<compile_context>
chip_gen: v6e
topology: v6e:2x2x1
jax: 0.10.0
libtpu: 0.0.40
codegen_flags: <defaults>
</compile_context>

<pallas_src>
import jax
import jax.numpy as jnp
from jax.experimental import pallas as pl
from jax.experimental.pallas import tpu as pltpu

INPUT_SIZE = 2
NUM_PARAM = 1
HIDDEN_SIZE = 20
DIN = INPUT_SIZE + NUM_PARAM
H_STEP = 1.0

LANES = 128            # lanes of a vreg
SUB = 8                # sublane rows per register-resident batch chunk
CHUNK = SUB * LANES    # 1024 batch elements per in-register chunk


def euler_kernel(x_ref, p_ref, w1_ref, b1_ref, w2_ref, b2_ref, w3_ref, b3_ref,
                 o_ref):
    """Batch on (sublane, lane); each feature is its own dense [S,128] plane.

    x_ref: [INPUT_SIZE, S, 128] VMEM     p_ref: [NUM_PARAM, S, 128] VMEM
    w*/b*: PyTorch-layout ([out, in]) weights / biases in SMEM (scalar reads)
    o_ref: [INPUT_SIZE, S, 128] VMEM (lane-dense stores)
    """
    n_chunks = x_ref.shape[1] // SUB  # static

    # --- Hoist ALL SMEM scalar reads out of the chunk loop (loop-invariant). ---
    w1 = [[w1_ref[j, k] for k in range(DIN)] for j in range(HIDDEN_SIZE)]
    b1 = [b1_ref[j] for j in range(HIDDEN_SIZE)]
    w2 = [[w2_ref[j, k] for k in range(HIDDEN_SIZE)] for j in range(HIDDEN_SIZE)]
    b2 = [b2_ref[j] for j in range(HIDDEN_SIZE)]
    w3 = [[w3_ref[j, k] for k in range(HIDDEN_SIZE)] for j in range(INPUT_SIZE)]
    b3 = [b3_ref[j] for j in range(INPUT_SIZE)]

    @pl.loop(0, n_chunks)
    def _(c):
        s = pl.multiple_of(c * SUB, SUB)
        rows = pl.ds(s, SUB)

        # DIN input feature planes for this chunk, each a dense [SUB, 128] block.
        feats = [x_ref[k, rows, :] for k in range(INPUT_SIZE)]
        feats += [p_ref[k, rows, :] for k in range(NUM_PARAM)]

        # lin1 + relu : scalar x vector FMAs on the VPU (no MXU padding).
        h1 = []
        for j in range(HIDDEN_SIZE):
            acc = w1[j][0] * feats[0]
            for k in range(1, DIN):
                acc = acc + w1[j][k] * feats[k]
            h1.append(jnp.maximum(acc + b1[j], 0.0))

        # lin2 + relu, with lin3 fused in: each h2[j] plane is consumed
        # immediately into the INPUT_SIZE output accumulators (caps vreg
        # liveness at ~26 instead of ~45).
        out = [None] * INPUT_SIZE
        for j in range(HIDDEN_SIZE):
            acc = w2[j][0] * h1[0]
            for k in range(1, HIDDEN_SIZE):
                acc = acc + w2[j][k] * h1[k]
            h2_j = jnp.maximum(acc + b2[j], 0.0)
            for i in range(INPUT_SIZE):
                term = w3[i][j] * h2_j
                out[i] = term if out[i] is None else out[i] + term

        # lin3 bias + Euler step (reuses the loaded x planes; lane-dense store).
        for i in range(INPUT_SIZE):
            f_i = out[i] + b3[i]
            o_ref[i, rows, :] = (feats[i] + H_STEP * f_i).astype(o_ref.dtype)


def _cdiv(a, b):
    return -(-a // b)


def euler_forward(x, p, params, *, n_steps=None, max_chunks_per_step=256):
    """x: [B, INPUT_SIZE], p: [B, NUM_PARAM] -> [B, INPUT_SIZE]."""
    B = x.shape[0]
    w1, b1, w2, b2, w3, b3 = params

    n_chunks_min = max(1, _cdiv(B, CHUNK))

    if n_steps is None:
        if n_chunks_min < 4:
            # Tiny batch: one big step amortizes the per-step overhead
            # (best on single-TC v5e/v6e; negligible work to shard on v7x).
            n_steps = 1
        else:
            # 2 balanced steps shard evenly across v7x's 2 TensorCores; more
            # steps only to keep per-step double-buffered VMEM bounded.
            n_steps = max(2, _cdiv(n_chunks_min, max_chunks_per_step))

    # Choose n_steps first, then round chunks up -> over-pad by < n_steps chunks.
    chunks_per_step = _cdiv(n_chunks_min, n_steps)
    n_chunks = n_steps * chunks_per_step
    B_pad = n_chunks * CHUNK
    nb = B_pad // LANES              # total sublane rows
    S = chunks_per_step * SUB        # sublane rows per grid step

    def to_planes(a):
        # [B, C] -> channel-major, lane-dense [C, nb, 128]  (layout plumbing;
        # fuses with the surrounding jit, the kernel never sees it)
        a = jnp.pad(a, ((0, B_pad - B), (0, 0)))
        return a.T.reshape(a.shape[1], nb, LANES)

    x_cm = to_planes(x)
    p_cm = to_planes(p)

    smem = pl.BlockSpec(memory_space=pltpu.MemorySpace.SMEM)

    out_cm = pl.pallas_call(
        euler_kernel,
        out_shape=jax.ShapeDtypeStruct((INPUT_SIZE, nb, LANES), x.dtype),
        grid_spec=pltpu.PrefetchScalarGridSpec(
            num_scalar_prefetch=0,
            grid=(n_steps,),
            in_specs=[
                pl.BlockSpec((INPUT_SIZE, S, LANES), lambda i: (0, i, 0)),  # x
                pl.BlockSpec((NUM_PARAM, S, LANES), lambda i: (0, i, 0)),   # p
                smem, smem,   # w1, b1
                smem, smem,   # w2, b2
                smem, smem,   # w3, b3
            ],
            out_specs=pl.BlockSpec((INPUT_SIZE, S, LANES), lambda i: (0, i, 0)),
        ),
        compiler_params=pltpu.CompilerParams(
            dimension_semantics=("parallel",)),
    )(x_cm, p_cm, w1, b1, w2, b2, w3, b3)

    # channel-major, padded -> [B, INPUT_SIZE]
    out = out_cm.reshape(INPUT_SIZE, B_pad).T[:B]
    return out


def init_params(key):
    """Deterministic init of PyTorch-shaped Linear params (weight: [out, in])."""
    k1, k2, k3, k4, k5, k6 = jax.random.split(key, 6)
    w1 = jax.random.normal(k1, (HIDDEN_SIZE, DIN), jnp.float32) * 0.1
    b1 = jax.random.normal(k2, (HIDDEN_SIZE,), jnp.float32) * 0.1
    w2 = jax.random.normal(k3, (HIDDEN_SIZE, HIDDEN_SIZE), jnp.float32) * 0.1
    b2 = jax.random.normal(k4, (HIDDEN_SIZE,), jnp.float32) * 0.1
    w3 = jax.random.normal(k5, (INPUT_SIZE, HIDDEN_SIZE), jnp.float32) * 0.1
    b3 = jax.random.normal(k6, (INPUT_SIZE,), jnp.float32) * 0.1
    return (w1, b1, w2, b2, w3, b3)


def euler_reference(x, p, params):
    """Pure-JAX reference matching the PyTorch forward exactly."""
    w1, b1, w2, b2, w3, b3 = params
    i = jnp.concatenate([x, p], axis=1)
    h1 = jnp.maximum(i @ w1.T + b1, 0.0)
    h2 = jnp.maximum(h1 @ w2.T + b2, 0.0)
    f = h2 @ w3.T + b3
    return x + H_STEP * f


if __name__ == "__main__":
    key = jax.random.PRNGKey(0)
    kx, kp, kparams = jax.random.split(key, 3)
    params = init_params(kparams)

    euler_jit = jax.jit(euler_forward)

    ok = True
    # B=2000: exercises padding + single-step path.
    # B=8192: exercises the 2-step (megacore-shardable) path.
    for B in (2000, 8192):
        kxb, kpb = jax.random.split(jax.random.fold_in(kx, B))
        x = jax.random.normal(kxb, (B, INPUT_SIZE), jnp.float32)
        p = jax.random.normal(kpb, (B, NUM_PARAM), jnp.float32)

        out = jax.block_until_ready(euler_jit(x, p, params))
        ref = euler_reference(x, p, params)

        assert out.shape == (B, INPUT_SIZE)
        if not jnp.allclose(out, ref, atol=2e-5, rtol=2e-5):
            ok = False
            print("MISMATCH B=%d max_abs_err=%e"
                  % (B, float(jnp.max(jnp.abs(out - ref)))))

    if ok:
        print("KERNEL_OK")
</pallas_src>

<mosaic_0001>
module attributes {stable_mosaic.version = 11 : i64} {
  func.func @euler_kernel(%arg0: i32, %arg1: memref<2x16x128xf32, #tpu.memory_space<vmem>>, %arg2: memref<1x16x128xf32, #tpu.memory_space<vmem>>, %arg3: memref<20x3xf32, #tpu.memory_space<smem>>, %arg4: memref<20xf32, #tpu.memory_space<smem>>, %arg5: memref<20x20xf32, #tpu.memory_space<smem>>, %arg6: memref<20xf32, #tpu.memory_space<smem>>, %arg7: memref<2x20xf32, #tpu.memory_space<smem>>, %arg8: memref<2xf32, #tpu.memory_space<smem>>, %arg9: memref<2x16x128xf32, #tpu.memory_space<vmem>>) attributes {dimension_semantics = [#tpu.dimension_semantics<parallel>], iteration_bounds = array<i64: 1>, scalar_prefetch = 0 : i64, scratch_operands = 0 : i64, tpu.core_type = #tpu.core_type<tc>, window_params = [{transform_indices = @transform_0, window_bounds = array<i64: 2, 16, 128>}, {transform_indices = @transform_1, window_bounds = array<i64: 1, 16, 128>}, {transform_indices = @transform_2, window_bounds = array<i64: 20, 3>}, {transform_indices = @transform_3, window_bounds = array<i64: 20>}, {transform_indices = @transform_4, window_bounds = array<i64: 20, 20>}, {transform_indices = @transform_5, window_bounds = array<i64: 20>}, {transform_indices = @transform_6, window_bounds = array<i64: 2, 20>}, {transform_indices = @transform_7, window_bounds = array<i64: 2>}, {transform_indices = @transform_8, window_bounds = array<i64: 2, 16, 128>}]} {
    %c0 = arith.constant 0 : index
    %c0_0 = arith.constant 0 : index
    %0 = memref.load %arg3[%c0, %c0_0] : memref<20x3xf32, #tpu.memory_space<smem>>
    %c0_1 = arith.constant 0 : index
    %c1 = arith.constant 1 : index
    %1 = memref.load %arg3[%c0_1, %c1] : memref<20x3xf32, #tpu.memory_space<smem>>
    %c0_2 = arith.constant 0 : index
    %c2 = arith.constant 2 : index
    %2 = memref.load %arg3[%c0_2, %c2] : memref<20x3xf32, #tpu.memory_space<smem>>
    %c1_3 = arith.constant 1 : index
    %c0_4 = arith.constant 0 : index
    %3 = memref.load %arg3[%c1_3, %c0_4] : memref<20x3xf32, #tpu.memory_space<smem>>
    %c1_5 = arith.constant 1 : index
    %c1_6 = arith.constant 1 : index
    %4 = memref.load %arg3[%c1_5, %c1_6] : memref<20x3xf32, #tpu.memory_space<smem>>
    %c1_7 = arith.constant 1 : index
    %c2_8 = arith.constant 2 : index
    %5 = memref.load %arg3[%c1_7, %c2_8] : memref<20x3xf32, #tpu.memory_space<smem>>
    %c2_9 = arith.constant 2 : index
    %c0_10 = arith.constant 0 : index
    %6 = memref.load %arg3[%c2_9, %c0_10] : memref<20x3xf32, #tpu.memory_space<smem>>
    %c2_11 = arith.constant 2 : index
    %c1_12 = arith.constant 1 : index
    %7 = memref.load %arg3[%c2_11, %c1_12] : memref<20x3xf32, #tpu.memory_space<smem>>
    %c2_13 = arith.constant 2 : index
    %c2_14 = arith.constant 2 : index
    %8 = memref.load %arg3[%c2_13, %c2_14] : memref<20x3xf32, #tpu.memory_space<smem>>
    %c3 = arith.constant 3 : index
    %c0_15 = arith.constant 0 : index
    %9 = memref.load %arg3[%c3, %c0_15] : memref<20x3xf32, #tpu.memory_space<smem>>
    %c3_16 = arith.constant 3 : index
    %c1_17 = arith.constant 1 : index
    %10 = memref.load %arg3[%c3_16, %c1_17] : memref<20x3xf32, #tpu.memory_space<smem>>
    %c3_18 = arith.constant 3 : index
    %c2_19 = arith.constant 2 : index
    %11 = memref.load %arg3[%c3_18, %c2_19] : memref<20x3xf32, #tpu.memory_space<smem>>
    %c4 = arith.constant 4 : index
    %c0_20 = arith.constant 0 : index
    %12 = memref.load %arg3[%c4, %c0_20] : memref<20x3xf32, #tpu.memory_space<smem>>
    %c4_21 = arith.constant 4 : index
    %c1_22 = arith.constant 1 : index
    %13 = memref.load %arg3[%c4_21, %c1_22] : memref<20x3xf32, #tpu.memory_space<smem>>
    %c4_23 = arith.constant 4 : index
    %c2_24 = arith.constant 2 : index
    %14 = memref.load %arg3[%c4_23, %c2_24] : memref<20x3xf32, #tpu.memory_space<smem>>
    %c5 = arith.constant 5 : index
    %c0_25 = arith.constant 0 : index
    %15 = memref.load %arg3[%c5, %c0_25] : memref<20x3xf32, #tpu.memory_space<smem>>
    %c5_26 = arith.constant 5 : index
    %c1_27 = arith.constant 1 : index
    %16 = memref.load %arg3[%c5_26, %c1_27] : memref<20x3xf32, #tpu.memory_space<smem>>
    %c5_28 = arith.constant 5 : index
    %c2_29 = arith.constant 2 : index
    %17 = memref.load %arg3[%c5_28, %c2_29] : memref<20x3xf32, #tpu.memory_space<smem>>
    %c6 = arith.constant 6 : index
    %c0_30 = arith.constant 0 : index
    %18 = memref.load %arg3[%c6, %c0_30] : memref<20x3xf32, #tpu.memory_space<smem>>
    %c6_31 = arith.constant 6 : index
    %c1_32 = arith.constant 1 : index
    %19 = memref.load %arg3[%c6_31, %c1_32] : memref<20x3xf32, #tpu.memory_space<smem>>
    %c6_33 = arith.constant 6 : index
    %c2_34 = arith.constant 2 : index
    %20 = memref.load %arg3[%c6_33, %c2_34] : memref<20x3xf32, #tpu.memory_space<smem>>
    %c7 = arith.constant 7 : index
    %c0_35 = arith.constant 0 : index
    %21 = memref.load %arg3[%c7, %c0_35] : memref<20x3xf32, #tpu.memory_space<smem>>
    %c7_36 = arith.constant 7 : index
    %c1_37 = arith.constant 1 : index
    %22 = memref.load %arg3[%c7_36, %c1_37] : memref<20x3xf32, #tpu.memory_space<smem>>
    %c7_38 = arith.constant 7 : index
    %c2_39 = arith.constant 2 : index
    %23 = memref.load %arg3[%c7_38, %c2_39] : memref<20x3xf32, #tpu.memory_space<smem>>
    %c8 = arith.constant 8 : index
    %c0_40 = arith.constant 0 : index
    %24 = memref.load %arg3[%c8, %c0_40] : memref<20x3xf32, #tpu.memory_space<smem>>
    %c8_41 = arith.constant 8 : index
    %c1_42 = arith.constant 1 : index
    %25 = memref.load %arg3[%c8_41, %c1_42] : memref<20x3xf32, #tpu.memory_space<smem>>
    %c8_43 = arith.constant 8 : index
    %c2_44 = arith.constant 2 : index
    %26 = memref.load %arg3[%c8_43, %c2_44] : memref<20x3xf32, #tpu.memory_space<smem>>
    %c9 = arith.constant 9 : index
    %c0_45 = arith.constant 0 : index
    %27 = memref.load %arg3[%c9, %c0_45] : memref<20x3xf32, #tpu.memory_space<smem>>
    %c9_46 = arith.constant 9 : index
    %c1_47 = arith.constant 1 : index
    %28 = memref.load %arg3[%c9_46, %c1_47] : memref<20x3xf32, #tpu.memory_space<smem>>
    %c9_48 = arith.constant 9 : index
    %c2_49 = arith.constant 2 : index
    %29 = memref.load %arg3[%c9_48, %c2_49] : memref<20x3xf32, #tpu.memory_space<smem>>
    %c10 = arith.constant 10 : index
    %c0_50 = arith.constant 0 : index
    %30 = memref.load %arg3[%c10, %c0_50] : memref<20x3xf32, #tpu.memory_space<smem>>
    %c10_51 = arith.constant 10 : index
    %c1_52 = arith.constant 1 : index
    %31 = memref.load %arg3[%c10_51, %c1_52] : memref<20x3xf32, #tpu.memory_space<smem>>
    %c10_53 = arith.constant 10 : index
    %c2_54 = arith.constant 2 : index
    %32 = memref.load %arg3[%c10_53, %c2_54] : memref<20x3xf32, #tpu.memory_space<smem>>
    %c11 = arith.constant 11 : index
    %c0_55 = arith.constant 0 : index
    %33 = memref.load %arg3[%c11, %c0_55] : memref<20x3xf32, #tpu.memory_space<smem>>
    %c11_56 = arith.constant 11 : index
    %c1_57 = arith.constant 1 : index
    %34 = memref.load %arg3[%c11_56, %c1_57] : memref<20x3xf32, #tpu.memory_space<smem>>
    %c11_58 = arith.constant 11 : index
    %c2_59 = arith.constant 2 : index
    %35 = memref.load %arg3[%c11_58, %c2_59] : memref<20x3xf32, #tpu.memory_space<smem>>
    %c12 = arith.constant 12 : index
    %c0_60 = arith.constant 0 : index
    %36 = memref.load %arg3[%c12, %c0_60] : memref<20x3xf32, #tpu.memory_space<smem>>
    %c12_61 = arith.constant 12 : index
    %c1_62 = arith.constant 1 : index
    %37 = memref.load %arg3[%c12_61, %c1_62] : memref<20x3xf32, #tpu.memory_space<smem>>
    %c12_63 = arith.constant 12 : index
    %c2_64 = arith.constant 2 : index
    %38 = memref.load %arg3[%c12_63, %c2_64] : memref<20x3xf32, #tpu.memory_space<smem>>
    %c13 = arith.constant 13 : index
    %c0_65 = arith.constant 0 : index
    %39 = memref.load %arg3[%c13, %c0_65] : memref<20x3xf32, #tpu.memory_space<smem>>
    %c13_66 = arith.constant 13 : index
    %c1_67 = arith.constant 1 : index
    %40 = memref.load %arg3[%c13_66, %c1_67] : memref<20x3xf32, #tpu.memory_space<smem>>
    %c13_68 = arith.constant 13 : index
    %c2_69 = arith.constant 2 : index
    %41 = memref.load %arg3[%c13_68, %c2_69] : memref<20x3xf32, #tpu.memory_space<smem>>
    %c14 = arith.constant 14 : index
    %c0_70 = arith.constant 0 : index
    %42 = memref.load %arg3[%c14, %c0_70] : memref<20x3xf32, #tpu.memory_space<smem>>
    %c14_71 = arith.constant 14 : index
    %c1_72 = arith.constant 1 : index
    %43 = memref.load %arg3[%c14_71, %c1_72] : memref<20x3xf32, #tpu.memory_space<smem>>
    %c14_73 = arith.constant 14 : index
    %c2_74 = arith.constant 2 : index
    %44 = memref.load %arg3[%c14_73, %c2_74] : memref<20x3xf32, #tpu.memory_space<smem>>
    %c15 = arith.constant 15 : index
    %c0_75 = arith.constant 0 : index
    %45 = memref.load %arg3[%c15, %c0_75] : memref<20x3xf32, #tpu.memory_space<smem>>
    %c15_76 = arith.constant 15 : index
    %c1_77 = arith.constant 1 : index
    %46 = memref.load %arg3[%c15_76, %c1_77] : memref<20x3xf32, #tpu.memory_space<smem>>
    %c15_78 = arith.constant 15 : index
    %c2_79 = arith.constant 2 : index
    %47 = memref.load %arg3[%c15_78, %c2_79] : memref<20x3xf32, #tpu.memory_space<smem>>
    %c16 = arith.constant 16 : index
    %c0_80 = arith.constant 0 : index
    %48 = memref.load %arg3[%c16, %c0_80] : memref<20x3xf32, #tpu.memory_space<smem>>
    %c16_81 = arith.constant 16 : index
    %c1_82 = arith.constant 1 : index
    %49 = memref.load %arg3[%c16_81, %c1_82] : memref<20x3xf32, #tpu.memory_space<smem>>
    %c16_83 = arith.constant 16 : index
    %c2_84 = arith.constant 2 : index
    %50 = memref.load %arg3[%c16_83, %c2_84] : memref<20x3xf32, #tpu.memory_space<smem>>
    %c17 = arith.constant 17 : index
    %c0_85 = arith.constant 0 : index
    %51 = memref.load %arg3[%c17, %c0_85] : memref<20x3xf32, #tpu.memory_space<smem>>
    %c17_86 = arith.constant 17 : index
    %c1_87 = arith.constant 1 : index
    %52 = memref.load %arg3[%c17_86, %c1_87] : memref<20x3xf32, #tpu.memory_space<smem>>
    %c17_88 = arith.constant 17 : index
    %c2_89 = arith.constant 2 : index
    %53 = memref.load %arg3[%c17_88, %c2_89] : memref<20x3xf32, #tpu.memory_space<smem>>
    %c18 = arith.constant 18 : index
    %c0_90 = arith.constant 0 : index
    %54 = memref.load %arg3[%c18, %c0_90] : memref<20x3xf32, #tpu.memory_space<smem>>
    %c18_91 = arith.constant 18 : index
    %c1_92 = arith.constant 1 : index
    %55 = memref.load %arg3[%c18_91, %c1_92] : memref<20x3xf32, #tpu.memory_space<smem>>
    %c18_93 = arith.constant 18 : index
    %c2_94 = arith.constant 2 : index
    %56 = memref.load %arg3[%c18_93, %c2_94] : memref<20x3xf32, #tpu.memory_space<smem>>
    %c19 = arith.constant 19 : index
    %c0_95 = arith.constant 0 : index
    %57 = memref.load %arg3[%c19, %c0_95] : memref<20x3xf32, #tpu.memory_space<smem>>
    %c19_96 = arith.constant 19 : index
    %c1_97 = arith.constant 1 : index
    %58 = memref.load %arg3[%c19_96, %c1_97] : memref<20x3xf32, #tpu.memory_space<smem>>
    %c19_98 = arith.constant 19 : index
    %c2_99 = arith.constant 2 : index
    %59 = memref.load %arg3[%c19_98, %c2_99] : memref<20x3xf32, #tpu.memory_space<smem>>
    %c0_100 = arith.constant 0 : index
    %60 = memref.load %arg4[%c0_100] : memref<20xf32, #tpu.memory_space<smem>>
    %c1_101 = arith.constant 1 : index
    %61 = memref.load %arg4[%c1_101] : memref<20xf32, #tpu.memory_space<smem>>
    %c2_102 = arith.constant 2 : index
    %62 = memref.load %arg4[%c2_102] : memref<20xf32, #tpu.memory_space<smem>>
    %c3_103 = arith.constant 3 : index
    %63 = memref.load %arg4[%c3_103] : memref<20xf32, #tpu.memory_space<smem>>
    %c4_104 = arith.constant 4 : index
    %64 = memref.load %arg4[%c4_104] : memref<20xf32, #tpu.memory_space<smem>>
    %c5_105 = arith.constant 5 : index
    %65 = memref.load %arg4[%c5_105] : memref<20xf32, #tpu.memory_space<smem>>
    %c6_106 = arith.constant 6 : index
    %66 = memref.load %arg4[%c6_106] : memref<20xf32, #tpu.memory_space<smem>>
    %c7_107 = arith.constant 7 : index
    %67 = memref.load %arg4[%c7_107] : memref<20xf32, #tpu.memory_space<smem>>
    %c8_108 = arith.constant 8 : index
    %68 = memref.load %arg4[%c8_108] : memref<20xf32, #tpu.memory_space<smem>>
    %c9_109 = arith.constant 9 : index
    %69 = memref.load %arg4[%c9_109] : memref<20xf32, #tpu.memory_space<smem>>
    %c10_110 = arith.constant 10 : index
    %70 = memref.load %arg4[%c10_110] : memref<20xf32, #tpu.memory_space<smem>>
    %c11_111 = arith.constant 11 : index
    %71 = memref.load %arg4[%c11_111] : memref<20xf32, #tpu.memory_space<smem>>
    %c12_112 = arith.constant 12 : index
    %72 = memref.load %arg4[%c12_112] : memref<20xf32, #tpu.memory_space<smem>>
    %c13_113 = arith.constant 13 : index
    %73 = memref.load %arg4[%c13_113] : memref<20xf32, #tpu.memory_space<smem>>
    %c14_114 = arith.constant 14 : index
    %74 = memref.load %arg4[%c14_114] : memref<20xf32, #tpu.memory_space<smem>>
    %c15_115 = arith.constant 15 : index
    %75 = memref.load %arg4[%c15_115] : memref<20xf32, #tpu.memory_space<smem>>
    %c16_116 = arith.constant 16 : index
    %76 = memref.load %arg4[%c16_116] : memref<20xf32, #tpu.memory_space<smem>>
    %c17_117 = arith.constant 17 : index
    %77 = memref.load %arg4[%c17_117] : memref<20xf32, #tpu.memory_space<smem>>
    %c18_118 = arith.constant 18 : index
    %78 = memref.load %arg4[%c18_118] : memref<20xf32, #tpu.memory_space<smem>>
    %c19_119 = arith.constant 19 : index
    %79 = memref.load %arg4[%c19_119] : memref<20xf32, #tpu.memory_space<smem>>
    %c0_120 = arith.constant 0 : index
    %c0_121 = arith.constant 0 : index
    %80 = memref.load %arg5[%c0_120, %c0_121] : memref<20x20xf32, #tpu.memory_space<smem>>
    %c0_122 = arith.constant 0 : index
    %c1_123 = arith.constant 1 : index
    %81 = memref.load %arg5[%c0_122, %c1_123] : memref<20x20xf32, #tpu.memory_space<smem>>
    %c0_124 = arith.constant 0 : index
    %c2_125 = arith.constant 2 : index
    %82 = memref.load %arg5[%c0_124, %c2_125] : memref<20x20xf32, #tpu.memory_space<smem>>
    %c0_126 = arith.constant 0 : index
    %c3_127 = arith.constant 3 : index
    %83 = memref.load %arg5[%c0_126, %c3_127] : memref<20x20xf32, #tpu.memory_space<smem>>
    %c0_128 = arith.constant 0 : index
    %c4_129 = arith.constant 4 : index
    %84 = memref.load %arg5[%c0_128, %c4_129] : memref<20x20xf32, #tpu.memory_space<smem>>
    %c0_130 = arith.constant 0 : index
    %c5_131 = arith.constant 5 : index
    %85 = memref.load %arg5[%c0_130, %c5_131] : memref<20x20xf32, #tpu.memory_space<smem>>
    %c0_132 = arith.constant 0 : index
    %c6_133 = arith.constant 6 : index
    %86 = memref.load %arg5[%c0_132, %c6_133] : memref<20x20xf32, #tpu.memory_space<smem>>
    %c0_134 = arith.constant 0 : index
    %c7_135 = arith.constant 7 : index
    %87 = memref.load %arg5[%c0_134, %c7_135] : memref<20x20xf32, #tpu.memory_space<smem>>
    %c0_136 = arith.constant 0 : index
    %c8_137 = arith.constant 8 : index
    %88 = memref.load %arg5[%c0_136, %c8_137] : memref<20x20xf32, #tpu.memory_space<smem>>
    %c0_138 = arith.constant 0 : index
    %c9_139 = arith.constant 9 : index
    %89 = memref.load %arg5[%c0_138, %c9_139] : memref<20x20xf32, #tpu.memory_space<smem>>
    %c0_140 = arith.constant 0 : index
    %c10_141 = arith.constant 10 : index
    %90 = memref.load %arg5[%c0_140, %c10_141] : memref<20x20xf32, #tpu.memory_space<smem>>
    %c0_142 = arith.constant 0 : index
    %c11_143 = arith.constant 11 : index
    %91 = memref.load %arg5[%c0_142, %c11_143] : memref<20x20xf32, #tpu.memory_space<smem>>
    %c0_144 = arith.constant 0 : index
    %c12_145 = arith.constant 12 : index
    %92 = memref.load %arg5[%c0_144, %c12_145] : memref<20x20xf32, #tpu.memory_space<smem>>
    %c0_146 = arith.constant 0 : index
    %c13_147 = arith.constant 13 : index
    %93 = memref.load %arg5[%c0_146, %c13_147] : memref<20x20xf32, #tpu.memory_space<smem>>
    %c0_148 = arith.constant 0 : index
    %c14_149 = arith.constant 14 : index
    %94 = memref.load %arg5[%c0_148, %c14_149] : memref<20x20xf32, #tpu.memory_space<smem>>
    %c0_150 = arith.constant 0 : index
    %c15_151 = arith.constant 15 : index
    %95 = memref.load %arg5[%c0_150, %c15_151] : memref<20x20xf32, #tpu.memory_space<smem>>
    %c0_152 = arith.constant 0 : index
    %c16_153 = arith.constant 16 : index
    %96 = memref.load %arg5[%c0_152, %c16_153] : memref<20x20xf32, #tpu.memory_space<smem>>
    %c0_154 = arith.constant 0 : index
    %c17_155 = arith.constant 17 : index
    %97 = memref.load %arg5[%c0_154, %c17_155] : memref<20x20xf32, #tpu.memory_space<smem>>
    %c0_156 = arith.constant 0 : index
    %c18_157 = arith.constant 18 : index
    %98 = memref.load %arg5[%c0_156, %c18_157] : memref<20x20xf32, #tpu.memory_space<smem>>
    %c0_158 = arith.constant 0 : index
    %c19_159 = arith.constant 19 : index
    %99 = memref.load %arg5[%c0_158, %c19_159] : memref<20x20xf32, #tpu.memory_space<smem>>
    %c1_160 = arith.constant 1 : index
    %c0_161 = arith.constant 0 : index
    %100 = memref.load %arg5[%c1_160, %c0_161] : memref<20x20xf32, #tpu.memory_space<smem>>
    %c1_162 = arith.constant 1 : index
    %c1_163 = arith.constant 1 : index
    %101 = memref.load %arg5[%c1_162, %c1_163] : memref<20x20xf32, #tpu.memory_space<smem>>
    %c1_164 = arith.constant 1 : index
    %c2_165 = arith.constant 2 : index
    %102 = memref.load %arg5[%c1_164, %c2_165] : memref<20x20xf32, #tpu.memory_space<smem>>
    %c1_166 = arith.constant 1 : index
    %c3_167 = arith.constant 3 : index
    %103 = memref.load %arg5[%c1_166, %c3_167] : memref<20x20xf32, #tpu.memory_space<smem>>
    %c1_168 = arith.constant 1 : index
    %c4_169 = arith.constant 4 : index
    %104 = memref.load %arg5[%c1_168, %c4_169] : memref<20x20xf32, #tpu.memory_space<smem>>
    %c1_170 = arith.constant 1 : index
    %c5_171 = arith.constant 5 : index
    %105 = memref.load %arg5[%c1_170, %c5_171] : memref<20x20xf32, #tpu.memory_space<smem>>
    %c1_172 = arith.constant 1 : index
    %c6_173 = arith.constant 6 : index
    %106 = memref.load %arg5[%c1_172, %c6_173] : memref<20x20xf32, #tpu.memory_space<smem>>
    %c1_174 = arith.constant 1 : index
    %c7_175 = arith.constant 7 : index
    %107 = memref.load %arg5[%c1_174, %c7_175] : memref<20x20xf32, #tpu.memory_space<smem>>
    %c1_176 = arith.constant 1 : index
    %c8_177 = arith.constant 8 : index
    %108 = memref.load %arg5[%c1_176, %c8_177] : memref<20x20xf32, #tpu.memory_space<smem>>
    %c1_178 = arith.constant 1 : index
    %c9_179 = arith.constant 9 : index
    %109 = memref.load %arg5[%c1_178, %c9_179] : memref<20x20xf32, #tpu.memory_space<smem>>
    %c1_180 = arith.constant 1 : index
    %c10_181 = arith.constant 10 : index
    %110 = memref.load %arg5[%c1_180, %c10_181] : memref<20x20xf32, #tpu.memory_space<smem>>
    %c1_182 = arith.constant 1 : index
    %c11_183 = arith.constant 11 : index
    %111 = memref.load %arg5[%c1_182, %c11_183] : memref<20x20xf32, #tpu.memory_space<smem>>
    %c1_184 = arith.constant 1 : index
    %c12_185 = arith.constant 12 : index
    %112 = memref.load %arg5[%c1_184, %c12_185] : memref<20x20xf32, #tpu.memory_space<smem>>
    %c1_186 = arith.constant 1 : index
    %c13_187 = arith.constant 13 : index
    %113 = memref.load %arg5[%c1_186, %c13_187] : memref<20x20xf32, #tpu.memory_space<smem>>
    %c1_188 = arith.constant 1 : index
    %c14_189 = arith.constant 14 : index
    %114 = memref.load %arg5[%c1_188, %c14_189] : memref<20x20xf32, #tpu.memory_space<smem>>
    %c1_190 = arith.constant 1 : index
    %c15_191 = arith.constant 15 : index
    %115 = memref.load %arg5[%c1_190, %c15_191] : memref<20x20xf32, #tpu.memory_space<smem>>
    %c1_192 = arith.constant 1 : index
    %c16_193 = arith.constant 16 : index
    %116 = memref.load %arg5[%c1_192, %c16_193] : memref<20x20xf32, #tpu.memory_space<smem>>
    %c1_194 = arith.constant 1 : index
    %c17_195 = arith.constant 17 : index
    %117 = memref.load %arg5[%c1_194, %c17_195] : memref<20x20xf32, #tpu.memory_space<smem>>
    %c1_196 = arith.constant 1 : index
    %c18_197 = arith.constant 18 : index
    %118 = memref.load %arg5[%c1_196, %c18_197] : memref<20x20xf32, #tpu.memory_space<smem>>
    %c1_198 = arith.constant 1 : index
    %c19_199 = arith.constant 19 : index
    %119 = memref.load %arg5[%c1_198, %c19_199] : memref<20x20xf32, #tpu.memory_space<smem>>
    %c2_200 = arith.constant 2 : index
    %c0_201 = arith.constant 0 : index
    %120 = memref.load %arg5[%c2_200, %c0_201] : memref<20x20xf32, #tpu.memory_space<smem>>
    %c2_202 = arith.constant 2 : index
    %c1_203 = arith.constant 1 : index
    %121 = memref.load %arg5[%c2_202, %c1_203] : memref<20x20xf32, #tpu.memory_space<smem>>
    %c2_204 = arith.constant 2 : index
    %c2_205 = arith.constant 2 : index
    %122 = memref.load %arg5[%c2_204, %c2_205] : memref<20x20xf32, #tpu.memory_space<smem>>
    %c2_206 = arith.constant 2 : index
    %c3_207 = arith.constant 3 : index
    %123 = memref.load %arg5[%c2_206, %c3_207] : memref<20x20xf32, #tpu.memory_space<smem>>
    %c2_208 = arith.constant 2 : index
    %c4_209 = arith.constant 4 : index
    %124 = memref.load %arg5[%c2_208, %c4_209] : memref<20x20xf32, #tpu.memory_space<smem>>
    %c2_210 = arith.constant 2 : index
    %c5_211 = arith.constant 5 : index
    %125 = memref.load %arg5[%c2_210, %c5_211] : memref<20x20xf32, #tpu.memory_space<smem>>
    %c2_212 = arith.constant 2 : index
    %c6_213 = arith.constant 6 : index
    %126 = memref.load %arg5[%c2_212, %c6_213] : memref<20x20xf32, #tpu.memory_space<smem>>
    %c2_214 = arith.constant 2 : index
    %c7_215 = arith.constant 7 : index
    %127 = memref.load %arg5[%c2_214, %c7_215] : memref<20x20xf32, #tpu.memory_space<smem>>
    %c2_216 = arith.constant 2 : index
    %c8_217 = arith.constant 8 : index
    %128 = memref.load %arg5[%c2_216, %c8_217] : memref<20x20xf32, #tpu.memory_space<smem>>
    %c2_218 = arith.constant 2 : index
    %c9_219 = arith.constant 9 : index
    %129 = memref.load %arg5[%c2_218, %c9_219] : memref<20x20xf32, #tpu.memory_space<smem>>
    %c2_220 = arith.constant 2 : index
    %c10_221 = arith.constant 10 : index
    %130 = memref.load %arg5[%c2_220, %c10_221] : memref<20x20xf32, #tpu.memory_space<smem>>
    %c2_222 = arith.constant 2 : index
    %c11_223 = arith.constant 11 : index
    %131 = memref.load %arg5[%c2_222, %c11_223] : memref<20x20xf32, #tpu.memory_space<smem>>
    %c2_224 = arith.constant 2 : index
    %c12_225 = arith.constant 12 : index
    %132 = memref.load %arg5[%c2_224, %c12_225] : memref<20x20xf32, #tpu.memory_space<smem>>
    %c2_226 = arith.constant 2 : index
    %c13_227 = arith.constant 13 : index
    %133 = memref.load %arg5[%c2_226, %c13_227] : memref<20x20xf32, #tpu.memory_space<smem>>
    %c2_228 = arith.constant 2 : index
    %c14_229 = arith.constant 14 : index
    %134 = memref.load %arg5[%c2_228, %c14_229] : memref<20x20xf32, #tpu.memory_space<smem>>
    %c2_230 = arith.constant 2 : index
    %c15_231 = arith.constant 15 : index
    %135 = memref.load %arg5[%c2_230, %c15_231] : memref<20x20xf32, #tpu.memory_space<smem>>
    %c2_232 = arith.constant 2 : index
    %c16_233 = arith.constant 16 : index
    %136 = memref.load %arg5[%c2_232, %c16_233] : memref<20x20xf32, #tpu.memory_space<smem>>
    %c2_234 = arith.constant 2 : index
    %c17_235 = arith.constant 17 : index
    %137 = memref.load %arg5[%c2_234, %c17_235] : memref<20x20xf32, #tpu.memory_space<smem>>
    %c2_236 = arith.constant 2 : index
    %c18_237 = arith.constant 18 : index
    %138 = memref.load %arg5[%c2_236, %c18_237] : memref<20x20xf32, #tpu.memory_space<smem>>
    %c2_238 = arith.constant 2 : index
    %c19_239 = arith.constant 19 : index
    %139 = memref.load %arg5[%c2_238, %c19_239] : memref<20x20xf32, #tpu.memory_space<smem>>
    %c3_240 = arith.constant 3 : index
    %c0_241 = arith.constant 0 : index
    %140 = memref.load %arg5[%c3_240, %c0_241] : memref<20x20xf32, #tpu.memory_space<smem>>
    %c3_242 = arith.constant 3 : index
    %c1_243 = arith.constant 1 : index
    %141 = memref.load %arg5[%c3_242, %c1_243] : memref<20x20xf32, #tpu.memory_space<smem>>
    %c3_244 = arith.constant 3 : index
    %c2_245 = arith.constant 2 : index
    %142 = memref.load %arg5[%c3_244, %c2_245] : memref<20x20xf32, #tpu.memory_space<smem>>
    %c3_246 = arith.constant 3 : index
    %c3_247 = arith.constant 3 : index
    %143 = memref.load %arg5[%c3_246, %c3_247] : memref<20x20xf32, #tpu.memory_space<smem>>
    %c3_248 = arith.constant 3 : index
    %c4_249 = arith.constant 4 : index
    %144 = memref.load %arg5[%c3_248, %c4_249] : memref<20x20xf32, #tpu.memory_space<smem>>
    %c3_250 = arith.constant 3 : index
    %c5_251 = arith.constant 5 : index
    %145 = memref.load %arg5[%c3_250, %c5_251] : memref<20x20xf32, #tpu.memory_space<smem>>
    %c3_252 = arith.constant 3 : index
    %c6_253 = arith.constant 6 : index
    %146 = memref.load %arg5[%c3_252, %c6_253] : memref<20x20xf32, #tpu.memory_space<smem>>
    %c3_254 = arith.constant 3 : index
    %c7_255 = arith.constant 7 : index
    %147 = memref.load %arg5[%c3_254, %c7_255] : memref<20x20xf32, #tpu.memory_space<smem>>
    %c3_256 = arith.constant 3 : index
    %c8_257 = arith.constant 8 : index
    %148 = memref.load %arg5[%c3_256, %c8_257] : memref<20x20xf32, #tpu.memory_space<smem>>
    %c3_258 = arith.constant 3 : index
    %c9_259 = arith.constant 9 : index
    %149 = memref.load %arg5[%c3_258, %c9_259] : memref<20x20xf32, #tpu.memory_space<smem>>
    %c3_260 = arith.constant 3 : index
    %c10_261 = arith.constant 10 : index
    %150 = memref.load %arg5[%c3_260, %c10_261] : memref<20x20xf32, #tpu.memory_space<smem>>
    %c3_262 = arith.constant 3 : index
    %c11_263 = arith.constant 11 : index
    %151 = memref.load %arg5[%c3_262, %c11_263] : memref<20x20xf32, #tpu.memory_space<smem>>
    %c3_264 = arith.constant 3 : index
    %c12_265 = arith.constant 12 : index
    %152 = memref.load %arg5[%c3_264, %c12_265] : memref<20x20xf32, #tpu.memory_space<smem>>
    %c3_266 = arith.constant 3 : index
    %c13_267 = arith.constant 13 : index
    %153 = memref.load %arg5[%c3_266, %c13_267] : memref<20x20xf32, #tpu.memory_space<smem>>
    %c3_268 = arith.constant 3 : index
    %c14_269 = arith.constant 14 : index
    %154 = memref.load %arg5[%c3_268, %c14_269] : memref<20x20xf32, #tpu.memory_space<smem>>
    %c3_270 = arith.constant 3 : index
    %c15_271 = arith.constant 15 : index
    %155 = memref.load %arg5[%c3_270, %c15_271] : memref<20x20xf32, #tpu.memory_space<smem>>
    %c3_272 = arith.constant 3 : index
    %c16_273 = arith.constant 16 : index
    %156 = memref.load %arg5[%c3_272, %c16_273] : memref<20x20xf32, #tpu.memory_space<smem>>
    %c3_274 = arith.constant 3 : index
    %c17_275 = arith.constant 17 : index
    %157 = memref.load %arg5[%c3_274, %c17_275] : memref<20x20xf32, #tpu.memory_space<smem>>
    %c3_276 = arith.constant 3 : index
    %c18_277 = arith.constant 18 : index
    %158 = memref.load %arg5[%c3_276, %c18_277] : memref<20x20xf32, #tpu.memory_space<smem>>
    %c3_278 = arith.constant 3 : index
    %c19_279 = arith.constant 19 : index
    %159 = memref.load %arg5[%c3_278, %c19_279] : memref<20x20xf32, #tpu.memory_space<smem>>
    %c4_280 = arith.constant 4 : index
    %c0_281 = arith.constant 0 : index
    %160 = memref.load %arg5[%c4_280, %c0_281] : memref<20x20xf32, #tpu.memory_space<smem>>
    %c4_282 = arith.constant 4 : index
    %c1_283 = arith.constant 1 : index
    %161 = memref.load %arg5[%c4_282, %c1_283] : memref<20x20xf32, #tpu.memory_space<smem>>
    %c4_284 = arith.constant 4 : index
    %c2_285 = arith.constant 2 : index
    %162 = memref.load %arg5[%c4_284, %c2_285] : memref<20x20xf32, #tpu.memory_space<smem>>
    %c4_286 = arith.constant 4 : index
    %c3_287 = arith.constant 3 : index
    %163 = memref.load %arg5[%c4_286, %c3_287] : memref<20x20xf32, #tpu.memory_space<smem>>
    %c4_288 = arith.constant 4 : index
    %c4_289 = arith.constant 4 : index
    %164 = memref.load %arg5[%c4_288, %c4_289] : memref<20x20xf32, #tpu.memory_space<smem>>
    %c4_290 = arith.constant 4 : index
    %c5_291 = arith.constant 5 : index
    %165 = memref.load %arg5[%c4_290, %c5_291] : memref<20x20xf32, #tpu.memory_space<smem>>
    %c4_292 = arith.constant 4 : index
    %c6_293 = arith.constant 6 : index
    %166 = memref.load %arg5[%c4_292, %c6_293] : memref<20x20xf32, #tpu.memory_space<smem>>
    %c4_294 = arith.constant 4 : index
    %c7_295 = arith.constant 7 : index
    %167 = memref.load %arg5[%c4_294, %c7_295] : memref<20x20xf32, #tpu.memory_space<smem>>
    %c4_296 = arith.constant 4 : index
    %c8_297 = arith.constant 8 : index
    %168 = memref.load %arg5[%c4_296, %c8_297] : memref<20x20xf32, #tpu.memory_space<smem>>
    %c4_298 = arith.constant 4 : index
    %c9_299 = arith.constant 9 : index
    %169 = memref.load %arg5[%c4_298, %c9_299] : memref<20x20xf32, #tpu.memory_space<smem>>
    %c4_300 = arith.constant 4 : index
    %c10_301 = arith.constant 10 : index
    %170 = memref.load %arg5[%c4_300, %c10_301] : memref<20x20xf32, #tpu.memory_space<smem>>
    %c4_302 = arith.constant 4 : index
    %c11_303 = arith.constant 11 : index
    %171 = memref.load %arg5[%c4_302, %c11_303] : memref<20x20xf32, #tpu.memory_space<smem>>
    %c4_304 = arith.constant 4 : index
    %c12_305 = arith.constant 12 : index
    %172 = memref.load %arg5[%c4_304, %c12_305] : memref<20x20xf32, #tpu.memory_space<smem>>
    %c4_306 = arith.constant 4 : index
    %c13_307 = arith.constant 13 : index
    %173 = memref.load %arg5[%c4_306, %c13_307] : memref<20x20xf32, #tpu.memory_space<smem>>
    %c4_308 = arith.constant 4 : index
    %c14_309 = arith.constant 14 : index
    %174 = memref.load %arg5[%c4_308, %c14_309] : memref<20x20xf32, #tpu.memory_space<smem>>
    %c4_310 = arith.constant 4 : index
    %c15_311 = arith.constant 15 : index
    %175 = memref.load %arg5[%c4_310, %c15_311] : memref<20x20xf32, #tpu.memory_space<smem>>
    %c4_312 = arith.constant 4 : index
    %c16_313 = arith.constant 16 : index
    %176 = memref.load %arg5[%c4_312, %c16_313] : memref<20x20xf32, #tpu.memory_space<smem>>
    %c4_314 = arith.constant 4 : index
    %c17_315 = arith.constant 17 : index
    %177 = memref.load %arg5[%c4_314, %c17_315] : memref<20x20xf32, #tpu.memory_space<smem>>
    %c4_316 = arith.constant 4 : index
    %c18_317 = arith.constant 18 : index
    %178 = memref.load %arg5[%c4_316, %c18_317] : memref<20x20xf32, #tpu.memory_space<smem>>
    %c4_318 = arith.constant 4 : index
    %c19_319 = arith.constant 19 : index
    %179 = memref.load %arg5[%c4_318, %c19_319] : memref<20x20xf32, #tpu.memory_space<smem>>
    %c5_320 = arith.constant 5 : index
    %c0_321 = arith.constant 0 : index
    %180 = memref.load %arg5[%c5_320, %c0_321] : memref<20x20xf32, #tpu.memory_space<smem>>
    %c5_322 = arith.constant 5 : index
    %c1_323 = arith.constant 1 : index
    %181 = memref.load %arg5[%c5_322, %c1_323] : memref<20x20xf32, #tpu.memory_space<smem>>
    %c5_324 = arith.constant 5 : index
    %c2_325 = arith.constant 2 : index
    %182 = memref.load %arg5[%c5_324, %c2_325] : memref<20x20xf32, #tpu.memory_space<smem>>
    %c5_326 = arith.constant 5 : index
    %c3_327 = arith.constant 3 : index
    %183 = memref.load %arg5[%c5_326, %c3_327] : memref<20x20xf32, #tpu.memory_space<smem>>
    %c5_328 = arith.constant 5 : index
    %c4_329 = arith.constant 4 : index
    %184 = memref.load %arg5[%c5_328, %c4_329] : memref<20x20xf32, #tpu.memory_space<smem>>
    %c5_330 = arith.constant 5 : index
    %c5_331 = arith.constant 5 : index
    %185 = memref.load %arg5[%c5_330, %c5_331] : memref<20x20xf32, #tpu.memory_space<smem>>
    %c5_332 = arith.constant 5 : index
    %c6_333 = arith.constant 6 : index
    %186 = memref.load %arg5[%c5_332, %c6_333] : memref<20x20xf32, #tpu.memory_space<smem>>
    %c5_334 = arith.constant 5 : index
    %c7_335 = arith.constant 7 : index
    %187 = memref.load %arg5[%c5_334, %c7_335] : memref<20x20xf32, #tpu.memory_space<smem>>
    %c5_336 = arith.constant 5 : index
    %c8_337 = arith.constant 8 : index
    %188 = memref.load %arg5[%c5_336, %c8_337] : memref<20x20xf32, #tpu.memory_space<smem>>
    %c5_338 = arith.constant 5 : index
    %c9_339 = arith.constant 9 : index
    %189 = memref.load %arg5[%c5_338, %c9_339] : memref<20x20xf32, #tpu.memory_space<smem>>
    %c5_340 = arith.constant 5 : index
    %c10_341 = arith.constant 10 : index
    %190 = memref.load %arg5[%c5_340, %c10_341] : memref<20x20xf32, #tpu.memory_space<smem>>
    %c5_342 = arith.constant 5 : index
    %c11_343 = arith.constant 11 : index
    %191 = memref.load %arg5[%c5_342, %c11_343] : memref<20x20xf32, #tpu.memory_space<smem>>
    %c5_344 = arith.constant 5 : index
    %c12_345 = arith.constant 12 : index
    %192 = memref.load %arg5[%c5_344, %c12_345] : memref<20x20xf32, #tpu.memory_space<smem>>
    %c5_346 = arith.constant 5 : index
    %c13_347 = arith.constant 13 : index
    %193 = memref.load %arg5[%c5_346, %c13_347] : memref<20x20xf32, #tpu.memory_space<smem>>
    %c5_348 = arith.constant 5 : index
    %c14_349 = arith.constant 14 : index
    %194 = memref.load %arg5[%c5_348, %c14_349] : memref<20x20xf32, #tpu.memory_space<smem>>
    %c5_350 = arith.constant 5 : index
    %c15_351 = arith.constant 15 : index
    %195 = memref.load %arg5[%c5_350, %c15_351] : memref<20x20xf32, #tpu.memory_space<smem>>
    %c5_352 = arith.constant 5 : index
    %c16_353 = arith.constant 16 : index
    %196 = memref.load %arg5[%c5_352, %c16_353] : memref<20x20xf32, #tpu.memory_space<smem>>
    %c5_354 = arith.constant 5 : index
    %c17_355 = arith.constant 17 : index
    %197 = memref.load %arg5[%c5_354, %c17_355] : memref<20x20xf32, #tpu.memory_space<smem>>
    %c5_356 = arith.constant 5 : index
    %c18_357 = arith.constant 18 : index
    %198 = memref.load %arg5[%c5_356, %c18_357] : memref<20x20xf32, #tpu.memory_space<smem>>
    %c5_358 = arith.constant 5 : index
    %c19_359 = arith.constant 19 : index
    %199 = memref.load %arg5[%c5_358, %c19_359] : memref<20x20xf32, #tpu.memory_space<smem>>
    %c6_360 = arith.constant 6 : index
    %c0_361 = arith.constant 0 : index
    %200 = memref.load %arg5[%c6_360, %c0_361] : memref<20x20xf32, #tpu.memory_space<smem>>
    %c6_362 = arith.constant 6 : index
    %c1_363 = arith.constant 1 : index
    %201 = memref.load %arg5[%c6_362, %c1_363] : memref<20x20xf32, #tpu.memory_space<smem>>
    %c6_364 = arith.constant 6 : index
    %c2_365 = arith.constant 2 : index
    %202 = memref.load %arg5[%c6_364, %c2_365] : memref<20x20xf32, #tpu.memory_space<smem>>
    %c6_366 = arith.constant 6 : index
    %c3_367 = arith.constant 3 : index
    %203 = memref.load %arg5[%c6_366, %c3_367] : memref<20x20xf32, #tpu.memory_space<smem>>
    %c6_368 = arith.constant 6 : index
    %c4_369 = arith.constant 4 : index
    %204 = memref.load %arg5[%c6_368, %c4_369] : memref<20x20xf32, #tpu.memory_space<smem>>
    %c6_370 = arith.constant 6 : index
    %c5_371 = arith.constant 5 : index
    %205 = memref.load %arg5[%c6_370, %c5_371] : memref<20x20xf32, #tpu.memory_space<smem>>
    %c6_372 = arith.constant 6 : index
    %c6_373 = arith.constant 6 : index
    %206 = memref.load %arg5[%c6_372, %c6_373] : memref<20x20xf32, #tpu.memory_space<smem>>
    %c6_374 = arith.constant 6 : index
    %c7_375 = arith.constant 7 : index
    %207 = memref.load %arg5[%c6_374, %c7_375] : memref<20x20xf32, #tpu.memory_space<smem>>
    %c6_376 = arith.constant 6 : index
    %c8_377 = arith.constant 8 : index
    %208 = memref.load %arg5[%c6_376, %c8_377] : memref<20x20xf32, #tpu.memory_space<smem>>
    %c6_378 = arith.constant 6 : index
    %c9_379 = arith.constant 9 : index
    %209 = memref.load %arg5[%c6_378, %c9_379] : memref<20x20xf32, #tpu.memory_space<smem>>
    %c6_380 = arith.constant 6 : index
    %c10_381 = arith.constant 10 : index
    %210 = memref.load %arg5[%c6_380, %c10_381] : memref<20x20xf32, #tpu.memory_space<smem>>
    %c6_382 = arith.constant 6 : index
    %c11_383 = arith.constant 11 : index
    %211 = memref.load %arg5[%c6_382, %c11_383] : memref<20x20xf32, #tpu.memory_space<smem>>
    %c6_384 = arith.constant 6 : index
    %c12_385 = arith.constant 12 : index
    %212 = memref.load %arg5[%c6_384, %c12_385] : memref<20x20xf32, #tpu.memory_space<smem>>
    %c6_386 = arith.constant 6 : index
    %c13_387 = arith.constant 13 : index
    %213 = memref.load %arg5[%c6_386, %c13_387] : memref<20x20xf32, #tpu.memory_space<smem>>
    %c6_388 = arith.constant 6 : index
    %c14_389 = arith.constant 14 : index
    %214 = memref.load %arg5[%c6_388, %c14_389] : memref<20x20xf32, #tpu.memory_space<smem>>
    %c6_390 = arith.constant 6 : index
    %c15_391 = arith.constant 15 : index
    %215 = memref.load %arg5[%c6_390, %c15_391] : memref<20x20xf32, #tpu.memory_space<smem>>
    %c6_392 = arith.constant 6 : index
    %c16_393 = arith.constant 16 : index
    %216 = memref.load %arg5[%c6_392, %c16_393] : memref<20x20xf32, #tpu.memory_space<smem>>
    %c6_394 = arith.constant 6 : index
    %c17_395 = arith.constant 17 : index
    %217 = memref.load %arg5[%c6_394, %c17_395] : memref<20x20xf32, #tpu.memory_space<smem>>
    %c6_396 = arith.constant 6 : index
    %c18_397 = arith.constant 18 : index
    %218 = memref.load %arg5[%c6_396, %c18_397] : memref<20x20xf32, #tpu.memory_space<smem>>
    %c6_398 = arith.constant 6 : index
    %c19_399 = arith.constant 19 : index
    %219 = memref.load %arg5[%c6_398, %c19_399] : memref<20x20xf32, #tpu.memory_space<smem>>
    %c7_400 = arith.constant 7 : index
    %c0_401 = arith.constant 0 : index
    %220 = memref.load %arg5[%c7_400, %c0_401] : memref<20x20xf32, #tpu.memory_space<smem>>
    %c7_402 = arith.constant 7 : index
    %c1_403 = arith.constant 1 : index
    %221 = memref.load %arg5[%c7_402, %c1_403] : memref<20x20xf32, #tpu.memory_space<smem>>
    %c7_404 = arith.constant 7 : index
    %c2_405 = arith.constant 2 : index
    %222 = memref.load %arg5[%c7_404, %c2_405] : memref<20x20xf32, #tpu.memory_space<smem>>
    %c7_406 = arith.constant 7 : index
    %c3_407 = arith.constant 3 : index
    %223 = memref.load %arg5[%c7_406, %c3_407] : memref<20x20xf32, #tpu.memory_space<smem>>
    %c7_408 = arith.constant 7 : index
    %c4_409 = arith.constant 4 : index
    %224 = memref.load %arg5[%c7_408, %c4_409] : memref<20x20xf32, #tpu.memory_space<smem>>
    %c7_410 = arith.constant 7 : index
    %c5_411 = arith.constant 5 : index
    %225 = memref.load %arg5[%c7_410, %c5_411] : memref<20x20xf32, #tpu.memory_space<smem>>
    %c7_412 = arith.constant 7 : index
    %c6_413 = arith.constant 6 : index
    %226 = memref.load %arg5[%c7_412, %c6_413] : memref<20x20xf32, #tpu.memory_space<smem>>
    %c7_414 = arith.constant 7 : index
    %c7_415 = arith.constant 7 : index
    %227 = memref.load %arg5[%c7_414, %c7_415] : memref<20x20xf32, #tpu.memory_space<smem>>
    %c7_416 = arith.constant 7 : index
    %c8_417 = arith.constant 8 : index
    %228 = memref.load %arg5[%c7_416, %c8_417] : memref<20x20xf32, #tpu.memory_space<smem>>
    %c7_418 = arith.constant 7 : index
    %c9_419 = arith.constant 9 : index
    %229 = memref.load %arg5[%c7_418, %c9_419] : memref<20x20xf32, #tpu.memory_space<smem>>
    %c7_420 = arith.constant 7 : index
    %c10_421 = arith.constant 10 : index
    %230 = memref.load %arg5[%c7_420, %c10_421] : memref<20x20xf32, #tpu.memory_space<smem>>
    %c7_422 = arith.constant 7 : index
    %c11_423 = arith.constant 11 : index
    %231 = memref.load %arg5[%c7_422, %c11_423] : memref<20x20xf32, #tpu.memory_space<smem>>
    %c7_424 = arith.constant 7 : index
    %c12_425 = arith.constant 12 : index
    %232 = memref.load %arg5[%c7_424, %c12_425] : memref<20x20xf32, #tpu.memory_space<smem>>
    %c7_426 = arith.constant 7 : index
    %c13_427 = arith.constant 13 : index
    %233 = memref.load %arg5[%c7_426, %c13_427] : memref<20x20xf32, #tpu.memory_space<smem>>
    %c7_428 = arith.constant 7 : index
    %c14_429 = arith.constant 14 : index
    %234 = memref.load %arg5[%c7_428, %c14_429] : memref<20x20xf32, #tpu.memory_space<smem>>
    %c7_430 = arith.constant 7 : index
    %c15_431 = arith.constant 15 : index
    %235 = memref.load %arg5[%c7_430, %c15_431] : memref<20x20xf32, #tpu.memory_space<smem>>
    %c7_432 = arith.constant 7 : index
    %c16_433 = arith.constant 16 : index
    %236 = memref.load %arg5[%c7_432, %c16_433] : memref<20x20xf32, #tpu.memory_space<smem>>
    %c7_434 = arith.constant 7 : index
    %c17_435 = arith.constant 17 : index
    %237 = memref.load %arg5[%c7_434, %c17_435] : memref<20x20xf32, #tpu.memory_space<smem>>
    %c7_436 = arith.constant 7 : index
    %c18_437 = arith.constant 18 : index
    %238 = memref.load %arg5[%c7_436, %c18_437] : memref<20x20xf32, #tpu.memory_space<smem>>
    %c7_438 = arith.constant 7 : index
    %c19_439 = arith.constant 19 : index
    %239 = memref.load %arg5[%c7_438, %c19_439] : memref<20x20xf32, #tpu.memory_space<smem>>
    %c8_440 = arith.constant 8 : index
    %c0_441 = arith.constant 0 : index
    %240 = memref.load %arg5[%c8_440, %c0_441] : memref<20x20xf32, #tpu.memory_space<smem>>
    %c8_442 = arith.constant 8 : index
    %c1_443 = arith.constant 1 : index
    %241 = memref.load %arg5[%c8_442, %c1_443] : memref<20x20xf32, #tpu.memory_space<smem>>
    %c8_444 = arith.constant 8 : index
    %c2_445 = arith.constant 2 : index
    %242 = memref.load %arg5[%c8_444, %c2_445] : memref<20x20xf32, #tpu.memory_space<smem>>
    %c8_446 = arith.constant 8 : index
    %c3_447 = arith.constant 3 : index
    %243 = memref.load %arg5[%c8_446, %c3_447] : memref<20x20xf32, #tpu.memory_space<smem>>
    %c8_448 = arith.constant 8 : index
    %c4_449 = arith.constant 4 : index
    %244 = memref.load %arg5[%c8_448, %c4_449] : memref<20x20xf32, #tpu.memory_space<smem>>
    %c8_450 = arith.constant 8 : index
    %c5_451 = arith.constant 5 : index
    %245 = memref.load %arg5[%c8_450, %c5_451] : memref<20x20xf32, #tpu.memory_space<smem>>
    %c8_452 = arith.constant 8 : index
    %c6_453 = arith.constant 6 : index
    %246 = memref.load %arg5[%c8_452, %c6_453] : memref<20x20xf32, #tpu.memory_space<smem>>
    %c8_454 = arith.constant 8 : index
    %c7_455 = arith.constant 7 : index
    %247 = memref.load %arg5[%c8_454, %c7_455] : memref<20x20xf32, #tpu.memory_space<smem>>
    %c8_456 = arith.constant 8 : index
    %c8_457 = arith.constant 8 : index
    %248 = memref.load %arg5[%c8_456, %c8_457] : memref<20x20xf32, #tpu.memory_space<smem>>
    %c8_458 = arith.constant 8 : index
    %c9_459 = arith.constant 9 : index
    %249 = memref.load %arg5[%c8_458, %c9_459] : memref<20x20xf32, #tpu.memory_space<smem>>
    %c8_460 = arith.constant 8 : index
    %c10_461 = arith.constant 10 : index
    %250 = memref.load %arg5[%c8_460, %c10_461] : memref<20x20xf32, #tpu.memory_space<smem>>
    %c8_462 = arith.constant 8 : index
    %c11_463 = arith.constant 11 : index
    %251 = memref.load %arg5[%c8_462, %c11_463] : memref<20x20xf32, #tpu.memory_space<smem>>
    %c8_464 = arith.constant 8 : index
    %c12_465 = arith.constant 12 : index
    %252 = memref.load %arg5[%c8_464, %c12_465] : memref<20x20xf32, #tpu.memory_space<smem>>
    %c8_466 = arith.constant 8 : index
    %c13_467 = arith.constant 13 : index
    %253 = memref.load %arg5[%c8_466, %c13_467] : memref<20x20xf32, #tpu.memory_space<smem>>
    %c8_468 = arith.constant 8 : index
    %c14_469 = arith.constant 14 : index
    %254 = memref.load %arg5[%c8_468, %c14_469] : memref<20x20xf32, #tpu.memory_space<smem>>
    %c8_470 = arith.constant 8 : index
    %c15_471 = arith.constant 15 : index
    %255 = memref.load %arg5[%c8_470, %c15_471] : memref<20x20xf32, #tpu.memory_space<smem>>
    %c8_472 = arith.constant 8 : index
    %c16_473 = arith.constant 16 : index
    %256 = memref.load %arg5[%c8_472, %c16_473] : memref<20x20xf32, #tpu.memory_space<smem>>
    %c8_474 = arith.constant 8 : index
    %c17_475 = arith.constant 17 : index
    %257 = memref.load %arg5[%c8_474, %c17_475] : memref<20x20xf32, #tpu.memory_space<smem>>
    %c8_476 = arith.constant 8 : index
    %c18_477 = arith.constant 18 : index
    %258 = memref.load %arg5[%c8_476, %c18_477] : memref<20x20xf32, #tpu.memory_space<smem>>
    %c8_478 = arith.constant 8 : index
    %c19_479 = arith.constant 19 : index
    %259 = memref.load %arg5[%c8_478, %c19_479] : memref<20x20xf32, #tpu.memory_space<smem>>
    %c9_480 = arith.constant 9 : index
    %c0_481 = arith.constant 0 : index
    %260 = memref.load %arg5[%c9_480, %c0_481] : memref<20x20xf32, #tpu.memory_space<smem>>
    %c9_482 = arith.constant 9 : index
    %c1_483 = arith.constant 1 : index
    %261 = memref.load %arg5[%c9_482, %c1_483] : memref<20x20xf32, #tpu.memory_space<smem>>
    %c9_484 = arith.constant 9 : index
    %c2_485 = arith.constant 2 : index
    %262 = memref.load %arg5[%c9_484, %c2_485] : memref<20x20xf32, #tpu.memory_space<smem>>
    %c9_486 = arith.constant 9 : index
    %c3_487 = arith.constant 3 : index
    %263 = memref.load %arg5[%c9_486, %c3_487] : memref<20x20xf32, #tpu.memory_space<smem>>
    %c9_488 = arith.constant 9 : index
    %c4_489 = arith.constant 4 : index
    %264 = memref.load %arg5[%c9_488, %c4_489] : memref<20x20xf32, #tpu.memory_space<smem>>
    %c9_490 = arith.constant 9 : index
    %c5_491 = arith.constant 5 : index
    %265 = memref.load %arg5[%c9_490, %c5_491] : memref<20x20xf32, #tpu.memory_space<smem>>
    %c9_492 = arith.constant 9 : index
    %c6_493 = arith.constant 6 : index
    %266 = memref.load %arg5[%c9_492, %c6_493] : memref<20x20xf32, #tpu.memory_space<smem>>
    %c9_494 = arith.constant 9 : index
    %c7_495 = arith.constant 7 : index
    %267 = memref.load %arg5[%c9_494, %c7_495] : memref<20x20xf32, #tpu.memory_space<smem>>
    %c9_496 = arith.constant 9 : index
    %c8_497 = arith.constant 8 : index
    %268 = memref.load %arg5[%c9_496, %c8_497] : memref<20x20xf32, #tpu.memory_space<smem>>
    %c9_498 = arith.constant 9 : index
    %c9_499 = arith.constant 9 : index
    %269 = memref.load %arg5[%c9_498, %c9_499] : memref<20x20xf32, #tpu.memory_space<smem>>
    %c9_500 = arith.constant 9 : index
    %c10_501 = arith.constant 10 : index
    %270 = memref.load %arg5[%c9_500, %c10_501] : memref<20x20xf32, #tpu.memory_space<smem>>
    %c9_502 = arith.constant 9 : index
    %c11_503 = arith.constant 11 : index
    %271 = memref.load %arg5[%c9_502, %c11_503] : memref<20x20xf32, #tpu.memory_space<smem>>
    %c9_504 = arith.constant 9 : index
    %c12_505 = arith.constant 12 : index
    %272 = memref.load %arg5[%c9_504, %c12_505] : memref<20x20xf32, #tpu.memory_space<smem>>
    %c9_506 = arith.constant 9 : index
    %c13_507 = arith.constant 13 : index
    %273 = memref.load %arg5[%c9_506, %c13_507] : memref<20x20xf32, #tpu.memory_space<smem>>
    %c9_508 = arith.constant 9 : index
    %c14_509 = arith.constant 14 : index
    %274 = memref.load %arg5[%c9_508, %c14_509] : memref<20x20xf32, #tpu.memory_space<smem>>
    %c9_510 = arith.constant 9 : index
    %c15_511 = arith.constant 15 : index
    %275 = memref.load %arg5[%c9_510, %c15_511] : memref<20x20xf32, #tpu.memory_space<smem>>
    %c9_512 = arith.constant 9 : index
    %c16_513 = arith.constant 16 : index
    %276 = memref.load %arg5[%c9_512, %c16_513] : memref<20x20xf32, #tpu.memory_space<smem>>
    %c9_514 = arith.constant 9 : index
    %c17_515 = arith.constant 17 : index
    %277 = memref.load %arg5[%c9_514, %c17_515] : memref<20x20xf32, #tpu.memory_space<smem>>
    %c9_516 = arith.constant 9 : index
    %c18_517 = arith.constant 18 : index
    %278 = memref.load %arg5[%c9_516, %c18_517] : memref<20x20xf32, #tpu.memory_space<smem>>
    %c9_518 = arith.constant 9 : index
    %c19_519 = arith.constant 19 : index
    %279 = memref.load %arg5[%c9_518, %c19_519] : memref<20x20xf32, #tpu.memory_space<smem>>
    %c10_520 = arith.constant 10 : index
    %c0_521 = arith.constant 0 : index
    %280 = memref.load %arg5[%c10_520, %c0_521] : memref<20x20xf32, #tpu.memory_space<smem>>
    %c10_522 = arith.constant 10 : index
    %c1_523 = arith.constant 1 : index
    %281 = memref.load %arg5[%c10_522, %c1_523] : memref<20x20xf32, #tpu.memory_space<smem>>
    %c10_524 = arith.constant 10 : index
    %c2_525 = arith.constant 2 : index
    %282 = memref.load %arg5[%c10_524, %c2_525] : memref<20x20xf32, #tpu.memory_space<smem>>
    %c10_526 = arith.constant 10 : index
    %c3_527 = arith.constant 3 : index
    %283 = memref.load %arg5[%c10_526, %c3_527] : memref<20x20xf32, #tpu.memory_space<smem>>
    %c10_528 = arith.constant 10 : index
    %c4_529 = arith.constant 4 : index
    %284 = memref.load %arg5[%c10_528, %c4_529] : memref<20x20xf32, #tpu.memory_space<smem>>
    %c10_530 = arith.constant 10 : index
    %c5_531 = arith.constant 5 : index
    %285 = memref.load %arg5[%c10_530, %c5_531] : memref<20x20xf32, #tpu.memory_space<smem>>
    %c10_532 = arith.constant 10 : index
    %c6_533 = arith.constant 6 : index
    %286 = memref.load %arg5[%c10_532, %c6_533] : memref<20x20xf32, #tpu.memory_space<smem>>
    %c10_534 = arith.constant 10 : index
    %c7_535 = arith.constant 7 : index
    %287 = memref.load %arg5[%c10_534, %c7_535] : memref<20x20xf32, #tpu.memory_space<smem>>
    %c10_536 = arith.constant 10 : index
    %c8_537 = arith.constant 8 : index
    %288 = memref.load %arg5[%c10_536, %c8_537] : memref<20x20xf32, #tpu.memory_space<smem>>
    %c10_538 = arith.constant 10 : index
    %c9_539 = arith.constant 9 : index
    %289 = memref.load %arg5[%c10_538, %c9_539] : memref<20x20xf32, #tpu.memory_space<smem>>
    %c10_540 = arith.constant 10 : index
    %c10_541 = arith.constant 10 : index
    %290 = memref.load %arg5[%c10_540, %c10_541] : memref<20x20xf32, #tpu.memory_space<smem>>
    %c10_542 = arith.constant 10 : index
    %c11_543 = arith.constant 11 : index
    %291 = memref.load %arg5[%c10_542, %c11_543] : memref<20x20xf32, #tpu.memory_space<smem>>
    %c10_544 = arith.constant 10 : index
    %c12_545 = arith.constant 12 : index
    %292 = memref.load %arg5[%c10_544, %c12_545] : memref<20x20xf32, #tpu.memory_space<smem>>
    %c10_546 = arith.constant 10 : index
    %c13_547 = arith.constant 13 : index
    %293 = memref.load %arg5[%c10_546, %c13_547] : memref<20x20xf32, #tpu.memory_space<smem>>
    %c10_548 = arith.constant 10 : index
    %c14_549 = arith.constant 14 : index
    %294 = memref.load %arg5[%c10_548, %c14_549] : memref<20x20xf32, #tpu.memory_space<smem>>
    %c10_550 = arith.constant 10 : index
    %c15_551 = arith.constant 15 : index
    %295 = memref.load %arg5[%c10_550, %c15_551] : memref<20x20xf32, #tpu.memory_space<smem>>
    %c10_552 = arith.constant 10 : index
    %c16_553 = arith.constant 16 : index
    %296 = memref.load %arg5[%c10_552, %c16_553] : memref<20x20xf32, #tpu.memory_space<smem>>
    %c10_554 = arith.constant 10 : index
    %c17_555 = arith.constant 17 : index
    %297 = memref.load %arg5[%c10_554, %c17_555] : memref<20x20xf32, #tpu.memory_space<smem>>
    %c10_556 = arith.constant 10 : index
    %c18_557 = arith.constant 18 : index
    %298 = memref.load %arg5[%c10_556, %c18_557] : memref<20x20xf32, #tpu.memory_space<smem>>
    %c10_558 = arith.constant 10 : index
    %c19_559 = arith.constant 19 : index
    %299 = memref.load %arg5[%c10_558, %c19_559] : memref<20x20xf32, #tpu.memory_space<smem>>
    %c11_560 = arith.constant 11 : index
    %c0_561 = arith.constant 0 : index
    %300 = memref.load %arg5[%c11_560, %c0_561] : memref<20x20xf32, #tpu.memory_space<smem>>
    %c11_562 = arith.constant 11 : index
    %c1_563 = arith.constant 1 : index
    %301 = memref.load %arg5[%c11_562, %c1_563] : memref<20x20xf32, #tpu.memory_space<smem>>
    %c11_564 = arith.constant 11 : index
    %c2_565 = arith.constant 2 : index
    %302 = memref.load %arg5[%c11_564, %c2_565] : memref<20x20xf32, #tpu.memory_space<smem>>
    %c11_566 = arith.constant 11 : index
    %c3_567 = arith.constant 3 : index
    %303 = memref.load %arg5[%c11_566, %c3_567] : memref<20x20xf32, #tpu.memory_space<smem>>
    %c11_568 = arith.constant 11 : index
    %c4_569 = arith.constant 4 : index
    %304 = memref.load %arg5[%c11_568, %c4_569] : memref<20x20xf32, #tpu.memory_space<smem>>
    %c11_570 = arith.constant 11 : index
    %c5_571 = arith.constant 5 : index
    %305 = memref.load %arg5[%c11_570, %c5_571] : memref<20x20xf32, #tpu.memory_space<smem>>
    %c11_572 = arith.constant 11 : index
    %c6_573 = arith.constant 6 : index
    %306 = memref.load %arg5[%c11_572, %c6_573] : memref<20x20xf32, #tpu.memory_space<smem>>
    %c11_574 = arith.constant 11 : index
    %c7_575 = arith.constant 7 : index
    %307 = memref.load %arg5[%c11_574, %c7_575] : memref<20x20xf32, #tpu.memory_space<smem>>
    %c11_576 = arith.constant 11 : index
    %c8_577 = arith.constant 8 : index
    %308 = memref.load %arg5[%c11_576, %c8_577] : memref<20x20xf32, #tpu.memory_space<smem>>
    %c11_578 = arith.constant 11 : index
    %c9_579 = arith.constant 9 : index
    %309 = memref.load %arg5[%c11_578, %c9_579] : memref<20x20xf32, #tpu.memory_space<smem>>
    %c11_580 = arith.constant 11 : index
    %c10_581 = arith.constant 10 : index
    %310 = memref.load %arg5[%c11_580, %c10_581] : memref<20x20xf32, #tpu.memory_space<smem>>
    %c11_582 = arith.constant 11 : index
    %c11_583 = arith.constant 11 : index
    %311 = memref.load %arg5[%c11_582, %c11_583] : memref<20x20xf32, #tpu.memory_space<smem>>
    %c11_584 = arith.constant 11 : index
    %c12_585 = arith.constant 12 : index
    %312 = memref.load %arg5[%c11_584, %c12_585] : memref<20x20xf32, #tpu.memory_space<smem>>
    %c11_586 = arith.constant 11 : index
    %c13_587 = arith.constant 13 : index
    %313 = memref.load %arg5[%c11_586, %c13_587] : memref<20x20xf32, #tpu.memory_space<smem>>
    %c11_588 = arith.constant 11 : index
    %c14_589 = arith.constant 14 : index
    %314 = memref.load %arg5[%c11_588, %c14_589] : memref<20x20xf32, #tpu.memory_space<smem>>
    %c11_590 = arith.constant 11 : index
    %c15_591 = arith.constant 15 : index
    %315 = memref.load %arg5[%c11_590, %c15_591] : memref<20x20xf32, #tpu.memory_space<smem>>
    %c11_592 = arith.constant 11 : index
    %c16_593 = arith.constant 16 : index
    %316 = memref.load %arg5[%c11_592, %c16_593] : memref<20x20xf32, #tpu.memory_space<smem>>
    %c11_594 = arith.constant 11 : index
    %c17_595 = arith.constant 17 : index
    %317 = memref.load %arg5[%c11_594, %c17_595] : memref<20x20xf32, #tpu.memory_space<smem>>
    %c11_596 = arith.constant 11 : index
    %c18_597 = arith.constant 18 : index
    %318 = memref.load %arg5[%c11_596, %c18_597] : memref<20x20xf32, #tpu.memory_space<smem>>
    %c11_598 = arith.constant 11 : index
    %c19_599 = arith.constant 19 : index
    %319 = memref.load %arg5[%c11_598, %c19_599] : memref<20x20xf32, #tpu.memory_space<smem>>
    %c12_600 = arith.constant 12 : index
    %c0_601 = arith.constant 0 : index
    %320 = memref.load %arg5[%c12_600, %c0_601] : memref<20x20xf32, #tpu.memory_space<smem>>
    %c12_602 = arith.constant 12 : index
    %c1_603 = arith.constant 1 : index
    %321 = memref.load %arg5[%c12_602, %c1_603] : memref<20x20xf32, #tpu.memory_space<smem>>
    %c12_604 = arith.constant 12 : index
    %c2_605 = arith.constant 2 : index
    %322 = memref.load %arg5[%c12_604, %c2_605] : memref<20x20xf32, #tpu.memory_space<smem>>
    %c12_606 = arith.constant 12 : index
    %c3_607 = arith.constant 3 : index
    %323 = memref.load %arg5[%c12_606, %c3_607] : memref<20x20xf32, #tpu.memory_space<smem>>
    %c12_608 = arith.constant 12 : index
    %c4_609 = arith.constant 4 : index
    %324 = memref.load %arg5[%c12_608, %c4_609] : memref<20x20xf32, #tpu.memory_space<smem>>
    %c12_610 = arith.constant 12 : index
    %c5_611 = arith.constant 5 : index
    %325 = memref.load %arg5[%c12_610, %c5_611] : memref<20x20xf32, #tpu.memory_space<smem>>
    %c12_612 = arith.constant 12 : index
    %c6_613 = arith.constant 6 : index
    %326 = memref.load %arg5[%c12_612, %c6_613] : memref<20x20xf32, #tpu.memory_space<smem>>
    %c12_614 = arith.constant 12 : index
    %c7_615 = arith.constant 7 : index
    %327 = memref.load %arg5[%c12_614, %c7_615] : memref<20x20xf32, #tpu.memory_space<smem>>
    %c12_616 = arith.constant 12 : index
    %c8_617 = arith.constant 8 : index
    %328 = memref.load %arg5[%c12_616, %c8_617] : memref<20x20xf32, #tpu.memory_space<smem>>
    %c12_618 = arith.constant 12 : index
    %c9_619 = arith.constant 9 : index
    %329 = memref.load %arg5[%c12_618, %c9_619] : memref<20x20xf32, #tpu.memory_space<smem>>
    %c12_620 = arith.constant 12 : index
    %c10_621 = arith.constant 10 : index
    %330 = memref.load %arg5[%c12_620, %c10_621] : memref<20x20xf32, #tpu.memory_space<smem>>
    %c12_622 = arith.constant 12 : index
    %c11_623 = arith.constant 11 : index
    %331 = memref.load %arg5[%c12_622, %c11_623] : memref<20x20xf32, #tpu.memory_space<smem>>
    %c12_624 = arith.constant 12 : index
    %c12_625 = arith.constant 12 : index
    %332 = memref.load %arg5[%c12_624, %c12_625] : memref<20x20xf32, #tpu.memory_space<smem>>
    %c12_626 = arith.constant 12 : index
    %c13_627 = arith.constant 13 : index
    %333 = memref.load %arg5[%c12_626, %c13_627] : memref<20x20xf32, #tpu.memory_space<smem>>
    %c12_628 = arith.constant 12 : index
    %c14_629 = arith.constant 14 : index
    %334 = memref.load %arg5[%c12_628, %c14_629] : memref<20x20xf32, #tpu.memory_space<smem>>
    %c12_630 = arith.constant 12 : index
    %c15_631 = arith.constant 15 : index
    %335 = memref.load %arg5[%c12_630, %c15_631] : memref<20x20xf32, #tpu.memory_space<smem>>
    %c12_632 = arith.constant 12 : index
    %c16_633 = arith.constant 16 : index
    %336 = memref.load %arg5[%c12_632, %c16_633] : memref<20x20xf32, #tpu.memory_space<smem>>
    %c12_634 = arith.constant 12 : index
    %c17_635 = arith.constant 17 : index
    %337 = memref.load %arg5[%c12_634, %c17_635] : memref<20x20xf32, #tpu.memory_space<smem>>
    %c12_636 = arith.constant 12 : index
    %c18_637 = arith.constant 18 : index
    %338 = memref.load %arg5[%c12_636, %c18_637] : memref<20x20xf32, #tpu.memory_space<smem>>
    %c12_638 = arith.constant 12 : index
    %c19_639 = arith.constant 19 : index
    %339 = memref.load %arg5[%c12_638, %c19_639] : memref<20x20xf32, #tpu.memory_space<smem>>
    %c13_640 = arith.constant 13 : index
    %c0_641 = arith.constant 0 : index
    %340 = memref.load %arg5[%c13_640, %c0_641] : memref<20x20xf32, #tpu.memory_space<smem>>
    %c13_642 = arith.constant 13 : index
    %c1_643 = arith.constant 1 : index
    %341 = memref.load %arg5[%c13_642, %c1_643] : memref<20x20xf32, #tpu.memory_space<smem>>
    %c13_644 = arith.constant 13 : index
    %c2_645 = arith.constant 2 : index
    %342 = memref.load %arg5[%c13_644, %c2_645] : memref<20x20xf32, #tpu.memory_space<smem>>
    %c13_646 = arith.constant 13 : index
    %c3_647 = arith.constant 3 : index
    %343 = memref.load %arg5[%c13_646, %c3_647] : memref<20x20xf32, #tpu.memory_space<smem>>
    %c13_648 = arith.constant 13 : index
    %c4_649 = arith.constant 4 : index
    %344 = memref.load %arg5[%c13_648, %c4_649] : memref<20x20xf32, #tpu.memory_space<smem>>
    %c13_650 = arith.constant 13 : index
    %c5_651 = arith.constant 5 : index
    %345 = memref.load %arg5[%c13_650, %c5_651] : memref<20x20xf32, #tpu.memory_space<smem>>
    %c13_652 = arith.constant 13 : index
    %c6_653 = arith.constant 6 : index
    %346 = memref.load %arg5[%c13_652, %c6_653] : memref<20x20xf32, #tpu.memory_space<smem>>
    %c13_654 = arith.constant 13 : index
    %c7_655 = arith.constant 7 : index
    %347 = memref.load %arg5[%c13_654, %c7_655] : memref<20x20xf32, #tpu.memory_space<smem>>
    %c13_656 = arith.constant 13 : index
    %c8_657 = arith.constant 8 : index
    %348 = memref.load %arg5[%c13_656, %c8_657] : memref<20x20xf32, #tpu.memory_space<smem>>
    %c13_658 = arith.constant 13 : index
    %c9_659 = arith.constant 9 : index
    %349 = memref.load %arg5[%c13_658, %c9_659] : memref<20x20xf32, #tpu.memory_space<smem>>
    %c13_660 = arith.constant 13 : index
    %c10_661 = arith.constant 10 : index
    %350 = memref.load %arg5[%c13_660, %c10_661] : memref<20x20xf32, #tpu.memory_space<smem>>
    %c13_662 = arith.constant 13 : index
    %c11_663 = arith.constant 11 : index
    %351 = memref.load %arg5[%c13_662, %c11_663] : memref<20x20xf32, #tpu.memory_space<smem>>
    %c13_664 = arith.constant 13 : index
    %c12_665 = arith.constant 12 : index
    %352 = memref.load %arg5[%c13_664, %c12_665] : memref<20x20xf32, #tpu.memory_space<smem>>
    %c13_666 = arith.constant 13 : index
    %c13_667 = arith.constant 13 : index
    %353 = memref.load %arg5[%c13_666, %c13_667] : memref<20x20xf32, #tpu.memory_space<smem>>
    %c13_668 = arith.constant 13 : index
    %c14_669 = arith.constant 14 : index
    %354 = memref.load %arg5[%c13_668, %c14_669] : memref<20x20xf32, #tpu.memory_space<smem>>
    %c13_670 = arith.constant 13 : index
    %c15_671 = arith.constant 15 : index
    %355 = memref.load %arg5[%c13_670, %c15_671] : memref<20x20xf32, #tpu.memory_space<smem>>
    %c13_672 = arith.constant 13 : index
    %c16_673 = arith.constant 16 : index
    %356 = memref.load %arg5[%c13_672, %c16_673] : memref<20x20xf32, #tpu.memory_space<smem>>
    %c13_674 = arith.constant 13 : index
    %c17_675 = arith.constant 17 : index
    %357 = memref.load %arg5[%c13_674, %c17_675] : memref<20x20xf32, #tpu.memory_space<smem>>
    %c13_676 = arith.constant 13 : index
    %c18_677 = arith.constant 18 : index
    %358 = memref.load %arg5[%c13_676, %c18_677] : memref<20x20xf32, #tpu.memory_space<smem>>
    %c13_678 = arith.constant 13 : index
    %c19_679 = arith.constant 19 : index
    %359 = memref.load %arg5[%c13_678, %c19_679] : memref<20x20xf32, #tpu.memory_space<smem>>
    %c14_680 = arith.constant 14 : index
    %c0_681 = arith.constant 0 : index
    %360 = memref.load %arg5[%c14_680, %c0_681] : memref<20x20xf32, #tpu.memory_space<smem>>
    %c14_682 = arith.constant 14 : index
    %c1_683 = arith.constant 1 : index
    %361 = memref.load %arg5[%c14_682, %c1_683] : memref<20x20xf32, #tpu.memory_space<smem>>
    %c14_684 = arith.constant 14 : index
    %c2_685 = arith.constant 2 : index
    %362 = memref.load %arg5[%c14_684, %c2_685] : memref<20x20xf32, #tpu.memory_space<smem>>
    %c14_686 = arith.constant 14 : index
    %c3_687 = arith.constant 3 : index
    %363 = memref.load %arg5[%c14_686, %c3_687] : memref<20x20xf32, #tpu.memory_space<smem>>
    %c14_688 = arith.constant 14 : index
    %c4_689 = arith.constant 4 : index
    %364 = memref.load %arg5[%c14_688, %c4_689] : memref<20x20xf32, #tpu.memory_space<smem>>
    %c14_690 = arith.constant 14 : index
    %c5_691 = arith.constant 5 : index
    %365 = memref.load %arg5[%c14_690, %c5_691] : memref<20x20xf32, #tpu.memory_space<smem>>
    %c14_692 = arith.constant 14 : index
    %c6_693 = arith.constant 6 : index
    %366 = memref.load %arg5[%c14_692, %c6_693] : memref<20x20xf32, #tpu.memory_space<smem>>
    %c14_694 = arith.constant 14 : index
    %c7_695 = arith.constant 7 : index
    %367 = memref.load %arg5[%c14_694, %c7_695] : memref<20x20xf32, #tpu.memory_space<smem>>
    %c14_696 = arith.constant 14 : index
    %c8_697 = arith.constant 8 : index
    %368 = memref.load %arg5[%c14_696, %c8_697] : memref<20x20xf32, #tpu.memory_space<smem>>
    %c14_698 = arith.constant 14 : index
    %c9_699 = arith.constant 9 : index
    %369 = memref.load %arg5[%c14_698, %c9_699] : memref<20x20xf32, #tpu.memory_space<smem>>
    %c14_700 = arith.constant 14 : index
    %c10_701 = arith.constant 10 : index
    %370 = memref.load %arg5[%c14_700, %c10_701] : memref<20x20xf32, #tpu.memory_space<smem>>
    %c14_702 = arith.constant 14 : index
    %c11_703 = arith.constant 11 : index
    %371 = memref.load %arg5[%c14_702, %c11_703] : memref<20x20xf32, #tpu.memory_space<smem>>
    %c14_704 = arith.constant 14 : index
    %c12_705 = arith.constant 12 : index
    %372 = memref.load %arg5[%c14_704, %c12_705] : memref<20x20xf32, #tpu.memory_space<smem>>
    %c14_706 = arith.constant 14 : index
    %c13_707 = arith.constant 13 : index
    %373 = memref.load %arg5[%c14_706, %c13_707] : memref<20x20xf32, #tpu.memory_space<smem>>
    %c14_708 = arith.constant 14 : index
    %c14_709 = arith.constant 14 : index
    %374 = memref.load %arg5[%c14_708, %c14_709] : memref<20x20xf32, #tpu.memory_space<smem>>
    %c14_710 = arith.constant 14 : index
    %c15_711 = arith.constant 15 : index
    %375 = memref.load %arg5[%c14_710, %c15_711] : memref<20x20xf32, #tpu.memory_space<smem>>
    %c14_712 = arith.constant 14 : index
    %c16_713 = arith.constant 16 : index
    %376 = memref.load %arg5[%c14_712, %c16_713] : memref<20x20xf32, #tpu.memory_space<smem>>
    %c14_714 = arith.constant 14 : index
    %c17_715 = arith.constant 17 : index
    %377 = memref.load %arg5[%c14_714, %c17_715] : memref<20x20xf32, #tpu.memory_space<smem>>
    %c14_716 = arith.constant 14 : index
    %c18_717 = arith.constant 18 : index
    %378 = memref.load %arg5[%c14_716, %c18_717] : memref<20x20xf32, #tpu.memory_space<smem>>
    %c14_718 = arith.constant 14 : index
    %c19_719 = arith.constant 19 : index
    %379 = memref.load %arg5[%c14_718, %c19_719] : memref<20x20xf32, #tpu.memory_space<smem>>
    %c15_720 = arith.constant 15 : index
    %c0_721 = arith.constant 0 : index
    %380 = memref.load %arg5[%c15_720, %c0_721] : memref<20x20xf32, #tpu.memory_space<smem>>
    %c15_722 = arith.constant 15 : index
    %c1_723 = arith.constant 1 : index
    %381 = memref.load %arg5[%c15_722, %c1_723] : memref<20x20xf32, #tpu.memory_space<smem>>
    %c15_724 = arith.constant 15 : index
    %c2_725 = arith.constant 2 : index
    %382 = memref.load %arg5[%c15_724, %c2_725] : memref<20x20xf32, #tpu.memory_space<smem>>
    %c15_726 = arith.constant 15 : index
    %c3_727 = arith.constant 3 : index
    %383 = memref.load %arg5[%c15_726, %c3_727] : memref<20x20xf32, #tpu.memory_space<smem>>
    %c15_728 = arith.constant 15 : index
    %c4_729 = arith.constant 4 : index
    %384 = memref.load %arg5[%c15_728, %c4_729] : memref<20x20xf32, #tpu.memory_space<smem>>
    %c15_730 = arith.constant 15 : index
    %c5_731 = arith.constant 5 : index
    %385 = memref.load %arg5[%c15_730, %c5_731] : memref<20x20xf32, #tpu.memory_space<smem>>
    %c15_732 = arith.constant 15 : index
    %c6_733 = arith.constant 6 : index
    %386 = memref.load %arg5[%c15_732, %c6_733] : memref<20x20xf32, #tpu.memory_space<smem>>
    %c15_734 = arith.constant 15 : index
    %c7_735 = arith.constant 7 : index
    %387 = memref.load %arg5[%c15_734, %c7_735] : memref<20x20xf32, #tpu.memory_space<smem>>
    %c15_736 = arith.constant 15 : index
    %c8_737 = arith.constant 8 : index
    %388 = memref.load %arg5[%c15_736, %c8_737] : memref<20x20xf32, #tpu.memory_space<smem>>
    %c15_738 = arith.constant 15 : index
    %c9_739 = arith.constant 9 : index
    %389 = memref.load %arg5[%c15_738, %c9_739] : memref<20x20xf32, #tpu.memory_space<smem>>
    %c15_740 = arith.constant 15 : index
    %c10_741 = arith.constant 10 : index
    %390 = memref.load %arg5[%c15_740, %c10_741] : memref<20x20xf32, #tpu.memory_space<smem>>
    %c15_742 = arith.constant 15 : index
    %c11_743 = arith.constant 11 : index
    %391 = memref.load %arg5[%c15_742, %c11_743] : memref<20x20xf32, #tpu.memory_space<smem>>
    %c15_744 = arith.constant 15 : index
    %c12_745 = arith.constant 12 : index
    %392 = memref.load %arg5[%c15_744, %c12_745] : memref<20x20xf32, #tpu.memory_space<smem>>
    %c15_746 = arith.constant 15 : index
    %c13_747 = arith.constant 13 : index
    %393 = memref.load %arg5[%c15_746, %c13_747] : memref<20x20xf32, #tpu.memory_space<smem>>
    %c15_748 = arith.constant 15 : index
    %c14_749 = arith.constant 14 : index
    %394 = memref.load %arg5[%c15_748, %c14_749] : memref<20x20xf32, #tpu.memory_space<smem>>
    %c15_750 = arith.constant 15 : index
    %c15_751 = arith.constant 15 : index
    %395 = memref.load %arg5[%c15_750, %c15_751] : memref<20x20xf32, #tpu.memory_space<smem>>
    %c15_752 = arith.constant 15 : index
    %c16_753 = arith.constant 16 : index
    %396 = memref.load %arg5[%c15_752, %c16_753] : memref<20x20xf32, #tpu.memory_space<smem>>
    %c15_754 = arith.constant 15 : index
    %c17_755 = arith.constant 17 : index
    %397 = memref.load %arg5[%c15_754, %c17_755] : memref<20x20xf32, #tpu.memory_space<smem>>
    %c15_756 = arith.constant 15 : index
    %c18_757 = arith.constant 18 : index
    %398 = memref.load %arg5[%c15_756, %c18_757] : memref<20x20xf32, #tpu.memory_space<smem>>
    %c15_758 = arith.constant 15 : index
    %c19_759 = arith.constant 19 : index
    %399 = memref.load %arg5[%c15_758, %c19_759] : memref<20x20xf32, #tpu.memory_space<smem>>
    %c16_760 = arith.constant 16 : index
    %c0_761 = arith.constant 0 : index
    %400 = memref.load %arg5[%c16_760, %c0_761] : memref<20x20xf32, #tpu.memory_space<smem>>
    %c16_762 = arith.constant 16 : index
    %c1_763 = arith.constant 1 : index
    %401 = memref.load %arg5[%c16_762, %c1_763] : memref<20x20xf32, #tpu.memory_space<smem>>
    %c16_764 = arith.constant 16 : index
    %c2_765 = arith.constant 2 : index
    %402 = memref.load %arg5[%c16_764, %c2_765] : memref<20x20xf32, #tpu.memory_space<smem>>
    %c16_766 = arith.constant 16 : index
    %c3_767 = arith.constant 3 : index
    %403 = memref.load %arg5[%c16_766, %c3_767] : memref<20x20xf32, #tpu.memory_space<smem>>
    %c16_768 = arith.constant 16 : index
    %c4_769 = arith.constant 4 : index
    %404 = memref.load %arg5[%c16_768, %c4_769] : memref<20x20xf32, #tpu.memory_space<smem>>
    %c16_770 = arith.constant 16 : index
    %c5_771 = arith.constant 5 : index
    %405 = memref.load %arg5[%c16_770, %c5_771] : memref<20x20xf32, #tpu.memory_space<smem>>
    %c16_772 = arith.constant 16 : index
    %c6_773 = arith.constant 6 : index
    %406 = memref.load %arg5[%c16_772, %c6_773] : memref<20x20xf32, #tpu.memory_space<smem>>
    %c16_774 = arith.constant 16 : index
    %c7_775 = arith.constant 7 : index
    %407 = memref.load %arg5[%c16_774, %c7_775] : memref<20x20xf32, #tpu.memory_space<smem>>
    %c16_776 = arith.constant 16 : index
    %c8_777 = arith.constant 8 : index
    %408 = memref.load %arg5[%c16_776, %c8_777] : memref<20x20xf32, #tpu.memory_space<smem>>
    %c16_778 = arith.constant 16 : index
    %c9_779 = arith.constant 9 : index
    %409 = memref.load %arg5[%c16_778, %c9_779] : memref<20x20xf32, #tpu.memory_space<smem>>
    %c16_780 = arith.constant 16 : index
    %c10_781 = arith.constant 10 : index
    %410 = memref.load %arg5[%c16_780, %c10_781] : memref<20x20xf32, #tpu.memory_space<smem>>
    %c16_782 = arith.constant 16 : index
    %c11_783 = arith.constant 11 : index
    %411 = memref.load %arg5[%c16_782, %c11_783] : memref<20x20xf32, #tpu.memory_space<smem>>
    %c16_784 = arith.constant 16 : index
    %c12_785 = arith.constant 12 : index
    %412 = memref.load %arg5[%c16_784, %c12_785] : memref<20x20xf32, #tpu.memory_space<smem>>
    %c16_786 = arith.constant 16 : index
    %c13_787 = arith.constant 13 : index
    %413 = memref.load %arg5[%c16_786, %c13_787] : memref<20x20xf32, #tpu.memory_space<smem>>
    %c16_788 = arith.constant 16 : index
    %c14_789 = arith.constant 14 : index
    %414 = memref.load %arg5[%c16_788, %c14_789] : memref<20x20xf32, #tpu.memory_space<smem>>
    %c16_790 = arith.constant 16 : index
    %c15_791 = arith.constant 15 : index
    %415 = memref.load %arg5[%c16_790, %c15_791] : memref<20x20xf32, #tpu.memory_space<smem>>
    %c16_792 = arith.constant 16 : index
    %c16_793 = arith.constant 16 : index
    %416 = memref.load %arg5[%c16_792, %c16_793] : memref<20x20xf32, #tpu.memory_space<smem>>
    %c16_794 = arith.constant 16 : index
    %c17_795 = arith.constant 17 : index
    %417 = memref.load %arg5[%c16_794, %c17_795] : memref<20x20xf32, #tpu.memory_space<smem>>
    %c16_796 = arith.constant 16 : index
    %c18_797 = arith.constant 18 : index
    %418 = memref.load %arg5[%c16_796, %c18_797] : memref<20x20xf32, #tpu.memory_space<smem>>
    %c16_798 = arith.constant 16 : index
    %c19_799 = arith.constant 19 : index
    %419 = memref.load %arg5[%c16_798, %c19_799] : memref<20x20xf32, #tpu.memory_space<smem>>
    %c17_800 = arith.constant 17 : index
    %c0_801 = arith.constant 0 : index
    %420 = memref.load %arg5[%c17_800, %c0_801] : memref<20x20xf32, #tpu.memory_space<smem>>
    %c17_802 = arith.constant 17 : index
    %c1_803 = arith.constant 1 : index
    %421 = memref.load %arg5[%c17_802, %c1_803] : memref<20x20xf32, #tpu.memory_space<smem>>
    %c17_804 = arith.constant 17 : index
    %c2_805 = arith.constant 2 : index
    %422 = memref.load %arg5[%c17_804, %c2_805] : memref<20x20xf32, #tpu.memory_space<smem>>
    %c17_806 = arith.constant 17 : index
    %c3_807 = arith.constant 3 : index
    %423 = memref.load %arg5[%c17_806, %c3_807] : memref<20x20xf32, #tpu.memory_space<smem>>
    %c17_808 = arith.constant 17 : index
    %c4_809 = arith.constant 4 : index
    %424 = memref.load %arg5[%c17_808, %c4_809] : memref<20x20xf32, #tpu.memory_space<smem>>
    %c17_810 = arith.constant 17 : index
    %c5_811 = arith.constant 5 : index
    %425 = memref.load %arg5[%c17_810, %c5_811] : memref<20x20xf32, #tpu.memory_space<smem>>
    %c17_812 = arith.constant 17 : index
    %c6_813 = arith.constant 6 : index
    %426 = memref.load %arg5[%c17_812, %c6_813] : memref<20x20xf32, #tpu.memory_space<smem>>
    %c17_814 = arith.constant 17 : index
    %c7_815 = arith.constant 7 : index
    %427 = memref.load %arg5[%c17_814, %c7_815] : memref<20x20xf32, #tpu.memory_space<smem>>
    %c17_816 = arith.constant 17 : index
    %c8_817 = arith.constant 8 : index
    %428 = memref.load %arg5[%c17_816, %c8_817] : memref<20x20xf32, #tpu.memory_space<smem>>
    %c17_818 = arith.constant 17 : index
    %c9_819 = arith.constant 9 : index
    %429 = memref.load %arg5[%c17_818, %c9_819] : memref<20x20xf32, #tpu.memory_space<smem>>
    %c17_820 = arith.constant 17 : index
    %c10_821 = arith.constant 10 : index
    %430 = memref.load %arg5[%c17_820, %c10_821] : memref<20x20xf32, #tpu.memory_space<smem>>
    %c17_822 = arith.constant 17 : index
    %c11_823 = arith.constant 11 : index
    %431 = memref.load %arg5[%c17_822, %c11_823] : memref<20x20xf32, #tpu.memory_space<smem>>
    %c17_824 = arith.constant 17 : index
    %c12_825 = arith.constant 12 : index
    %432 = memref.load %arg5[%c17_824, %c12_825] : memref<20x20xf32, #tpu.memory_space<smem>>
    %c17_826 = arith.constant 17 : index
    %c13_827 = arith.constant 13 : index
    %433 = memref.load %arg5[%c17_826, %c13_827] : memref<20x20xf32, #tpu.memory_space<smem>>
    %c17_828 = arith.constant 17 : index
    %c14_829 = arith.constant 14 : index
    %434 = memref.load %arg5[%c17_828, %c14_829] : memref<20x20xf32, #tpu.memory_space<smem>>
    %c17_830 = arith.constant 17 : index
    %c15_831 = arith.constant 15 : index
    %435 = memref.load %arg5[%c17_830, %c15_831] : memref<20x20xf32, #tpu.memory_space<smem>>
    %c17_832 = arith.constant 17 : index
    %c16_833 = arith.constant 16 : index
    %436 = memref.load %arg5[%c17_832, %c16_833] : memref<20x20xf32, #tpu.memory_space<smem>>
    %c17_834 = arith.constant 17 : index
    %c17_835 = arith.constant 17 : index
    %437 = memref.load %arg5[%c17_834, %c17_835] : memref<20x20xf32, #tpu.memory_space<smem>>
    %c17_836 = arith.constant 17 : index
    %c18_837 = arith.constant 18 : index
    %438 = memref.load %arg5[%c17_836, %c18_837] : memref<20x20xf32, #tpu.memory_space<smem>>
    %c17_838 = arith.constant 17 : index
    %c19_839 = arith.constant 19 : index
    %439 = memref.load %arg5[%c17_838, %c19_839] : memref<20x20xf32, #tpu.memory_space<smem>>
    %c18_840 = arith.constant 18 : index
    %c0_841 = arith.constant 0 : index
    %440 = memref.load %arg5[%c18_840, %c0_841] : memref<20x20xf32, #tpu.memory_space<smem>>
    %c18_842 = arith.constant 18 : index
    %c1_843 = arith.constant 1 : index
    %441 = memref.load %arg5[%c18_842, %c1_843] : memref<20x20xf32, #tpu.memory_space<smem>>
    %c18_844 = arith.constant 18 : index
    %c2_845 = arith.constant 2 : index
    %442 = memref.load %arg5[%c18_844, %c2_845] : memref<20x20xf32, #tpu.memory_space<smem>>
    %c18_846 = arith.constant 18 : index
    %c3_847 = arith.constant 3 : index
    %443 = memref.load %arg5[%c18_846, %c3_847] : memref<20x20xf32, #tpu.memory_space<smem>>
    %c18_848 = arith.constant 18 : index
    %c4_849 = arith.constant 4 : index
    %444 = memref.load %arg5[%c18_848, %c4_849] : memref<20x20xf32, #tpu.memory_space<smem>>
    %c18_850 = arith.constant 18 : index
    %c5_851 = arith.constant 5 : index
    %445 = memref.load %arg5[%c18_850, %c5_851] : memref<20x20xf32, #tpu.memory_space<smem>>
    %c18_852 = arith.constant 18 : index
    %c6_853 = arith.constant 6 : index
    %446 = memref.load %arg5[%c18_852, %c6_853] : memref<20x20xf32, #tpu.memory_space<smem>>
    %c18_854 = arith.constant 18 : index
    %c7_855 = arith.constant 7 : index
    %447 = memref.load %arg5[%c18_854, %c7_855] : memref<20x20xf32, #tpu.memory_space<smem>>
    %c18_856 = arith.constant 18 : index
    %c8_857 = arith.constant 8 : index
    %448 = memref.load %arg5[%c18_856, %c8_857] : memref<20x20xf32, #tpu.memory_space<smem>>
    %c18_858 = arith.constant 18 : index
    %c9_859 = arith.constant 9 : index
    %449 = memref.load %arg5[%c18_858, %c9_859] : memref<20x20xf32, #tpu.memory_space<smem>>
    %c18_860 = arith.constant 18 : index
    %c10_861 = arith.constant 10 : index
    %450 = memref.load %arg5[%c18_860, %c10_861] : memref<20x20xf32, #tpu.memory_space<smem>>
    %c18_862 = arith.constant 18 : index
    %c11_863 = arith.constant 11 : index
    %451 = memref.load %arg5[%c18_862, %c11_863] : memref<20x20xf32, #tpu.memory_space<smem>>
    %c18_864 = arith.constant 18 : index
    %c12_865 = arith.constant 12 : index
    %452 = memref.load %arg5[%c18_864, %c12_865] : memref<20x20xf32, #tpu.memory_space<smem>>
    %c18_866 = arith.constant 18 : index
    %c13_867 = arith.constant 13 : index
    %453 = memref.load %arg5[%c18_866, %c13_867] : memref<20x20xf32, #tpu.memory_space<smem>>
    %c18_868 = arith.constant 18 : index
    %c14_869 = arith.constant 14 : index
    %454 = memref.load %arg5[%c18_868, %c14_869] : memref<20x20xf32, #tpu.memory_space<smem>>
    %c18_870 = arith.constant 18 : index
    %c15_871 = arith.constant 15 : index
    %455 = memref.load %arg5[%c18_870, %c15_871] : memref<20x20xf32, #tpu.memory_space<smem>>
    %c18_872 = arith.constant 18 : index
    %c16_873 = arith.constant 16 : index
    %456 = memref.load %arg5[%c18_872, %c16_873] : memref<20x20xf32, #tpu.memory_space<smem>>
    %c18_874 = arith.constant 18 : index
    %c17_875 = arith.constant 17 : index
    %457 = memref.load %arg5[%c18_874, %c17_875] : memref<20x20xf32, #tpu.memory_space<smem>>
    %c18_876 = arith.constant 18 : index
    %c18_877 = arith.constant 18 : index
    %458 = memref.load %arg5[%c18_876, %c18_877] : memref<20x20xf32, #tpu.memory_space<smem>>
    %c18_878 = arith.constant 18 : index
    %c19_879 = arith.constant 19 : index
    %459 = memref.load %arg5[%c18_878, %c19_879] : memref<20x20xf32, #tpu.memory_space<smem>>
    %c19_880 = arith.constant 19 : index
    %c0_881 = arith.constant 0 : index
    %460 = memref.load %arg5[%c19_880, %c0_881] : memref<20x20xf32, #tpu.memory_space<smem>>
    %c19_882 = arith.constant 19 : index
    %c1_883 = arith.constant 1 : index
    %461 = memref.load %arg5[%c19_882, %c1_883] : memref<20x20xf32, #tpu.memory_space<smem>>
    %c19_884 = arith.constant 19 : index
    %c2_885 = arith.constant 2 : index
    %462 = memref.load %arg5[%c19_884, %c2_885] : memref<20x20xf32, #tpu.memory_space<smem>>
    %c19_886 = arith.constant 19 : index
    %c3_887 = arith.constant 3 : index
    %463 = memref.load %arg5[%c19_886, %c3_887] : memref<20x20xf32, #tpu.memory_space<smem>>
    %c19_888 = arith.constant 19 : index
    %c4_889 = arith.constant 4 : index
    %464 = memref.load %arg5[%c19_888, %c4_889] : memref<20x20xf32, #tpu.memory_space<smem>>
    %c19_890 = arith.constant 19 : index
    %c5_891 = arith.constant 5 : index
    %465 = memref.load %arg5[%c19_890, %c5_891] : memref<20x20xf32, #tpu.memory_space<smem>>
    %c19_892 = arith.constant 19 : index
    %c6_893 = arith.constant 6 : index
    %466 = memref.load %arg5[%c19_892, %c6_893] : memref<20x20xf32, #tpu.memory_space<smem>>
    %c19_894 = arith.constant 19 : index
    %c7_895 = arith.constant 7 : index
    %467 = memref.load %arg5[%c19_894, %c7_895] : memref<20x20xf32, #tpu.memory_space<smem>>
    %c19_896 = arith.constant 19 : index
    %c8_897 = arith.constant 8 : index
    %468 = memref.load %arg5[%c19_896, %c8_897] : memref<20x20xf32, #tpu.memory_space<smem>>
    %c19_898 = arith.constant 19 : index
    %c9_899 = arith.constant 9 : index
    %469 = memref.load %arg5[%c19_898, %c9_899] : memref<20x20xf32, #tpu.memory_space<smem>>
    %c19_900 = arith.constant 19 : index
    %c10_901 = arith.constant 10 : index
    %470 = memref.load %arg5[%c19_900, %c10_901] : memref<20x20xf32, #tpu.memory_space<smem>>
    %c19_902 = arith.constant 19 : index
    %c11_903 = arith.constant 11 : index
    %471 = memref.load %arg5[%c19_902, %c11_903] : memref<20x20xf32, #tpu.memory_space<smem>>
    %c19_904 = arith.constant 19 : index
    %c12_905 = arith.constant 12 : index
    %472 = memref.load %arg5[%c19_904, %c12_905] : memref<20x20xf32, #tpu.memory_space<smem>>
    %c19_906 = arith.constant 19 : index
    %c13_907 = arith.constant 13 : index
    %473 = memref.load %arg5[%c19_906, %c13_907] : memref<20x20xf32, #tpu.memory_space<smem>>
    %c19_908 = arith.constant 19 : index
    %c14_909 = arith.constant 14 : index
    %474 = memref.load %arg5[%c19_908, %c14_909] : memref<20x20xf32, #tpu.memory_space<smem>>
    %c19_910 = arith.constant 19 : index
    %c15_911 = arith.constant 15 : index
    %475 = memref.load %arg5[%c19_910, %c15_911] : memref<20x20xf32, #tpu.memory_space<smem>>
    %c19_912 = arith.constant 19 : index
    %c16_913 = arith.constant 16 : index
    %476 = memref.load %arg5[%c19_912, %c16_913] : memref<20x20xf32, #tpu.memory_space<smem>>
    %c19_914 = arith.constant 19 : index
    %c17_915 = arith.constant 17 : index
    %477 = memref.load %arg5[%c19_914, %c17_915] : memref<20x20xf32, #tpu.memory_space<smem>>
    %c19_916 = arith.constant 19 : index
    %c18_917 = arith.constant 18 : index
    %478 = memref.load %arg5[%c19_916, %c18_917] : memref<20x20xf32, #tpu.memory_space<smem>>
    %c19_918 = arith.constant 19 : index
    %c19_919 = arith.constant 19 : index
    %479 = memref.load %arg5[%c19_918, %c19_919] : memref<20x20xf32, #tpu.memory_space<smem>>
    %c0_920 = arith.constant 0 : index
    %480 = memref.load %arg6[%c0_920] : memref<20xf32, #tpu.memory_space<smem>>
    %c1_921 = arith.constant 1 : index
    %481 = memref.load %arg6[%c1_921] : memref<20xf32, #tpu.memory_space<smem>>
    %c2_922 = arith.constant 2 : index
    %482 = memref.load %arg6[%c2_922] : memref<20xf32, #tpu.memory_space<smem>>
    %c3_923 = arith.constant 3 : index
    %483 = memref.load %arg6[%c3_923] : memref<20xf32, #tpu.memory_space<smem>>
    %c4_924 = arith.constant 4 : index
    %484 = memref.load %arg6[%c4_924] : memref<20xf32, #tpu.memory_space<smem>>
    %c5_925 = arith.constant 5 : index
    %485 = memref.load %arg6[%c5_925] : memref<20xf32, #tpu.memory_space<smem>>
    %c6_926 = arith.constant 6 : index
    %486 = memref.load %arg6[%c6_926] : memref<20xf32, #tpu.memory_space<smem>>
    %c7_927 = arith.constant 7 : index
    %487 = memref.load %arg6[%c7_927] : memref<20xf32, #tpu.memory_space<smem>>
    %c8_928 = arith.constant 8 : index
    %488 = memref.load %arg6[%c8_928] : memref<20xf32, #tpu.memory_space<smem>>
    %c9_929 = arith.constant 9 : index
    %489 = memref.load %arg6[%c9_929] : memref<20xf32, #tpu.memory_space<smem>>
    %c10_930 = arith.constant 10 : index
    %490 = memref.load %arg6[%c10_930] : memref<20xf32, #tpu.memory_space<smem>>
    %c11_931 = arith.constant 11 : index
    %491 = memref.load %arg6[%c11_931] : memref<20xf32, #tpu.memory_space<smem>>
    %c12_932 = arith.constant 12 : index
    %492 = memref.load %arg6[%c12_932] : memref<20xf32, #tpu.memory_space<smem>>
    %c13_933 = arith.constant 13 : index
    %493 = memref.load %arg6[%c13_933] : memref<20xf32, #tpu.memory_space<smem>>
    %c14_934 = arith.constant 14 : index
    %494 = memref.load %arg6[%c14_934] : memref<20xf32, #tpu.memory_space<smem>>
    %c15_935 = arith.constant 15 : index
    %495 = memref.load %arg6[%c15_935] : memref<20xf32, #tpu.memory_space<smem>>
    %c16_936 = arith.constant 16 : index
    %496 = memref.load %arg6[%c16_936] : memref<20xf32, #tpu.memory_space<smem>>
    %c17_937 = arith.constant 17 : index
    %497 = memref.load %arg6[%c17_937] : memref<20xf32, #tpu.memory_space<smem>>
    %c18_938 = arith.constant 18 : index
    %498 = memref.load %arg6[%c18_938] : memref<20xf32, #tpu.memory_space<smem>>
    %c19_939 = arith.constant 19 : index
    %499 = memref.load %arg6[%c19_939] : memref<20xf32, #tpu.memory_space<smem>>
    %c0_940 = arith.constant 0 : index
    %c0_941 = arith.constant 0 : index
    %500 = memref.load %arg7[%c0_940, %c0_941] : memref<2x20xf32, #tpu.memory_space<smem>>
    %c0_942 = arith.constant 0 : index
    %c1_943 = arith.constant 1 : index
    %501 = memref.load %arg7[%c0_942, %c1_943] : memref<2x20xf32, #tpu.memory_space<smem>>
    %c0_944 = arith.constant 0 : index
    %c2_945 = arith.constant 2 : index
    %502 = memref.load %arg7[%c0_944, %c2_945] : memref<2x20xf32, #tpu.memory_space<smem>>
    %c0_946 = arith.constant 0 : index
    %c3_947 = arith.constant 3 : index
    %503 = memref.load %arg7[%c0_946, %c3_947] : memref<2x20xf32, #tpu.memory_space<smem>>
    %c0_948 = arith.constant 0 : index
    %c4_949 = arith.constant 4 : index
    %504 = memref.load %arg7[%c0_948, %c4_949] : memref<2x20xf32, #tpu.memory_space<smem>>
    %c0_950 = arith.constant 0 : index
    %c5_951 = arith.constant 5 : index
    %505 = memref.load %arg7[%c0_950, %c5_951] : memref<2x20xf32, #tpu.memory_space<smem>>
    %c0_952 = arith.constant 0 : index
    %c6_953 = arith.constant 6 : index
    %506 = memref.load %arg7[%c0_952, %c6_953] : memref<2x20xf32, #tpu.memory_space<smem>>
    %c0_954 = arith.constant 0 : index
    %c7_955 = arith.constant 7 : index
    %507 = memref.load %arg7[%c0_954, %c7_955] : memref<2x20xf32, #tpu.memory_space<smem>>
    %c0_956 = arith.constant 0 : index
    %c8_957 = arith.constant 8 : index
    %508 = memref.load %arg7[%c0_956, %c8_957] : memref<2x20xf32, #tpu.memory_space<smem>>
    %c0_958 = arith.constant 0 : index
    %c9_959 = arith.constant 9 : index
    %509 = memref.load %arg7[%c0_958, %c9_959] : memref<2x20xf32, #tpu.memory_space<smem>>
    %c0_960 = arith.constant 0 : index
    %c10_961 = arith.constant 10 : index
    %510 = memref.load %arg7[%c0_960, %c10_961] : memref<2x20xf32, #tpu.memory_space<smem>>
    %c0_962 = arith.constant 0 : index
    %c11_963 = arith.constant 11 : index
    %511 = memref.load %arg7[%c0_962, %c11_963] : memref<2x20xf32, #tpu.memory_space<smem>>
    %c0_964 = arith.constant 0 : index
    %c12_965 = arith.constant 12 : index
    %512 = memref.load %arg7[%c0_964, %c12_965] : memref<2x20xf32, #tpu.memory_space<smem>>
    %c0_966 = arith.constant 0 : index
    %c13_967 = arith.constant 13 : index
    %513 = memref.load %arg7[%c0_966, %c13_967] : memref<2x20xf32, #tpu.memory_space<smem>>
    %c0_968 = arith.constant 0 : index
    %c14_969 = arith.constant 14 : index
    %514 = memref.load %arg7[%c0_968, %c14_969] : memref<2x20xf32, #tpu.memory_space<smem>>
    %c0_970 = arith.constant 0 : index
    %c15_971 = arith.constant 15 : index
    %515 = memref.load %arg7[%c0_970, %c15_971] : memref<2x20xf32, #tpu.memory_space<smem>>
    %c0_972 = arith.constant 0 : index
    %c16_973 = arith.constant 16 : index
    %516 = memref.load %arg7[%c0_972, %c16_973] : memref<2x20xf32, #tpu.memory_space<smem>>
    %c0_974 = arith.constant 0 : index
    %c17_975 = arith.constant 17 : index
    %517 = memref.load %arg7[%c0_974, %c17_975] : memref<2x20xf32, #tpu.memory_space<smem>>
    %c0_976 = arith.constant 0 : index
    %c18_977 = arith.constant 18 : index
    %518 = memref.load %arg7[%c0_976, %c18_977] : memref<2x20xf32, #tpu.memory_space<smem>>
    %c0_978 = arith.constant 0 : index
    %c19_979 = arith.constant 19 : index
    %519 = memref.load %arg7[%c0_978, %c19_979] : memref<2x20xf32, #tpu.memory_space<smem>>
    %c1_980 = arith.constant 1 : index
    %c0_981 = arith.constant 0 : index
    %520 = memref.load %arg7[%c1_980, %c0_981] : memref<2x20xf32, #tpu.memory_space<smem>>
    %c1_982 = arith.constant 1 : index
    %c1_983 = arith.constant 1 : index
    %521 = memref.load %arg7[%c1_982, %c1_983] : memref<2x20xf32, #tpu.memory_space<smem>>
    %c1_984 = arith.constant 1 : index
    %c2_985 = arith.constant 2 : index
    %522 = memref.load %arg7[%c1_984, %c2_985] : memref<2x20xf32, #tpu.memory_space<smem>>
    %c1_986 = arith.constant 1 : index
    %c3_987 = arith.constant 3 : index
    %523 = memref.load %arg7[%c1_986, %c3_987] : memref<2x20xf32, #tpu.memory_space<smem>>
    %c1_988 = arith.constant 1 : index
    %c4_989 = arith.constant 4 : index
    %524 = memref.load %arg7[%c1_988, %c4_989] : memref<2x20xf32, #tpu.memory_space<smem>>
    %c1_990 = arith.constant 1 : index
    %c5_991 = arith.constant 5 : index
    %525 = memref.load %arg7[%c1_990, %c5_991] : memref<2x20xf32, #tpu.memory_space<smem>>
    %c1_992 = arith.constant 1 : index
    %c6_993 = arith.constant 6 : index
    %526 = memref.load %arg7[%c1_992, %c6_993] : memref<2x20xf32, #tpu.memory_space<smem>>
    %c1_994 = arith.constant 1 : index
    %c7_995 = arith.constant 7 : index
    %527 = memref.load %arg7[%c1_994, %c7_995] : memref<2x20xf32, #tpu.memory_space<smem>>
    %c1_996 = arith.constant 1 : index
    %c8_997 = arith.constant 8 : index
    %528 = memref.load %arg7[%c1_996, %c8_997] : memref<2x20xf32, #tpu.memory_space<smem>>
    %c1_998 = arith.constant 1 : index
    %c9_999 = arith.constant 9 : index
    %529 = memref.load %arg7[%c1_998, %c9_999] : memref<2x20xf32, #tpu.memory_space<smem>>
    %c1_1000 = arith.constant 1 : index
    %c10_1001 = arith.constant 10 : index
    %530 = memref.load %arg7[%c1_1000, %c10_1001] : memref<2x20xf32, #tpu.memory_space<smem>>
    %c1_1002 = arith.constant 1 : index
    %c11_1003 = arith.constant 11 : index
    %531 = memref.load %arg7[%c1_1002, %c11_1003] : memref<2x20xf32, #tpu.memory_space<smem>>
    %c1_1004 = arith.constant 1 : index
    %c12_1005 = arith.constant 12 : index
    %532 = memref.load %arg7[%c1_1004, %c12_1005] : memref<2x20xf32, #tpu.memory_space<smem>>
    %c1_1006 = arith.constant 1 : index
    %c13_1007 = arith.constant 13 : index
    %533 = memref.load %arg7[%c1_1006, %c13_1007] : memref<2x20xf32, #tpu.memory_space<smem>>
    %c1_1008 = arith.constant 1 : index
    %c14_1009 = arith.constant 14 : index
    %534 = memref.load %arg7[%c1_1008, %c14_1009] : memref<2x20xf32, #tpu.memory_space<smem>>
    %c1_1010 = arith.constant 1 : index
    %c15_1011 = arith.constant 15 : index
    %535 = memref.load %arg7[%c1_1010, %c15_1011] : memref<2x20xf32, #tpu.memory_space<smem>>
    %c1_1012 = arith.constant 1 : index
    %c16_1013 = arith.constant 16 : index
    %536 = memref.load %arg7[%c1_1012, %c16_1013] : memref<2x20xf32, #tpu.memory_space<smem>>
    %c1_1014 = arith.constant 1 : index
    %c17_1015 = arith.constant 17 : index
    %537 = memref.load %arg7[%c1_1014, %c17_1015] : memref<2x20xf32, #tpu.memory_space<smem>>
    %c1_1016 = arith.constant 1 : index
    %c18_1017 = arith.constant 18 : index
    %538 = memref.load %arg7[%c1_1016, %c18_1017] : memref<2x20xf32, #tpu.memory_space<smem>>
    %c1_1018 = arith.constant 1 : index
    %c19_1019 = arith.constant 19 : index
    %539 = memref.load %arg7[%c1_1018, %c19_1019] : memref<2x20xf32, #tpu.memory_space<smem>>
    %c0_1020 = arith.constant 0 : index
    %540 = memref.load %arg8[%c0_1020] : memref<2xf32, #tpu.memory_space<smem>>
    %c1_1021 = arith.constant 1 : index
    %541 = memref.load %arg8[%c1_1021] : memref<2xf32, #tpu.memory_space<smem>>
    %c0_i32 = arith.constant 0 : i32
    %c2_i32 = arith.constant 2 : i32
    %542 = arith.addi %c0_i32, %c2_i32 : i32
    %c1_i32 = arith.constant 1 : i32
    scf.for %arg10 = %c0_i32 to %542 step %c1_i32  : i32 {
      %c1_i32_1023 = arith.constant 1 : i32
      %543 = arith.muli %arg10, %c1_i32_1023 : i32
      %c0_i32_1024 = arith.constant 0 : i32
      %544 = arith.addi %c0_i32_1024, %543 : i32
      %c8_i32 = arith.constant 8 : i32
      %545 = arith.muli %544, %c8_i32 : i32
      %546 = tpu.assume_multiple %545, 8 : i32
      %c0_1025 = arith.constant 0 : index
      %547 = arith.index_cast %546 : i32 to index
      %c0_1026 = arith.constant 0 : index
      %548 = vector.load %arg1[%c0_1025, %547, %c0_1026] : memref<2x16x128xf32, #tpu.memory_space<vmem>>, vector<1x8x128xf32>
      %549 = vector.shape_cast %548 : vector<1x8x128xf32> to vector<8x128xf32>
      %c1_1027 = arith.constant 1 : index
      %550 = arith.index_cast %546 : i32 to index
      %c0_1028 = arith.constant 0 : index
      %551 = vector.load %arg1[%c1_1027, %550, %c0_1028] : memref<2x16x128xf32, #tpu.memory_space<vmem>>, vector<1x8x128xf32>
      %552 = vector.shape_cast %551 : vector<1x8x128xf32> to vector<8x128xf32>
      %c0_1029 = arith.constant 0 : index
      %553 = arith.index_cast %546 : i32 to index
      %c0_1030 = arith.constant 0 : index
      %554 = vector.load %arg2[%c0_1029, %553, %c0_1030] : memref<1x16x128xf32, #tpu.memory_space<vmem>>, vector<1x8x128xf32>
      %555 = vector.shape_cast %554 : vector<1x8x128xf32> to vector<8x128xf32>
      %556 = vector.broadcast %0 : f32 to vector<8x128xf32>
      %557 = arith.mulf %556, %549 : vector<8x128xf32>
      %558 = vector.broadcast %1 : f32 to vector<8x128xf32>
      %559 = arith.mulf %558, %552 : vector<8x128xf32>
      %560 = arith.addf %557, %559 : vector<8x128xf32>
      %561 = vector.broadcast %2 : f32 to vector<8x128xf32>
      %562 = arith.mulf %561, %555 : vector<8x128xf32>
      %563 = arith.addf %560, %562 : vector<8x128xf32>
      %564 = vector.broadcast %60 : f32 to vector<8x128xf32>
      %565 = arith.addf %563, %564 : vector<8x128xf32>
      %cst = arith.constant 0.000000e+00 : f32
      %566 = vector.broadcast %cst : f32 to vector<8x128xf32>
      %567 = arith.maximumf %565, %566 : vector<8x128xf32>
      %568 = vector.broadcast %3 : f32 to vector<8x128xf32>
      %569 = arith.mulf %568, %549 : vector<8x128xf32>
      %570 = vector.broadcast %4 : f32 to vector<8x128xf32>
      %571 = arith.mulf %570, %552 : vector<8x128xf32>
      %572 = arith.addf %569, %571 : vector<8x128xf32>
      %573 = vector.broadcast %5 : f32 to vector<8x128xf32>
      %574 = arith.mulf %573, %555 : vector<8x128xf32>
      %575 = arith.addf %572, %574 : vector<8x128xf32>
      %576 = vector.broadcast %61 : f32 to vector<8x128xf32>
      %577 = arith.addf %575, %576 : vector<8x128xf32>
      %cst_1031 = arith.constant 0.000000e+00 : f32
      %578 = vector.broadcast %cst_1031 : f32 to vector<8x128xf32>
      %579 = arith.maximumf %577, %578 : vector<8x128xf32>
      %580 = vector.broadcast %6 : f32 to vector<8x128xf32>
      %581 = arith.mulf %580, %549 : vector<8x128xf32>
      %582 = vector.broadcast %7 : f32 to vector<8x128xf32>
      %583 = arith.mulf %582, %552 : vector<8x128xf32>
      %584 = arith.addf %581, %583 : vector<8x128xf32>
      %585 = vector.broadcast %8 : f32 to vector<8x128xf32>
      %586 = arith.mulf %585, %555 : vector<8x128xf32>
      %587 = arith.addf %584, %586 : vector<8x128xf32>
      %588 = vector.broadcast %62 : f32 to vector<8x128xf32>
      %589 = arith.addf %587, %588 : vector<8x128xf32>
      %cst_1032 = arith.constant 0.000000e+00 : f32
      %590 = vector.broadcast %cst_1032 : f32 to vector<8x128xf32>
      %591 = arith.maximumf %589, %590 : vector<8x128xf32>
      %592 = vector.broadcast %9 : f32 to vector<8x128xf32>
      %593 = arith.mulf %592, %549 : vector<8x128xf32>
      %594 = vector.broadcast %10 : f32 to vector<8x128xf32>
      %595 = arith.mulf %594, %552 : vector<8x128xf32>
      %596 = arith.addf %593, %595 : vector<8x128xf32>
      %597 = vector.broadcast %11 : f32 to vector<8x128xf32>
      %598 = arith.mulf %597, %555 : vector<8x128xf32>
      %599 = arith.addf %596, %598 : vector<8x128xf32>
      %600 = vector.broadcast %63 : f32 to vector<8x128xf32>
      %601 = arith.addf %599, %600 : vector<8x128xf32>
      %cst_1033 = arith.constant 0.000000e+00 : f32
      %602 = vector.broadcast %cst_1033 : f32 to vector<8x128xf32>
      %603 = arith.maximumf %601, %602 : vector<8x128xf32>
      %604 = vector.broadcast %12 : f32 to vector<8x128xf32>
      %605 = arith.mulf %604, %549 : vector<8x128xf32>
      %606 = vector.broadcast %13 : f32 to vector<8x128xf32>
      %607 = arith.mulf %606, %552 : vector<8x128xf32>
      %608 = arith.addf %605, %607 : vector<8x128xf32>
      %609 = vector.broadcast %14 : f32 to vector<8x128xf32>
      %610 = arith.mulf %609, %555 : vector<8x128xf32>
      %611 = arith.addf %608, %610 : vector<8x128xf32>
      %612 = vector.broadcast %64 : f32 to vector<8x128xf32>
      %613 = arith.addf %611, %612 : vector<8x128xf32>
      %cst_1034 = arith.constant 0.000000e+00 : f32
      %614 = vector.broadcast %cst_1034 : f32 to vector<8x128xf32>
      %615 = arith.maximumf %613, %614 : vector<8x128xf32>
      %616 = vector.broadcast %15 : f32 to vector<8x128xf32>
      %617 = arith.mulf %616, %549 : vector<8x128xf32>
      %618 = vector.broadcast %16 : f32 to vector<8x128xf32>
      %619 = arith.mulf %618, %552 : vector<8x128xf32>
      %620 = arith.addf %617, %619 : vector<8x128xf32>
      %621 = vector.broadcast %17 : f32 to vector<8x128xf32>
      %622 = arith.mulf %621, %555 : vector<8x128xf32>
      %623 = arith.addf %620, %622 : vector<8x128xf32>
      %624 = vector.broadcast %65 : f32 to vector<8x128xf32>
      %625 = arith.addf %623, %624 : vector<8x128xf32>
      %cst_1035 = arith.constant 0.000000e+00 : f32
      %626 = vector.broadcast %cst_1035 : f32 to vector<8x128xf32>
      %627 = arith.maximumf %625, %626 : vector<8x128xf32>
      %628 = vector.broadcast %18 : f32 to vector<8x128xf32>
      %629 = arith.mulf %628, %549 : vector<8x128xf32>
      %630 = vector.broadcast %19 : f32 to vector<8x128xf32>
      %631 = arith.mulf %630, %552 : vector<8x128xf32>
      %632 = arith.addf %629, %631 : vector<8x128xf32>
      %633 = vector.broadcast %20 : f32 to vector<8x128xf32>
      %634 = arith.mulf %633, %555 : vector<8x128xf32>
      %635 = arith.addf %632, %634 : vector<8x128xf32>
      %636 = vector.broadcast %66 : f32 to vector<8x128xf32>
      %637 = arith.addf %635, %636 : vector<8x128xf32>
      %cst_1036 = arith.constant 0.000000e+00 : f32
      %638 = vector.broadcast %cst_1036 : f32 to vector<8x128xf32>
      %639 = arith.maximumf %637, %638 : vector<8x128xf32>
      %640 = vector.broadcast %21 : f32 to vector<8x128xf32>
      %641 = arith.mulf %640, %549 : vector<8x128xf32>
      %642 = vector.broadcast %22 : f32 to vector<8x128xf32>
      %643 = arith.mulf %642, %552 : vector<8x128xf32>
      %644 = arith.addf %641, %643 : vector<8x128xf32>
      %645 = vector.broadcast %23 : f32 to vector<8x128xf32>
      %646 = arith.mulf %645, %555 : vector<8x128xf32>
      %647 = arith.addf %644, %646 : vector<8x128xf32>
      %648 = vector.broadcast %67 : f32 to vector<8x128xf32>
      %649 = arith.addf %647, %648 : vector<8x128xf32>
      %cst_1037 = arith.constant 0.000000e+00 : f32
      %650 = vector.broadcast %cst_1037 : f32 to vector<8x128xf32>
      %651 = arith.maximumf %649, %650 : vector<8x128xf32>
      %652 = vector.broadcast %24 : f32 to vector<8x128xf32>
      %653 = arith.mulf %652, %549 : vector<8x128xf32>
      %654 = vector.broadcast %25 : f32 to vector<8x128xf32>
      %655 = arith.mulf %654, %552 : vector<8x128xf32>
      %656 = arith.addf %653, %655 : vector<8x128xf32>
      %657 = vector.broadcast %26 : f32 to vector<8x128xf32>
      %658 = arith.mulf %657, %555 : vector<8x128xf32>
      %659 = arith.addf %656, %658 : vector<8x128xf32>
      %660 = vector.broadcast %68 : f32 to vector<8x128xf32>
      %661 = arith.addf %659, %660 : vector<8x128xf32>
      %cst_1038 = arith.constant 0.000000e+00 : f32
      %662 = vector.broadcast %cst_1038 : f32 to vector<8x128xf32>
      %663 = arith.maximumf %661, %662 : vector<8x128xf32>
      %664 = vector.broadcast %27 : f32 to vector<8x128xf32>
      %665 = arith.mulf %664, %549 : vector<8x128xf32>
      %666 = vector.broadcast %28 : f32 to vector<8x128xf32>
      %667 = arith.mulf %666, %552 : vector<8x128xf32>
      %668 = arith.addf %665, %667 : vector<8x128xf32>
      %669 = vector.broadcast %29 : f32 to vector<8x128xf32>
      %670 = arith.mulf %669, %555 : vector<8x128xf32>
      %671 = arith.addf %668, %670 : vector<8x128xf32>
      %672 = vector.broadcast %69 : f32 to vector<8x128xf32>
      %673 = arith.addf %671, %672 : vector<8x128xf32>
      %cst_1039 = arith.constant 0.000000e+00 : f32
      %674 = vector.broadcast %cst_1039 : f32 to vector<8x128xf32>
      %675 = arith.maximumf %673, %674 : vector<8x128xf32>
      %676 = vector.broadcast %30 : f32 to vector<8x128xf32>
      %677 = arith.mulf %676, %549 : vector<8x128xf32>
      %678 = vector.broadcast %31 : f32 to vector<8x128xf32>
      %679 = arith.mulf %678, %552 : vector<8x128xf32>
      %680 = arith.addf %677, %679 : vector<8x128xf32>
      %681 = vector.broadcast %32 : f32 to vector<8x128xf32>
      %682 = arith.mulf %681, %555 : vector<8x128xf32>
      %683 = arith.addf %680, %682 : vector<8x128xf32>
      %684 = vector.broadcast %70 : f32 to vector<8x128xf32>
      %685 = arith.addf %683, %684 : vector<8x128xf32>
      %cst_1040 = arith.constant 0.000000e+00 : f32
      %686 = vector.broadcast %cst_1040 : f32 to vector<8x128xf32>
      %687 = arith.maximumf %685, %686 : vector<8x128xf32>
      %688 = vector.broadcast %33 : f32 to vector<8x128xf32>
      %689 = arith.mulf %688, %549 : vector<8x128xf32>
      %690 = vector.broadcast %34 : f32 to vector<8x128xf32>
      %691 = arith.mulf %690, %552 : vector<8x128xf32>
      %692 = arith.addf %689, %691 : vector<8x128xf32>
      %693 = vector.broadcast %35 : f32 to vector<8x128xf32>
      %694 = arith.mulf %693, %555 : vector<8x128xf32>
      %695 = arith.addf %692, %694 : vector<8x128xf32>
      %696 = vector.broadcast %71 : f32 to vector<8x128xf32>
      %697 = arith.addf %695, %696 : vector<8x128xf32>
      %cst_1041 = arith.constant 0.000000e+00 : f32
      %698 = vector.broadcast %cst_1041 : f32 to vector<8x128xf32>
      %699 = arith.maximumf %697, %698 : vector<8x128xf32>
      %700 = vector.broadcast %36 : f32 to vector<8x128xf32>
      %701 = arith.mulf %700, %549 : vector<8x128xf32>
      %702 = vector.broadcast %37 : f32 to vector<8x128xf32>
      %703 = arith.mulf %702, %552 : vector<8x128xf32>
      %704 = arith.addf %701, %703 : vector<8x128xf32>
      %705 = vector.broadcast %38 : f32 to vector<8x128xf32>
      %706 = arith.mulf %705, %555 : vector<8x128xf32>
      %707 = arith.addf %704, %706 : vector<8x128xf32>
      %708 = vector.broadcast %72 : f32 to vector<8x128xf32>
      %709 = arith.addf %707, %708 : vector<8x128xf32>
      %cst_1042 = arith.constant 0.000000e+00 : f32
      %710 = vector.broadcast %cst_1042 : f32 to vector<8x128xf32>
      %711 = arith.maximumf %709, %710 : vector<8x128xf32>
      %712 = vector.broadcast %39 : f32 to vector<8x128xf32>
      %713 = arith.mulf %712, %549 : vector<8x128xf32>
      %714 = vector.broadcast %40 : f32 to vector<8x128xf32>
      %715 = arith.mulf %714, %552 : vector<8x128xf32>
      %716 = arith.addf %713, %715 : vector<8x128xf32>
      %717 = vector.broadcast %41 : f32 to vector<8x128xf32>
      %718 = arith.mulf %717, %555 : vector<8x128xf32>
      %719 = arith.addf %716, %718 : vector<8x128xf32>
      %720 = vector.broadcast %73 : f32 to vector<8x128xf32>
      %721 = arith.addf %719, %720 : vector<8x128xf32>
      %cst_1043 = arith.constant 0.000000e+00 : f32
      %722 = vector.broadcast %cst_1043 : f32 to vector<8x128xf32>
      %723 = arith.maximumf %721, %722 : vector<8x128xf32>
      %724 = vector.broadcast %42 : f32 to vector<8x128xf32>
      %725 = arith.mulf %724, %549 : vector<8x128xf32>
      %726 = vector.broadcast %43 : f32 to vector<8x128xf32>
      %727 = arith.mulf %726, %552 : vector<8x128xf32>
      %728 = arith.addf %725, %727 : vector<8x128xf32>
      %729 = vector.broadcast %44 : f32 to vector<8x128xf32>
      %730 = arith.mulf %729, %555 : vector<8x128xf32>
      %731 = arith.addf %728, %730 : vector<8x128xf32>
      %732 = vector.broadcast %74 : f32 to vector<8x128xf32>
      %733 = arith.addf %731, %732 : vector<8x128xf32>
      %cst_1044 = arith.constant 0.000000e+00 : f32
      %734 = vector.broadcast %cst_1044 : f32 to vector<8x128xf32>
      %735 = arith.maximumf %733, %734 : vector<8x128xf32>
      %736 = vector.broadcast %45 : f32 to vector<8x128xf32>
      %737 = arith.mulf %736, %549 : vector<8x128xf32>
      %738 = vector.broadcast %46 : f32 to vector<8x128xf32>
      %739 = arith.mulf %738, %552 : vector<8x128xf32>
      %740 = arith.addf %737, %739 : vector<8x128xf32>
      %741 = vector.broadcast %47 : f32 to vector<8x128xf32>
      %742 = arith.mulf %741, %555 : vector<8x128xf32>
      %743 = arith.addf %740, %742 : vector<8x128xf32>
      %744 = vector.broadcast %75 : f32 to vector<8x128xf32>
      %745 = arith.addf %743, %744 : vector<8x128xf32>
      %cst_1045 = arith.constant 0.000000e+00 : f32
      %746 = vector.broadcast %cst_1045 : f32 to vector<8x128xf32>
      %747 = arith.maximumf %745, %746 : vector<8x128xf32>
      %748 = vector.broadcast %48 : f32 to vector<8x128xf32>
      %749 = arith.mulf %748, %549 : vector<8x128xf32>
      %750 = vector.broadcast %49 : f32 to vector<8x128xf32>
      %751 = arith.mulf %750, %552 : vector<8x128xf32>
      %752 = arith.addf %749, %751 : vector<8x128xf32>
      %753 = vector.broadcast %50 : f32 to vector<8x128xf32>
      %754 = arith.mulf %753, %555 : vector<8x128xf32>
      %755 = arith.addf %752, %754 : vector<8x128xf32>
      %756 = vector.broadcast %76 : f32 to vector<8x128xf32>
      %757 = arith.addf %755, %756 : vector<8x128xf32>
      %cst_1046 = arith.constant 0.000000e+00 : f32
      %758 = vector.broadcast %cst_1046 : f32 to vector<8x128xf32>
      %759 = arith.maximumf %757, %758 : vector<8x128xf32>
      %760 = vector.broadcast %51 : f32 to vector<8x128xf32>
      %761 = arith.mulf %760, %549 : vector<8x128xf32>
      %762 = vector.broadcast %52 : f32 to vector<8x128xf32>
      %763 = arith.mulf %762, %552 : vector<8x128xf32>
      %764 = arith.addf %761, %763 : vector<8x128xf32>
      %765 = vector.broadcast %53 : f32 to vector<8x128xf32>
      %766 = arith.mulf %765, %555 : vector<8x128xf32>
      %767 = arith.addf %764, %766 : vector<8x128xf32>
      %768 = vector.broadcast %77 : f32 to vector<8x128xf32>
      %769 = arith.addf %767, %768 : vector<8x128xf32>
      %cst_1047 = arith.constant 0.000000e+00 : f32
      %770 = vector.broadcast %cst_1047 : f32 to vector<8x128xf32>
      %771 = arith.maximumf %769, %770 : vector<8x128xf32>
      %772 = vector.broadcast %54 : f32 to vector<8x128xf32>
      %773 = arith.mulf %772, %549 : vector<8x128xf32>
      %774 = vector.broadcast %55 : f32 to vector<8x128xf32>
      %775 = arith.mulf %774, %552 : vector<8x128xf32>
      %776 = arith.addf %773, %775 : vector<8x128xf32>
      %777 = vector.broadcast %56 : f32 to vector<8x128xf32>
      %778 = arith.mulf %777, %555 : vector<8x128xf32>
      %779 = arith.addf %776, %778 : vector<8x128xf32>
      %780 = vector.broadcast %78 : f32 to vector<8x128xf32>
      %781 = arith.addf %779, %780 : vector<8x128xf32>
      %cst_1048 = arith.constant 0.000000e+00 : f32
      %782 = vector.broadcast %cst_1048 : f32 to vector<8x128xf32>
      %783 = arith.maximumf %781, %782 : vector<8x128xf32>
      %784 = vector.broadcast %57 : f32 to vector<8x128xf32>
      %785 = arith.mulf %784, %549 : vector<8x128xf32>
      %786 = vector.broadcast %58 : f32 to vector<8x128xf32>
      %787 = arith.mulf %786, %552 : vector<8x128xf32>
      %788 = arith.addf %785, %787 : vector<8x128xf32>
      %789 = vector.broadcast %59 : f32 to vector<8x128xf32>
      %790 = arith.mulf %789, %555 : vector<8x128xf32>
      %791 = arith.addf %788, %790 : vector<8x128xf32>
      %792 = vector.broadcast %79 : f32 to vector<8x128xf32>
      %793 = arith.addf %791, %792 : vector<8x128xf32>
      %cst_1049 = arith.constant 0.000000e+00 : f32
      %794 = vector.broadcast %cst_1049 : f32 to vector<8x128xf32>
      %795 = arith.maximumf %793, %794 : vector<8x128xf32>
      %796 = vector.broadcast %80 : f32 to vector<8x128xf32>
      %797 = arith.mulf %796, %567 : vector<8x128xf32>
      %798 = vector.broadcast %81 : f32 to vector<8x128xf32>
      %799 = arith.mulf %798, %579 : vector<8x128xf32>
      %800 = arith.addf %797, %799 : vector<8x128xf32>
      %801 = vector.broadcast %82 : f32 to vector<8x128xf32>
      %802 = arith.mulf %801, %591 : vector<8x128xf32>
      %803 = arith.addf %800, %802 : vector<8x128xf32>
      %804 = vector.broadcast %83 : f32 to vector<8x128xf32>
      %805 = arith.mulf %804, %603 : vector<8x128xf32>
      %806 = arith.addf %803, %805 : vector<8x128xf32>
      %807 = vector.broadcast %84 : f32 to vector<8x128xf32>
      %808 = arith.mulf %807, %615 : vector<8x128xf32>
      %809 = arith.addf %806, %808 : vector<8x128xf32>
      %810 = vector.broadcast %85 : f32 to vector<8x128xf32>
      %811 = arith.mulf %810, %627 : vector<8x128xf32>
      %812 = arith.addf %809, %811 : vector<8x128xf32>
      %813 = vector.broadcast %86 : f32 to vector<8x128xf32>
      %814 = arith.mulf %813, %639 : vector<8x128xf32>
      %815 = arith.addf %812, %814 : vector<8x128xf32>
      %816 = vector.broadcast %87 : f32 to vector<8x128xf32>
      %817 = arith.mulf %816, %651 : vector<8x128xf32>
      %818 = arith.addf %815, %817 : vector<8x128xf32>
      %819 = vector.broadcast %88 : f32 to vector<8x128xf32>
      %820 = arith.mulf %819, %663 : vector<8x128xf32>
      %821 = arith.addf %818, %820 : vector<8x128xf32>
      %822 = vector.broadcast %89 : f32 to vector<8x128xf32>
      %823 = arith.mulf %822, %675 : vector<8x128xf32>
      %824 = arith.addf %821, %823 : vector<8x128xf32>
      %825 = vector.broadcast %90 : f32 to vector<8x128xf32>
      %826 = arith.mulf %825, %687 : vector<8x128xf32>
      %827 = arith.addf %824, %826 : vector<8x128xf32>
      %828 = vector.broadcast %91 : f32 to vector<8x128xf32>
      %829 = arith.mulf %828, %699 : vector<8x128xf32>
      %830 = arith.addf %827, %829 : vector<8x128xf32>
      %831 = vector.broadcast %92 : f32 to vector<8x128xf32>
      %832 = arith.mulf %831, %711 : vector<8x128xf32>
      %833 = arith.addf %830, %832 : vector<8x128xf32>
      %834 = vector.broadcast %93 : f32 to vector<8x128xf32>
      %835 = arith.mulf %834, %723 : vector<8x128xf32>
      %836 = arith.addf %833, %835 : vector<8x128xf32>
      %837 = vector.broadcast %94 : f32 to vector<8x128xf32>
      %838 = arith.mulf %837, %735 : vector<8x128xf32>
      %839 = arith.addf %836, %838 : vector<8x128xf32>
      %840 = vector.broadcast %95 : f32 to vector<8x128xf32>
      %841 = arith.mulf %840, %747 : vector<8x128xf32>
      %842 = arith.addf %839, %841 : vector<8x128xf32>
      %843 = vector.broadcast %96 : f32 to vector<8x128xf32>
      %844 = arith.mulf %843, %759 : vector<8x128xf32>
      %845 = arith.addf %842, %844 : vector<8x128xf32>
      %846 = vector.broadcast %97 : f32 to vector<8x128xf32>
      %847 = arith.mulf %846, %771 : vector<8x128xf32>
      %848 = arith.addf %845, %847 : vector<8x128xf32>
      %849 = vector.broadcast %98 : f32 to vector<8x128xf32>
      %850 = arith.mulf %849, %783 : vector<8x128xf32>
      %851 = arith.addf %848, %850 : vector<8x128xf32>
      %852 = vector.broadcast %99 : f32 to vector<8x128xf32>
      %853 = arith.mulf %852, %795 : vector<8x128xf32>
      %854 = arith.addf %851, %853 : vector<8x128xf32>
      %855 = vector.broadcast %480 : f32 to vector<8x128xf32>
      %856 = arith.addf %854, %855 : vector<8x128xf32>
      %cst_1050 = arith.constant 0.000000e+00 : f32
      %857 = vector.broadcast %cst_1050 : f32 to vector<8x128xf32>
      %858 = arith.maximumf %856, %857 : vector<8x128xf32>
      %859 = vector.broadcast %500 : f32 to vector<8x128xf32>
      %860 = arith.mulf %859, %858 : vector<8x128xf32>
      %861 = vector.broadcast %520 : f32 to vector<8x128xf32>
      %862 = arith.mulf %861, %858 : vector<8x128xf32>
      %863 = vector.broadcast %100 : f32 to vector<8x128xf32>
      %864 = arith.mulf %863, %567 : vector<8x128xf32>
      %865 = vector.broadcast %101 : f32 to vector<8x128xf32>
      %866 = arith.mulf %865, %579 : vector<8x128xf32>
      %867 = arith.addf %864, %866 : vector<8x128xf32>
      %868 = vector.broadcast %102 : f32 to vector<8x128xf32>
      %869 = arith.mulf %868, %591 : vector<8x128xf32>
      %870 = arith.addf %867, %869 : vector<8x128xf32>
      %871 = vector.broadcast %103 : f32 to vector<8x128xf32>
      %872 = arith.mulf %871, %603 : vector<8x128xf32>
      %873 = arith.addf %870, %872 : vector<8x128xf32>
      %874 = vector.broadcast %104 : f32 to vector<8x128xf32>
      %875 = arith.mulf %874, %615 : vector<8x128xf32>
      %876 = arith.addf %873, %875 : vector<8x128xf32>
      %877 = vector.broadcast %105 : f32 to vector<8x128xf32>
      %878 = arith.mulf %877, %627 : vector<8x128xf32>
      %879 = arith.addf %876, %878 : vector<8x128xf32>
      %880 = vector.broadcast %106 : f32 to vector<8x128xf32>
      %881 = arith.mulf %880, %639 : vector<8x128xf32>
      %882 = arith.addf %879, %881 : vector<8x128xf32>
      %883 = vector.broadcast %107 : f32 to vector<8x128xf32>
      %884 = arith.mulf %883, %651 : vector<8x128xf32>
      %885 = arith.addf %882, %884 : vector<8x128xf32>
      %886 = vector.broadcast %108 : f32 to vector<8x128xf32>
      %887 = arith.mulf %886, %663 : vector<8x128xf32>
      %888 = arith.addf %885, %887 : vector<8x128xf32>
      %889 = vector.broadcast %109 : f32 to vector<8x128xf32>
      %890 = arith.mulf %889, %675 : vector<8x128xf32>
      %891 = arith.addf %888, %890 : vector<8x128xf32>
      %892 = vector.broadcast %110 : f32 to vector<8x128xf32>
      %893 = arith.mulf %892, %687 : vector<8x128xf32>
      %894 = arith.addf %891, %893 : vector<8x128xf32>
      %895 = vector.broadcast %111 : f32 to vector<8x128xf32>
      %896 = arith.mulf %895, %699 : vector<8x128xf32>
      %897 = arith.addf %894, %896 : vector<8x128xf32>
      %898 = vector.broadcast %112 : f32 to vector<8x128xf32>
      %899 = arith.mulf %898, %711 : vector<8x128xf32>
      %900 = arith.addf %897, %899 : vector<8x128xf32>
      %901 = vector.broadcast %113 : f32 to vector<8x128xf32>
      %902 = arith.mulf %901, %723 : vector<8x128xf32>
      %903 = arith.addf %900, %902 : vector<8x128xf32>
      %904 = vector.broadcast %114 : f32 to vector<8x128xf32>
      %905 = arith.mulf %904, %735 : vector<8x128xf32>
      %906 = arith.addf %903, %905 : vector<8x128xf32>
      %907 = vector.broadcast %115 : f32 to vector<8x128xf32>
      %908 = arith.mulf %907, %747 : vector<8x128xf32>
      %909 = arith.addf %906, %908 : vector<8x128xf32>
      %910 = vector.broadcast %116 : f32 to vector<8x128xf32>
      %911 = arith.mulf %910, %759 : vector<8x128xf32>
      %912 = arith.addf %909, %911 : vector<8x128xf32>
      %913 = vector.broadcast %117 : f32 to vector<8x128xf32>
      %914 = arith.mulf %913, %771 : vector<8x128xf32>
      %915 = arith.addf %912, %914 : vector<8x128xf32>
      %916 = vector.broadcast %118 : f32 to vector<8x128xf32>
      %917 = arith.mulf %916, %783 : vector<8x128xf32>
      %918 = arith.addf %915, %917 : vector<8x128xf32>
      %919 = vector.broadcast %119 : f32 to vector<8x128xf32>
      %920 = arith.mulf %919, %795 : vector<8x128xf32>
      %921 = arith.addf %918, %920 : vector<8x128xf32>
      %922 = vector.broadcast %481 : f32 to vector<8x128xf32>
      %923 = arith.addf %921, %922 : vector<8x128xf32>
      %cst_1051 = arith.constant 0.000000e+00 : f32
      %924 = vector.broadcast %cst_1051 : f32 to vector<8x128xf32>
      %925 = arith.maximumf %923, %924 : vector<8x128xf32>
      %926 = vector.broadcast %501 : f32 to vector<8x128xf32>
      %927 = arith.mulf %926, %925 : vector<8x128xf32>
      %928 = arith.addf %860, %927 : vector<8x128xf32>
      %929 = vector.broadcast %521 : f32 to vector<8x128xf32>
      %930 = arith.mulf %929, %925 : vector<8x128xf32>
      %931 = arith.addf %862, %930 : vector<8x128xf32>
      %932 = vector.broadcast %120 : f32 to vector<8x128xf32>
      %933 = arith.mulf %932, %567 : vector<8x128xf32>
      %934 = vector.broadcast %121 : f32 to vector<8x128xf32>
      %935 = arith.mulf %934, %579 : vector<8x128xf32>
      %936 = arith.addf %933, %935 : vector<8x128xf32>
      %937 = vector.broadcast %122 : f32 to vector<8x128xf32>
      %938 = arith.mulf %937, %591 : vector<8x128xf32>
      %939 = arith.addf %936, %938 : vector<8x128xf32>
      %940 = vector.broadcast %123 : f32 to vector<8x128xf32>
      %941 = arith.mulf %940, %603 : vector<8x128xf32>
      %942 = arith.addf %939, %941 : vector<8x128xf32>
      %943 = vector.broadcast %124 : f32 to vector<8x128xf32>
      %944 = arith.mulf %943, %615 : vector<8x128xf32>
      %945 = arith.addf %942, %944 : vector<8x128xf32>
      %946 = vector.broadcast %125 : f32 to vector<8x128xf32>
      %947 = arith.mulf %946, %627 : vector<8x128xf32>
      %948 = arith.addf %945, %947 : vector<8x128xf32>
      %949 = vector.broadcast %126 : f32 to vector<8x128xf32>
      %950 = arith.mulf %949, %639 : vector<8x128xf32>
      %951 = arith.addf %948, %950 : vector<8x128xf32>
      %952 = vector.broadcast %127 : f32 to vector<8x128xf32>
      %953 = arith.mulf %952, %651 : vector<8x128xf32>
      %954 = arith.addf %951, %953 : vector<8x128xf32>
      %955 = vector.broadcast %128 : f32 to vector<8x128xf32>
      %956 = arith.mulf %955, %663 : vector<8x128xf32>
      %957 = arith.addf %954, %956 : vector<8x128xf32>
      %958 = vector.broadcast %129 : f32 to vector<8x128xf32>
      %959 = arith.mulf %958, %675 : vector<8x128xf32>
      %960 = arith.addf %957, %959 : vector<8x128xf32>
      %961 = vector.broadcast %130 : f32 to vector<8x128xf32>
      %962 = arith.mulf %961, %687 : vector<8x128xf32>
      %963 = arith.addf %960, %962 : vector<8x128xf32>
      %964 = vector.broadcast %131 : f32 to vector<8x128xf32>
      %965 = arith.mulf %964, %699 : vector<8x128xf32>
      %966 = arith.addf %963, %965 : vector<8x128xf32>
      %967 = vector.broadcast %132 : f32 to vector<8x128xf32>
      %968 = arith.mulf %967, %711 : vector<8x128xf32>
      %969 = arith.addf %966, %968 : vector<8x128xf32>
      %970 = vector.broadcast %133 : f32 to vector<8x128xf32>
      %971 = arith.mulf %970, %723 : vector<8x128xf32>
      %972 = arith.addf %969, %971 : vector<8x128xf32>
      %973 = vector.broadcast %134 : f32 to vector<8x128xf32>
      %974 = arith.mulf %973, %735 : vector<8x128xf32>
      %975 = arith.addf %972, %974 : vector<8x128xf32>
      %976 = vector.broadcast %135 : f32 to vector<8x128xf32>
      %977 = arith.mulf %976, %747 : vector<8x128xf32>
      %978 = arith.addf %975, %977 : vector<8x128xf32>
      %979 = vector.broadcast %136 : f32 to vector<8x128xf32>
      %980 = arith.mulf %979, %759 : vector<8x128xf32>
      %981 = arith.addf %978, %980 : vector<8x128xf32>
      %982 = vector.broadcast %137 : f32 to vector<8x128xf32>
      %983 = arith.mulf %982, %771 : vector<8x128xf32>
      %984 = arith.addf %981, %983 : vector<8x128xf32>
      %985 = vector.broadcast %138 : f32 to vector<8x128xf32>
      %986 = arith.mulf %985, %783 : vector<8x128xf32>
      %987 = arith.addf %984, %986 : vector<8x128xf32>
      %988 = vector.broadcast %139 : f32 to vector<8x128xf32>
      %989 = arith.mulf %988, %795 : vector<8x128xf32>
      %990 = arith.addf %987, %989 : vector<8x128xf32>
      %991 = vector.broadcast %482 : f32 to vector<8x128xf32>
      %992 = arith.addf %990, %991 : vector<8x128xf32>
      %cst_1052 = arith.constant 0.000000e+00 : f32
      %993 = vector.broadcast %cst_1052 : f32 to vector<8x128xf32>
      %994 = arith.maximumf %992, %993 : vector<8x128xf32>
      %995 = vector.broadcast %502 : f32 to vector<8x128xf32>
      %996 = arith.mulf %995, %994 : vector<8x128xf32>
      %997 = arith.addf %928, %996 : vector<8x128xf32>
      %998 = vector.broadcast %522 : f32 to vector<8x128xf32>
      %999 = arith.mulf %998, %994 : vector<8x128xf32>
      %1000 = arith.addf %931, %999 : vector<8x128xf32>
      %1001 = vector.broadcast %140 : f32 to vector<8x128xf32>
      %1002 = arith.mulf %1001, %567 : vector<8x128xf32>
      %1003 = vector.broadcast %141 : f32 to vector<8x128xf32>
      %1004 = arith.mulf %1003, %579 : vector<8x128xf32>
      %1005 = arith.addf %1002, %1004 : vector<8x128xf32>
      %1006 = vector.broadcast %142 : f32 to vector<8x128xf32>
      %1007 = arith.mulf %1006, %591 : vector<8x128xf32>
      %1008 = arith.addf %1005, %1007 : vector<8x128xf32>
      %1009 = vector.broadcast %143 : f32 to vector<8x128xf32>
      %1010 = arith.mulf %1009, %603 : vector<8x128xf32>
      %1011 = arith.addf %1008, %1010 : vector<8x128xf32>
      %1012 = vector.broadcast %144 : f32 to vector<8x128xf32>
      %1013 = arith.mulf %1012, %615 : vector<8x128xf32>
      %1014 = arith.addf %1011, %1013 : vector<8x128xf32>
      %1015 = vector.broadcast %145 : f32 to vector<8x128xf32>
      %1016 = arith.mulf %1015, %627 : vector<8x128xf32>
      %1017 = arith.addf %1014, %1016 : vector<8x128xf32>
      %1018 = vector.broadcast %146 : f32 to vector<8x128xf32>
      %1019 = arith.mulf %1018, %639 : vector<8x128xf32>
      %1020 = arith.addf %1017, %1019 : vector<8x128xf32>
      %1021 = vector.broadcast %147 : f32 to vector<8x128xf32>
      %1022 = arith.mulf %1021, %651 : vector<8x128xf32>
      %1023 = arith.addf %1020, %1022 : vector<8x128xf32>
      %1024 = vector.broadcast %148 : f32 to vector<8x128xf32>
      %1025 = arith.mulf %1024, %663 : vector<8x128xf32>
      %1026 = arith.addf %1023, %1025 : vector<8x128xf32>
      %1027 = vector.broadcast %149 : f32 to vector<8x128xf32>
      %1028 = arith.mulf %1027, %675 : vector<8x128xf32>
      %1029 = arith.addf %1026, %1028 : vector<8x128xf32>
      %1030 = vector.broadcast %150 : f32 to vector<8x128xf32>
      %1031 = arith.mulf %1030, %687 : vector<8x128xf32>
      %1032 = arith.addf %1029, %1031 : vector<8x128xf32>
      %1033 = vector.broadcast %151 : f32 to vector<8x128xf32>
      %1034 = arith.mulf %1033, %699 : vector<8x128xf32>
      %1035 = arith.addf %1032, %1034 : vector<8x128xf32>
      %1036 = vector.broadcast %152 : f32 to vector<8x128xf32>
      %1037 = arith.mulf %1036, %711 : vector<8x128xf32>
      %1038 = arith.addf %1035, %1037 : vector<8x128xf32>
      %1039 = vector.broadcast %153 : f32 to vector<8x128xf32>
      %1040 = arith.mulf %1039, %723 : vector<8x128xf32>
      %1041 = arith.addf %1038, %1040 : vector<8x128xf32>
      %1042 = vector.broadcast %154 : f32 to vector<8x128xf32>
      %1043 = arith.mulf %1042, %735 : vector<8x128xf32>
      %1044 = arith.addf %1041, %1043 : vector<8x128xf32>
      %1045 = vector.broadcast %155 : f32 to vector<8x128xf32>
      %1046 = arith.mulf %1045, %747 : vector<8x128xf32>
      %1047 = arith.addf %1044, %1046 : vector<8x128xf32>
      %1048 = vector.broadcast %156 : f32 to vector<8x128xf32>
      %1049 = arith.mulf %1048, %759 : vector<8x128xf32>
      %1050 = arith.addf %1047, %1049 : vector<8x128xf32>
      %1051 = vector.broadcast %157 : f32 to vector<8x128xf32>
      %1052 = arith.mulf %1051, %771 : vector<8x128xf32>
      %1053 = arith.addf %1050, %1052 : vector<8x128xf32>
      %1054 = vector.broadcast %158 : f32 to vector<8x128xf32>
      %1055 = arith.mulf %1054, %783 : vector<8x128xf32>
      %1056 = arith.addf %1053, %1055 : vector<8x128xf32>
      %1057 = vector.broadcast %159 : f32 to vector<8x128xf32>
      %1058 = arith.mulf %1057, %795 : vector<8x128xf32>
      %1059 = arith.addf %1056, %1058 : vector<8x128xf32>
      %1060 = vector.broadcast %483 : f32 to vector<8x128xf32>
      %1061 = arith.addf %1059, %1060 : vector<8x128xf32>
      %cst_1053 = arith.constant 0.000000e+00 : f32
      %1062 = vector.broadcast %cst_1053 : f32 to vector<8x128xf32>
      %1063 = arith.maximumf %1061, %1062 : vector<8x128xf32>
      %1064 = vector.broadcast %503 : f32 to vector<8x128xf32>
      %1065 = arith.mulf %1064, %1063 : vector<8x128xf32>
      %1066 = arith.addf %997, %1065 : vector<8x128xf32>
      %1067 = vector.broadcast %523 : f32 to vector<8x128xf32>
      %1068 = arith.mulf %1067, %1063 : vector<8x128xf32>
      %1069 = arith.addf %1000, %1068 : vector<8x128xf32>
      %1070 = vector.broadcast %160 : f32 to vector<8x128xf32>
      %1071 = arith.mulf %1070, %567 : vector<8x128xf32>
      %1072 = vector.broadcast %161 : f32 to vector<8x128xf32>
      %1073 = arith.mulf %1072, %579 : vector<8x128xf32>
      %1074 = arith.addf %1071, %1073 : vector<8x128xf32>
      %1075 = vector.broadcast %162 : f32 to vector<8x128xf32>
      %1076 = arith.mulf %1075, %591 : vector<8x128xf32>
      %1077 = arith.addf %1074, %1076 : vector<8x128xf32>
      %1078 = vector.broadcast %163 : f32 to vector<8x128xf32>
      %1079 = arith.mulf %1078, %603 : vector<8x128xf32>
      %1080 = arith.addf %1077, %1079 : vector<8x128xf32>
      %1081 = vector.broadcast %164 : f32 to vector<8x128xf32>
      %1082 = arith.mulf %1081, %615 : vector<8x128xf32>
      %1083 = arith.addf %1080, %1082 : vector<8x128xf32>
      %1084 = vector.broadcast %165 : f32 to vector<8x128xf32>
      %1085 = arith.mulf %1084, %627 : vector<8x128xf32>
      %1086 = arith.addf %1083, %1085 : vector<8x128xf32>
      %1087 = vector.broadcast %166 : f32 to vector<8x128xf32>
      %1088 = arith.mulf %1087, %639 : vector<8x128xf32>
      %1089 = arith.addf %1086, %1088 : vector<8x128xf32>
      %1090 = vector.broadcast %167 : f32 to vector<8x128xf32>
      %1091 = arith.mulf %1090, %651 : vector<8x128xf32>
      %1092 = arith.addf %1089, %1091 : vector<8x128xf32>
      %1093 = vector.broadcast %168 : f32 to vector<8x128xf32>
      %1094 = arith.mulf %1093, %663 : vector<8x128xf32>
      %1095 = arith.addf %1092, %1094 : vector<8x128xf32>
      %1096 = vector.broadcast %169 : f32 to vector<8x128xf32>
      %1097 = arith.mulf %1096, %675 : vector<8x128xf32>
      %1098 = arith.addf %1095, %1097 : vector<8x128xf32>
      %1099 = vector.broadcast %170 : f32 to vector<8x128xf32>
      %1100 = arith.mulf %1099, %687 : vector<8x128xf32>
      %1101 = arith.addf %1098, %1100 : vector<8x128xf32>
      %1102 = vector.broadcast %171 : f32 to vector<8x128xf32>
      %1103 = arith.mulf %1102, %699 : vector<8x128xf32>
      %1104 = arith.addf %1101, %1103 : vector<8x128xf32>
      %1105 = vector.broadcast %172 : f32 to vector<8x128xf32>
      %1106 = arith.mulf %1105, %711 : vector<8x128xf32>
      %1107 = arith.addf %1104, %1106 : vector<8x128xf32>
      %1108 = vector.broadcast %173 : f32 to vector<8x128xf32>
      %1109 = arith.mulf %1108, %723 : vector<8x128xf32>
      %1110 = arith.addf %1107, %1109 : vector<8x128xf32>
      %1111 = vector.broadcast %174 : f32 to vector<8x128xf32>
      %1112 = arith.mulf %1111, %735 : vector<8x128xf32>
      %1113 = arith.addf %1110, %1112 : vector<8x128xf32>
      %1114 = vector.broadcast %175 : f32 to vector<8x128xf32>
      %1115 = arith.mulf %1114, %747 : vector<8x128xf32>
      %1116 = arith.addf %1113, %1115 : vector<8x128xf32>
      %1117 = vector.broadcast %176 : f32 to vector<8x128xf32>
      %1118 = arith.mulf %1117, %759 : vector<8x128xf32>
      %1119 = arith.addf %1116, %1118 : vector<8x128xf32>
      %1120 = vector.broadcast %177 : f32 to vector<8x128xf32>
      %1121 = arith.mulf %1120, %771 : vector<8x128xf32>
      %1122 = arith.addf %1119, %1121 : vector<8x128xf32>
      %1123 = vector.broadcast %178 : f32 to vector<8x128xf32>
      %1124 = arith.mulf %1123, %783 : vector<8x128xf32>
      %1125 = arith.addf %1122, %1124 : vector<8x128xf32>
      %1126 = vector.broadcast %179 : f32 to vector<8x128xf32>
      %1127 = arith.mulf %1126, %795 : vector<8x128xf32>
      %1128 = arith.addf %1125, %1127 : vector<8x128xf32>
      %1129 = vector.broadcast %484 : f32 to vector<8x128xf32>
      %1130 = arith.addf %1128, %1129 : vector<8x128xf32>
      %cst_1054 = arith.constant 0.000000e+00 : f32
      %1131 = vector.broadcast %cst_1054 : f32 to vector<8x128xf32>
      %1132 = arith.maximumf %1130, %1131 : vector<8x128xf32>
      %1133 = vector.broadcast %504 : f32 to vector<8x128xf32>
      %1134 = arith.mulf %1133, %1132 : vector<8x128xf32>
      %1135 = arith.addf %1066, %1134 : vector<8x128xf32>
      %1136 = vector.broadcast %524 : f32 to vector<8x128xf32>
      %1137 = arith.mulf %1136, %1132 : vector<8x128xf32>
      %1138 = arith.addf %1069, %1137 : vector<8x128xf32>
      %1139 = vector.broadcast %180 : f32 to vector<8x128xf32>
      %1140 = arith.mulf %1139, %567 : vector<8x128xf32>
      %1141 = vector.broadcast %181 : f32 to vector<8x128xf32>
      %1142 = arith.mulf %1141, %579 : vector<8x128xf32>
      %1143 = arith.addf %1140, %1142 : vector<8x128xf32>
      %1144 = vector.broadcast %182 : f32 to vector<8x128xf32>
      %1145 = arith.mulf %1144, %591 : vector<8x128xf32>
      %1146 = arith.addf %1143, %1145 : vector<8x128xf32>
      %1147 = vector.broadcast %183 : f32 to vector<8x128xf32>
      %1148 = arith.mulf %1147, %603 : vector<8x128xf32>
      %1149 = arith.addf %1146, %1148 : vector<8x128xf32>
      %1150 = vector.broadcast %184 : f32 to vector<8x128xf32>
      %1151 = arith.mulf %1150, %615 : vector<8x128xf32>
      %1152 = arith.addf %1149, %1151 : vector<8x128xf32>
      %1153 = vector.broadcast %185 : f32 to vector<8x128xf32>
      %1154 = arith.mulf %1153, %627 : vector<8x128xf32>
      %1155 = arith.addf %1152, %1154 : vector<8x128xf32>
      %1156 = vector.broadcast %186 : f32 to vector<8x128xf32>
      %1157 = arith.mulf %1156, %639 : vector<8x128xf32>
      %1158 = arith.addf %1155, %1157 : vector<8x128xf32>
      %1159 = vector.broadcast %187 : f32 to vector<8x128xf32>
      %1160 = arith.mulf %1159, %651 : vector<8x128xf32>
      %1161 = arith.addf %1158, %1160 : vector<8x128xf32>
      %1162 = vector.broadcast %188 : f32 to vector<8x128xf32>
      %1163 = arith.mulf %1162, %663 : vector<8x128xf32>
      %1164 = arith.addf %1161, %1163 : vector<8x128xf32>
      %1165 = vector.broadcast %189 : f32 to vector<8x128xf32>
      %1166 = arith.mulf %1165, %675 : vector<8x128xf32>
      %1167 = arith.addf %1164, %1166 : vector<8x128xf32>
      %1168 = vector.broadcast %190 : f32 to vector<8x128xf32>
      %1169 = arith.mulf %1168, %687 : vector<8x128xf32>
      %1170 = arith.addf %1167, %1169 : vector<8x128xf32>
      %1171 = vector.broadcast %191 : f32 to vector<8x128xf32>
      %1172 = arith.mulf %1171, %699 : vector<8x128xf32>
      %1173 = arith.addf %1170, %1172 : vector<8x128xf32>
      %1174 = vector.broadcast %192 : f32 to vector<8x128xf32>
      %1175 = arith.mulf %1174, %711 : vector<8x128xf32>
      %1176 = arith.addf %1173, %1175 : vector<8x128xf32>
      %1177 = vector.broadcast %193 : f32 to vector<8x128xf32>
      %1178 = arith.mulf %1177, %723 : vector<8x128xf32>
      %1179 = arith.addf %1176, %1178 : vector<8x128xf32>
      %1180 = vector.broadcast %194 : f32 to vector<8x128xf32>
      %1181 = arith.mulf %1180, %735 : vector<8x128xf32>
      %1182 = arith.addf %1179, %1181 : vector<8x128xf32>
      %1183 = vector.broadcast %195 : f32 to vector<8x128xf32>
      %1184 = arith.mulf %1183, %747 : vector<8x128xf32>
      %1185 = arith.addf %1182, %1184 : vector<8x128xf32>
      %1186 = vector.broadcast %196 : f32 to vector<8x128xf32>
      %1187 = arith.mulf %1186, %759 : vector<8x128xf32>
      %1188 = arith.addf %1185, %1187 : vector<8x128xf32>
      %1189 = vector.broadcast %197 : f32 to vector<8x128xf32>
      %1190 = arith.mulf %1189, %771 : vector<8x128xf32>
      %1191 = arith.addf %1188, %1190 : vector<8x128xf32>
      %1192 = vector.broadcast %198 : f32 to vector<8x128xf32>
      %1193 = arith.mulf %1192, %783 : vector<8x128xf32>
      %1194 = arith.addf %1191, %1193 : vector<8x128xf32>
      %1195 = vector.broadcast %199 : f32 to vector<8x128xf32>
      %1196 = arith.mulf %1195, %795 : vector<8x128xf32>
      %1197 = arith.addf %1194, %1196 : vector<8x128xf32>
      %1198 = vector.broadcast %485 : f32 to vector<8x128xf32>
      %1199 = arith.addf %1197, %1198 : vector<8x128xf32>
      %cst_1055 = arith.constant 0.000000e+00 : f32
      %1200 = vector.broadcast %cst_1055 : f32 to vector<8x128xf32>
      %1201 = arith.maximumf %1199, %1200 : vector<8x128xf32>
      %1202 = vector.broadcast %505 : f32 to vector<8x128xf32>
      %1203 = arith.mulf %1202, %1201 : vector<8x128xf32>
      %1204 = arith.addf %1135, %1203 : vector<8x128xf32>
      %1205 = vector.broadcast %525 : f32 to vector<8x128xf32>
      %1206 = arith.mulf %1205, %1201 : vector<8x128xf32>
      %1207 = arith.addf %1138, %1206 : vector<8x128xf32>
      %1208 = vector.broadcast %200 : f32 to vector<8x128xf32>
      %1209 = arith.mulf %1208, %567 : vector<8x128xf32>
      %1210 = vector.broadcast %201 : f32 to vector<8x128xf32>
      %1211 = arith.mulf %1210, %579 : vector<8x128xf32>
      %1212 = arith.addf %1209, %1211 : vector<8x128xf32>
      %1213 = vector.broadcast %202 : f32 to vector<8x128xf32>
      %1214 = arith.mulf %1213, %591 : vector<8x128xf32>
      %1215 = arith.addf %1212, %1214 : vector<8x128xf32>
      %1216 = vector.broadcast %203 : f32 to vector<8x128xf32>
      %1217 = arith.mulf %1216, %603 : vector<8x128xf32>
      %1218 = arith.addf %1215, %1217 : vector<8x128xf32>
      %1219 = vector.broadcast %204 : f32 to vector<8x128xf32>
      %1220 = arith.mulf %1219, %615 : vector<8x128xf32>
      %1221 = arith.addf %1218, %1220 : vector<8x128xf32>
      %1222 = vector.broadcast %205 : f32 to vector<8x128xf32>
      %1223 = arith.mulf %1222, %627 : vector<8x128xf32>
      %1224 = arith.addf %1221, %1223 : vector<8x128xf32>
      %1225 = vector.broadcast %206 : f32 to vector<8x128xf32>
      %1226 = arith.mulf %1225, %639 : vector<8x128xf32>
      %1227 = arith.addf %1224, %1226 : vector<8x128xf32>
      %1228 = vector.broadcast %207 : f32 to vector<8x128xf32>
      %1229 = arith.mulf %1228, %651 : vector<8x128xf32>
      %1230 = arith.addf %1227, %1229 : vector<8x128xf32>
      %1231 = vector.broadcast %208 : f32 to vector<8x128xf32>
      %1232 = arith.mulf %1231, %663 : vector<8x128xf32>
      %1233 = arith.addf %1230, %1232 : vector<8x128xf32>
      %1234 = vector.broadcast %209 : f32 to vector<8x128xf32>
      %1235 = arith.mulf %1234, %675 : vector<8x128xf32>
      %1236 = arith.addf %1233, %1235 : vector<8x128xf32>
      %1237 = vector.broadcast %210 : f32 to vector<8x128xf32>
      %1238 = arith.mulf %1237, %687 : vector<8x128xf32>
      %1239 = arith.addf %1236, %1238 : vector<8x128xf32>
      %1240 = vector.broadcast %211 : f32 to vector<8x128xf32>
      %1241 = arith.mulf %1240, %699 : vector<8x128xf32>
      %1242 = arith.addf %1239, %1241 : vector<8x128xf32>
      %1243 = vector.broadcast %212 : f32 to vector<8x128xf32>
      %1244 = arith.mulf %1243, %711 : vector<8x128xf32>
      %1245 = arith.addf %1242, %1244 : vector<8x128xf32>
      %1246 = vector.broadcast %213 : f32 to vector<8x128xf32>
      %1247 = arith.mulf %1246, %723 : vector<8x128xf32>
      %1248 = arith.addf %1245, %1247 : vector<8x128xf32>
      %1249 = vector.broadcast %214 : f32 to vector<8x128xf32>
      %1250 = arith.mulf %1249, %735 : vector<8x128xf32>
      %1251 = arith.addf %1248, %1250 : vector<8x128xf32>
      %1252 = vector.broadcast %215 : f32 to vector<8x128xf32>
      %1253 = arith.mulf %1252, %747 : vector<8x128xf32>
      %1254 = arith.addf %1251, %1253 : vector<8x128xf32>
      %1255 = vector.broadcast %216 : f32 to vector<8x128xf32>
      %1256 = arith.mulf %1255, %759 : vector<8x128xf32>
      %1257 = arith.addf %1254, %1256 : vector<8x128xf32>
      %1258 = vector.broadcast %217 : f32 to vector<8x128xf32>
      %1259 = arith.mulf %1258, %771 : vector<8x128xf32>
      %1260 = arith.addf %1257, %1259 : vector<8x128xf32>
      %1261 = vector.broadcast %218 : f32 to vector<8x128xf32>
      %1262 = arith.mulf %1261, %783 : vector<8x128xf32>
      %1263 = arith.addf %1260, %1262 : vector<8x128xf32>
      %1264 = vector.broadcast %219 : f32 to vector<8x128xf32>
      %1265 = arith.mulf %1264, %795 : vector<8x128xf32>
      %1266 = arith.addf %1263, %1265 : vector<8x128xf32>
      %1267 = vector.broadcast %486 : f32 to vector<8x128xf32>
      %1268 = arith.addf %1266, %1267 : vector<8x128xf32>
      %cst_1056 = arith.constant 0.000000e+00 : f32
      %1269 = vector.broadcast %cst_1056 : f32 to vector<8x128xf32>
      %1270 = arith.maximumf %1268, %1269 : vector<8x128xf32>
      %1271 = vector.broadcast %506 : f32 to vector<8x128xf32>
      %1272 = arith.mulf %1271, %1270 : vector<8x128xf32>
      %1273 = arith.addf %1204, %1272 : vector<8x128xf32>
      %1274 = vector.broadcast %526 : f32 to vector<8x128xf32>
      %1275 = arith.mulf %1274, %1270 : vector<8x128xf32>
      %1276 = arith.addf %1207, %1275 : vector<8x128xf32>
      %1277 = vector.broadcast %220 : f32 to vector<8x128xf32>
      %1278 = arith.mulf %1277, %567 : vector<8x128xf32>
      %1279 = vector.broadcast %221 : f32 to vector<8x128xf32>
      %1280 = arith.mulf %1279, %579 : vector<8x128xf32>
      %1281 = arith.addf %1278, %1280 : vector<8x128xf32>
      %1282 = vector.broadcast %222 : f32 to vector<8x128xf32>
      %1283 = arith.mulf %1282, %591 : vector<8x128xf32>
      %1284 = arith.addf %1281, %1283 : vector<8x128xf32>
      %1285 = vector.broadcast %223 : f32 to vector<8x128xf32>
      %1286 = arith.mulf %1285, %603 : vector<8x128xf32>
      %1287 = arith.addf %1284, %1286 : vector<8x128xf32>
      %1288 = vector.broadcast %224 : f32 to vector<8x128xf32>
      %1289 = arith.mulf %1288, %615 : vector<8x128xf32>
      %1290 = arith.addf %1287, %1289 : vector<8x128xf32>
      %1291 = vector.broadcast %225 : f32 to vector<8x128xf32>
      %1292 = arith.mulf %1291, %627 : vector<8x128xf32>
      %1293 = arith.addf %1290, %1292 : vector<8x128xf32>
      %1294 = vector.broadcast %226 : f32 to vector<8x128xf32>
      %1295 = arith.mulf %1294, %639 : vector<8x128xf32>
      %1296 = arith.addf %1293, %1295 : vector<8x128xf32>
      %1297 = vector.broadcast %227 : f32 to vector<8x128xf32>
      %1298 = arith.mulf %1297, %651 : vector<8x128xf32>
      %1299 = arith.addf %1296, %1298 : vector<8x128xf32>
      %1300 = vector.broadcast %228 : f32 to vector<8x128xf32>
      %1301 = arith.mulf %1300, %663 : vector<8x128xf32>
      %1302 = arith.addf %1299, %1301 : vector<8x128xf32>
      %1303 = vector.broadcast %229 : f32 to vector<8x128xf32>
      %1304 = arith.mulf %1303, %675 : vector<8x128xf32>
      %1305 = arith.addf %1302, %1304 : vector<8x128xf32>
      %1306 = vector.broadcast %230 : f32 to vector<8x128xf32>
      %1307 = arith.mulf %1306, %687 : vector<8x128xf32>
      %1308 = arith.addf %1305, %1307 : vector<8x128xf32>
      %1309 = vector.broadcast %231 : f32 to vector<8x128xf32>
      %1310 = arith.mulf %1309, %699 : vector<8x128xf32>
      %1311 = arith.addf %1308, %1310 : vector<8x128xf32>
      %1312 = vector.broadcast %232 : f32 to vector<8x128xf32>
      %1313 = arith.mulf %1312, %711 : vector<8x128xf32>
      %1314 = arith.addf %1311, %1313 : vector<8x128xf32>
      %1315 = vector.broadcast %233 : f32 to vector<8x128xf32>
      %1316 = arith.mulf %1315, %723 : vector<8x128xf32>
      %1317 = arith.addf %1314, %1316 : vector<8x128xf32>
      %1318 = vector.broadcast %234 : f32 to vector<8x128xf32>
      %1319 = arith.mulf %1318, %735 : vector<8x128xf32>
      %1320 = arith.addf %1317, %1319 : vector<8x128xf32>
      %1321 = vector.broadcast %235 : f32 to vector<8x128xf32>
      %1322 = arith.mulf %1321, %747 : vector<8x128xf32>
      %1323 = arith.addf %1320, %1322 : vector<8x128xf32>
      %1324 = vector.broadcast %236 : f32 to vector<8x128xf32>
      %1325 = arith.mulf %1324, %759 : vector<8x128xf32>
      %1326 = arith.addf %1323, %1325 : vector<8x128xf32>
      %1327 = vector.broadcast %237 : f32 to vector<8x128xf32>
      %1328 = arith.mulf %1327, %771 : vector<8x128xf32>
      %1329 = arith.addf %1326, %1328 : vector<8x128xf32>
      %1330 = vector.broadcast %238 : f32 to vector<8x128xf32>
      %1331 = arith.mulf %1330, %783 : vector<8x128xf32>
      %1332 = arith.addf %1329, %1331 : vector<8x128xf32>
      %1333 = vector.broadcast %239 : f32 to vector<8x128xf32>
      %1334 = arith.mulf %1333, %795 : vector<8x128xf32>
      %1335 = arith.addf %1332, %1334 : vector<8x128xf32>
      %1336 = vector.broadcast %487 : f32 to vector<8x128xf32>
      %1337 = arith.addf %1335, %1336 : vector<8x128xf32>
      %cst_1057 = arith.constant 0.000000e+00 : f32
      %1338 = vector.broadcast %cst_1057 : f32 to vector<8x128xf32>
      %1339 = arith.maximumf %1337, %1338 : vector<8x128xf32>
      %1340 = vector.broadcast %507 : f32 to vector<8x128xf32>
      %1341 = arith.mulf %1340, %1339 : vector<8x128xf32>
      %1342 = arith.addf %1273, %1341 : vector<8x128xf32>
      %1343 = vector.broadcast %527 : f32 to vector<8x128xf32>
      %1344 = arith.mulf %1343, %1339 : vector<8x128xf32>
      %1345 = arith.addf %1276, %1344 : vector<8x128xf32>
      %1346 = vector.broadcast %240 : f32 to vector<8x128xf32>
      %1347 = arith.mulf %1346, %567 : vector<8x128xf32>
      %1348 = vector.broadcast %241 : f32 to vector<8x128xf32>
      %1349 = arith.mulf %1348, %579 : vector<8x128xf32>
      %1350 = arith.addf %1347, %1349 : vector<8x128xf32>
      %1351 = vector.broadcast %242 : f32 to vector<8x128xf32>
      %1352 = arith.mulf %1351, %591 : vector<8x128xf32>
      %1353 = arith.addf %1350, %1352 : vector<8x128xf32>
      %1354 = vector.broadcast %243 : f32 to vector<8x128xf32>
      %1355 = arith.mulf %1354, %603 : vector<8x128xf32>
      %1356 = arith.addf %1353, %1355 : vector<8x128xf32>
      %1357 = vector.broadcast %244 : f32 to vector<8x128xf32>
      %1358 = arith.mulf %1357, %615 : vector<8x128xf32>
      %1359 = arith.addf %1356, %1358 : vector<8x128xf32>
      %1360 = vector.broadcast %245 : f32 to vector<8x128xf32>
      %1361 = arith.mulf %1360, %627 : vector<8x128xf32>
      %1362 = arith.addf %1359, %1361 : vector<8x128xf32>
      %1363 = vector.broadcast %246 : f32 to vector<8x128xf32>
      %1364 = arith.mulf %1363, %639 : vector<8x128xf32>
      %1365 = arith.addf %1362, %1364 : vector<8x128xf32>
      %1366 = vector.broadcast %247 : f32 to vector<8x128xf32>
      %1367 = arith.mulf %1366, %651 : vector<8x128xf32>
      %1368 = arith.addf %1365, %1367 : vector<8x128xf32>
      %1369 = vector.broadcast %248 : f32 to vector<8x128xf32>
      %1370 = arith.mulf %1369, %663 : vector<8x128xf32>
      %1371 = arith.addf %1368, %1370 : vector<8x128xf32>
      %1372 = vector.broadcast %249 : f32 to vector<8x128xf32>
      %1373 = arith.mulf %1372, %675 : vector<8x128xf32>
      %1374 = arith.addf %1371, %1373 : vector<8x128xf32>
      %1375 = vector.broadcast %250 : f32 to vector<8x128xf32>
      %1376 = arith.mulf %1375, %687 : vector<8x128xf32>
      %1377 = arith.addf %1374, %1376 : vector<8x128xf32>
      %1378 = vector.broadcast %251 : f32 to vector<8x128xf32>
      %1379 = arith.mulf %1378, %699 : vector<8x128xf32>
      %1380 = arith.addf %1377, %1379 : vector<8x128xf32>
      %1381 = vector.broadcast %252 : f32 to vector<8x128xf32>
      %1382 = arith.mulf %1381, %711 : vector<8x128xf32>
      %1383 = arith.addf %1380, %1382 : vector<8x128xf32>
      %1384 = vector.broadcast %253 : f32 to vector<8x128xf32>
      %1385 = arith.mulf %1384, %723 : vector<8x128xf32>
      %1386 = arith.addf %1383, %1385 : vector<8x128xf32>
      %1387 = vector.broadcast %254 : f32 to vector<8x128xf32>
      %1388 = arith.mulf %1387, %735 : vector<8x128xf32>
      %1389 = arith.addf %1386, %1388 : vector<8x128xf32>
      %1390 = vector.broadcast %255 : f32 to vector<8x128xf32>
      %1391 = arith.mulf %1390, %747 : vector<8x128xf32>
      %1392 = arith.addf %1389, %1391 : vector<8x128xf32>
      %1393 = vector.broadcast %256 : f32 to vector<8x128xf32>
      %1394 = arith.mulf %1393, %759 : vector<8x128xf32>
      %1395 = arith.addf %1392, %1394 : vector<8x128xf32>
      %1396 = vector.broadcast %257 : f32 to vector<8x128xf32>
      %1397 = arith.mulf %1396, %771 : vector<8x128xf32>
      %1398 = arith.addf %1395, %1397 : vector<8x128xf32>
      %1399 = vector.broadcast %258 : f32 to vector<8x128xf32>
      %1400 = arith.mulf %1399, %783 : vector<8x128xf32>
      %1401 = arith.addf %1398, %1400 : vector<8x128xf32>
      %1402 = vector.broadcast %259 : f32 to vector<8x128xf32>
      %1403 = arith.mulf %1402, %795 : vector<8x128xf32>
      %1404 = arith.addf %1401, %1403 : vector<8x128xf32>
      %1405 = vector.broadcast %488 : f32 to vector<8x128xf32>
      %1406 = arith.addf %1404, %1405 : vector<8x128xf32>
      %cst_1058 = arith.constant 0.000000e+00 : f32
      %1407 = vector.broadcast %cst_1058 : f32 to vector<8x128xf32>
      %1408 = arith.maximumf %1406, %1407 : vector<8x128xf32>
      %1409 = vector.broadcast %508 : f32 to vector<8x128xf32>
      %1410 = arith.mulf %1409, %1408 : vector<8x128xf32>
      %1411 = arith.addf %1342, %1410 : vector<8x128xf32>
      %1412 = vector.broadcast %528 : f32 to vector<8x128xf32>
      %1413 = arith.mulf %1412, %1408 : vector<8x128xf32>
      %1414 = arith.addf %1345, %1413 : vector<8x128xf32>
      %1415 = vector.broadcast %260 : f32 to vector<8x128xf32>
      %1416 = arith.mulf %1415, %567 : vector<8x128xf32>
      %1417 = vector.broadcast %261 : f32 to vector<8x128xf32>
      %1418 = arith.mulf %1417, %579 : vector<8x128xf32>
      %1419 = arith.addf %1416, %1418 : vector<8x128xf32>
      %1420 = vector.broadcast %262 : f32 to vector<8x128xf32>
      %1421 = arith.mulf %1420, %591 : vector<8x128xf32>
      %1422 = arith.addf %1419, %1421 : vector<8x128xf32>
      %1423 = vector.broadcast %263 : f32 to vector<8x128xf32>
      %1424 = arith.mulf %1423, %603 : vector<8x128xf32>
      %1425 = arith.addf %1422, %1424 : vector<8x128xf32>
      %1426 = vector.broadcast %264 : f32 to vector<8x128xf32>
      %1427 = arith.mulf %1426, %615 : vector<8x128xf32>
      %1428 = arith.addf %1425, %1427 : vector<8x128xf32>
      %1429 = vector.broadcast %265 : f32 to vector<8x128xf32>
      %1430 = arith.mulf %1429, %627 : vector<8x128xf32>
      %1431 = arith.addf %1428, %1430 : vector<8x128xf32>
      %1432 = vector.broadcast %266 : f32 to vector<8x128xf32>
      %1433 = arith.mulf %1432, %639 : vector<8x128xf32>
      %1434 = arith.addf %1431, %1433 : vector<8x128xf32>
      %1435 = vector.broadcast %267 : f32 to vector<8x128xf32>
      %1436 = arith.mulf %1435, %651 : vector<8x128xf32>
      %1437 = arith.addf %1434, %1436 : vector<8x128xf32>
      %1438 = vector.broadcast %268 : f32 to vector<8x128xf32>
      %1439 = arith.mulf %1438, %663 : vector<8x128xf32>
      %1440 = arith.addf %1437, %1439 : vector<8x128xf32>
      %1441 = vector.broadcast %269 : f32 to vector<8x128xf32>
      %1442 = arith.mulf %1441, %675 : vector<8x128xf32>
      %1443 = arith.addf %1440, %1442 : vector<8x128xf32>
      %1444 = vector.broadcast %270 : f32 to vector<8x128xf32>
      %1445 = arith.mulf %1444, %687 : vector<8x128xf32>
      %1446 = arith.addf %1443, %1445 : vector<8x128xf32>
      %1447 = vector.broadcast %271 : f32 to vector<8x128xf32>
      %1448 = arith.mulf %1447, %699 : vector<8x128xf32>
      %1449 = arith.addf %1446, %1448 : vector<8x128xf32>
      %1450 = vector.broadcast %272 : f32 to vector<8x128xf32>
      %1451 = arith.mulf %1450, %711 : vector<8x128xf32>
      %1452 = arith.addf %1449, %1451 : vector<8x128xf32>
      %1453 = vector.broadcast %273 : f32 to vector<8x128xf32>
      %1454 = arith.mulf %1453, %723 : vector<8x128xf32>
      %1455 = arith.addf %1452, %1454 : vector<8x128xf32>
      %1456 = vector.broadcast %274 : f32 to vector<8x128xf32>
      %1457 = arith.mulf %1456, %735 : vector<8x128xf32>
      %1458 = arith.addf %1455, %1457 : vector<8x128xf32>
      %1459 = vector.broadcast %275 : f32 to vector<8x128xf32>
      %1460 = arith.mulf %1459, %747 : vector<8x128xf32>
      %1461 = arith.addf %1458, %1460 : vector<8x128xf32>
      %1462 = vector.broadcast %276 : f32 to vector<8x128xf32>
      %1463 = arith.mulf %1462, %759 : vector<8x128xf32>
      %1464 = arith.addf %1461, %1463 : vector<8x128xf32>
      %1465 = vector.broadcast %277 : f32 to vector<8x128xf32>
      %1466 = arith.mulf %1465, %771 : vector<8x128xf32>
      %1467 = arith.addf %1464, %1466 : vector<8x128xf32>
      %1468 = vector.broadcast %278 : f32 to vector<8x128xf32>
      %1469 = arith.mulf %1468, %783 : vector<8x128xf32>
      %1470 = arith.addf %1467, %1469 : vector<8x128xf32>
      %1471 = vector.broadcast %279 : f32 to vector<8x128xf32>
      %1472 = arith.mulf %1471, %795 : vector<8x128xf32>
      %1473 = arith.addf %1470, %1472 : vector<8x128xf32>
      %1474 = vector.broadcast %489 : f32 to vector<8x128xf32>
      %1475 = arith.addf %1473, %1474 : vector<8x128xf32>
      %cst_1059 = arith.constant 0.000000e+00 : f32
      %1476 = vector.broadcast %cst_1059 : f32 to vector<8x128xf32>
      %1477 = arith.maximumf %1475, %1476 : vector<8x128xf32>
      %1478 = vector.broadcast %509 : f32 to vector<8x128xf32>
      %1479 = arith.mulf %1478, %1477 : vector<8x128xf32>
      %1480 = arith.addf %1411, %1479 : vector<8x128xf32>
      %1481 = vector.broadcast %529 : f32 to vector<8x128xf32>
      %1482 = arith.mulf %1481, %1477 : vector<8x128xf32>
      %1483 = arith.addf %1414, %1482 : vector<8x128xf32>
      %1484 = vector.broadcast %280 : f32 to vector<8x128xf32>
      %1485 = arith.mulf %1484, %567 : vector<8x128xf32>
      %1486 = vector.broadcast %281 : f32 to vector<8x128xf32>
      %1487 = arith.mulf %1486, %579 : vector<8x128xf32>
      %1488 = arith.addf %1485, %1487 : vector<8x128xf32>
      %1489 = vector.broadcast %282 : f32 to vector<8x128xf32>
      %1490 = arith.mulf %1489, %591 : vector<8x128xf32>
      %1491 = arith.addf %1488, %1490 : vector<8x128xf32>
      %1492 = vector.broadcast %283 : f32 to vector<8x128xf32>
      %1493 = arith.mulf %1492, %603 : vector<8x128xf32>
      %1494 = arith.addf %1491, %1493 : vector<8x128xf32>
      %1495 = vector.broadcast %284 : f32 to vector<8x128xf32>
      %1496 = arith.mulf %1495, %615 : vector<8x128xf32>
      %1497 = arith.addf %1494, %1496 : vector<8x128xf32>
      %1498 = vector.broadcast %285 : f32 to vector<8x128xf32>
      %1499 = arith.mulf %1498, %627 : vector<8x128xf32>
      %1500 = arith.addf %1497, %1499 : vector<8x128xf32>
      %1501 = vector.broadcast %286 : f32 to vector<8x128xf32>
      %1502 = arith.mulf %1501, %639 : vector<8x128xf32>
      %1503 = arith.addf %1500, %1502 : vector<8x128xf32>
      %1504 = vector.broadcast %287 : f32 to vector<8x128xf32>
      %1505 = arith.mulf %1504, %651 : vector<8x128xf32>
      %1506 = arith.addf %1503, %1505 : vector<8x128xf32>
      %1507 = vector.broadcast %288 : f32 to vector<8x128xf32>
      %1508 = arith.mulf %1507, %663 : vector<8x128xf32>
      %1509 = arith.addf %1506, %1508 : vector<8x128xf32>
      %1510 = vector.broadcast %289 : f32 to vector<8x128xf32>
      %1511 = arith.mulf %1510, %675 : vector<8x128xf32>
      %1512 = arith.addf %1509, %1511 : vector<8x128xf32>
      %1513 = vector.broadcast %290 : f32 to vector<8x128xf32>
      %1514 = arith.mulf %1513, %687 : vector<8x128xf32>
      %1515 = arith.addf %1512, %1514 : vector<8x128xf32>
      %1516 = vector.broadcast %291 : f32 to vector<8x128xf32>
      %1517 = arith.mulf %1516, %699 : vector<8x128xf32>
      %1518 = arith.addf %1515, %1517 : vector<8x128xf32>
      %1519 = vector.broadcast %292 : f32 to vector<8x128xf32>
      %1520 = arith.mulf %1519, %711 : vector<8x128xf32>
      %1521 = arith.addf %1518, %1520 : vector<8x128xf32>
      %1522 = vector.broadcast %293 : f32 to vector<8x128xf32>
      %1523 = arith.mulf %1522, %723 : vector<8x128xf32>
      %1524 = arith.addf %1521, %1523 : vector<8x128xf32>
      %1525 = vector.broadcast %294 : f32 to vector<8x128xf32>
      %1526 = arith.mulf %1525, %735 : vector<8x128xf32>
      %1527 = arith.addf %1524, %1526 : vector<8x128xf32>
      %1528 = vector.broadcast %295 : f32 to vector<8x128xf32>
      %1529 = arith.mulf %1528, %747 : vector<8x128xf32>
      %1530 = arith.addf %1527, %1529 : vector<8x128xf32>
      %1531 = vector.broadcast %296 : f32 to vector<8x128xf32>
      %1532 = arith.mulf %1531, %759 : vector<8x128xf32>
      %1533 = arith.addf %1530, %1532 : vector<8x128xf32>
      %1534 = vector.broadcast %297 : f32 to vector<8x128xf32>
      %1535 = arith.mulf %1534, %771 : vector<8x128xf32>
      %1536 = arith.addf %1533, %1535 : vector<8x128xf32>
      %1537 = vector.broadcast %298 : f32 to vector<8x128xf32>
      %1538 = arith.mulf %1537, %783 : vector<8x128xf32>
      %1539 = arith.addf %1536, %1538 : vector<8x128xf32>
      %1540 = vector.broadcast %299 : f32 to vector<8x128xf32>
      %1541 = arith.mulf %1540, %795 : vector<8x128xf32>
      %1542 = arith.addf %1539, %1541 : vector<8x128xf32>
      %1543 = vector.broadcast %490 : f32 to vector<8x128xf32>
      %1544 = arith.addf %1542, %1543 : vector<8x128xf32>
      %cst_1060 = arith.constant 0.000000e+00 : f32
      %1545 = vector.broadcast %cst_1060 : f32 to vector<8x128xf32>
      %1546 = arith.maximumf %1544, %1545 : vector<8x128xf32>
      %1547 = vector.broadcast %510 : f32 to vector<8x128xf32>
      %1548 = arith.mulf %1547, %1546 : vector<8x128xf32>
      %1549 = arith.addf %1480, %1548 : vector<8x128xf32>
      %1550 = vector.broadcast %530 : f32 to vector<8x128xf32>
      %1551 = arith.mulf %1550, %1546 : vector<8x128xf32>
      %1552 = arith.addf %1483, %1551 : vector<8x128xf32>
      %1553 = vector.broadcast %300 : f32 to vector<8x128xf32>
      %1554 = arith.mulf %1553, %567 : vector<8x128xf32>
      %1555 = vector.broadcast %301 : f32 to vector<8x128xf32>
      %1556 = arith.mulf %1555, %579 : vector<8x128xf32>
      %1557 = arith.addf %1554, %1556 : vector<8x128xf32>
      %1558 = vector.broadcast %302 : f32 to vector<8x128xf32>
      %1559 = arith.mulf %1558, %591 : vector<8x128xf32>
      %1560 = arith.addf %1557, %1559 : vector<8x128xf32>
      %1561 = vector.broadcast %303 : f32 to vector<8x128xf32>
      %1562 = arith.mulf %1561, %603 : vector<8x128xf32>
      %1563 = arith.addf %1560, %1562 : vector<8x128xf32>
      %1564 = vector.broadcast %304 : f32 to vector<8x128xf32>
      %1565 = arith.mulf %1564, %615 : vector<8x128xf32>
      %1566 = arith.addf %1563, %1565 : vector<8x128xf32>
      %1567 = vector.broadcast %305 : f32 to vector<8x128xf32>
      %1568 = arith.mulf %1567, %627 : vector<8x128xf32>
      %1569 = arith.addf %1566, %1568 : vector<8x128xf32>
      %1570 = vector.broadcast %306 : f32 to vector<8x128xf32>
      %1571 = arith.mulf %1570, %639 : vector<8x128xf32>
      %1572 = arith.addf %1569, %1571 : vector<8x128xf32>
      %1573 = vector.broadcast %307 : f32 to vector<8x128xf32>
      %1574 = arith.mulf %1573, %651 : vector<8x128xf32>
      %1575 = arith.addf %1572, %1574 : vector<8x128xf32>
      %1576 = vector.broadcast %308 : f32 to vector<8x128xf32>
      %1577 = arith.mulf %1576, %663 : vector<8x128xf32>
      %1578 = arith.addf %1575, %1577 : vector<8x128xf32>
      %1579 = vector.broadcast %309 : f32 to vector<8x128xf32>
      %1580 = arith.mulf %1579, %675 : vector<8x128xf32>
      %1581 = arith.addf %1578, %1580 : vector<8x128xf32>
      %1582 = vector.broadcast %310 : f32 to vector<8x128xf32>
      %1583 = arith.mulf %1582, %687 : vector<8x128xf32>
      %1584 = arith.addf %1581, %1583 : vector<8x128xf32>
      %1585 = vector.broadcast %311 : f32 to vector<8x128xf32>
      %1586 = arith.mulf %1585, %699 : vector<8x128xf32>
      %1587 = arith.addf %1584, %1586 : vector<8x128xf32>
      %1588 = vector.broadcast %312 : f32 to vector<8x128xf32>
      %1589 = arith.mulf %1588, %711 : vector<8x128xf32>
      %1590 = arith.addf %1587, %1589 : vector<8x128xf32>
      %1591 = vector.broadcast %313 : f32 to vector<8x128xf32>
      %1592 = arith.mulf %1591, %723 : vector<8x128xf32>
      %1593 = arith.addf %1590, %1592 : vector<8x128xf32>
      %1594 = vector.broadcast %314 : f32 to vector<8x128xf32>
      %1595 = arith.mulf %1594, %735 : vector<8x128xf32>
      %1596 = arith.addf %1593, %1595 : vector<8x128xf32>
      %1597 = vector.broadcast %315 : f32 to vector<8x128xf32>
      %1598 = arith.mulf %1597, %747 : vector<8x128xf32>
      %1599 = arith.addf %1596, %1598 : vector<8x128xf32>
      %1600 = vector.broadcast %316 : f32 to vector<8x128xf32>
      %1601 = arith.mulf %1600, %759 : vector<8x128xf32>
      %1602 = arith.addf %1599, %1601 : vector<8x128xf32>
      %1603 = vector.broadcast %317 : f32 to vector<8x128xf32>
      %1604 = arith.mulf %1603, %771 : vector<8x128xf32>
      %1605 = arith.addf %1602, %1604 : vector<8x128xf32>
      %1606 = vector.broadcast %318 : f32 to vector<8x128xf32>
      %1607 = arith.mulf %1606, %783 : vector<8x128xf32>
      %1608 = arith.addf %1605, %1607 : vector<8x128xf32>
      %1609 = vector.broadcast %319 : f32 to vector<8x128xf32>
      %1610 = arith.mulf %1609, %795 : vector<8x128xf32>
      %1611 = arith.addf %1608, %1610 : vector<8x128xf32>
      %1612 = vector.broadcast %491 : f32 to vector<8x128xf32>
      %1613 = arith.addf %1611, %1612 : vector<8x128xf32>
      %cst_1061 = arith.constant 0.000000e+00 : f32
      %1614 = vector.broadcast %cst_1061 : f32 to vector<8x128xf32>
      %1615 = arith.maximumf %1613, %1614 : vector<8x128xf32>
      %1616 = vector.broadcast %511 : f32 to vector<8x128xf32>
      %1617 = arith.mulf %1616, %1615 : vector<8x128xf32>
      %1618 = arith.addf %1549, %1617 : vector<8x128xf32>
      %1619 = vector.broadcast %531 : f32 to vector<8x128xf32>
      %1620 = arith.mulf %1619, %1615 : vector<8x128xf32>
      %1621 = arith.addf %1552, %1620 : vector<8x128xf32>
      %1622 = vector.broadcast %320 : f32 to vector<8x128xf32>
      %1623 = arith.mulf %1622, %567 : vector<8x128xf32>
      %1624 = vector.broadcast %321 : f32 to vector<8x128xf32>
      %1625 = arith.mulf %1624, %579 : vector<8x128xf32>
      %1626 = arith.addf %1623, %1625 : vector<8x128xf32>
      %1627 = vector.broadcast %322 : f32 to vector<8x128xf32>
      %1628 = arith.mulf %1627, %591 : vector<8x128xf32>
      %1629 = arith.addf %1626, %1628 : vector<8x128xf32>
      %1630 = vector.broadcast %323 : f32 to vector<8x128xf32>
      %1631 = arith.mulf %1630, %603 : vector<8x128xf32>
      %1632 = arith.addf %1629, %1631 : vector<8x128xf32>
      %1633 = vector.broadcast %324 : f32 to vector<8x128xf32>
      %1634 = arith.mulf %1633, %615 : vector<8x128xf32>
      %1635 = arith.addf %1632, %1634 : vector<8x128xf32>
      %1636 = vector.broadcast %325 : f32 to vector<8x128xf32>
      %1637 = arith.mulf %1636, %627 : vector<8x128xf32>
      %1638 = arith.addf %1635, %1637 : vector<8x128xf32>
      %1639 = vector.broadcast %326 : f32 to vector<8x128xf32>
      %1640 = arith.mulf %1639, %639 : vector<8x128xf32>
      %1641 = arith.addf %1638, %1640 : vector<8x128xf32>
      %1642 = vector.broadcast %327 : f32 to vector<8x128xf32>
      %1643 = arith.mulf %1642, %651 : vector<8x128xf32>
      %1644 = arith.addf %1641, %1643 : vector<8x128xf32>
      %1645 = vector.broadcast %328 : f32 to vector<8x128xf32>
      %1646 = arith.mulf %1645, %663 : vector<8x128xf32>
      %1647 = arith.addf %1644, %1646 : vector<8x128xf32>
      %1648 = vector.broadcast %329 : f32 to vector<8x128xf32>
      %1649 = arith.mulf %1648, %675 : vector<8x128xf32>
      %1650 = arith.addf %1647, %1649 : vector<8x128xf32>
      %1651 = vector.broadcast %330 : f32 to vector<8x128xf32>
      %1652 = arith.mulf %1651, %687 : vector<8x128xf32>
      %1653 = arith.addf %1650, %1652 : vector<8x128xf32>
      %1654 = vector.broadcast %331 : f32 to vector<8x128xf32>
      %1655 = arith.mulf %1654, %699 : vector<8x128xf32>
      %1656 = arith.addf %1653, %1655 : vector<8x128xf32>
      %1657 = vector.broadcast %332 : f32 to vector<8x128xf32>
      %1658 = arith.mulf %1657, %711 : vector<8x128xf32>
      %1659 = arith.addf %1656, %1658 : vector<8x128xf32>
      %1660 = vector.broadcast %333 : f32 to vector<8x128xf32>
      %1661 = arith.mulf %1660, %723 : vector<8x128xf32>
      %1662 = arith.addf %1659, %1661 : vector<8x128xf32>
      %1663 = vector.broadcast %334 : f32 to vector<8x128xf32>
      %1664 = arith.mulf %1663, %735 : vector<8x128xf32>
      %1665 = arith.addf %1662, %1664 : vector<8x128xf32>
      %1666 = vector.broadcast %335 : f32 to vector<8x128xf32>
      %1667 = arith.mulf %1666, %747 : vector<8x128xf32>
      %1668 = arith.addf %1665, %1667 : vector<8x128xf32>
      %1669 = vector.broadcast %336 : f32 to vector<8x128xf32>
      %1670 = arith.mulf %1669, %759 : vector<8x128xf32>
      %1671 = arith.addf %1668, %1670 : vector<8x128xf32>
      %1672 = vector.broadcast %337 : f32 to vector<8x128xf32>
      %1673 = arith.mulf %1672, %771 : vector<8x128xf32>
      %1674 = arith.addf %1671, %1673 : vector<8x128xf32>
      %1675 = vector.broadcast %338 : f32 to vector<8x128xf32>
      %1676 = arith.mulf %1675, %783 : vector<8x128xf32>
      %1677 = arith.addf %1674, %1676 : vector<8x128xf32>
      %1678 = vector.broadcast %339 : f32 to vector<8x128xf32>
      %1679 = arith.mulf %1678, %795 : vector<8x128xf32>
      %1680 = arith.addf %1677, %1679 : vector<8x128xf32>
      %1681 = vector.broadcast %492 : f32 to vector<8x128xf32>
      %1682 = arith.addf %1680, %1681 : vector<8x128xf32>
      %cst_1062 = arith.constant 0.000000e+00 : f32
      %1683 = vector.broadcast %cst_1062 : f32 to vector<8x128xf32>
      %1684 = arith.maximumf %1682, %1683 : vector<8x128xf32>
      %1685 = vector.broadcast %512 : f32 to vector<8x128xf32>
      %1686 = arith.mulf %1685, %1684 : vector<8x128xf32>
      %1687 = arith.addf %1618, %1686 : vector<8x128xf32>
      %1688 = vector.broadcast %532 : f32 to vector<8x128xf32>
      %1689 = arith.mulf %1688, %1684 : vector<8x128xf32>
      %1690 = arith.addf %1621, %1689 : vector<8x128xf32>
      %1691 = vector.broadcast %340 : f32 to vector<8x128xf32>
      %1692 = arith.mulf %1691, %567 : vector<8x128xf32>
      %1693 = vector.broadcast %341 : f32 to vector<8x128xf32>
      %1694 = arith.mulf %1693, %579 : vector<8x128xf32>
      %1695 = arith.addf %1692, %1694 : vector<8x128xf32>
      %1696 = vector.broadcast %342 : f32 to vector<8x128xf32>
      %1697 = arith.mulf %1696, %591 : vector<8x128xf32>
      %1698 = arith.addf %1695, %1697 : vector<8x128xf32>
      %1699 = vector.broadcast %343 : f32 to vector<8x128xf32>
      %1700 = arith.mulf %1699, %603 : vector<8x128xf32>
      %1701 = arith.addf %1698, %1700 : vector<8x128xf32>
      %1702 = vector.broadcast %344 : f32 to vector<8x128xf32>
      %1703 = arith.mulf %1702, %615 : vector<8x128xf32>
      %1704 = arith.addf %1701, %1703 : vector<8x128xf32>
      %1705 = vector.broadcast %345 : f32 to vector<8x128xf32>
      %1706 = arith.mulf %1705, %627 : vector<8x128xf32>
      %1707 = arith.addf %1704, %1706 : vector<8x128xf32>
      %1708 = vector.broadcast %346 : f32 to vector<8x128xf32>
      %1709 = arith.mulf %1708, %639 : vector<8x128xf32>
      %1710 = arith.addf %1707, %1709 : vector<8x128xf32>
      %1711 = vector.broadcast %347 : f32 to vector<8x128xf32>
      %1712 = arith.mulf %1711, %651 : vector<8x128xf32>
      %1713 = arith.addf %1710, %1712 : vector<8x128xf32>
      %1714 = vector.broadcast %348 : f32 to vector<8x128xf32>
      %1715 = arith.mulf %1714, %663 : vector<8x128xf32>
      %1716 = arith.addf %1713, %1715 : vector<8x128xf32>
      %1717 = vector.broadcast %349 : f32 to vector<8x128xf32>
      %1718 = arith.mulf %1717, %675 : vector<8x128xf32>
      %1719 = arith.addf %1716, %1718 : vector<8x128xf32>
      %1720 = vector.broadcast %350 : f32 to vector<8x128xf32>
      %1721 = arith.mulf %1720, %687 : vector<8x128xf32>
      %1722 = arith.addf %1719, %1721 : vector<8x128xf32>
      %1723 = vector.broadcast %351 : f32 to vector<8x128xf32>
      %1724 = arith.mulf %1723, %699 : vector<8x128xf32>
      %1725 = arith.addf %1722, %1724 : vector<8x128xf32>
      %1726 = vector.broadcast %352 : f32 to vector<8x128xf32>
      %1727 = arith.mulf %1726, %711 : vector<8x128xf32>
      %1728 = arith.addf %1725, %1727 : vector<8x128xf32>
      %1729 = vector.broadcast %353 : f32 to vector<8x128xf32>
      %1730 = arith.mulf %1729, %723 : vector<8x128xf32>
      %1731 = arith.addf %1728, %1730 : vector<8x128xf32>
      %1732 = vector.broadcast %354 : f32 to vector<8x128xf32>
      %1733 = arith.mulf %1732, %735 : vector<8x128xf32>
      %1734 = arith.addf %1731, %1733 : vector<8x128xf32>
      %1735 = vector.broadcast %355 : f32 to vector<8x128xf32>
      %1736 = arith.mulf %1735, %747 : vector<8x128xf32>
      %1737 = arith.addf %1734, %1736 : vector<8x128xf32>
      %1738 = vector.broadcast %356 : f32 to vector<8x128xf32>
      %1739 = arith.mulf %1738, %759 : vector<8x128xf32>
      %1740 = arith.addf %1737, %1739 : vector<8x128xf32>
      %1741 = vector.broadcast %357 : f32 to vector<8x128xf32>
      %1742 = arith.mulf %1741, %771 : vector<8x128xf32>
      %1743 = arith.addf %1740, %1742 : vector<8x128xf32>
      %1744 = vector.broadcast %358 : f32 to vector<8x128xf32>
      %1745 = arith.mulf %1744, %783 : vector<8x128xf32>
      %1746 = arith.addf %1743, %1745 : vector<8x128xf32>
      %1747 = vector.broadcast %359 : f32 to vector<8x128xf32>
      %1748 = arith.mulf %1747, %795 : vector<8x128xf32>
      %1749 = arith.addf %1746, %1748 : vector<8x128xf32>
      %1750 = vector.broadcast %493 : f32 to vector<8x128xf32>
      %1751 = arith.addf %1749, %1750 : vector<8x128xf32>
      %cst_1063 = arith.constant 0.000000e+00 : f32
      %1752 = vector.broadcast %cst_1063 : f32 to vector<8x128xf32>
      %1753 = arith.maximumf %1751, %1752 : vector<8x128xf32>
      %1754 = vector.broadcast %513 : f32 to vector<8x128xf32>
      %1755 = arith.mulf %1754, %1753 : vector<8x128xf32>
      %1756 = arith.addf %1687, %1755 : vector<8x128xf32>
      %1757 = vector.broadcast %533 : f32 to vector<8x128xf32>
      %1758 = arith.mulf %1757, %1753 : vector<8x128xf32>
      %1759 = arith.addf %1690, %1758 : vector<8x128xf32>
      %1760 = vector.broadcast %360 : f32 to vector<8x128xf32>
      %1761 = arith.mulf %1760, %567 : vector<8x128xf32>
      %1762 = vector.broadcast %361 : f32 to vector<8x128xf32>
      %1763 = arith.mulf %1762, %579 : vector<8x128xf32>
      %1764 = arith.addf %1761, %1763 : vector<8x128xf32>
      %1765 = vector.broadcast %362 : f32 to vector<8x128xf32>
      %1766 = arith.mulf %1765, %591 : vector<8x128xf32>
      %1767 = arith.addf %1764, %1766 : vector<8x128xf32>
      %1768 = vector.broadcast %363 : f32 to vector<8x128xf32>
      %1769 = arith.mulf %1768, %603 : vector<8x128xf32>
      %1770 = arith.addf %1767, %1769 : vector<8x128xf32>
      %1771 = vector.broadcast %364 : f32 to vector<8x128xf32>
      %1772 = arith.mulf %1771, %615 : vector<8x128xf32>
      %1773 = arith.addf %1770, %1772 : vector<8x128xf32>
      %1774 = vector.broadcast %365 : f32 to vector<8x128xf32>
      %1775 = arith.mulf %1774, %627 : vector<8x128xf32>
      %1776 = arith.addf %1773, %1775 : vector<8x128xf32>
      %1777 = vector.broadcast %366 : f32 to vector<8x128xf32>
      %1778 = arith.mulf %1777, %639 : vector<8x128xf32>
      %1779 = arith.addf %1776, %1778 : vector<8x128xf32>
      %1780 = vector.broadcast %367 : f32 to vector<8x128xf32>
      %1781 = arith.mulf %1780, %651 : vector<8x128xf32>
      %1782 = arith.addf %1779, %1781 : vector<8x128xf32>
      %1783 = vector.broadcast %368 : f32 to vector<8x128xf32>
      %1784 = arith.mulf %1783, %663 : vector<8x128xf32>
      %1785 = arith.addf %1782, %1784 : vector<8x128xf32>
      %1786 = vector.broadcast %369 : f32 to vector<8x128xf32>
      %1787 = arith.mulf %1786, %675 : vector<8x128xf32>
      %1788 = arith.addf %1785, %1787 : vector<8x128xf32>
      %1789 = vector.broadcast %370 : f32 to vector<8x128xf32>
      %1790 = arith.mulf %1789, %687 : vector<8x128xf32>
      %1791 = arith.addf %1788, %1790 : vector<8x128xf32>
      %1792 = vector.broadcast %371 : f32 to vector<8x128xf32>
      %1793 = arith.mulf %1792, %699 : vector<8x128xf32>
      %1794 = arith.addf %1791, %1793 : vector<8x128xf32>
      %1795 = vector.broadcast %372 : f32 to vector<8x128xf32>
      %1796 = arith.mulf %1795, %711 : vector<8x128xf32>
      %1797 = arith.addf %1794, %1796 : vector<8x128xf32>
      %1798 = vector.broadcast %373 : f32 to vector<8x128xf32>
      %1799 = arith.mulf %1798, %723 : vector<8x128xf32>
      %1800 = arith.addf %1797, %1799 : vector<8x128xf32>
      %1801 = vector.broadcast %374 : f32 to vector<8x128xf32>
      %1802 = arith.mulf %1801, %735 : vector<8x128xf32>
      %1803 = arith.addf %1800, %1802 : vector<8x128xf32>
      %1804 = vector.broadcast %375 : f32 to vector<8x128xf32>
      %1805 = arith.mulf %1804, %747 : vector<8x128xf32>
      %1806 = arith.addf %1803, %1805 : vector<8x128xf32>
      %1807 = vector.broadcast %376 : f32 to vector<8x128xf32>
      %1808 = arith.mulf %1807, %759 : vector<8x128xf32>
      %1809 = arith.addf %1806, %1808 : vector<8x128xf32>
      %1810 = vector.broadcast %377 : f32 to vector<8x128xf32>
      %1811 = arith.mulf %1810, %771 : vector<8x128xf32>
      %1812 = arith.addf %1809, %1811 : vector<8x128xf32>
      %1813 = vector.broadcast %378 : f32 to vector<8x128xf32>
      %1814 = arith.mulf %1813, %783 : vector<8x128xf32>
      %1815 = arith.addf %1812, %1814 : vector<8x128xf32>
      %1816 = vector.broadcast %379 : f32 to vector<8x128xf32>
      %1817 = arith.mulf %1816, %795 : vector<8x128xf32>
      %1818 = arith.addf %1815, %1817 : vector<8x128xf32>
      %1819 = vector.broadcast %494 : f32 to vector<8x128xf32>
      %1820 = arith.addf %1818, %1819 : vector<8x128xf32>
      %cst_1064 = arith.constant 0.000000e+00 : f32
      %1821 = vector.broadcast %cst_1064 : f32 to vector<8x128xf32>
      %1822 = arith.maximumf %1820, %1821 : vector<8x128xf32>
      %1823 = vector.broadcast %514 : f32 to vector<8x128xf32>
      %1824 = arith.mulf %1823, %1822 : vector<8x128xf32>
      %1825 = arith.addf %1756, %1824 : vector<8x128xf32>
      %1826 = vector.broadcast %534 : f32 to vector<8x128xf32>
      %1827 = arith.mulf %1826, %1822 : vector<8x128xf32>
      %1828 = arith.addf %1759, %1827 : vector<8x128xf32>
      %1829 = vector.broadcast %380 : f32 to vector<8x128xf32>
      %1830 = arith.mulf %1829, %567 : vector<8x128xf32>
      %1831 = vector.broadcast %381 : f32 to vector<8x128xf32>
      %1832 = arith.mulf %1831, %579 : vector<8x128xf32>
      %1833 = arith.addf %1830, %1832 : vector<8x128xf32>
      %1834 = vector.broadcast %382 : f32 to vector<8x128xf32>
      %1835 = arith.mulf %1834, %591 : vector<8x128xf32>
      %1836 = arith.addf %1833, %1835 : vector<8x128xf32>
      %1837 = vector.broadcast %383 : f32 to vector<8x128xf32>
      %1838 = arith.mulf %1837, %603 : vector<8x128xf32>
      %1839 = arith.addf %1836, %1838 : vector<8x128xf32>
      %1840 = vector.broadcast %384 : f32 to vector<8x128xf32>
      %1841 = arith.mulf %1840, %615 : vector<8x128xf32>
      %1842 = arith.addf %1839, %1841 : vector<8x128xf32>
      %1843 = vector.broadcast %385 : f32 to vector<8x128xf32>
      %1844 = arith.mulf %1843, %627 : vector<8x128xf32>
      %1845 = arith.addf %1842, %1844 : vector<8x128xf32>
      %1846 = vector.broadcast %386 : f32 to vector<8x128xf32>
      %1847 = arith.mulf %1846, %639 : vector<8x128xf32>
      %1848 = arith.addf %1845, %1847 : vector<8x128xf32>
      %1849 = vector.broadcast %387 : f32 to vector<8x128xf32>
      %1850 = arith.mulf %1849, %651 : vector<8x128xf32>
      %1851 = arith.addf %1848, %1850 : vector<8x128xf32>
      %1852 = vector.broadcast %388 : f32 to vector<8x128xf32>
      %1853 = arith.mulf %1852, %663 : vector<8x128xf32>
      %1854 = arith.addf %1851, %1853 : vector<8x128xf32>
      %1855 = vector.broadcast %389 : f32 to vector<8x128xf32>
      %1856 = arith.mulf %1855, %675 : vector<8x128xf32>
      %1857 = arith.addf %1854, %1856 : vector<8x128xf32>
      %1858 = vector.broadcast %390 : f32 to vector<8x128xf32>
      %1859 = arith.mulf %1858, %687 : vector<8x128xf32>
      %1860 = arith.addf %1857, %1859 : vector<8x128xf32>
      %1861 = vector.broadcast %391 : f32 to vector<8x128xf32>
      %1862 = arith.mulf %1861, %699 : vector<8x128xf32>
      %1863 = arith.addf %1860, %1862 : vector<8x128xf32>
      %1864 = vector.broadcast %392 : f32 to vector<8x128xf32>
      %1865 = arith.mulf %1864, %711 : vector<8x128xf32>
      %1866 = arith.addf %1863, %1865 : vector<8x128xf32>
      %1867 = vector.broadcast %393 : f32 to vector<8x128xf32>
      %1868 = arith.mulf %1867, %723 : vector<8x128xf32>
      %1869 = arith.addf %1866, %1868 : vector<8x128xf32>
      %1870 = vector.broadcast %394 : f32 to vector<8x128xf32>
      %1871 = arith.mulf %1870, %735 : vector<8x128xf32>
      %1872 = arith.addf %1869, %1871 : vector<8x128xf32>
      %1873 = vector.broadcast %395 : f32 to vector<8x128xf32>
      %1874 = arith.mulf %1873, %747 : vector<8x128xf32>
      %1875 = arith.addf %1872, %1874 : vector<8x128xf32>
      %1876 = vector.broadcast %396 : f32 to vector<8x128xf32>
      %1877 = arith.mulf %1876, %759 : vector<8x128xf32>
      %1878 = arith.addf %1875, %1877 : vector<8x128xf32>
      %1879 = vector.broadcast %397 : f32 to vector<8x128xf32>
      %1880 = arith.mulf %1879, %771 : vector<8x128xf32>
      %1881 = arith.addf %1878, %1880 : vector<8x128xf32>
      %1882 = vector.broadcast %398 : f32 to vector<8x128xf32>
      %1883 = arith.mulf %1882, %783 : vector<8x128xf32>
      %1884 = arith.addf %1881, %1883 : vector<8x128xf32>
      %1885 = vector.broadcast %399 : f32 to vector<8x128xf32>
      %1886 = arith.mulf %1885, %795 : vector<8x128xf32>
      %1887 = arith.addf %1884, %1886 : vector<8x128xf32>
      %1888 = vector.broadcast %495 : f32 to vector<8x128xf32>
      %1889 = arith.addf %1887, %1888 : vector<8x128xf32>
      %cst_1065 = arith.constant 0.000000e+00 : f32
      %1890 = vector.broadcast %cst_1065 : f32 to vector<8x128xf32>
      %1891 = arith.maximumf %1889, %1890 : vector<8x128xf32>
      %1892 = vector.broadcast %515 : f32 to vector<8x128xf32>
      %1893 = arith.mulf %1892, %1891 : vector<8x128xf32>
      %1894 = arith.addf %1825, %1893 : vector<8x128xf32>
      %1895 = vector.broadcast %535 : f32 to vector<8x128xf32>
      %1896 = arith.mulf %1895, %1891 : vector<8x128xf32>
      %1897 = arith.addf %1828, %1896 : vector<8x128xf32>
      %1898 = vector.broadcast %400 : f32 to vector<8x128xf32>
      %1899 = arith.mulf %1898, %567 : vector<8x128xf32>
      %1900 = vector.broadcast %401 : f32 to vector<8x128xf32>
      %1901 = arith.mulf %1900, %579 : vector<8x128xf32>
      %1902 = arith.addf %1899, %1901 : vector<8x128xf32>
      %1903 = vector.broadcast %402 : f32 to vector<8x128xf32>
      %1904 = arith.mulf %1903, %591 : vector<8x128xf32>
      %1905 = arith.addf %1902, %1904 : vector<8x128xf32>
      %1906 = vector.broadcast %403 : f32 to vector<8x128xf32>
      %1907 = arith.mulf %1906, %603 : vector<8x128xf32>
      %1908 = arith.addf %1905, %1907 : vector<8x128xf32>
      %1909 = vector.broadcast %404 : f32 to vector<8x128xf32>
      %1910 = arith.mulf %1909, %615 : vector<8x128xf32>
      %1911 = arith.addf %1908, %1910 : vector<8x128xf32>
      %1912 = vector.broadcast %405 : f32 to vector<8x128xf32>
      %1913 = arith.mulf %1912, %627 : vector<8x128xf32>
      %1914 = arith.addf %1911, %1913 : vector<8x128xf32>
      %1915 = vector.broadcast %406 : f32 to vector<8x128xf32>
      %1916 = arith.mulf %1915, %639 : vector<8x128xf32>
      %1917 = arith.addf %1914, %1916 : vector<8x128xf32>
      %1918 = vector.broadcast %407 : f32 to vector<8x128xf32>
      %1919 = arith.mulf %1918, %651 : vector<8x128xf32>
      %1920 = arith.addf %1917, %1919 : vector<8x128xf32>
      %1921 = vector.broadcast %408 : f32 to vector<8x128xf32>
      %1922 = arith.mulf %1921, %663 : vector<8x128xf32>
      %1923 = arith.addf %1920, %1922 : vector<8x128xf32>
      %1924 = vector.broadcast %409 : f32 to vector<8x128xf32>
      %1925 = arith.mulf %1924, %675 : vector<8x128xf32>
      %1926 = arith.addf %1923, %1925 : vector<8x128xf32>
      %1927 = vector.broadcast %410 : f32 to vector<8x128xf32>
      %1928 = arith.mulf %1927, %687 : vector<8x128xf32>
      %1929 = arith.addf %1926, %1928 : vector<8x128xf32>
      %1930 = vector.broadcast %411 : f32 to vector<8x128xf32>
      %1931 = arith.mulf %1930, %699 : vector<8x128xf32>
      %1932 = arith.addf %1929, %1931 : vector<8x128xf32>
      %1933 = vector.broadcast %412 : f32 to vector<8x128xf32>
      %1934 = arith.mulf %1933, %711 : vector<8x128xf32>
      %1935 = arith.addf %1932, %1934 : vector<8x128xf32>
      %1936 = vector.broadcast %413 : f32 to vector<8x128xf32>
      %1937 = arith.mulf %1936, %723 : vector<8x128xf32>
      %1938 = arith.addf %1935, %1937 : vector<8x128xf32>
      %1939 = vector.broadcast %414 : f32 to vector<8x128xf32>
      %1940 = arith.mulf %1939, %735 : vector<8x128xf32>
      %1941 = arith.addf %1938, %1940 : vector<8x128xf32>
      %1942 = vector.broadcast %415 : f32 to vector<8x128xf32>
      %1943 = arith.mulf %1942, %747 : vector<8x128xf32>
      %1944 = arith.addf %1941, %1943 : vector<8x128xf32>
      %1945 = vector.broadcast %416 : f32 to vector<8x128xf32>
      %1946 = arith.mulf %1945, %759 : vector<8x128xf32>
      %1947 = arith.addf %1944, %1946 : vector<8x128xf32>
      %1948 = vector.broadcast %417 : f32 to vector<8x128xf32>
      %1949 = arith.mulf %1948, %771 : vector<8x128xf32>
      %1950 = arith.addf %1947, %1949 : vector<8x128xf32>
      %1951 = vector.broadcast %418 : f32 to vector<8x128xf32>
      %1952 = arith.mulf %1951, %783 : vector<8x128xf32>
      %1953 = arith.addf %1950, %1952 : vector<8x128xf32>
      %1954 = vector.broadcast %419 : f32 to vector<8x128xf32>
      %1955 = arith.mulf %1954, %795 : vector<8x128xf32>
      %1956 = arith.addf %1953, %1955 : vector<8x128xf32>
      %1957 = vector.broadcast %496 : f32 to vector<8x128xf32>
      %1958 = arith.addf %1956, %1957 : vector<8x128xf32>
      %cst_1066 = arith.constant 0.000000e+00 : f32
      %1959 = vector.broadcast %cst_1066 : f32 to vector<8x128xf32>
      %1960 = arith.maximumf %1958, %1959 : vector<8x128xf32>
      %1961 = vector.broadcast %516 : f32 to vector<8x128xf32>
      %1962 = arith.mulf %1961, %1960 : vector<8x128xf32>
      %1963 = arith.addf %1894, %1962 : vector<8x128xf32>
      %1964 = vector.broadcast %536 : f32 to vector<8x128xf32>
      %1965 = arith.mulf %1964, %1960 : vector<8x128xf32>
      %1966 = arith.addf %1897, %1965 : vector<8x128xf32>
      %1967 = vector.broadcast %420 : f32 to vector<8x128xf32>
      %1968 = arith.mulf %1967, %567 : vector<8x128xf32>
      %1969 = vector.broadcast %421 : f32 to vector<8x128xf32>
      %1970 = arith.mulf %1969, %579 : vector<8x128xf32>
      %1971 = arith.addf %1968, %1970 : vector<8x128xf32>
      %1972 = vector.broadcast %422 : f32 to vector<8x128xf32>
      %1973 = arith.mulf %1972, %591 : vector<8x128xf32>
      %1974 = arith.addf %1971, %1973 : vector<8x128xf32>
      %1975 = vector.broadcast %423 : f32 to vector<8x128xf32>
      %1976 = arith.mulf %1975, %603 : vector<8x128xf32>
      %1977 = arith.addf %1974, %1976 : vector<8x128xf32>
      %1978 = vector.broadcast %424 : f32 to vector<8x128xf32>
      %1979 = arith.mulf %1978, %615 : vector<8x128xf32>
      %1980 = arith.addf %1977, %1979 : vector<8x128xf32>
      %1981 = vector.broadcast %425 : f32 to vector<8x128xf32>
      %1982 = arith.mulf %1981, %627 : vector<8x128xf32>
      %1983 = arith.addf %1980, %1982 : vector<8x128xf32>
      %1984 = vector.broadcast %426 : f32 to vector<8x128xf32>
      %1985 = arith.mulf %1984, %639 : vector<8x128xf32>
      %1986 = arith.addf %1983, %1985 : vector<8x128xf32>
      %1987 = vector.broadcast %427 : f32 to vector<8x128xf32>
      %1988 = arith.mulf %1987, %651 : vector<8x128xf32>
      %1989 = arith.addf %1986, %1988 : vector<8x128xf32>
      %1990 = vector.broadcast %428 : f32 to vector<8x128xf32>
      %1991 = arith.mulf %1990, %663 : vector<8x128xf32>
      %1992 = arith.addf %1989, %1991 : vector<8x128xf32>
      %1993 = vector.broadcast %429 : f32 to vector<8x128xf32>
      %1994 = arith.mulf %1993, %675 : vector<8x128xf32>
      %1995 = arith.addf %1992, %1994 : vector<8x128xf32>
      %1996 = vector.broadcast %430 : f32 to vector<8x128xf32>
      %1997 = arith.mulf %1996, %687 : vector<8x128xf32>
      %1998 = arith.addf %1995, %1997 : vector<8x128xf32>
      %1999 = vector.broadcast %431 : f32 to vector<8x128xf32>
      %2000 = arith.mulf %1999, %699 : vector<8x128xf32>
      %2001 = arith.addf %1998, %2000 : vector<8x128xf32>
      %2002 = vector.broadcast %432 : f32 to vector<8x128xf32>
      %2003 = arith.mulf %2002, %711 : vector<8x128xf32>
      %2004 = arith.addf %2001, %2003 : vector<8x128xf32>
      %2005 = vector.broadcast %433 : f32 to vector<8x128xf32>
      %2006 = arith.mulf %2005, %723 : vector<8x128xf32>
      %2007 = arith.addf %2004, %2006 : vector<8x128xf32>
      %2008 = vector.broadcast %434 : f32 to vector<8x128xf32>
      %2009 = arith.mulf %2008, %735 : vector<8x128xf32>
      %2010 = arith.addf %2007, %2009 : vector<8x128xf32>
      %2011 = vector.broadcast %435 : f32 to vector<8x128xf32>
      %2012 = arith.mulf %2011, %747 : vector<8x128xf32>
      %2013 = arith.addf %2010, %2012 : vector<8x128xf32>
      %2014 = vector.broadcast %436 : f32 to vector<8x128xf32>
      %2015 = arith.mulf %2014, %759 : vector<8x128xf32>
      %2016 = arith.addf %2013, %2015 : vector<8x128xf32>
      %2017 = vector.broadcast %437 : f32 to vector<8x128xf32>
      %2018 = arith.mulf %2017, %771 : vector<8x128xf32>
      %2019 = arith.addf %2016, %2018 : vector<8x128xf32>
      %2020 = vector.broadcast %438 : f32 to vector<8x128xf32>
      %2021 = arith.mulf %2020, %783 : vector<8x128xf32>
      %2022 = arith.addf %2019, %2021 : vector<8x128xf32>
      %2023 = vector.broadcast %439 : f32 to vector<8x128xf32>
      %2024 = arith.mulf %2023, %795 : vector<8x128xf32>
      %2025 = arith.addf %2022, %2024 : vector<8x128xf32>
      %2026 = vector.broadcast %497 : f32 to vector<8x128xf32>
      %2027 = arith.addf %2025, %2026 : vector<8x128xf32>
      %cst_1067 = arith.constant 0.000000e+00 : f32
      %2028 = vector.broadcast %cst_1067 : f32 to vector<8x128xf32>
      %2029 = arith.maximumf %2027, %2028 : vector<8x128xf32>
      %2030 = vector.broadcast %517 : f32 to vector<8x128xf32>
      %2031 = arith.mulf %2030, %2029 : vector<8x128xf32>
      %2032 = arith.addf %1963, %2031 : vector<8x128xf32>
      %2033 = vector.broadcast %537 : f32 to vector<8x128xf32>
      %2034 = arith.mulf %2033, %2029 : vector<8x128xf32>
      %2035 = arith.addf %1966, %2034 : vector<8x128xf32>
      %2036 = vector.broadcast %440 : f32 to vector<8x128xf32>
      %2037 = arith.mulf %2036, %567 : vector<8x128xf32>
      %2038 = vector.broadcast %441 : f32 to vector<8x128xf32>
      %2039 = arith.mulf %2038, %579 : vector<8x128xf32>
      %2040 = arith.addf %2037, %2039 : vector<8x128xf32>
      %2041 = vector.broadcast %442 : f32 to vector<8x128xf32>
      %2042 = arith.mulf %2041, %591 : vector<8x128xf32>
      %2043 = arith.addf %2040, %2042 : vector<8x128xf32>
      %2044 = vector.broadcast %443 : f32 to vector<8x128xf32>
      %2045 = arith.mulf %2044, %603 : vector<8x128xf32>
      %2046 = arith.addf %2043, %2045 : vector<8x128xf32>
      %2047 = vector.broadcast %444 : f32 to vector<8x128xf32>
      %2048 = arith.mulf %2047, %615 : vector<8x128xf32>
      %2049 = arith.addf %2046, %2048 : vector<8x128xf32>
      %2050 = vector.broadcast %445 : f32 to vector<8x128xf32>
      %2051 = arith.mulf %2050, %627 : vector<8x128xf32>
      %2052 = arith.addf %2049, %2051 : vector<8x128xf32>
      %2053 = vector.broadcast %446 : f32 to vector<8x128xf32>
      %2054 = arith.mulf %2053, %639 : vector<8x128xf32>
      %2055 = arith.addf %2052, %2054 : vector<8x128xf32>
      %2056 = vector.broadcast %447 : f32 to vector<8x128xf32>
      %2057 = arith.mulf %2056, %651 : vector<8x128xf32>
      %2058 = arith.addf %2055, %2057 : vector<8x128xf32>
      %2059 = vector.broadcast %448 : f32 to vector<8x128xf32>
      %2060 = arith.mulf %2059, %663 : vector<8x128xf32>
      %2061 = arith.addf %2058, %2060 : vector<8x128xf32>
      %2062 = vector.broadcast %449 : f32 to vector<8x128xf32>
      %2063 = arith.mulf %2062, %675 : vector<8x128xf32>
      %2064 = arith.addf %2061, %2063 : vector<8x128xf32>
      %2065 = vector.broadcast %450 : f32 to vector<8x128xf32>
      %2066 = arith.mulf %2065, %687 : vector<8x128xf32>
      %2067 = arith.addf %2064, %2066 : vector<8x128xf32>
      %2068 = vector.broadcast %451 : f32 to vector<8x128xf32>
      %2069 = arith.mulf %2068, %699 : vector<8x128xf32>
      %2070 = arith.addf %2067, %2069 : vector<8x128xf32>
      %2071 = vector.broadcast %452 : f32 to vector<8x128xf32>
      %2072 = arith.mulf %2071, %711 : vector<8x128xf32>
      %2073 = arith.addf %2070, %2072 : vector<8x128xf32>
      %2074 = vector.broadcast %453 : f32 to vector<8x128xf32>
      %2075 = arith.mulf %2074, %723 : vector<8x128xf32>
      %2076 = arith.addf %2073, %2075 : vector<8x128xf32>
      %2077 = vector.broadcast %454 : f32 to vector<8x128xf32>
      %2078 = arith.mulf %2077, %735 : vector<8x128xf32>
      %2079 = arith.addf %2076, %2078 : vector<8x128xf32>
      %2080 = vector.broadcast %455 : f32 to vector<8x128xf32>
      %2081 = arith.mulf %2080, %747 : vector<8x128xf32>
      %2082 = arith.addf %2079, %2081 : vector<8x128xf32>
      %2083 = vector.broadcast %456 : f32 to vector<8x128xf32>
      %2084 = arith.mulf %2083, %759 : vector<8x128xf32>
      %2085 = arith.addf %2082, %2084 : vector<8x128xf32>
      %2086 = vector.broadcast %457 : f32 to vector<8x128xf32>
      %2087 = arith.mulf %2086, %771 : vector<8x128xf32>
      %2088 = arith.addf %2085, %2087 : vector<8x128xf32>
      %2089 = vector.broadcast %458 : f32 to vector<8x128xf32>
      %2090 = arith.mulf %2089, %783 : vector<8x128xf32>
      %2091 = arith.addf %2088, %2090 : vector<8x128xf32>
      %2092 = vector.broadcast %459 : f32 to vector<8x128xf32>
      %2093 = arith.mulf %2092, %795 : vector<8x128xf32>
      %2094 = arith.addf %2091, %2093 : vector<8x128xf32>
      %2095 = vector.broadcast %498 : f32 to vector<8x128xf32>
      %2096 = arith.addf %2094, %2095 : vector<8x128xf32>
      %cst_1068 = arith.constant 0.000000e+00 : f32
      %2097 = vector.broadcast %cst_1068 : f32 to vector<8x128xf32>
      %2098 = arith.maximumf %2096, %2097 : vector<8x128xf32>
      %2099 = vector.broadcast %518 : f32 to vector<8x128xf32>
      %2100 = arith.mulf %2099, %2098 : vector<8x128xf32>
      %2101 = arith.addf %2032, %2100 : vector<8x128xf32>
      %2102 = vector.broadcast %538 : f32 to vector<8x128xf32>
      %2103 = arith.mulf %2102, %2098 : vector<8x128xf32>
      %2104 = arith.addf %2035, %2103 : vector<8x128xf32>
      %2105 = vector.broadcast %460 : f32 to vector<8x128xf32>
      %2106 = arith.mulf %2105, %567 : vector<8x128xf32>
      %2107 = vector.broadcast %461 : f32 to vector<8x128xf32>
      %2108 = arith.mulf %2107, %579 : vector<8x128xf32>
      %2109 = arith.addf %2106, %2108 : vector<8x128xf32>
      %2110 = vector.broadcast %462 : f32 to vector<8x128xf32>
      %2111 = arith.mulf %2110, %591 : vector<8x128xf32>
      %2112 = arith.addf %2109, %2111 : vector<8x128xf32>
      %2113 = vector.broadcast %463 : f32 to vector<8x128xf32>
      %2114 = arith.mulf %2113, %603 : vector<8x128xf32>
      %2115 = arith.addf %2112, %2114 : vector<8x128xf32>
      %2116 = vector.broadcast %464 : f32 to vector<8x128xf32>
      %2117 = arith.mulf %2116, %615 : vector<8x128xf32>
      %2118 = arith.addf %2115, %2117 : vector<8x128xf32>
      %2119 = vector.broadcast %465 : f32 to vector<8x128xf32>
      %2120 = arith.mulf %2119, %627 : vector<8x128xf32>
      %2121 = arith.addf %2118, %2120 : vector<8x128xf32>
      %2122 = vector.broadcast %466 : f32 to vector<8x128xf32>
      %2123 = arith.mulf %2122, %639 : vector<8x128xf32>
      %2124 = arith.addf %2121, %2123 : vector<8x128xf32>
      %2125 = vector.broadcast %467 : f32 to vector<8x128xf32>
      %2126 = arith.mulf %2125, %651 : vector<8x128xf32>
      %2127 = arith.addf %2124, %2126 : vector<8x128xf32>
      %2128 = vector.broadcast %468 : f32 to vector<8x128xf32>
      %2129 = arith.mulf %2128, %663 : vector<8x128xf32>
      %2130 = arith.addf %2127, %2129 : vector<8x128xf32>
      %2131 = vector.broadcast %469 : f32 to vector<8x128xf32>
      %2132 = arith.mulf %2131, %675 : vector<8x128xf32>
      %2133 = arith.addf %2130, %2132 : vector<8x128xf32>
      %2134 = vector.broadcast %470 : f32 to vector<8x128xf32>
      %2135 = arith.mulf %2134, %687 : vector<8x128xf32>
      %2136 = arith.addf %2133, %2135 : vector<8x128xf32>
      %2137 = vector.broadcast %471 : f32 to vector<8x128xf32>
      %2138 = arith.mulf %2137, %699 : vector<8x128xf32>
      %2139 = arith.addf %2136, %2138 : vector<8x128xf32>
      %2140 = vector.broadcast %472 : f32 to vector<8x128xf32>
      %2141 = arith.mulf %2140, %711 : vector<8x128xf32>
      %2142 = arith.addf %2139, %2141 : vector<8x128xf32>
      %2143 = vector.broadcast %473 : f32 to vector<8x128xf32>
      %2144 = arith.mulf %2143, %723 : vector<8x128xf32>
      %2145 = arith.addf %2142, %2144 : vector<8x128xf32>
      %2146 = vector.broadcast %474 : f32 to vector<8x128xf32>
      %2147 = arith.mulf %2146, %735 : vector<8x128xf32>
      %2148 = arith.addf %2145, %2147 : vector<8x128xf32>
      %2149 = vector.broadcast %475 : f32 to vector<8x128xf32>
      %2150 = arith.mulf %2149, %747 : vector<8x128xf32>
      %2151 = arith.addf %2148, %2150 : vector<8x128xf32>
      %2152 = vector.broadcast %476 : f32 to vector<8x128xf32>
      %2153 = arith.mulf %2152, %759 : vector<8x128xf32>
      %2154 = arith.addf %2151, %2153 : vector<8x128xf32>
      %2155 = vector.broadcast %477 : f32 to vector<8x128xf32>
      %2156 = arith.mulf %2155, %771 : vector<8x128xf32>
      %2157 = arith.addf %2154, %2156 : vector<8x128xf32>
      %2158 = vector.broadcast %478 : f32 to vector<8x128xf32>
      %2159 = arith.mulf %2158, %783 : vector<8x128xf32>
      %2160 = arith.addf %2157, %2159 : vector<8x128xf32>
      %2161 = vector.broadcast %479 : f32 to vector<8x128xf32>
      %2162 = arith.mulf %2161, %795 : vector<8x128xf32>
      %2163 = arith.addf %2160, %2162 : vector<8x128xf32>
      %2164 = vector.broadcast %499 : f32 to vector<8x128xf32>
      %2165 = arith.addf %2163, %2164 : vector<8x128xf32>
      %cst_1069 = arith.constant 0.000000e+00 : f32
      %2166 = vector.broadcast %cst_1069 : f32 to vector<8x128xf32>
      %2167 = arith.maximumf %2165, %2166 : vector<8x128xf32>
      %2168 = vector.broadcast %519 : f32 to vector<8x128xf32>
      %2169 = arith.mulf %2168, %2167 : vector<8x128xf32>
      %2170 = arith.addf %2101, %2169 : vector<8x128xf32>
      %2171 = vector.broadcast %539 : f32 to vector<8x128xf32>
      %2172 = arith.mulf %2171, %2167 : vector<8x128xf32>
      %2173 = arith.addf %2104, %2172 : vector<8x128xf32>
      %2174 = vector.broadcast %540 : f32 to vector<8x128xf32>
      %2175 = arith.addf %2170, %2174 : vector<8x128xf32>
      %cst_1070 = arith.constant 1.000000e+00 : f32
      %2176 = vector.broadcast %cst_1070 : f32 to vector<8x128xf32>
      %2177 = arith.mulf %2176, %2175 : vector<8x128xf32>
      %2178 = arith.addf %549, %2177 : vector<8x128xf32>
      %c0_1071 = arith.constant 0 : index
      %2179 = arith.index_cast %546 : i32 to index
      %c0_1072 = arith.constant 0 : index
      %2180 = vector.load %arg9[%c0_1071, %2179, %c0_1072] : memref<2x16x128xf32, #tpu.memory_space<vmem>>, vector<1x8x128xf32>
      %2181 = vector.shape_cast %2180 : vector<1x8x128xf32> to vector<8x128xf32>
      %2182 = vector.shape_cast %2178 : vector<8x128xf32> to vector<1x8x128xf32>
      tpu.vector_store %arg9[%c0_1071, %2179, %c0_1072], %2182 {strides = array<i32>} : memref<2x16x128xf32, #tpu.memory_space<vmem>>, vector<1x8x128xf32>,
      %2183 = vector.broadcast %541 : f32 to vector<8x128xf32>
      %2184 = arith.addf %2173, %2183 : vector<8x128xf32>
      %cst_1073 = arith.constant 1.000000e+00 : f32
      %2185 = vector.broadcast %cst_1073 : f32 to vector<8x128xf32>
      %2186 = arith.mulf %2185, %2184 : vector<8x128xf32>
      %2187 = arith.addf %552, %2186 : vector<8x128xf32>
      %c1_1074 = arith.constant 1 : index
      %2188 = arith.index_cast %546 : i32 to index
      %c0_1075 = arith.constant 0 : index
      %2189 = vector.load %arg9[%c1_1074, %2188, %c0_1075] : memref<2x16x128xf32, #tpu.memory_space<vmem>>, vector<1x8x128xf32>
      %2190 = vector.shape_cast %2189 : vector<1x8x128xf32> to vector<8x128xf32>
      %2191 = vector.shape_cast %2187 : vector<8x128xf32> to vector<1x8x128xf32>
      tpu.vector_store %arg9[%c1_1074, %2188, %c0_1075], %2191 {strides = array<i32>} : memref<2x16x128xf32, #tpu.memory_space<vmem>>, vector<1x8x128xf32>,
    }
    %c2_i32_1022 = arith.constant 2 : i32
    return
  }
  func.func @transform_0(%arg0: i32) -> (i32, i32, i32) {
    %c0_i32 = arith.constant 0 : i32
    %c0_i32_0 = arith.constant 0 : i32
    %c0_i32_1 = arith.constant 0 : i32
    return %c0_i32, %arg0, %c0_i32_0 : i32, i32, i32
  }
  func.func @transform_1(%arg0: i32) -> (i32, i32, i32) {
    %c0_i32 = arith.constant 0 : i32
    %c0_i32_0 = arith.constant 0 : i32
    %c0_i32_1 = arith.constant 0 : i32
    return %c0_i32, %arg0, %c0_i32_0 : i32, i32, i32
  }
  func.func @transform_2(%arg0: i32) -> (i32, i32) {
    %c0_i32 = arith.constant 0 : i32
    %c0_i32_0 = arith.constant 0 : i32
    %c0_i32_1 = arith.constant 0 : i32
    return %c0_i32, %c0_i32_0 : i32, i32
  }
  func.func @transform_3(%arg0: i32) -> i32 {
    %c0_i32 = arith.constant 0 : i32
    %c0_i32_0 = arith.constant 0 : i32
    return %c0_i32 : i32
  }
  func.func @transform_4(%arg0: i32) -> (i32, i32) {
    %c0_i32 = arith.constant 0 : i32
    %c0_i32_0 = arith.constant 0 : i32
    %c0_i32_1 = arith.constant 0 : i32
    return %c0_i32, %c0_i32_0 : i32, i32
  }
  func.func @transform_5(%arg0: i32) -> i32 {
    %c0_i32 = arith.constant 0 : i32
    %c0_i32_0 = arith.constant 0 : i32
    return %c0_i32 : i32
  }
  func.func @transform_6(%arg0: i32) -> (i32, i32) {
    %c0_i32 = arith.constant 0 : i32
    %c0_i32_0 = arith.constant 0 : i32
    %c0_i32_1 = arith.constant 0 : i32
    return %c0_i32, %c0_i32_0 : i32, i32
  }
  func.func @transform_7(%arg0: i32) -> i32 {
    %c0_i32 = arith.constant 0 : i32
    %c0_i32_0 = arith.constant 0 : i32
    return %c0_i32 : i32
  }
  func.func @transform_8(%arg0: i32) -> (i32, i32, i32) {
    %c0_i32 = arith.constant 0 : i32
    %c0_i32_0 = arith.constant 0 : i32
    %c0_i32_1 = arith.constant 0 : i32
    return %c0_i32, %arg0, %c0_i32_0 : i32, i32, i32
  }
}

</mosaic_0001>

<bundles_post_ra>
// kernel: euler_forward.1
= control target key start
LH: loop header
LB: loop body
LE: loop exit
PB: predicated region body
PF: predicated region fallthrough
CT: control target
= control target key end

     0   :  { %s5292_s0 = inlined_call_operand.vmem [shape: f32[2,16,128], index: 0, kind: input, shape index: {}]   ;;  %s5293_s1 = inlined_call_operand.vmem [shape: f32[1,16,128], index: 1, kind: input, shape index: {}]   ;;  %s5294_s2 = inlined_call_operand.vmem [shape: f32[20,3], index: 2, kind: input, shape index: {}]   ;;  %s5295_s3 = inlined_call_operand.vmem [shape: f32[20], index: 3, kind: input, shape index: {}]   ;;  %s5296_s4 = inlined_call_operand.vmem [shape: f32[20,20], index: 4, kind: input, shape index: {}]   ;;  %s5297_s5 = inlined_call_operand.vmem [shape: f32[20], index: 5, kind: input, shape index: {}]   ;;  %s5298_s6 = inlined_call_operand.vmem [shape: f32[2,20], index: 6, kind: input, shape index: {}]   ;;  %s5299_s7 = inlined_call_operand.vmem [shape: f32[2], index: 7, kind: input, shape index: {}]   ;;  %s5300_s8 = inlined_call_operand.vmem [shape: f32[2,16,128], index: 8, kind: output, shape index: {}]  }
   0x1   :  { %5337 = sst [smem:[#allocation553_spill]] %s5292_s0 }
   0x2   :  { %5338 = sst [smem:[#allocation554_spill]] %s5293_s1 }
   0x3   :  { %5339 = sst [smem:[#allocation555_spill]] %s5300_s8 }
   0x4   :  { %13 = vsyncpa [#allocation3], 0 }
   0x5   :  { %14 = vsyncpa [#allocation5], 0 }
   0x6   :  { %15 = vsyncpa [#allocation8], 0  ;;  %s39_s29 = sshll.u32 %s5295_s3, 4  ;;  %s40_s29 = int_to_ptr.vmem [resolvable:$true] %s39_s29 }
   0x7   :  { %16 = vsyncpa [#allocation11], 0  ;;  %s61_s10 = sshll.u32 %s5297_s5, 4  ;;  %s2832_s11 = scalar_lea.vmem %s40_s29, 16  ;;  %s62_s10 = int_to_ptr.vmem [resolvable:$true] %s61_s10 }
   0x8   :  { %p2833_p0 = scmp.ne.s32.totalorder %s40_s29, %s2832_s11  ;;  %p2837_p1 = scmp.lt.s32.totalorder %s40_s29, %s40_s29 }
   0x9   :  { %p2838_p2 = scmp.lt.s32.totalorder %s2832_s11, %s2832_s11 }
   0xb   :  { %p2839_p3 = por %p2838_p2, %p2837_p1 }
   0xd   :  { %p2840_p4 = pnand %p2839_p3, %p2833_p0 }
   0xf   :  { %2843 = shalt.err (!%p2840_p4)
}
  0x10   :  { %s2920_s12 = smov [#allocation4]   ;;  %s2844_s13 = scalar_lea.vmem %s62_s10, 16 }
  0x11   :  { %42 = dma.vmem_to_smem %s40_s29, 16, %s2920_s12, [#allocation5]  }
  0x12   :  { %p2845_p5 = scmp.ne.s32.totalorder %s62_s10, %s2844_s13  ;;  %p2849_p6 = scmp.lt.s32.totalorder %s62_s10, %s62_s10 }
  0x13   :  { %p2850_p7 = scmp.lt.s32.totalorder %s2844_s13, %s2844_s13 }
  0x15   :  { %p2851_p8 = por %p2850_p7, %p2849_p6 }
  0x17   :  { %p2852_p9 = pnand %p2851_p8, %p2845_p5 }
  0x19   :  { %2855 = shalt.err (!%p2852_p9)
}
  0x1a   :  { %s2921_s3 = smov [#allocation7]   ;;  %s26_s15 = sshll.u32 %s5294_s2, 4  ;;  %s27_s15 = int_to_ptr.vmem [resolvable:$true] %s26_s15 }
  0x1b   :  { %64 = dma.vmem_to_smem %s62_s10, 16, %s2921_s3, [#allocation8]  }
  0x1c   :  { %s48_s18 = sshll.u32 %s5296_s4, 4  ;;  %s2856_s19 = scalar_lea.vmem %s27_s15, 384  ;;  %s49_s18 = int_to_ptr.vmem [resolvable:$true] %s48_s18 }
  0x1d   :  { %p2857_p10 = scmp.ne.s32.totalorder %s27_s15, %s2856_s19  ;;  %p2861_p11 = scmp.lt.s32.totalorder %s27_s15, %s27_s15 }
  0x1e   :  { %p2862_p12 = scmp.lt.s32.totalorder %s2856_s19, %s2856_s19 }
  0x20   :  { %p2863_p13 = por %p2862_p12, %p2861_p11 }
  0x22   :  { %p2864_p0 = pnand %p2863_p13, %p2857_p10 }
  0x24   :  { %2867 = shalt.err (!%p2864_p0)
}
  0x25   :  { %s2922_s20 = smov [#allocation2]   ;;  %s2923_s21 = smov 128  }
  0x26   :  { %s2924_s22 = smov 8   ;;  %s2868_s23 = scalar_lea.vmem %s49_s18, 384 }
  0x27   :  { %32 = dma.vmem_to_smem %s27_s15, 384, %s2922_s20, [#allocation3], %s2923_s21, %s2923_s21, %s2924_s22  }
  0x28   :  { %p2869_p1 = scmp.ne.s32.totalorder %s49_s18, %s2868_s23  ;;  %p2873_p2 = scmp.lt.s32.totalorder %s49_s18, %s49_s18 }
  0x29   :  { %p2874_p3 = scmp.lt.s32.totalorder %s2868_s23, %s2868_s23 }
  0x2b   :  { %p2875_p4 = por %p2874_p3, %p2873_p2 }
  0x2d   :  { %p2876_p5 = pnand %p2875_p4, %p2869_p1 }
  0x2f   :  { %2879 = shalt.err (!%p2876_p5)
}
  0x30   :  { %s2925_s2 = smov [#allocation6]   ;;  %s71_s25 = sshll.u32 %s5298_s6, 4  ;;  %s72_s25 = int_to_ptr.vmem [resolvable:$true] %s71_s25 }
  0x31   :  { %54 = dma.vmem_to_smem %s49_s18, 384, %s2925_s2, [#allocation5], %s2923_s21, %s2923_s21, %s2924_s22  }
  0x32   :  { %s81_s28 = sshll.u32 %s5299_s7, 4  ;;  %s2880_s29 = scalar_lea.vmem %s72_s25, 32  ;;  %s82_s28 = int_to_ptr.vmem [resolvable:$true] %s81_s28 }
  0x33   :  { %p2881_p6 = scmp.ne.s32.totalorder %s72_s25, %s2880_s29  ;;  %p2885_p7 = scmp.lt.s32.totalorder %s72_s25, %s72_s25 }
  0x34   :  { %p2886_p8 = scmp.lt.s32.totalorder %s2880_s29, %s2880_s29 }
  0x36   :  { %p2887_p9 = por %p2886_p8, %p2885_p7 }
  0x38   :  { %p2888_p10 = pnand %p2887_p9, %p2881_p6 }
  0x3a   :  { %2891 = shalt.err (!%p2888_p10)
}
  0x3b   :  { %s2926_s30 = smov [#allocation9]   ;;  %s2892_s9 = scalar_lea.vmem %s82_s28, 16 }
  0x3c   :  { %74 = dma.vmem_to_smem %s72_s25, 32, %s2926_s30, [#allocation8]  }
  0x3d   :  { %p2893_p11 = scmp.ne.s32.totalorder %s82_s28, %s2892_s9  ;;  %p2897_p12 = scmp.lt.s32.totalorder %s82_s28, %s82_s28 }
  0x3e   :  { %p2898_p13 = scmp.lt.s32.totalorder %s2892_s9, %s2892_s9 }
  0x40   :  { %p2899_p0 = por %p2898_p13, %p2897_p12 }
  0x42   :  { %p2900_p1 = pnand %p2899_p0, %p2893_p11 }
  0x44   :  { %2903 = shalt.err (!%p2900_p1)
}
  0x45   :  { %s2927_s6 = smov [#allocation10]  }
  0x46   :  { %84 = dma.vmem_to_smem %s82_s28, 16, %s2927_s6, [#allocation11]  }
  0x47   :  { %2908 = dma.done.wait [#allocation3], 384  }
  0x48   :  { %2909 = vsyncadd [#allocation3], 4294966912 }
  0x49   :  { %2910 = dma.done.wait [#allocation5], 400  }
  0x4a   :  { %2911 = vsyncadd [#allocation5], 4294966896 }
  0x4b   :  { %2912 = dma.done.wait [#allocation8], 48  }
  0x4c   :  { %2913 = vsyncadd [#allocation8], 4294967248 }
  0x4d   :  { %2914 = dma.done.wait [#allocation11], 16  }
  0x4e   :  { %2915 = vsyncadd [#allocation11], 4294967280 }
  0x4f   :  { %103 = sfence }
  0x50   :  { %s2991_s7 = sld [smem:[#allocation2]] }
  0x51   :  { %s2993_s10 = sld [smem:[#allocation2 + $0x1]] }
  0x52   :  { %s2995_s11 = sld [smem:[#allocation2 + $0x2]] }
  0x53   :  { %s2997_s12 = sld [smem:[#allocation2 + $0x80]] }
  0x54   :  { %s2999_s13 = sld [smem:[#allocation2 + $0x81]] }
  0x55   :  { %s3001_s3 = sld [smem:[#allocation2 + $0x82]] }
  0x56   :  { %5340 = sst [smem:[#allocation16_spill]] %s2991_s7 }
  0x57   :  { %5341 = sst [smem:[#allocation17_spill]] %s2993_s10 }
  0x58   :  { %5342 = sst [smem:[#allocation18_spill]] %s2995_s11 }
  0x59   :  { %5343 = sst [smem:[#allocation19_spill]] %s2997_s12 }
  0x5a   :  { %5344 = sst [smem:[#allocation20_spill]] %s2999_s13 }
  0x5b   :  { %5345 = sst [smem:[#allocation21_spill]] %s3001_s3 }
  0x5c   :  { %s3003_s5 = sld [smem:[#allocation2 + $0x100]] }
  0x5d   :  { %s3005_s14 = sld [smem:[#allocation2 + $0x101]] }
  0x5e   :  { %s3007_s15 = sld [smem:[#allocation2 + $0x102]] }
  0x5f   :  { %s3009_s16 = sld [smem:[#allocation2 + $0x180]] }
  0x60   :  { %s3011_s17 = sld [smem:[#allocation2 + $0x181]] }
  0x61   :  { %s3013_s18 = sld [smem:[#allocation2 + $0x182]] }
  0x62   :  { %5346 = sst [smem:[#allocation22_spill]] %s3003_s5 }
  0x63   :  { %5347 = sst [smem:[#allocation23_spill]] %s3005_s14 }
  0x64   :  { %5348 = sst [smem:[#allocation24_spill]] %s3007_s15 }
  0x65   :  { %5349 = sst [smem:[#allocation25_spill]] %s3009_s16 }
  0x66   :  { %5350 = sst [smem:[#allocation26_spill]] %s3011_s17 }
  0x67   :  { %s3015_s19 = sld [smem:[#allocation2 + $0x200]] }
  0x68   :  { %s3017_s20 = sld [smem:[#allocation2 + $0x201]] }
  0x69   :  { %s3019_s21 = sld [smem:[#allocation2 + $0x202]] }
  0x6a   :  { %s3021_s22 = sld [smem:[#allocation2 + $0x280]] }
  0x6b   :  { %s3023_s23 = sld [smem:[#allocation2 + $0x281]] }
  0x6c   :  { %s3025_s2 = sld [smem:[#allocation2 + $0x282]] }
  0x6d   :  { %s3027_s4 = sld [smem:[#allocation2 + $0x300]] }
  0x6e   :  { %s3029_s24 = sld [smem:[#allocation2 + $0x301]] }
  0x6f   :  { %s3031_s25 = sld [smem:[#allocation2 + $0x302]] }
  0x70   :  { %5351 = sst [smem:[#allocation27_spill]] %s3021_s22 }
  0x71   :  { %5352 = sst [smem:[#allocation28_spill]] %s3023_s23 }
  0x72   :  { %5353 = sst [smem:[#allocation29_spill]] %s3025_s2 }
  0x73   :  { %5354 = sst [smem:[#allocation30_spill]] %s3027_s4 }
  0x74   :  { %5355 = sst [smem:[#allocation31_spill]] %s3029_s24 }
  0x75   :  { %5356 = sst [smem:[#allocation32_spill]] %s3031_s25 }
  0x76   :  { %s3033_s26 = sld [smem:[#allocation2 + $0x380]] }
  0x77   :  { %s3035_s27 = sld [smem:[#allocation2 + $0x381]] }
  0x78   :  { %s3037_s28 = sld [smem:[#allocation2 + $0x382]] }
  0x79   :  { %s3039_s29 = sld [smem:[#allocation2 + $0x400]] }
  0x7a   :  { %s3041_s30 = sld [smem:[#allocation2 + $0x401]] }
  0x7b   :  { %s3043_s9 = sld [smem:[#allocation2 + $0x402]] }
  0x7c   :  { %5357 = sst [smem:[#allocation33_spill]] %s3033_s26 }
  0x7d   :  { %5358 = sst [smem:[#allocation34_spill]] %s3035_s27 }
  0x7e   :  { %5359 = sst [smem:[#allocation35_spill]] %s3037_s28 }
  0x7f   :  { %5360 = sst [smem:[#allocation36_spill]] %s3039_s29 }
  0x80   :  { %5361 = sst [smem:[#allocation37_spill]] %s3041_s30 }
  0x81   :  { %5362 = sst [smem:[#allocation38_spill]] %s3043_s9 }
  0x82   :  { %s3045_s6 = sld [smem:[#allocation2 + $0x480]] }
  0x83   :  { %s3047_s8 = sld [smem:[#allocation2 + $0x481]] }
  0x84   :  { %s3049_s2 = sld [smem:[#allocation2 + $0x482]] }
  0x85   :  { %s3051_s24 = sld [smem:[#allocation2 + $0x500]] }
  0x86   :  { %s3053_s25 = sld [smem:[#allocation2 + $0x501]] }
  0x87   :  { %s3055_s26 = sld [smem:[#allocation2 + $0x502]] }
  0x88   :  { %5363 = sst [smem:[#allocation39_spill]] %s3045_s6 }
  0x89   :  { %5364 = sst [smem:[#allocation40_spill]] %s3047_s8 }
  0x8a   :  { %5365 = sst [smem:[#allocation41_spill]] %s3049_s2 }
  0x8b   :  { %5366 = sst [smem:[#allocation42_spill]] %s3051_s24 }
  0x8c   :  { %5367 = sst [smem:[#allocation43_spill]] %s3053_s25 }
  0x8d   :  { %5368 = sst [smem:[#allocation44_spill]] %s3055_s26 }
  0x8e   :  { %s3057_s27 = sld [smem:[#allocation2 + $0x580]] }
  0x8f   :  { %s3059_s28 = sld [smem:[#allocation2 + $0x581]] }
  0x90   :  { %s3061_s29 = sld [smem:[#allocation2 + $0x582]] }
  0x91   :  { %s3063_s30 = sld [smem:[#allocation2 + $0x600]] }
  0x92   :  { %s3065_s9 = sld [smem:[#allocation2 + $0x601]] }
  0x93   :  { %s3067_s6 = sld [smem:[#allocation2 + $0x602]] }
  0x94   :  { %5369 = sst [smem:[#allocation45_spill]] %s3057_s27 }
  0x95   :  { %5370 = sst [smem:[#allocation46_spill]] %s3059_s28 }
  0x96   :  { %5371 = sst [smem:[#allocation47_spill]] %s3061_s29 }
  0x97   :  { %5372 = sst [smem:[#allocation48_spill]] %s3063_s30 }
  0x98   :  { %5373 = sst [smem:[#allocation49_spill]] %s3065_s9 }
  0x99   :  { %5374 = sst [smem:[#allocation50_spill]] %s3067_s6 }
  0x9a   :  { %s3069_s8 = sld [smem:[#allocation2 + $0x680]] }
  0x9b   :  { %s3071_s2 = sld [smem:[#allocation2 + $0x681]] }
  0x9c   :  { %s3073_s24 = sld [smem:[#allocation2 + $0x682]] }
  0x9d   :  { %s3075_s25 = sld [smem:[#allocation2 + $0x700]] }
  0x9e   :  { %s3077_s26 = sld [smem:[#allocation2 + $0x701]] }
  0x9f   :  { %s3079_s27 = sld [smem:[#allocation2 + $0x702]] }
  0xa0   :  { %5375 = sst [smem:[#allocation51_spill]] %s3069_s8 }
  0xa1   :  { %5376 = sst [smem:[#allocation52_spill]] %s3071_s2 }
  0xa2   :  { %5377 = sst [smem:[#allocation53_spill]] %s3073_s24 }
  0xa3   :  { %5378 = sst [smem:[#allocation54_spill]] %s3075_s25 }
  0xa4   :  { %5379 = sst [smem:[#allocation55_spill]] %s3077_s26 }
  0xa5   :  { %5380 = sst [smem:[#allocation56_spill]] %s3079_s27 }
  0xa6   :  { %s3081_s28 = sld [smem:[#allocation2 + $0x780]] }
  0xa7   :  { %s3083_s29 = sld [smem:[#allocation2 + $0x781]] }
  0xa8   :  { %s3085_s30 = sld [smem:[#allocation2 + $0x782]] }
  0xa9   :  { %s3087_s9 = sld [smem:[#allocation2 + $0x800]] }
  0xaa   :  { %s3089_s6 = sld [smem:[#allocation2 + $0x801]] }
  0xab   :  { %s3091_s8 = sld [smem:[#allocation2 + $0x802]] }
  0xac   :  { %5381 = sst [smem:[#allocation57_spill]] %s3081_s28 }
  0xad   :  { %5382 = sst [smem:[#allocation58_spill]] %s3083_s29 }
  0xae   :  { %5383 = sst [smem:[#allocation59_spill]] %s3085_s30 }
  0xaf   :  { %5384 = sst [smem:[#allocation60_spill]] %s3087_s9 }
  0xb0   :  { %5385 = sst [smem:[#allocation61_spill]] %s3089_s6 }
  0xb1   :  { %5386 = sst [smem:[#allocation62_spill]] %s3091_s8 }
  0xb2   :  { %s3093_s2 = sld [smem:[#allocation2 + $0x880]] }
  0xb3   :  { %s3095_s24 = sld [smem:[#allocation2 + $0x881]] }
  0xb4   :  { %s3097_s25 = sld [smem:[#allocation2 + $0x882]] }
  0xb5   :  { %s3099_s26 = sld [smem:[#allocation2 + $0x900]] }
  0xb6   :  { %s3101_s27 = sld [smem:[#allocation2 + $0x901]] }
  0xb7   :  { %s3103_s28 = sld [smem:[#allocation2 + $0x902]] }
  0xb8   :  { %5387 = sst [smem:[#allocation63_spill]] %s3093_s2 }
  0xb9   :  { %5388 = sst [smem:[#allocation64_spill]] %s3095_s24 }
  0xba   :  { %5389 = sst [smem:[#allocation65_spill]] %s3097_s25 }
  0xbb   :  { %5390 = sst [smem:[#allocation66_spill]] %s3099_s26 }
  0xbc   :  { %5391 = sst [smem:[#allocation67_spill]] %s3101_s27 }
  0xbd   :  { %5392 = sst [smem:[#allocation68_spill]] %s3103_s28 }
  0xbe   :  { %s3105_s29 = sld [smem:[#allocation2 + $0x980]] }
  0xbf   :  { %s3107_s30 = sld [smem:[#allocation2 + $0x981]] }
  0xc0   :  { %s3109_s9 = sld [smem:[#allocation2 + $0x982]] }
  0xc1   :  { %s3111_s6 = sld [smem:[#allocation4]] }
  0xc2   :  { %s3113_s8 = sld [smem:[#allocation4 + $0x1]] }
  0xc3   :  { %s3115_s2 = sld [smem:[#allocation4 + $0x2]] }
  0xc4   :  { %5393 = sst [smem:[#allocation69_spill]] %s3105_s29 }
  0xc5   :  { %5394 = sst [smem:[#allocation70_spill]] %s3107_s30 }
  0xc6   :  { %5395 = sst [smem:[#allocation71_spill]] %s3109_s9 }
  0xc7   :  { %5396 = sst [smem:[#allocation72_spill]] %s3111_s6 }
  0xc8   :  { %5397 = sst [smem:[#allocation73_spill]] %s3113_s8 }
  0xc9   :  { %5398 = sst [smem:[#allocation74_spill]] %s3115_s2 }
  0xca   :  { %s3117_s24 = sld [smem:[#allocation4 + $0x3]] }
  0xcb   :  { %s3119_s25 = sld [smem:[#allocation4 + $0x4]] }
  0xcc   :  { %s3121_s26 = sld [smem:[#allocation4 + $0x5]] }
  0xcd   :  { %s3123_s27 = sld [smem:[#allocation4 + $0x6]] }
  0xce   :  { %s3125_s28 = sld [smem:[#allocation4 + $0x7]] }
  0xcf   :  { %s3127_s29 = sld [smem:[#allocation4 + $0x8]] }
  0xd0   :  { %5399 = sst [smem:[#allocation75_spill]] %s3117_s24 }
  0xd1   :  { %5400 = sst [smem:[#allocation76_spill]] %s3119_s25 }
  0xd2   :  { %5401 = sst [smem:[#allocation77_spill]] %s3121_s26 }
  0xd3   :  { %5402 = sst [smem:[#allocation78_spill]] %s3123_s27 }
  0xd4   :  { %5403 = sst [smem:[#allocation79_spill]] %s3125_s28 }
  0xd5   :  { %5404 = sst [smem:[#allocation80_spill]] %s3127_s29 }
  0xd6   :  { %s3129_s30 = sld [smem:[#allocation4 + $0x9]] }
  0xd7   :  { %s3131_s9 = sld [smem:[#allocation4 + $0xa]] }
  0xd8   :  { %s3133_s4 = sld [smem:[#allocation4 + $0xb]] }
  0xd9   :  { %s3135_s23 = sld [smem:[#allocation4 + $0xc]] }
  0xda   :  { %s3137_s22 = sld [smem:[#allocation4 + $0xd]] }
  0xdb   :  { %s3139_s24 = sld [smem:[#allocation4 + $0xe]] }
  0xdc   :  { %5405 = sst [smem:[#allocation81_spill]] %s3129_s30 }
  0xdd   :  { %5406 = sst [smem:[#allocation82_spill]] %s3131_s9 }
  0xde   :  { %5407 = sst [smem:[#allocation83_spill]] %s3133_s4 }
  0xdf   :  { %5408 = sst [smem:[#allocation84_spill]] %s3135_s23 }
  0xe0   :  { %5409 = sst [smem:[#allocation85_spill]] %s3137_s22 }
  0xe1   :  { %5410 = sst [smem:[#allocation86_spill]] %s3139_s24 }
  0xe2   :  { %s3141_s25 = sld [smem:[#allocation4 + $0xf]] }
  0xe3   :  { %s3143_s26 = sld [smem:[#allocation4 + $0x10]] }
  0xe4   :  { %s3145_s27 = sld [smem:[#allocation4 + $0x11]] }
  0xe5   :  { %s3147_s28 = sld [smem:[#allocation4 + $0x12]] }
  0xe6   :  { %s3149_s29 = sld [smem:[#allocation4 + $0x13]] }
  0xe7   :  { %s3151_s30 = sld [smem:[#allocation6]] }
  0xe8   :  { %5411 = sst [smem:[#allocation87_spill]] %s3141_s25 }
  0xe9   :  { %5412 = sst [smem:[#allocation88_spill]] %s3143_s26 }
  0xea   :  { %5413 = sst [smem:[#allocation89_spill]] %s3145_s27 }
  0xeb   :  { %5414 = sst [smem:[#allocation90_spill]] %s3147_s28 }
  0xec   :  { %5415 = sst [smem:[#allocation91_spill]] %s3149_s29 }
  0xed   :  { %5416 = sst [smem:[#allocation92_spill]] %s3151_s30 }
  0xee   :  { %s3153_s9 = sld [smem:[#allocation6 + $0x1]] }
  0xef   :  { %s3155_s4 = sld [smem:[#allocation6 + $0x2]] }
  0xf0   :  { %s3157_s23 = sld [smem:[#allocation6 + $0x3]] }
  0xf1   :  { %s3159_s22 = sld [smem:[#allocation6 + $0x4]] }
  0xf2   :  { %s3161_s24 = sld [smem:[#allocation6 + $0x5]] }
  0xf3   :  { %s3163_s25 = sld [smem:[#allocation6 + $0x6]] }
  0xf4   :  { %5417 = sst [smem:[#allocation93_spill]] %s3153_s9 }
  0xf5   :  { %5418 = sst [smem:[#allocation94_spill]] %s3155_s4 }
  0xf6   :  { %5419 = sst [smem:[#allocation95_spill]] %s3157_s23 }
  0xf7   :  { %5420 = sst [smem:[#allocation96_spill]] %s3159_s22 }
  0xf8   :  { %5421 = sst [smem:[#allocation97_spill]] %s3161_s24 }
  0xf9   :  { %5422 = sst [smem:[#allocation98_spill]] %s3163_s25 }
  0xfa   :  { %s3165_s26 = sld [smem:[#allocation6 + $0x7]] }
  0xfb   :  { %s3167_s27 = sld [smem:[#allocation6 + $0x8]] }
  0xfc   :  { %s3169_s28 = sld [smem:[#allocation6 + $0x9]] }
  0xfd   :  { %s3171_s29 = sld [smem:[#allocation6 + $0xa]] }
  0xfe   :  { %s3173_s30 = sld [smem:[#allocation6 + $0xb]] }
  0xff   :  { %s3175_s9 = sld [smem:[#allocation6 + $0xc]] }
 0x100   :  { %5423 = sst [smem:[#allocation99_spill]] %s3165_s26 }
 0x101   :  { %5424 = sst [smem:[#allocation100_spill]] %s3167_s27 }
 0x102   :  { %5425 = sst [smem:[#allocation101_spill]] %s3169_s28 }
 0x103   :  { %5426 = sst [smem:[#allocation102_spill]] %s3171_s29 }
 0x104   :  { %5427 = sst [smem:[#allocation103_spill]] %s3173_s30 }
 0x105   :  { %5428 = sst [smem:[#allocation104_spill]] %s3175_s9 }
 0x106   :  { %s3177_s4 = sld [smem:[#allocation6 + $0xd]] }
 0x107   :  { %s3179_s23 = sld [smem:[#allocation6 + $0xe]] }
 0x108   :  { %s3181_s22 = sld [smem:[#allocation6 + $0xf]] }
 0x109   :  { %s3183_s24 = sld [smem:[#allocation6 + $0x10]] }
 0x10a   :  { %s3185_s25 = sld [smem:[#allocation6 + $0x11]] }
 0x10b   :  { %s3187_s26 = sld [smem:[#allocation6 + $0x12]] }
 0x10c   :  { %5429 = sst [smem:[#allocation105_spill]] %s3177_s4 }
 0x10d   :  { %5430 = sst [smem:[#allocation106_spill]] %s3179_s23 }
 0x10e   :  { %5431 = sst [smem:[#allocation107_spill]] %s3181_s22 }
 0x10f   :  { %5432 = sst [smem:[#allocation108_spill]] %s3183_s24 }
 0x110   :  { %5433 = sst [smem:[#allocation109_spill]] %s3185_s25 }
 0x111   :  { %5434 = sst [smem:[#allocation110_spill]] %s3187_s26 }
 0x112   :  { %s3189_s27 = sld [smem:[#allocation6 + $0x13]] }
 0x113   :  { %s3191_s28 = sld [smem:[#allocation6 + $0x80]] }
 0x114   :  { %s3193_s29 = sld [smem:[#allocation6 + $0x81]] }
 0x115   :  { %s3195_s30 = sld [smem:[#allocation6 + $0x82]] }
 0x116   :  { %s3197_s9 = sld [smem:[#allocation6 + $0x83]] }
 0x117   :  { %s3199_s4 = sld [smem:[#allocation6 + $0x84]] }
 0x118   :  { %5435 = sst [smem:[#allocation111_spill]] %s3189_s27 }
 0x119   :  { %5436 = sst [smem:[#allocation112_spill]] %s3191_s28 }
 0x11a   :  { %5437 = sst [smem:[#allocation113_spill]] %s3193_s29 }
 0x11b   :  { %5438 = sst [smem:[#allocation114_spill]] %s3195_s30 }
 0x11c   :  { %5439 = sst [smem:[#allocation115_spill]] %s3197_s9 }
 0x11d   :  { %5440 = sst [smem:[#allocation116_spill]] %s3199_s4 }
 0x11e   :  { %s3201_s23 = sld [smem:[#allocation6 + $0x85]] }
 0x11f   :  { %s3203_s22 = sld [smem:[#allocation6 + $0x86]] }
 0x120   :  { %s3205_s24 = sld [smem:[#allocation6 + $0x87]] }
 0x121   :  { %s3207_s25 = sld [smem:[#allocation6 + $0x88]] }
 0x122   :  { %s3209_s26 = sld [smem:[#allocation6 + $0x89]] }
 0x123   :  { %s3211_s27 = sld [smem:[#allocation6 + $0x8a]] }
 0x124   :  { %5441 = sst [smem:[#allocation117_spill]] %s3201_s23 }
 0x125   :  { %5442 = sst [smem:[#allocation118_spill]] %s3203_s22 }
 0x126   :  { %5443 = sst [smem:[#allocation119_spill]] %s3205_s24 }
 0x127   :  { %5444 = sst [smem:[#allocation120_spill]] %s3207_s25 }
 0x128   :  { %5445 = sst [smem:[#allocation121_spill]] %s3209_s26 }
 0x129   :  { %5446 = sst [smem:[#allocation122_spill]] %s3211_s27 }
 0x12a   :  { %s3213_s28 = sld [smem:[#allocation6 + $0x8b]] }
 0x12b   :  { %s3215_s29 = sld [smem:[#allocation6 + $0x8c]] }
 0x12c   :  { %s3217_s30 = sld [smem:[#allocation6 + $0x8d]] }
 0x12d   :  { %s3219_s9 = sld [smem:[#allocation6 + $0x8e]] }
 0x12e   :  { %s3221_s4 = sld [smem:[#allocation6 + $0x8f]] }
 0x12f   :  { %s3223_s23 = sld [smem:[#allocation6 + $0x90]] }
 0x130   :  { %5447 = sst [smem:[#allocation123_spill]] %s3213_s28 }
 0x131   :  { %5448 = sst [smem:[#allocation124_spill]] %s3215_s29 }
 0x132   :  { %5449 = sst [smem:[#allocation125_spill]] %s3217_s30 }
 0x133   :  { %5450 = sst [smem:[#allocation126_spill]] %s3219_s9 }
 0x134   :  { %5451 = sst [smem:[#allocation127_spill]] %s3221_s4 }
 0x135   :  { %5452 = sst [smem:[#allocation128_spill]] %s3223_s23 }
 0x136   :  { %s3225_s22 = sld [smem:[#allocation6 + $0x91]] }
 0x137   :  { %s3227_s24 = sld [smem:[#allocation6 + $0x92]] }
 0x138   :  { %s3229_s25 = sld [smem:[#allocation6 + $0x93]] }
 0x139   :  { %s3231_s26 = sld [smem:[#allocation6 + $0x100]] }
 0x13a   :  { %s3233_s27 = sld [smem:[#allocation6 + $0x101]] }
 0x13b   :  { %s3235_s28 = sld [smem:[#allocation6 + $0x102]] }
 0x13c   :  { %5453 = sst [smem:[#allocation129_spill]] %s3225_s22 }
 0x13d   :  { %5454 = sst [smem:[#allocation130_spill]] %s3227_s24 }
 0x13e   :  { %5455 = sst [smem:[#allocation131_spill]] %s3229_s25 }
 0x13f   :  { %5456 = sst [smem:[#allocation132_spill]] %s3231_s26 }
 0x140   :  { %5457 = sst [smem:[#allocation133_spill]] %s3233_s27 }
 0x141   :  { %5458 = sst [smem:[#allocation134_spill]] %s3235_s28 }
 0x142   :  { %s3237_s29 = sld [smem:[#allocation6 + $0x103]] }
 0x143   :  { %s3239_s30 = sld [smem:[#allocation6 + $0x104]] }
 0x144   :  { %s3241_s9 = sld [smem:[#allocation6 + $0x105]] }
 0x145   :  { %s3243_s4 = sld [smem:[#allocation6 + $0x106]] }
 0x146   :  { %s3245_s23 = sld [smem:[#allocation6 + $0x107]] }
 0x147   :  { %s3247_s22 = sld [smem:[#allocation6 + $0x108]] }
 0x148   :  { %5459 = sst [smem:[#allocation135_spill]] %s3237_s29 }
 0x149   :  { %5460 = sst [smem:[#allocation136_spill]] %s3239_s30 }
 0x14a   :  { %5461 = sst [smem:[#allocation137_spill]] %s3241_s9 }
 0x14b   :  { %5462 = sst [smem:[#allocation138_spill]] %s3243_s4 }
 0x14c   :  { %5463 = sst [smem:[#allocation139_spill]] %s3245_s23 }
 0x14d   :  { %5464 = sst [smem:[#allocation140_spill]] %s3247_s22 }
 0x14e   :  { %s3249_s24 = sld [smem:[#allocation6 + $0x109]] }
 0x14f   :  { %s3251_s25 = sld [smem:[#allocation6 + $0x10a]] }
 0x150   :  { %s3253_s26 = sld [smem:[#allocation6 + $0x10b]] }
 0x151   :  { %s3255_s27 = sld [smem:[#allocation6 + $0x10c]] }
 0x152   :  { %s3257_s28 = sld [smem:[#allocation6 + $0x10d]] }
 0x153   :  { %s3259_s29 = sld [smem:[#allocation6 + $0x10e]] }
 0x154   :  { %5465 = sst [smem:[#allocation141_spill]] %s3249_s24 }
 0x155   :  { %5466 = sst [smem:[#allocation142_spill]] %s3251_s25 }
 0x156   :  { %5467 = sst [smem:[#allocation143_spill]] %s3253_s26 }
 0x157   :  { %5468 = sst [smem:[#allocation144_spill]] %s3255_s27 }
 0x158   :  { %5469 = sst [smem:[#allocation145_spill]] %s3257_s28 }
 0x159   :  { %5470 = sst [smem:[#allocation146_spill]] %s3259_s29 }
 0x15a   :  { %s3261_s30 = sld [smem:[#allocation6 + $0x10f]] }
 0x15b   :  { %s3263_s9 = sld [smem:[#allocation6 + $0x110]] }
 0x15c   :  { %s3265_s4 = sld [smem:[#allocation6 + $0x111]] }
 0x15d   :  { %s3267_s23 = sld [smem:[#allocation6 + $0x112]] }
 0x15e   :  { %s3269_s22 = sld [smem:[#allocation6 + $0x113]] }
 0x15f   :  { %s3271_s24 = sld [smem:[#allocation6 + $0x180]] }
 0x160   :  { %5471 = sst [smem:[#allocation147_spill]] %s3261_s30 }
 0x161   :  { %5472 = sst [smem:[#allocation148_spill]] %s3263_s9 }
 0x162   :  { %5473 = sst [smem:[#allocation149_spill]] %s3265_s4 }
 0x163   :  { %5474 = sst [smem:[#allocation150_spill]] %s3267_s23 }
 0x164   :  { %5475 = sst [smem:[#allocation151_spill]] %s3269_s22 }
 0x165   :  { %5476 = sst [smem:[#allocation152_spill]] %s3271_s24 }
 0x166   :  { %s3273_s25 = sld [smem:[#allocation6 + $0x181]] }
 0x167   :  { %s3275_s26 = sld [smem:[#allocation6 + $0x182]] }
 0x168   :  { %s3277_s27 = sld [smem:[#allocation6 + $0x183]] }
 0x169   :  { %s3279_s28 = sld [smem:[#allocation6 + $0x184]] }
 0x16a   :  { %s3281_s29 = sld [smem:[#allocation6 + $0x185]] }
 0x16b   :  { %s3283_s30 = sld [smem:[#allocation6 + $0x186]] }
 0x16c   :  { %5477 = sst [smem:[#allocation153_spill]] %s3273_s25 }
 0x16d   :  { %5478 = sst [smem:[#allocation154_spill]] %s3275_s26 }
 0x16e   :  { %5479 = sst [smem:[#allocation155_spill]] %s3277_s27 }
 0x16f   :  { %5480 = sst [smem:[#allocation156_spill]] %s3279_s28 }
 0x170   :  { %5481 = sst [smem:[#allocation157_spill]] %s3281_s29 }
 0x171   :  { %5482 = sst [smem:[#allocation158_spill]] %s3283_s30 }
 0x172   :  { %s3285_s9 = sld [smem:[#allocation6 + $0x187]] }
 0x173   :  { %s3287_s4 = sld [smem:[#allocation6 + $0x188]] }
 0x174   :  { %s3289_s23 = sld [smem:[#allocation6 + $0x189]] }
 0x175   :  { %s3291_s22 = sld [smem:[#allocation6 + $0x18a]] }
 0x176   :  { %s3293_s24 = sld [smem:[#allocation6 + $0x18b]] }
 0x177   :  { %s3295_s25 = sld [smem:[#allocation6 + $0x18c]] }
 0x178   :  { %5483 = sst [smem:[#allocation159_spill]] %s3285_s9 }
 0x179   :  { %5484 = sst [smem:[#allocation160_spill]] %s3287_s4 }
 0x17a   :  { %5485 = sst [smem:[#allocation161_spill]] %s3289_s23 }
 0x17b   :  { %5486 = sst [smem:[#allocation162_spill]] %s3291_s22 }
 0x17c   :  { %5487 = sst [smem:[#allocation163_spill]] %s3293_s24 }
 0x17d   :  { %5488 = sst [smem:[#allocation164_spill]] %s3295_s25 }
 0x17e   :  { %s3297_s26 = sld [smem:[#allocation6 + $0x18d]] }
 0x17f   :  { %s3299_s27 = sld [smem:[#allocation6 + $0x18e]] }
 0x180   :  { %s3301_s28 = sld [smem:[#allocation6 + $0x18f]] }
 0x181   :  { %s3303_s29 = sld [smem:[#allocation6 + $0x190]] }
 0x182   :  { %s3305_s30 = sld [smem:[#allocation6 + $0x191]] }
 0x183   :  { %s3307_s9 = sld [smem:[#allocation6 + $0x192]] }
 0x184   :  { %5489 = sst [smem:[#allocation165_spill]] %s3297_s26 }
 0x185   :  { %5490 = sst [smem:[#allocation166_spill]] %s3299_s27 }
 0x186   :  { %5491 = sst [smem:[#allocation167_spill]] %s3301_s28 }
 0x187   :  { %5492 = sst [smem:[#allocation168_spill]] %s3303_s29 }
 0x188   :  { %5493 = sst [smem:[#allocation169_spill]] %s3305_s30 }
 0x189   :  { %5494 = sst [smem:[#allocation170_spill]] %s3307_s9 }
 0x18a   :  { %s3309_s4 = sld [smem:[#allocation6 + $0x193]] }
 0x18b   :  { %s3311_s23 = sld [smem:[#allocation6 + $0x200]] }
 0x18c   :  { %s3313_s22 = sld [smem:[#allocation6 + $0x201]] }
 0x18d   :  { %s3315_s24 = sld [smem:[#allocation6 + $0x202]] }
 0x18e   :  { %s3317_s25 = sld [smem:[#allocation6 + $0x203]] }
 0x18f   :  { %s3319_s26 = sld [smem:[#allocation6 + $0x204]] }
 0x190   :  { %5495 = sst [smem:[#allocation171_spill]] %s3309_s4 }
 0x191   :  { %5496 = sst [smem:[#allocation172_spill]] %s3311_s23 }
 0x192   :  { %5497 = sst [smem:[#allocation173_spill]] %s3313_s22 }
 0x193   :  { %5498 = sst [smem:[#allocation174_spill]] %s3315_s24 }
 0x194   :  { %5499 = sst [smem:[#allocation175_spill]] %s3317_s25 }
 0x195   :  { %5500 = sst [smem:[#allocation176_spill]] %s3319_s26 }
 0x196   :  { %s3321_s27 = sld [smem:[#allocation6 + $0x205]] }
 0x197   :  { %s3323_s28 = sld [smem:[#allocation6 + $0x206]] }
 0x198   :  { %s3325_s29 = sld [smem:[#allocation6 + $0x207]] }
 0x199   :  { %s3327_s30 = sld [smem:[#allocation6 + $0x208]] }
 0x19a   :  { %s3329_s9 = sld [smem:[#allocation6 + $0x209]] }
 0x19b   :  { %s3331_s4 = sld [smem:[#allocation6 + $0x20a]] }
 0x19c   :  { %5501 = sst [smem:[#allocation177_spill]] %s3321_s27 }
 0x19d   :  { %5502 = sst [smem:[#allocation178_spill]] %s3323_s28 }
 0x19e   :  { %5503 = sst [smem:[#allocation179_spill]] %s3325_s29 }
 0x19f   :  { %5504 = sst [smem:[#allocation180_spill]] %s3327_s30 }
 0x1a0   :  { %5505 = sst [smem:[#allocation181_spill]] %s3329_s9 }
 0x1a1   :  { %5506 = sst [smem:[#allocation182_spill]] %s3331_s4 }
 0x1a2   :  { %s3333_s23 = sld [smem:[#allocation6 + $0x20b]] }
 0x1a3   :  { %s3335_s22 = sld [smem:[#allocation6 + $0x20c]] }
 0x1a4   :  { %s3337_s24 = sld [smem:[#allocation6 + $0x20d]] }
 0x1a5   :  { %s3339_s25 = sld [smem:[#allocation6 + $0x20e]] }
 0x1a6   :  { %s3341_s26 = sld [smem:[#allocation6 + $0x20f]] }
 0x1a7   :  { %s3343_s27 = sld [smem:[#allocation6 + $0x210]] }
 0x1a8   :  { %5507 = sst [smem:[#allocation183_spill]] %s3333_s23 }
 0x1a9   :  { %5508 = sst [smem:[#allocation184_spill]] %s3335_s22 }
 0x1aa   :  { %5509 = sst [smem:[#allocation185_spill]] %s3337_s24 }
 0x1ab   :  { %5510 = sst [smem:[#allocation186_spill]] %s3339_s25 }
 0x1ac   :  { %5511 = sst [smem:[#allocation187_spill]] %s3341_s26 }
 0x1ad   :  { %5512 = sst [smem:[#allocation188_spill]] %s3343_s27 }
 0x1ae   :  { %s3345_s28 = sld [smem:[#allocation6 + $0x211]] }
 0x1af   :  { %s3347_s29 = sld [smem:[#allocation6 + $0x212]] }
 0x1b0   :  { %s3349_s30 = sld [smem:[#allocation6 + $0x213]] }
 0x1b1   :  { %s3351_s9 = sld [smem:[#allocation6 + $0x280]] }
 0x1b2   :  { %s3353_s4 = sld [smem:[#allocation6 + $0x281]] }
 0x1b3   :  { %s3355_s23 = sld [smem:[#allocation6 + $0x282]] }
 0x1b4   :  { %5513 = sst [smem:[#allocation189_spill]] %s3345_s28 }
 0x1b5   :  { %5514 = sst [smem:[#allocation190_spill]] %s3347_s29 }
 0x1b6   :  { %5515 = sst [smem:[#allocation191_spill]] %s3349_s30 }
 0x1b7   :  { %5516 = sst [smem:[#allocation192_spill]] %s3351_s9 }
 0x1b8   :  { %5517 = sst [smem:[#allocation193_spill]] %s3353_s4 }
 0x1b9   :  { %5518 = sst [smem:[#allocation194_spill]] %s3355_s23 }
 0x1ba   :  { %s3357_s22 = sld [smem:[#allocation6 + $0x283]] }
 0x1bb   :  { %s3359_s24 = sld [smem:[#allocation6 + $0x284]] }
 0x1bc   :  { %s3361_s25 = sld [smem:[#allocation6 + $0x285]] }
 0x1bd   :  { %s3363_s26 = sld [smem:[#allocation6 + $0x286]] }
 0x1be   :  { %s3365_s27 = sld [smem:[#allocation6 + $0x287]] }
 0x1bf   :  { %s3367_s28 = sld [smem:[#allocation6 + $0x288]] }
 0x1c0   :  { %5519 = sst [smem:[#allocation195_spill]] %s3357_s22 }
 0x1c1   :  { %5520 = sst [smem:[#allocation196_spill]] %s3359_s24 }
 0x1c2   :  { %5521 = sst [smem:[#allocation197_spill]] %s3361_s25 }
 0x1c3   :  { %5522 = sst [smem:[#allocation198_spill]] %s3363_s26 }
 0x1c4   :  { %5523 = sst [smem:[#allocation199_spill]] %s3365_s27 }
 0x1c5   :  { %5524 = sst [smem:[#allocation200_spill]] %s3367_s28 }
 0x1c6   :  { %s3369_s29 = sld [smem:[#allocation6 + $0x289]] }
 0x1c7   :  { %s3371_s30 = sld [smem:[#allocation6 + $0x28a]] }
 0x1c8   :  { %s3373_s9 = sld [smem:[#allocation6 + $0x28b]] }
 0x1c9   :  { %s3375_s4 = sld [smem:[#allocation6 + $0x28c]] }
 0x1ca   :  { %s3377_s23 = sld [smem:[#allocation6 + $0x28d]] }
 0x1cb   :  { %s3379_s22 = sld [smem:[#allocation6 + $0x28e]] }
 0x1cc   :  { %5525 = sst [smem:[#allocation201_spill]] %s3369_s29 }
 0x1cd   :  { %5526 = sst [smem:[#allocation202_spill]] %s3371_s30 }
 0x1ce   :  { %5527 = sst [smem:[#allocation203_spill]] %s3373_s9 }
 0x1cf   :  { %5528 = sst [smem:[#allocation204_spill]] %s3375_s4 }
 0x1d0   :  { %5529 = sst [smem:[#allocation205_spill]] %s3377_s23 }
 0x1d1   :  { %5530 = sst [smem:[#allocation206_spill]] %s3379_s22 }
 0x1d2   :  { %s3381_s24 = sld [smem:[#allocation6 + $0x28f]] }
 0x1d3   :  { %s3383_s25 = sld [smem:[#allocation6 + $0x290]] }
 0x1d4   :  { %s3385_s26 = sld [smem:[#allocation6 + $0x291]] }
 0x1d5   :  { %s3387_s27 = sld [smem:[#allocation6 + $0x292]] }
 0x1d6   :  { %s3389_s28 = sld [smem:[#allocation6 + $0x293]] }
 0x1d7   :  { %s3391_s29 = sld [smem:[#allocation6 + $0x300]] }
 0x1d8   :  { %5531 = sst [smem:[#allocation207_spill]] %s3381_s24 }
 0x1d9   :  { %5532 = sst [smem:[#allocation208_spill]] %s3383_s25 }
 0x1da   :  { %5533 = sst [smem:[#allocation209_spill]] %s3385_s26 }
 0x1db   :  { %5534 = sst [smem:[#allocation210_spill]] %s3387_s27 }
 0x1dc   :  { %5535 = sst [smem:[#allocation211_spill]] %s3389_s28 }
 0x1dd   :  { %5536 = sst [smem:[#allocation212_spill]] %s3391_s29 }
 0x1de   :  { %s3393_s30 = sld [smem:[#allocation6 + $0x301]] }
 0x1df   :  { %s3395_s9 = sld [smem:[#allocation6 + $0x302]] }
 0x1e0   :  { %s3397_s4 = sld [smem:[#allocation6 + $0x303]] }
 0x1e1   :  { %s3399_s23 = sld [smem:[#allocation6 + $0x304]] }
 0x1e2   :  { %s3401_s22 = sld [smem:[#allocation6 + $0x305]] }
 0x1e3   :  { %s3403_s24 = sld [smem:[#allocation6 + $0x306]] }
 0x1e4   :  { %5537 = sst [smem:[#allocation213_spill]] %s3393_s30 }
 0x1e5   :  { %5538 = sst [smem:[#allocation214_spill]] %s3395_s9 }
 0x1e6   :  { %5539 = sst [smem:[#allocation215_spill]] %s3397_s4 }
 0x1e7   :  { %5540 = sst [smem:[#allocation216_spill]] %s3399_s23 }
 0x1e8   :  { %5541 = sst [smem:[#allocation217_spill]] %s3401_s22 }
 0x1e9   :  { %5542 = sst [smem:[#allocation218_spill]] %s3403_s24 }
 0x1ea   :  { %s3405_s25 = sld [smem:[#allocation6 + $0x307]] }
 0x1eb   :  { %s3407_s26 = sld [smem:[#allocation6 + $0x308]] }
 0x1ec   :  { %s3409_s27 = sld [smem:[#allocation6 + $0x309]] }
 0x1ed   :  { %s3411_s28 = sld [smem:[#allocation6 + $0x30a]] }
 0x1ee   :  { %s3413_s29 = sld [smem:[#allocation6 + $0x30b]] }
 0x1ef   :  { %s3415_s30 = sld [smem:[#allocation6 + $0x30c]] }
 0x1f0   :  { %5543 = sst [smem:[#allocation219_spill]] %s3405_s25 }
 0x1f1   :  { %5544 = sst [smem:[#allocation220_spill]] %s3407_s26 }
 0x1f2   :  { %5545 = sst [smem:[#allocation221_spill]] %s3409_s27 }
 0x1f3   :  { %5546 = sst [smem:[#allocation222_spill]] %s3411_s28 }
 0x1f4   :  { %5547 = sst [smem:[#allocation223_spill]] %s3413_s29 }
 0x1f5   :  { %5548 = sst [smem:[#allocation224_spill]] %s3415_s30 }
 0x1f6   :  { %s3417_s9 = sld [smem:[#allocation6 + $0x30d]] }
 0x1f7   :  { %s3419_s4 = sld [smem:[#allocation6 + $0x30e]] }
 0x1f8   :  { %s3421_s23 = sld [smem:[#allocation6 + $0x30f]] }
 0x1f9   :  { %s3423_s22 = sld [smem:[#allocation6 + $0x310]] }
 0x1fa   :  { %s3425_s24 = sld [smem:[#allocation6 + $0x311]] }
 0x1fb   :  { %s3427_s25 = sld [smem:[#allocation6 + $0x312]] }
 0x1fc   :  { %5549 = sst [smem:[#allocation225_spill]] %s3417_s9 }
 0x1fd   :  { %5550 = sst [smem:[#allocation226_spill]] %s3419_s4 }
 0x1fe   :  { %5551 = sst [smem:[#allocation227_spill]] %s3421_s23 }
 0x1ff   :  { %5552 = sst [smem:[#allocation228_spill]] %s3423_s22 }
 0x200   :  { %5553 = sst [smem:[#allocation229_spill]] %s3425_s24 }
 0x201   :  { %5554 = sst [smem:[#allocation230_spill]] %s3427_s25 }
 0x202   :  { %s3429_s26 = sld [smem:[#allocation6 + $0x313]] }
 0x203   :  { %s3431_s27 = sld [smem:[#allocation6 + $0x380]] }
 0x204   :  { %s3433_s28 = sld [smem:[#allocation6 + $0x381]] }
 0x205   :  { %s3435_s29 = sld [smem:[#allocation6 + $0x382]] }
 0x206   :  { %s3437_s30 = sld [smem:[#allocation6 + $0x383]] }
 0x207   :  { %s3439_s9 = sld [smem:[#allocation6 + $0x384]] }
 0x208   :  { %5555 = sst [smem:[#allocation231_spill]] %s3429_s26 }
 0x209   :  { %5556 = sst [smem:[#allocation232_spill]] %s3431_s27 }
 0x20a   :  { %5557 = sst [smem:[#allocation233_spill]] %s3433_s28 }
 0x20b   :  { %5558 = sst [smem:[#allocation234_spill]] %s3435_s29 }
 0x20c   :  { %5559 = sst [smem:[#allocation235_spill]] %s3437_s30 }
 0x20d   :  { %5560 = sst [smem:[#allocation236_spill]] %s3439_s9 }
 0x20e   :  { %s3441_s4 = sld [smem:[#allocation6 + $0x385]] }
 0x20f   :  { %s3443_s23 = sld [smem:[#allocation6 + $0x386]] }
 0x210   :  { %s3445_s22 = sld [smem:[#allocation6 + $0x387]] }
 0x211   :  { %s3447_s24 = sld [smem:[#allocation6 + $0x388]] }
 0x212   :  { %s3449_s25 = sld [smem:[#allocation6 + $0x389]] }
 0x213   :  { %s3451_s26 = sld [smem:[#allocation6 + $0x38a]] }
 0x214   :  { %5561 = sst [smem:[#allocation237_spill]] %s3441_s4 }
 0x215   :  { %5562 = sst [smem:[#allocation238_spill]] %s3443_s23 }
 0x216   :  { %5563 = sst [smem:[#allocation239_spill]] %s3445_s22 }
 0x217   :  { %5564 = sst [smem:[#allocation240_spill]] %s3447_s24 }
 0x218   :  { %5565 = sst [smem:[#allocation241_spill]] %s3449_s25 }
 0x219   :  { %5566 = sst [smem:[#allocation242_spill]] %s3451_s26 }
 0x21a   :  { %s3453_s27 = sld [smem:[#allocation6 + $0x38b]] }
 0x21b   :  { %s3455_s28 = sld [smem:[#allocation6 + $0x38c]] }
 0x21c   :  { %s3457_s29 = sld [smem:[#allocation6 + $0x38d]] }
 0x21d   :  { %s3459_s30 = sld [smem:[#allocation6 + $0x38e]] }
 0x21e   :  { %s3461_s9 = sld [smem:[#allocation6 + $0x38f]] }
 0x21f   :  { %s3463_s4 = sld [smem:[#allocation6 + $0x390]] }
 0x220   :  { %5567 = sst [smem:[#allocation243_spill]] %s3453_s27 }
 0x221   :  { %5568 = sst [smem:[#allocation244_spill]] %s3455_s28 }
 0x222   :  { %5569 = sst [smem:[#allocation245_spill]] %s3457_s29 }
 0x223   :  { %5570 = sst [smem:[#allocation246_spill]] %s3459_s30 }
 0x224   :  { %5571 = sst [smem:[#allocation247_spill]] %s3461_s9 }
 0x225   :  { %5572 = sst [smem:[#allocation248_spill]] %s3463_s4 }
 0x226   :  { %s3465_s23 = sld [smem:[#allocation6 + $0x391]] }
 0x227   :  { %s3467_s22 = sld [smem:[#allocation6 + $0x392]] }
 0x228   :  { %s3469_s24 = sld [smem:[#allocation6 + $0x393]] }
 0x229   :  { %s3471_s25 = sld [smem:[#allocation6 + $0x400]] }
 0x22a   :  { %s3473_s26 = sld [smem:[#allocation6 + $0x401]] }
 0x22b   :  { %s3475_s27 = sld [smem:[#allocation6 + $0x402]] }
 0x22c   :  { %5573 = sst [smem:[#allocation249_spill]] %s3465_s23 }
 0x22d   :  { %5574 = sst [smem:[#allocation250_spill]] %s3467_s22 }
 0x22e   :  { %5575 = sst [smem:[#allocation251_spill]] %s3469_s24 }
 0x22f   :  { %5576 = sst [smem:[#allocation252_spill]] %s3471_s25 }
 0x230   :  { %5577 = sst [smem:[#allocation253_spill]] %s3473_s26 }
 0x231   :  { %5578 = sst [smem:[#allocation254_spill]] %s3475_s27 }
 0x232   :  { %s3477_s28 = sld [smem:[#allocation6 + $0x403]] }
 0x233   :  { %s3479_s29 = sld [smem:[#allocation6 + $0x404]] }
 0x234   :  { %s3481_s30 = sld [smem:[#allocation6 + $0x405]] }
 0x235   :  { %s3483_s9 = sld [smem:[#allocation6 + $0x406]] }
 0x236   :  { %s3485_s4 = sld [smem:[#allocation6 + $0x407]] }
 0x237   :  { %s3487_s23 = sld [smem:[#allocation6 + $0x408]] }
 0x238   :  { %5579 = sst [smem:[#allocation255_spill]] %s3477_s28 }
 0x239   :  { %5580 = sst [smem:[#allocation256_spill]] %s3479_s29 }
 0x23a   :  { %5581 = sst [smem:[#allocation257_spill]] %s3481_s30 }
 0x23b   :  { %5582 = sst [smem:[#allocation258_spill]] %s3483_s9 }
 0x23c   :  { %5583 = sst [smem:[#allocation259_spill]] %s3485_s4 }
 0x23d   :  { %5584 = sst [smem:[#allocation260_spill]] %s3487_s23 }
 0x23e   :  { %s3489_s22 = sld [smem:[#allocation6 + $0x409]] }
 0x23f   :  { %s3491_s24 = sld [smem:[#allocation6 + $0x40a]] }
 0x240   :  { %s3493_s25 = sld [smem:[#allocation6 + $0x40b]] }
 0x241   :  { %s3495_s26 = sld [smem:[#allocation6 + $0x40c]] }
 0x242   :  { %s3497_s27 = sld [smem:[#allocation6 + $0x40d]] }
 0x243   :  { %s3499_s28 = sld [smem:[#allocation6 + $0x40e]] }
 0x244   :  { %5585 = sst [smem:[#allocation261_spill]] %s3489_s22 }
 0x245   :  { %5586 = sst [smem:[#allocation262_spill]] %s3491_s24 }
 0x246   :  { %5587 = sst [smem:[#allocation263_spill]] %s3493_s25 }
 0x247   :  { %5588 = sst [smem:[#allocation264_spill]] %s3495_s26 }
 0x248   :  { %5589 = sst [smem:[#allocation265_spill]] %s3497_s27 }
 0x249   :  { %5590 = sst [smem:[#allocation266_spill]] %s3499_s28 }
 0x24a   :  { %s3501_s29 = sld [smem:[#allocation6 + $0x40f]] }
 0x24b   :  { %s3503_s30 = sld [smem:[#allocation6 + $0x410]] }
 0x24c   :  { %s3505_s9 = sld [smem:[#allocation6 + $0x411]] }
 0x24d   :  { %s3507_s4 = sld [smem:[#allocation6 + $0x412]] }
 0x24e   :  { %s3509_s23 = sld [smem:[#allocation6 + $0x413]] }
 0x24f   :  { %s3511_s22 = sld [smem:[#allocation6 + $0x480]] }
 0x250   :  { %5591 = sst [smem:[#allocation267_spill]] %s3501_s29 }
 0x251   :  { %5592 = sst [smem:[#allocation268_spill]] %s3503_s30 }
 0x252   :  { %5593 = sst [smem:[#allocation269_spill]] %s3505_s9 }
 0x253   :  { %5594 = sst [smem:[#allocation270_spill]] %s3507_s4 }
 0x254   :  { %5595 = sst [smem:[#allocation271_spill]] %s3509_s23 }
 0x255   :  { %5596 = sst [smem:[#allocation272_spill]] %s3511_s22 }
 0x256   :  { %s3513_s24 = sld [smem:[#allocation6 + $0x481]] }
 0x257   :  { %s3515_s25 = sld [smem:[#allocation6 + $0x482]] }
 0x258   :  { %s3517_s26 = sld [smem:[#allocation6 + $0x483]] }
 0x259   :  { %s3519_s27 = sld [smem:[#allocation6 + $0x484]] }
 0x25a   :  { %s3521_s28 = sld [smem:[#allocation6 + $0x485]] }
 0x25b   :  { %s3523_s29 = sld [smem:[#allocation6 + $0x486]] }
 0x25c   :  { %5597 = sst [smem:[#allocation273_spill]] %s3513_s24 }
 0x25d   :  { %5598 = sst [smem:[#allocation274_spill]] %s3515_s25 }
 0x25e   :  { %5599 = sst [smem:[#allocation275_spill]] %s3517_s26 }
 0x25f   :  { %5600 = sst [smem:[#allocation276_spill]] %s3519_s27 }
 0x260   :  { %5601 = sst [smem:[#allocation277_spill]] %s3521_s28 }
 0x261   :  { %5602 = sst [smem:[#allocation278_spill]] %s3523_s29 }
 0x262   :  { %s3525_s30 = sld [smem:[#allocation6 + $0x487]] }
 0x263   :  { %s3527_s9 = sld [smem:[#allocation6 + $0x488]] }
 0x264   :  { %s3529_s4 = sld [smem:[#allocation6 + $0x489]] }
 0x265   :  { %s3531_s23 = sld [smem:[#allocation6 + $0x48a]] }
 0x266   :  { %s3533_s22 = sld [smem:[#allocation6 + $0x48b]] }
 0x267   :  { %s3535_s24 = sld [smem:[#allocation6 + $0x48c]] }
 0x268   :  { %5603 = sst [smem:[#allocation279_spill]] %s3525_s30 }
 0x269   :  { %5604 = sst [smem:[#allocation280_spill]] %s3527_s9 }
 0x26a   :  { %5605 = sst [smem:[#allocation281_spill]] %s3529_s4 }
 0x26b   :  { %5606 = sst [smem:[#allocation282_spill]] %s3531_s23 }
 0x26c   :  { %5607 = sst [smem:[#allocation283_spill]] %s3533_s22 }
 0x26d   :  { %5608 = sst [smem:[#allocation284_spill]] %s3535_s24 }
 0x26e   :  { %s3537_s25 = sld [smem:[#allocation6 + $0x48d]] }
 0x26f   :  { %s3539_s26 = sld [smem:[#allocation6 + $0x48e]] }
 0x270   :  { %s3541_s27 = sld [smem:[#allocation6 + $0x48f]] }
 0x271   :  { %s3543_s28 = sld [smem:[#allocation6 + $0x490]] }
 0x272   :  { %s3545_s29 = sld [smem:[#allocation6 + $0x491]] }
 0x273   :  { %s3547_s30 = sld [smem:[#allocation6 + $0x492]] }
 0x274   :  { %5609 = sst [smem:[#allocation285_spill]] %s3537_s25 }
 0x275   :  { %5610 = sst [smem:[#allocation286_spill]] %s3539_s26 }
 0x276   :  { %5611 = sst [smem:[#allocation287_spill]] %s3541_s27 }
 0x277   :  { %5612 = sst [smem:[#allocation288_spill]] %s3543_s28 }
 0x278   :  { %5613 = sst [smem:[#allocation289_spill]] %s3545_s29 }
 0x279   :  { %5614 = sst [smem:[#allocation290_spill]] %s3547_s30 }
 0x27a   :  { %s3549_s9 = sld [smem:[#allocation6 + $0x493]] }
 0x27b   :  { %s3551_s4 = sld [smem:[#allocation6 + $0x500]] }
 0x27c   :  { %s3553_s23 = sld [smem:[#allocation6 + $0x501]] }
 0x27d   :  { %s3555_s22 = sld [smem:[#allocation6 + $0x502]] }
 0x27e   :  { %s3557_s24 = sld [smem:[#allocation6 + $0x503]] }
 0x27f   :  { %s3559_s25 = sld [smem:[#allocation6 + $0x504]] }
 0x280   :  { %5615 = sst [smem:[#allocation291_spill]] %s3549_s9 }
 0x281   :  { %5616 = sst [smem:[#allocation292_spill]] %s3551_s4 }
 0x282   :  { %5617 = sst [smem:[#allocation293_spill]] %s3553_s23 }
 0x283   :  { %5618 = sst [smem:[#allocation294_spill]] %s3555_s22 }
 0x284   :  { %5619 = sst [smem:[#allocation295_spill]] %s3557_s24 }
 0x285   :  { %5620 = sst [smem:[#allocation296_spill]] %s3559_s25 }
 0x286   :  { %s3561_s26 = sld [smem:[#allocation6 + $0x505]] }
 0x287   :  { %s3563_s27 = sld [smem:[#allocation6 + $0x506]] }
 0x288   :  { %s3565_s28 = sld [smem:[#allocation6 + $0x507]] }
 0x289   :  { %s3567_s29 = sld [smem:[#allocation6 + $0x508]] }
 0x28a   :  { %s3569_s30 = sld [smem:[#allocation6 + $0x509]] }
 0x28b   :  { %s3571_s9 = sld [smem:[#allocation6 + $0x50a]] }
 0x28c   :  { %5621 = sst [smem:[#allocation297_spill]] %s3561_s26 }
 0x28d   :  { %5622 = sst [smem:[#allocation298_spill]] %s3563_s27 }
 0x28e   :  { %5623 = sst [smem:[#allocation299_spill]] %s3565_s28 }
 0x28f   :  { %5624 = sst [smem:[#allocation300_spill]] %s3567_s29 }
 0x290   :  { %5625 = sst [smem:[#allocation301_spill]] %s3569_s30 }
 0x291   :  { %5626 = sst [smem:[#allocation302_spill]] %s3571_s9 }
 0x292   :  { %s3573_s4 = sld [smem:[#allocation6 + $0x50b]] }
 0x293   :  { %s3575_s23 = sld [smem:[#allocation6 + $0x50c]] }
 0x294   :  { %s3577_s22 = sld [smem:[#allocation6 + $0x50d]] }
 0x295   :  { %s3579_s24 = sld [smem:[#allocation6 + $0x50e]] }
 0x296   :  { %s3581_s25 = sld [smem:[#allocation6 + $0x50f]] }
 0x297   :  { %s3583_s26 = sld [smem:[#allocation6 + $0x510]] }
 0x298   :  { %5627 = sst [smem:[#allocation303_spill]] %s3573_s4 }
 0x299   :  { %5628 = sst [smem:[#allocation304_spill]] %s3575_s23 }
 0x29a   :  { %5629 = sst [smem:[#allocation305_spill]] %s3577_s22 }
 0x29b   :  { %5630 = sst [smem:[#allocation306_spill]] %s3579_s24 }
 0x29c   :  { %5631 = sst [smem:[#allocation307_spill]] %s3581_s25 }
 0x29d   :  { %5632 = sst [smem:[#allocation308_spill]] %s3583_s26 }
 0x29e   :  { %s3585_s27 = sld [smem:[#allocation6 + $0x511]] }
 0x29f   :  { %s3587_s28 = sld [smem:[#allocation6 + $0x512]] }
 0x2a0   :  { %s3589_s29 = sld [smem:[#allocation6 + $0x513]] }
 0x2a1   :  { %s3591_s30 = sld [smem:[#allocation6 + $0x580]] }
 0x2a2   :  { %s3593_s9 = sld [smem:[#allocation6 + $0x581]] }
 0x2a3   :  { %s3595_s4 = sld [smem:[#allocation6 + $0x582]] }
 0x2a4   :  { %5633 = sst [smem:[#allocation309_spill]] %s3585_s27 }
 0x2a5   :  { %5634 = sst [smem:[#allocation310_spill]] %s3587_s28 }
 0x2a6   :  { %5635 = sst [smem:[#allocation311_spill]] %s3589_s29 }
 0x2a7   :  { %5636 = sst [smem:[#allocation312_spill]] %s3591_s30 }
 0x2a8   :  { %5637 = sst [smem:[#allocation313_spill]] %s3593_s9 }
 0x2a9   :  { %5638 = sst [smem:[#allocation314_spill]] %s3595_s4 }
 0x2aa   :  { %s3597_s23 = sld [smem:[#allocation6 + $0x583]] }
 0x2ab   :  { %s3599_s22 = sld [smem:[#allocation6 + $0x584]] }
 0x2ac   :  { %s3601_s24 = sld [smem:[#allocation6 + $0x585]] }
 0x2ad   :  { %s3603_s25 = sld [smem:[#allocation6 + $0x586]] }
 0x2ae   :  { %s3605_s26 = sld [smem:[#allocation6 + $0x587]] }
 0x2af   :  { %s3607_s27 = sld [smem:[#allocation6 + $0x588]] }
 0x2b0   :  { %5639 = sst [smem:[#allocation315_spill]] %s3597_s23 }
 0x2b1   :  { %5640 = sst [smem:[#allocation316_spill]] %s3599_s22 }
 0x2b2   :  { %5641 = sst [smem:[#allocation317_spill]] %s3601_s24 }
 0x2b3   :  { %5642 = sst [smem:[#allocation318_spill]] %s3603_s25 }
 0x2b4   :  { %5643 = sst [smem:[#allocation319_spill]] %s3605_s26 }
 0x2b5   :  { %5644 = sst [smem:[#allocation320_spill]] %s3607_s27 }
 0x2b6   :  { %s3609_s28 = sld [smem:[#allocation6 + $0x589]] }
 0x2b7   :  { %s3611_s29 = sld [smem:[#allocation6 + $0x58a]] }
 0x2b8   :  { %s3613_s30 = sld [smem:[#allocation6 + $0x58b]] }
 0x2b9   :  { %s3615_s9 = sld [smem:[#allocation6 + $0x58c]] }
 0x2ba   :  { %s3617_s4 = sld [smem:[#allocation6 + $0x58d]] }
 0x2bb   :  { %s3619_s23 = sld [smem:[#allocation6 + $0x58e]] }
 0x2bc   :  { %5645 = sst [smem:[#allocation321_spill]] %s3609_s28 }
 0x2bd   :  { %5646 = sst [smem:[#allocation322_spill]] %s3611_s29 }
 0x2be   :  { %5647 = sst [smem:[#allocation323_spill]] %s3613_s30 }
 0x2bf   :  { %5648 = sst [smem:[#allocation324_spill]] %s3615_s9 }
 0x2c0   :  { %5649 = sst [smem:[#allocation325_spill]] %s3617_s4 }
 0x2c1   :  { %5650 = sst [smem:[#allocation326_spill]] %s3619_s23 }
 0x2c2   :  { %s3621_s22 = sld [smem:[#allocation6 + $0x58f]] }
 0x2c3   :  { %s3623_s24 = sld [smem:[#allocation6 + $0x590]] }
 0x2c4   :  { %s3625_s25 = sld [smem:[#allocation6 + $0x591]] }
 0x2c5   :  { %s3627_s26 = sld [smem:[#allocation6 + $0x592]] }
 0x2c6   :  { %s3629_s27 = sld [smem:[#allocation6 + $0x593]] }
 0x2c7   :  { %s3631_s28 = sld [smem:[#allocation6 + $0x600]] }
 0x2c8   :  { %5651 = sst [smem:[#allocation327_spill]] %s3621_s22 }
 0x2c9   :  { %5652 = sst [smem:[#allocation328_spill]] %s3623_s24 }
 0x2ca   :  { %5653 = sst [smem:[#allocation329_spill]] %s3625_s25 }
 0x2cb   :  { %5654 = sst [smem:[#allocation330_spill]] %s3627_s26 }
 0x2cc   :  { %5655 = sst [smem:[#allocation331_spill]] %s3629_s27 }
 0x2cd   :  { %5656 = sst [smem:[#allocation332_spill]] %s3631_s28 }
 0x2ce   :  { %s3633_s29 = sld [smem:[#allocation6 + $0x601]] }
 0x2cf   :  { %s3635_s30 = sld [smem:[#allocation6 + $0x602]] }
 0x2d0   :  { %s3637_s9 = sld [smem:[#allocation6 + $0x603]] }
 0x2d1   :  { %s3639_s4 = sld [smem:[#allocation6 + $0x604]] }
 0x2d2   :  { %s3641_s23 = sld [smem:[#allocation6 + $0x605]] }
 0x2d3   :  { %s3643_s22 = sld [smem:[#allocation6 + $0x606]] }
 0x2d4   :  { %5657 = sst [smem:[#allocation333_spill]] %s3633_s29 }
 0x2d5   :  { %5658 = sst [smem:[#allocation334_spill]] %s3635_s30 }
 0x2d6   :  { %5659 = sst [smem:[#allocation335_spill]] %s3637_s9 }
 0x2d7   :  { %5660 = sst [smem:[#allocation336_spill]] %s3639_s4 }
 0x2d8   :  { %5661 = sst [smem:[#allocation337_spill]] %s3641_s23 }
 0x2d9   :  { %5662 = sst [smem:[#allocation338_spill]] %s3643_s22 }
 0x2da   :  { %s3645_s24 = sld [smem:[#allocation6 + $0x607]] }
 0x2db   :  { %s3647_s25 = sld [smem:[#allocation6 + $0x608]] }
 0x2dc   :  { %s3649_s26 = sld [smem:[#allocation6 + $0x609]] }
 0x2dd   :  { %s3651_s27 = sld [smem:[#allocation6 + $0x60a]] }
 0x2de   :  { %s3653_s28 = sld [smem:[#allocation6 + $0x60b]] }
 0x2df   :  { %s3655_s29 = sld [smem:[#allocation6 + $0x60c]] }
 0x2e0   :  { %5663 = sst [smem:[#allocation339_spill]] %s3645_s24 }
 0x2e1   :  { %5664 = sst [smem:[#allocation340_spill]] %s3647_s25 }
 0x2e2   :  { %5665 = sst [smem:[#allocation341_spill]] %s3649_s26 }
 0x2e3   :  { %5666 = sst [smem:[#allocation342_spill]] %s3651_s27 }
 0x2e4   :  { %5667 = sst [smem:[#allocation343_spill]] %s3653_s28 }
 0x2e5   :  { %5668 = sst [smem:[#allocation344_spill]] %s3655_s29 }
 0x2e6   :  { %s3657_s30 = sld [smem:[#allocation6 + $0x60d]] }
 0x2e7   :  { %s3659_s9 = sld [smem:[#allocation6 + $0x60e]] }
 0x2e8   :  { %s3661_s4 = sld [smem:[#allocation6 + $0x60f]] }
 0x2e9   :  { %s3663_s23 = sld [smem:[#allocation6 + $0x610]] }
 0x2ea   :  { %s3665_s22 = sld [smem:[#allocation6 + $0x611]] }
 0x2eb   :  { %s3667_s24 = sld [smem:[#allocation6 + $0x612]] }
 0x2ec   :  { %5669 = sst [smem:[#allocation345_spill]] %s3657_s30 }
 0x2ed   :  { %5670 = sst [smem:[#allocation346_spill]] %s3659_s9 }
 0x2ee   :  { %5671 = sst [smem:[#allocation347_spill]] %s3661_s4 }
 0x2ef   :  { %5672 = sst [smem:[#allocation348_spill]] %s3663_s23 }
 0x2f0   :  { %5673 = sst [smem:[#allocation349_spill]] %s3665_s22 }
 0x2f1   :  { %5674 = sst [smem:[#allocation350_spill]] %s3667_s24 }
 0x2f2   :  { %s3669_s25 = sld [smem:[#allocation6 + $0x613]] }
 0x2f3   :  { %s3671_s26 = sld [smem:[#allocation6 + $0x680]] }
 0x2f4   :  { %s3673_s27 = sld [smem:[#allocation6 + $0x681]] }
 0x2f5   :  { %s3675_s28 = sld [smem:[#allocation6 + $0x682]] }
 0x2f6   :  { %s3677_s29 = sld [smem:[#allocation6 + $0x683]] }
 0x2f7   :  { %s3679_s30 = sld [smem:[#allocation6 + $0x684]] }
 0x2f8   :  { %5675 = sst [smem:[#allocation351_spill]] %s3669_s25 }
 0x2f9   :  { %5676 = sst [smem:[#allocation352_spill]] %s3671_s26 }
 0x2fa   :  { %5677 = sst [smem:[#allocation353_spill]] %s3673_s27 }
 0x2fb   :  { %5678 = sst [smem:[#allocation354_spill]] %s3675_s28 }
 0x2fc   :  { %5679 = sst [smem:[#allocation355_spill]] %s3677_s29 }
 0x2fd   :  { %5680 = sst [smem:[#allocation356_spill]] %s3679_s30 }
 0x2fe   :  { %s3681_s9 = sld [smem:[#allocation6 + $0x685]] }
 0x2ff   :  { %s3683_s4 = sld [smem:[#allocation6 + $0x686]] }
 0x300   :  { %s3685_s23 = sld [smem:[#allocation6 + $0x687]] }
 0x301   :  { %s3687_s22 = sld [smem:[#allocation6 + $0x688]] }
 0x302   :  { %s3689_s24 = sld [smem:[#allocation6 + $0x689]] }
 0x303   :  { %s3691_s25 = sld [smem:[#allocation6 + $0x68a]] }
 0x304   :  { %5681 = sst [smem:[#allocation357_spill]] %s3681_s9 }
 0x305   :  { %5682 = sst [smem:[#allocation358_spill]] %s3683_s4 }
 0x306   :  { %5683 = sst [smem:[#allocation359_spill]] %s3685_s23 }
 0x307   :  { %5684 = sst [smem:[#allocation360_spill]] %s3687_s22 }
 0x308   :  { %5685 = sst [smem:[#allocation361_spill]] %s3689_s24 }
 0x309   :  { %5686 = sst [smem:[#allocation362_spill]] %s3691_s25 }
 0x30a   :  { %s3693_s26 = sld [smem:[#allocation6 + $0x68b]] }
 0x30b   :  { %s3695_s27 = sld [smem:[#allocation6 + $0x68c]] }
 0x30c   :  { %s3697_s28 = sld [smem:[#allocation6 + $0x68d]] }
 0x30d   :  { %s3699_s29 = sld [smem:[#allocation6 + $0x68e]] }
 0x30e   :  { %s3701_s30 = sld [smem:[#allocation6 + $0x68f]] }
 0x30f   :  { %s3703_s9 = sld [smem:[#allocation6 + $0x690]] }
 0x310   :  { %5687 = sst [smem:[#allocation363_spill]] %s3693_s26 }
 0x311   :  { %5688 = sst [smem:[#allocation364_spill]] %s3695_s27 }
 0x312   :  { %5689 = sst [smem:[#allocation365_spill]] %s3697_s28 }
 0x313   :  { %5690 = sst [smem:[#allocation366_spill]] %s3699_s29 }
 0x314   :  { %5691 = sst [smem:[#allocation367_spill]] %s3701_s30 }
 0x315   :  { %5692 = sst [smem:[#allocation368_spill]] %s3703_s9 }
 0x316   :  { %s3705_s4 = sld [smem:[#allocation6 + $0x691]] }
 0x317   :  { %s3707_s23 = sld [smem:[#allocation6 + $0x692]] }
 0x318   :  { %s3709_s22 = sld [smem:[#allocation6 + $0x693]] }
 0x319   :  { %s3711_s24 = sld [smem:[#allocation6 + $0x700]] }
 0x31a   :  { %s3713_s25 = sld [smem:[#allocation6 + $0x701]] }
 0x31b   :  { %s3715_s26 = sld [smem:[#allocation6 + $0x702]] }
 0x31c   :  { %5693 = sst [smem:[#allocation369_spill]] %s3705_s4 }
 0x31d   :  { %5694 = sst [smem:[#allocation370_spill]] %s3707_s23 }
 0x31e   :  { %5695 = sst [smem:[#allocation371_spill]] %s3709_s22 }
 0x31f   :  { %5696 = sst [smem:[#allocation372_spill]] %s3711_s24 }
 0x320   :  { %5697 = sst [smem:[#allocation373_spill]] %s3713_s25 }
 0x321   :  { %5698 = sst [smem:[#allocation374_spill]] %s3715_s26 }
 0x322   :  { %s3717_s27 = sld [smem:[#allocation6 + $0x703]] }
 0x323   :  { %s3719_s28 = sld [smem:[#allocation6 + $0x704]] }
 0x324   :  { %s3721_s29 = sld [smem:[#allocation6 + $0x705]] }
 0x325   :  { %s3723_s30 = sld [smem:[#allocation6 + $0x706]] }
 0x326   :  { %s3725_s9 = sld [smem:[#allocation6 + $0x707]] }
 0x327   :  { %s3727_s4 = sld [smem:[#allocation6 + $0x708]] }
 0x328   :  { %5699 = sst [smem:[#allocation375_spill]] %s3717_s27 }
 0x329   :  { %5700 = sst [smem:[#allocation376_spill]] %s3719_s28 }
 0x32a   :  { %5701 = sst [smem:[#allocation377_spill]] %s3721_s29 }
 0x32b   :  { %5702 = sst [smem:[#allocation378_spill]] %s3723_s30 }
 0x32c   :  { %5703 = sst [smem:[#allocation379_spill]] %s3725_s9 }
 0x32d   :  { %5704 = sst [smem:[#allocation380_spill]] %s3727_s4 }
 0x32e   :  { %s3729_s23 = sld [smem:[#allocation6 + $0x709]] }
 0x32f   :  { %s3731_s22 = sld [smem:[#allocation6 + $0x70a]] }
 0x330   :  { %s3733_s24 = sld [smem:[#allocation6 + $0x70b]] }
 0x331   :  { %s3735_s25 = sld [smem:[#allocation6 + $0x70c]] }
 0x332   :  { %s3737_s26 = sld [smem:[#allocation6 + $0x70d]] }
 0x333   :  { %s3739_s27 = sld [smem:[#allocation6 + $0x70e]] }
 0x334   :  { %5705 = sst [smem:[#allocation381_spill]] %s3729_s23 }
 0x335   :  { %5706 = sst [smem:[#allocation382_spill]] %s3731_s22 }
 0x336   :  { %5707 = sst [smem:[#allocation383_spill]] %s3733_s24 }
 0x337   :  { %5708 = sst [smem:[#allocation384_spill]] %s3735_s25 }
 0x338   :  { %5709 = sst [smem:[#allocation385_spill]] %s3737_s26 }
 0x339   :  { %5710 = sst [smem:[#allocation386_spill]] %s3739_s27 }
 0x33a   :  { %s3741_s28 = sld [smem:[#allocation6 + $0x70f]] }
 0x33b   :  { %s3743_s29 = sld [smem:[#allocation6 + $0x710]] }
 0x33c   :  { %s3745_s30 = sld [smem:[#allocation6 + $0x711]] }
 0x33d   :  { %s3747_s9 = sld [smem:[#allocation6 + $0x712]] }
 0x33e   :  { %s3749_s4 = sld [smem:[#allocation6 + $0x713]] }
 0x33f   :  { %s3751_s23 = sld [smem:[#allocation6 + $0x780]] }
 0x340   :  { %5711 = sst [smem:[#allocation387_spill]] %s3741_s28 }
 0x341   :  { %5712 = sst [smem:[#allocation388_spill]] %s3743_s29 }
 0x342   :  { %5713 = sst [smem:[#allocation389_spill]] %s3745_s30 }
 0x343   :  { %5714 = sst [smem:[#allocation390_spill]] %s3747_s9 }
 0x344   :  { %5715 = sst [smem:[#allocation391_spill]] %s3749_s4 }
 0x345   :  { %5716 = sst [smem:[#allocation392_spill]] %s3751_s23 }
 0x346   :  { %s3753_s22 = sld [smem:[#allocation6 + $0x781]] }
 0x347   :  { %s3755_s24 = sld [smem:[#allocation6 + $0x782]] }
 0x348   :  { %s3757_s25 = sld [smem:[#allocation6 + $0x783]] }
 0x349   :  { %s3759_s26 = sld [smem:[#allocation6 + $0x784]] }
 0x34a   :  { %s3761_s27 = sld [smem:[#allocation6 + $0x785]] }
 0x34b   :  { %s3763_s28 = sld [smem:[#allocation6 + $0x786]] }
 0x34c   :  { %5717 = sst [smem:[#allocation393_spill]] %s3753_s22 }
 0x34d   :  { %5718 = sst [smem:[#allocation394_spill]] %s3755_s24 }
 0x34e   :  { %5719 = sst [smem:[#allocation395_spill]] %s3757_s25 }
 0x34f   :  { %5720 = sst [smem:[#allocation396_spill]] %s3759_s26 }
 0x350   :  { %5721 = sst [smem:[#allocation397_spill]] %s3761_s27 }
 0x351   :  { %5722 = sst [smem:[#allocation398_spill]] %s3763_s28 }
 0x352   :  { %s3765_s29 = sld [smem:[#allocation6 + $0x787]] }
 0x353   :  { %s3767_s30 = sld [smem:[#allocation6 + $0x788]] }
 0x354   :  { %s3769_s9 = sld [smem:[#allocation6 + $0x789]] }
 0x355   :  { %s3771_s4 = sld [smem:[#allocation6 + $0x78a]] }
 0x356   :  { %s3773_s23 = sld [smem:[#allocation6 + $0x78b]] }
 0x357   :  { %s3775_s22 = sld [smem:[#allocation6 + $0x78c]] }
 0x358   :  { %5723 = sst [smem:[#allocation399_spill]] %s3765_s29 }
 0x359   :  { %5724 = sst [smem:[#allocation400_spill]] %s3767_s30 }
 0x35a   :  { %5725 = sst [smem:[#allocation401_spill]] %s3769_s9 }
 0x35b   :  { %5726 = sst [smem:[#allocation402_spill]] %s3771_s4 }
 0x35c   :  { %5727 = sst [smem:[#allocation403_spill]] %s3773_s23 }
 0x35d   :  { %5728 = sst [smem:[#allocation404_spill]] %s3775_s22 }
 0x35e   :  { %s3777_s24 = sld [smem:[#allocation6 + $0x78d]] }
 0x35f   :  { %s3779_s25 = sld [smem:[#allocation6 + $0x78e]] }
 0x360   :  { %s3781_s26 = sld [smem:[#allocation6 + $0x78f]] }
 0x361   :  { %s3783_s27 = sld [smem:[#allocation6 + $0x790]] }
 0x362   :  { %s3785_s28 = sld [smem:[#allocation6 + $0x791]] }
 0x363   :  { %s3787_s29 = sld [smem:[#allocation6 + $0x792]] }
 0x364   :  { %5729 = sst [smem:[#allocation405_spill]] %s3777_s24 }
 0x365   :  { %5730 = sst [smem:[#allocation406_spill]] %s3779_s25 }
 0x366   :  { %5731 = sst [smem:[#allocation407_spill]] %s3781_s26 }
 0x367   :  { %5732 = sst [smem:[#allocation408_spill]] %s3783_s27 }
 0x368   :  { %5733 = sst [smem:[#allocation409_spill]] %s3785_s28 }
 0x369   :  { %5734 = sst [smem:[#allocation410_spill]] %s3787_s29 }
 0x36a   :  { %s3789_s30 = sld [smem:[#allocation6 + $0x793]] }
 0x36b   :  { %s3791_s9 = sld [smem:[#allocation6 + $0x800]] }
 0x36c   :  { %s3793_s4 = sld [smem:[#allocation6 + $0x801]] }
 0x36d   :  { %s3795_s23 = sld [smem:[#allocation6 + $0x802]] }
 0x36e   :  { %s3797_s22 = sld [smem:[#allocation6 + $0x803]] }
 0x36f   :  { %s3799_s24 = sld [smem:[#allocation6 + $0x804]] }
 0x370   :  { %5735 = sst [smem:[#allocation411_spill]] %s3789_s30 }
 0x371   :  { %5736 = sst [smem:[#allocation412_spill]] %s3791_s9 }
 0x372   :  { %5737 = sst [smem:[#allocation413_spill]] %s3793_s4 }
 0x373   :  { %5738 = sst [smem:[#allocation414_spill]] %s3795_s23 }
 0x374   :  { %5739 = sst [smem:[#allocation415_spill]] %s3797_s22 }
 0x375   :  { %5740 = sst [smem:[#allocation416_spill]] %s3799_s24 }
 0x376   :  { %s3801_s25 = sld [smem:[#allocation6 + $0x805]] }
 0x377   :  { %s3803_s26 = sld [smem:[#allocation6 + $0x806]] }
 0x378   :  { %s3805_s27 = sld [smem:[#allocation6 + $0x807]] }
 0x379   :  { %s3807_s28 = sld [smem:[#allocation6 + $0x808]] }
 0x37a   :  { %s3809_s29 = sld [smem:[#allocation6 + $0x809]] }
 0x37b   :  { %s3811_s30 = sld [smem:[#allocation6 + $0x80a]] }
 0x37c   :  { %5741 = sst [smem:[#allocation417_spill]] %s3801_s25 }
 0x37d   :  { %5742 = sst [smem:[#allocation418_spill]] %s3803_s26 }
 0x37e   :  { %5743 = sst [smem:[#allocation419_spill]] %s3805_s27 }
 0x37f   :  { %5744 = sst [smem:[#allocation420_spill]] %s3807_s28 }
 0x380   :  { %5745 = sst [smem:[#allocation421_spill]] %s3809_s29 }
 0x381   :  { %5746 = sst [smem:[#allocation422_spill]] %s3811_s30 }
 0x382   :  { %s3813_s9 = sld [smem:[#allocation6 + $0x80b]] }
 0x383   :  { %s3815_s4 = sld [smem:[#allocation6 + $0x80c]] }
 0x384   :  { %s3817_s23 = sld [smem:[#allocation6 + $0x80d]] }
 0x385   :  { %s3819_s22 = sld [smem:[#allocation6 + $0x80e]] }
 0x386   :  { %s3821_s24 = sld [smem:[#allocation6 + $0x80f]] }
 0x387   :  { %s3823_s25 = sld [smem:[#allocation6 + $0x810]] }
 0x388   :  { %5747 = sst [smem:[#allocation423_spill]] %s3813_s9 }
 0x389   :  { %5748 = sst [smem:[#allocation424_spill]] %s3815_s4 }
 0x38a   :  { %5749 = sst [smem:[#allocation425_spill]] %s3817_s23 }
 0x38b   :  { %5750 = sst [smem:[#allocation426_spill]] %s3819_s22 }
 0x38c   :  { %5751 = sst [smem:[#allocation427_spill]] %s3821_s24 }
 0x38d   :  { %5752 = sst [smem:[#allocation428_spill]] %s3823_s25 }
 0x38e   :  { %s3825_s26 = sld [smem:[#allocation6 + $0x811]] }
 0x38f   :  { %s3827_s27 = sld [smem:[#allocation6 + $0x812]] }
 0x390   :  { %s3829_s28 = sld [smem:[#allocation6 + $0x813]] }
 0x391   :  { %s3831_s29 = sld [smem:[#allocation6 + $0x880]] }
 0x392   :  { %s3833_s30 = sld [smem:[#allocation6 + $0x881]] }
 0x393   :  { %s3835_s9 = sld [smem:[#allocation6 + $0x882]] }
 0x394   :  { %5753 = sst [smem:[#allocation429_spill]] %s3825_s26 }
 0x395   :  { %5754 = sst [smem:[#allocation430_spill]] %s3827_s27 }
 0x396   :  { %5755 = sst [smem:[#allocation431_spill]] %s3829_s28 }
 0x397   :  { %5756 = sst [smem:[#allocation432_spill]] %s3831_s29 }
 0x398   :  { %5757 = sst [smem:[#allocation433_spill]] %s3833_s30 }
 0x399   :  { %5758 = sst [smem:[#allocation434_spill]] %s3835_s9 }
 0x39a   :  { %s3837_s4 = sld [smem:[#allocation6 + $0x883]] }
 0x39b   :  { %s3839_s23 = sld [smem:[#allocation6 + $0x884]] }
 0x39c   :  { %s3841_s22 = sld [smem:[#allocation6 + $0x885]] }
 0x39d   :  { %s3843_s24 = sld [smem:[#allocation6 + $0x886]] }
 0x39e   :  { %s3845_s25 = sld [smem:[#allocation6 + $0x887]] }
 0x39f   :  { %s3847_s26 = sld [smem:[#allocation6 + $0x888]] }
 0x3a0   :  { %5759 = sst [smem:[#allocation435_spill]] %s3837_s4 }
 0x3a1   :  { %5760 = sst [smem:[#allocation436_spill]] %s3839_s23 }
 0x3a2   :  { %5761 = sst [smem:[#allocation437_spill]] %s3841_s22 }
 0x3a3   :  { %5762 = sst [smem:[#allocation438_spill]] %s3843_s24 }
 0x3a4   :  { %5763 = sst [smem:[#allocation439_spill]] %s3845_s25 }
 0x3a5   :  { %5764 = sst [smem:[#allocation440_spill]] %s3847_s26 }
 0x3a6   :  { %s3849_s27 = sld [smem:[#allocation6 + $0x889]] }
 0x3a7   :  { %s3851_s28 = sld [smem:[#allocation6 + $0x88a]] }
 0x3a8   :  { %s3853_s29 = sld [smem:[#allocation6 + $0x88b]] }
 0x3a9   :  { %s3855_s30 = sld [smem:[#allocation6 + $0x88c]] }
 0x3aa   :  { %s3857_s9 = sld [smem:[#allocation6 + $0x88d]] }
 0x3ab   :  { %s3859_s4 = sld [smem:[#allocation6 + $0x88e]] }
 0x3ac   :  { %5765 = sst [smem:[#allocation441_spill]] %s3849_s27 }
 0x3ad   :  { %5766 = sst [smem:[#allocation442_spill]] %s3851_s28 }
 0x3ae   :  { %5767 = sst [smem:[#allocation443_spill]] %s3853_s29 }
 0x3af   :  { %5768 = sst [smem:[#allocation444_spill]] %s3855_s30 }
 0x3b0   :  { %5769 = sst [smem:[#allocation445_spill]] %s3857_s9 }
 0x3b1   :  { %5770 = sst [smem:[#allocation446_spill]] %s3859_s4 }
 0x3b2   :  { %s3861_s23 = sld [smem:[#allocation6 + $0x88f]] }
 0x3b3   :  { %s3863_s22 = sld [smem:[#allocation6 + $0x890]] }
 0x3b4   :  { %s3865_s24 = sld [smem:[#allocation6 + $0x891]] }
 0x3b5   :  { %s3867_s25 = sld [smem:[#allocation6 + $0x892]] }
 0x3b6   :  { %s3869_s26 = sld [smem:[#allocation6 + $0x893]] }
 0x3b7   :  { %s3871_s27 = sld [smem:[#allocation6 + $0x900]] }
 0x3b8   :  { %5771 = sst [smem:[#allocation447_spill]] %s3861_s23 }
 0x3b9   :  { %5772 = sst [smem:[#allocation448_spill]] %s3863_s22 }
 0x3ba   :  { %5773 = sst [smem:[#allocation449_spill]] %s3865_s24 }
 0x3bb   :  { %5774 = sst [smem:[#allocation450_spill]] %s3867_s25 }
 0x3bc   :  { %5775 = sst [smem:[#allocation451_spill]] %s3869_s26 }
 0x3bd   :  { %5776 = sst [smem:[#allocation452_spill]] %s3871_s27 }
 0x3be   :  { %s3873_s28 = sld [smem:[#allocation6 + $0x901]] }
 0x3bf   :  { %s3875_s29 = sld [smem:[#allocation6 + $0x902]] }
 0x3c0   :  { %s3877_s30 = sld [smem:[#allocation6 + $0x903]] }
 0x3c1   :  { %s3879_s9 = sld [smem:[#allocation6 + $0x904]] }
 0x3c2   :  { %s3881_s4 = sld [smem:[#allocation6 + $0x905]] }
 0x3c3   :  { %s3883_s23 = sld [smem:[#allocation6 + $0x906]] }
 0x3c4   :  { %5777 = sst [smem:[#allocation453_spill]] %s3873_s28 }
 0x3c5   :  { %5778 = sst [smem:[#allocation454_spill]] %s3875_s29 }
 0x3c6   :  { %5779 = sst [smem:[#allocation455_spill]] %s3877_s30 }
 0x3c7   :  { %5780 = sst [smem:[#allocation456_spill]] %s3879_s9 }
 0x3c8   :  { %5781 = sst [smem:[#allocation457_spill]] %s3881_s4 }
 0x3c9   :  { %5782 = sst [smem:[#allocation458_spill]] %s3883_s23 }
 0x3ca   :  { %s3885_s22 = sld [smem:[#allocation6 + $0x907]] }
 0x3cb   :  { %s3887_s24 = sld [smem:[#allocation6 + $0x908]] }
 0x3cc   :  { %s3889_s25 = sld [smem:[#allocation6 + $0x909]] }
 0x3cd   :  { %s3891_s26 = sld [smem:[#allocation6 + $0x90a]] }
 0x3ce   :  { %s3893_s27 = sld [smem:[#allocation6 + $0x90b]] }
 0x3cf   :  { %s3895_s28 = sld [smem:[#allocation6 + $0x90c]] }
 0x3d0   :  { %5783 = sst [smem:[#allocation459_spill]] %s3885_s22 }
 0x3d1   :  { %5784 = sst [smem:[#allocation460_spill]] %s3887_s24 }
 0x3d2   :  { %5785 = sst [smem:[#allocation461_spill]] %s3889_s25 }
 0x3d3   :  { %5786 = sst [smem:[#allocation462_spill]] %s3891_s26 }
 0x3d4   :  { %5787 = sst [smem:[#allocation463_spill]] %s3893_s27 }
 0x3d5   :  { %5788 = sst [smem:[#allocation464_spill]] %s3895_s28 }
 0x3d6   :  { %s3897_s29 = sld [smem:[#allocation6 + $0x90d]] }
 0x3d7   :  { %s3899_s30 = sld [smem:[#allocation6 + $0x90e]] }
 0x3d8   :  { %s3901_s9 = sld [smem:[#allocation6 + $0x90f]] }
 0x3d9   :  { %s3903_s4 = sld [smem:[#allocation6 + $0x910]] }
 0x3da   :  { %s3905_s23 = sld [smem:[#allocation6 + $0x911]] }
 0x3db   :  { %s3907_s22 = sld [smem:[#allocation6 + $0x912]] }
 0x3dc   :  { %5789 = sst [smem:[#allocation465_spill]] %s3897_s29 }
 0x3dd   :  { %5790 = sst [smem:[#allocation466_spill]] %s3899_s30 }
 0x3de   :  { %5791 = sst [smem:[#allocation467_spill]] %s3901_s9 }
 0x3df   :  { %5792 = sst [smem:[#allocation468_spill]] %s3903_s4 }
 0x3e0   :  { %5793 = sst [smem:[#allocation469_spill]] %s3905_s23 }
 0x3e1   :  { %5794 = sst [smem:[#allocation470_spill]] %s3907_s22 }
 0x3e2   :  { %s3909_s24 = sld [smem:[#allocation6 + $0x913]] }
 0x3e3   :  { %s3911_s25 = sld [smem:[#allocation6 + $0x980]] }
 0x3e4   :  { %s3913_s26 = sld [smem:[#allocation6 + $0x981]] }
 0x3e5   :  { %s3915_s27 = sld [smem:[#allocation6 + $0x982]] }
 0x3e6   :  { %s3917_s28 = sld [smem:[#allocation6 + $0x983]] }
 0x3e7   :  { %s3919_s29 = sld [smem:[#allocation6 + $0x984]] }
 0x3e8   :  { %5795 = sst [smem:[#allocation471_spill]] %s3909_s24 }
 0x3e9   :  { %5796 = sst [smem:[#allocation472_spill]] %s3911_s25 }
 0x3ea   :  { %5797 = sst [smem:[#allocation473_spill]] %s3913_s26 }
 0x3eb   :  { %5798 = sst [smem:[#allocation474_spill]] %s3915_s27 }
 0x3ec   :  { %5799 = sst [smem:[#allocation475_spill]] %s3917_s28 }
 0x3ed   :  { %5800 = sst [smem:[#allocation476_spill]] %s3919_s29 }
 0x3ee   :  { %s3921_s30 = sld [smem:[#allocation6 + $0x985]] }
 0x3ef   :  { %s3923_s9 = sld [smem:[#allocation6 + $0x986]] }
 0x3f0   :  { %s3925_s4 = sld [smem:[#allocation6 + $0x987]] }
 0x3f1   :  { %s3927_s23 = sld [smem:[#allocation6 + $0x988]] }
 0x3f2   :  { %s3929_s22 = sld [smem:[#allocation6 + $0x989]] }
 0x3f3   :  { %s3931_s24 = sld [smem:[#allocation6 + $0x98a]] }
 0x3f4   :  { %5801 = sst [smem:[#allocation477_spill]] %s3921_s30 }
 0x3f5   :  { %5802 = sst [smem:[#allocation478_spill]] %s3923_s9 }
 0x3f6   :  { %5803 = sst [smem:[#allocation479_spill]] %s3925_s4 }
 0x3f7   :  { %5804 = sst [smem:[#allocation480_spill]] %s3927_s23 }
 0x3f8   :  { %5805 = sst [smem:[#allocation481_spill]] %s3929_s22 }
 0x3f9   :  { %5806 = sst [smem:[#allocation482_spill]] %s3931_s24 }
 0x3fa   :  { %s3933_s25 = sld [smem:[#allocation6 + $0x98b]] }
 0x3fb   :  { %s3935_s26 = sld [smem:[#allocation6 + $0x98c]] }
 0x3fc   :  { %s3937_s27 = sld [smem:[#allocation6 + $0x98d]] }
 0x3fd   :  { %s3939_s28 = sld [smem:[#allocation6 + $0x98e]] }
 0x3fe   :  { %s3941_s29 = sld [smem:[#allocation6 + $0x98f]] }
 0x3ff   :  { %s3943_s30 = sld [smem:[#allocation6 + $0x990]] }
 0x400   :  { %5807 = sst [smem:[#allocation483_spill]] %s3933_s25 }
 0x401   :  { %5808 = sst [smem:[#allocation484_spill]] %s3935_s26 }
 0x402   :  { %5809 = sst [smem:[#allocation485_spill]] %s3937_s27 }
 0x403   :  { %5810 = sst [smem:[#allocation486_spill]] %s3939_s28 }
 0x404   :  { %5811 = sst [smem:[#allocation487_spill]] %s3941_s29 }
 0x405   :  { %5812 = sst [smem:[#allocation488_spill]] %s3943_s30 }
 0x406   :  { %s3945_s9 = sld [smem:[#allocation6 + $0x991]] }
 0x407   :  { %s3947_s4 = sld [smem:[#allocation6 + $0x992]] }
 0x408   :  { %s3949_s23 = sld [smem:[#allocation6 + $0x993]] }
 0x409   :  { %s3951_s22 = sld [smem:[#allocation7]] }
 0x40a   :  { %s3953_s24 = sld [smem:[#allocation7 + $0x1]] }
 0x40b   :  { %s3955_s25 = sld [smem:[#allocation7 + $0x2]] }
 0x40c   :  { %5813 = sst [smem:[#allocation489_spill]] %s3945_s9 }
 0x40d   :  { %5814 = sst [smem:[#allocation490_spill]] %s3947_s4 }
 0x40e   :  { %5815 = sst [smem:[#allocation491_spill]] %s3949_s23 }
 0x40f   :  { %5816 = sst [smem:[#allocation492_spill]] %s3951_s22 }
 0x410   :  { %5817 = sst [smem:[#allocation493_spill]] %s3953_s24 }
 0x411   :  { %5818 = sst [smem:[#allocation494_spill]] %s3955_s25 }
 0x412   :  { %s3957_s26 = sld [smem:[#allocation7 + $0x3]] }
 0x413   :  { %s3959_s27 = sld [smem:[#allocation7 + $0x4]] }
 0x414   :  { %s3961_s28 = sld [smem:[#allocation7 + $0x5]] }
 0x415   :  { %s3963_s29 = sld [smem:[#allocation7 + $0x6]] }
 0x416   :  { %s3965_s30 = sld [smem:[#allocation7 + $0x7]] }
 0x417   :  { %s3967_s9 = sld [smem:[#allocation7 + $0x8]] }
 0x418   :  { %5819 = sst [smem:[#allocation495_spill]] %s3957_s26 }
 0x419   :  { %5820 = sst [smem:[#allocation496_spill]] %s3959_s27 }
 0x41a   :  { %5821 = sst [smem:[#allocation497_spill]] %s3961_s28 }
 0x41b   :  { %5822 = sst [smem:[#allocation498_spill]] %s3963_s29 }
 0x41c   :  { %5823 = sst [smem:[#allocation499_spill]] %s3965_s30 }
 0x41d   :  { %5824 = sst [smem:[#allocation500_spill]] %s3967_s9 }
 0x41e   :  { %s3969_s4 = sld [smem:[#allocation7 + $0x9]] }
 0x41f   :  { %s3971_s23 = sld [smem:[#allocation7 + $0xa]] }
 0x420   :  { %s3973_s22 = sld [smem:[#allocation7 + $0xb]] }
 0x421   :  { %s3975_s24 = sld [smem:[#allocation7 + $0xc]] }
 0x422   :  { %s3977_s25 = sld [smem:[#allocation7 + $0xd]] }
 0x423   :  { %s3979_s26 = sld [smem:[#allocation7 + $0xe]] }
 0x424   :  { %5825 = sst [smem:[#allocation501_spill]] %s3969_s4 }
 0x425   :  { %5826 = sst [smem:[#allocation502_spill]] %s3971_s23 }
 0x426   :  { %5827 = sst [smem:[#allocation503_spill]] %s3973_s22 }
 0x427   :  { %5828 = sst [smem:[#allocation504_spill]] %s3975_s24 }
 0x428   :  { %5829 = sst [smem:[#allocation505_spill]] %s3977_s25 }
 0x429   :  { %5830 = sst [smem:[#allocation506_spill]] %s3979_s26 }
 0x42a   :  { %s3981_s27 = sld [smem:[#allocation7 + $0xf]] }
 0x42b   :  { %s3983_s28 = sld [smem:[#allocation7 + $0x10]] }
 0x42c   :  { %s3985_s29 = sld [smem:[#allocation7 + $0x11]] }
 0x42d   :  { %s3987_s30 = sld [smem:[#allocation7 + $0x12]] }
 0x42e   :  { %s3989_s9 = sld [smem:[#allocation7 + $0x13]] }
 0x42f   :  { %s3991_s4 = sld [smem:[#allocation9]] }
 0x430   :  { %5831 = sst [smem:[#allocation507_spill]] %s3981_s27 }
 0x431   :  { %5832 = sst [smem:[#allocation508_spill]] %s3983_s28 }
 0x432   :  { %5833 = sst [smem:[#allocation509_spill]] %s3985_s29 }
 0x433   :  { %5834 = sst [smem:[#allocation510_spill]] %s3987_s30 }
 0x434   :  { %5835 = sst [smem:[#allocation511_spill]] %s3989_s9 }
 0x435   :  { %5836 = sst [smem:[#allocation512_spill]] %s3991_s4 }
 0x436   :  { %s3993_s23 = sld [smem:[#allocation9 + $0x1]] }
 0x437   :  { %s3995_s22 = sld [smem:[#allocation9 + $0x2]] }
 0x438   :  { %s3997_s24 = sld [smem:[#allocation9 + $0x3]] }
 0x439   :  { %s3999_s25 = sld [smem:[#allocation9 + $0x4]] }
 0x43a   :  { %s4001_s26 = sld [smem:[#allocation9 + $0x5]] }
 0x43b   :  { %s4003_s27 = sld [smem:[#allocation9 + $0x6]] }
 0x43c   :  { %5837 = sst [smem:[#allocation513_spill]] %s3993_s23 }
 0x43d   :  { %5838 = sst [smem:[#allocation514_spill]] %s3995_s22 }
 0x43e   :  { %5839 = sst [smem:[#allocation515_spill]] %s3997_s24 }
 0x43f   :  { %5840 = sst [smem:[#allocation516_spill]] %s3999_s25 }
 0x440   :  { %5841 = sst [smem:[#allocation517_spill]] %s4001_s26 }
 0x441   :  { %5842 = sst [smem:[#allocation518_spill]] %s4003_s27 }
 0x442   :  { %s4005_s28 = sld [smem:[#allocation9 + $0x7]] }
 0x443   :  { %s4007_s29 = sld [smem:[#allocation9 + $0x8]] }
 0x444   :  { %s4009_s30 = sld [smem:[#allocation9 + $0x9]] }
 0x445   :  { %s4011_s9 = sld [smem:[#allocation9 + $0xa]] }
 0x446   :  { %s4013_s4 = sld [smem:[#allocation9 + $0xb]] }
 0x447   :  { %s4015_s23 = sld [smem:[#allocation9 + $0xc]] }
 0x448   :  { %5843 = sst [smem:[#allocation519_spill]] %s4005_s28 }
 0x449   :  { %5844 = sst [smem:[#allocation520_spill]] %s4007_s29 }
 0x44a   :  { %5845 = sst [smem:[#allocation521_spill]] %s4009_s30 }
 0x44b   :  { %5846 = sst [smem:[#allocation522_spill]] %s4011_s9 }
 0x44c   :  { %5847 = sst [smem:[#allocation523_spill]] %s4013_s4 }
 0x44d   :  { %5848 = sst [smem:[#allocation524_spill]] %s4015_s23 }
 0x44e   :  { %s4017_s22 = sld [smem:[#allocation9 + $0xd]] }
 0x44f   :  { %s4019_s24 = sld [smem:[#allocation9 + $0xe]] }
 0x450   :  { %s4021_s25 = sld [smem:[#allocation9 + $0xf]] }
 0x451   :  { %s4023_s26 = sld [smem:[#allocation9 + $0x10]] }
 0x452   :  { %s4025_s27 = sld [smem:[#allocation9 + $0x11]] }
 0x453   :  { %s4027_s28 = sld [smem:[#allocation9 + $0x12]] }
 0x454   :  { %5849 = sst [smem:[#allocation525_spill]] %s4017_s22 }
 0x455   :  { %5850 = sst [smem:[#allocation526_spill]] %s4019_s24 }
 0x456   :  { %5851 = sst [smem:[#allocation527_spill]] %s4021_s25 }
 0x457   :  { %5852 = sst [smem:[#allocation528_spill]] %s4023_s26 }
 0x458   :  { %5853 = sst [smem:[#allocation529_spill]] %s4025_s27 }
 0x459   :  { %5854 = sst [smem:[#allocation530_spill]] %s4027_s28 }
 0x45a   :  { %s4029_s29 = sld [smem:[#allocation9 + $0x13]] }
 0x45b   :  { %s4031_s30 = sld [smem:[#allocation9 + $0x80]] }
 0x45c   :  { %s4033_s9 = sld [smem:[#allocation9 + $0x81]] }
 0x45d   :  { %s4035_s4 = sld [smem:[#allocation9 + $0x82]] }
 0x45e   :  { %s4037_s23 = sld [smem:[#allocation9 + $0x83]] }
 0x45f   :  { %s4039_s22 = sld [smem:[#allocation9 + $0x84]] }
 0x460   :  { %5855 = sst [smem:[#allocation531_spill]] %s4029_s29 }
 0x461   :  { %5856 = sst [smem:[#allocation532_spill]] %s4031_s30 }
 0x462   :  { %5857 = sst [smem:[#allocation533_spill]] %s4033_s9 }
 0x463   :  { %5858 = sst [smem:[#allocation534_spill]] %s4035_s4 }
 0x464   :  { %5859 = sst [smem:[#allocation535_spill]] %s4037_s23 }
 0x465   :  { %5860 = sst [smem:[#allocation536_spill]] %s4039_s22 }
 0x466   :  { %s4041_s24 = sld [smem:[#allocation9 + $0x85]] }
 0x467   :  { %s4043_s25 = sld [smem:[#allocation9 + $0x86]] }
 0x468   :  { %s4045_s26 = sld [smem:[#allocation9 + $0x87]] }
 0x469   :  { %s4047_s27 = sld [smem:[#allocation9 + $0x88]] }
 0x46a   :  { %s4049_s28 = sld [smem:[#allocation9 + $0x89]] }
 0x46b   :  { %s4051_s29 = sld [smem:[#allocation9 + $0x8a]] }
 0x46c   :  { %5861 = sst [smem:[#allocation537_spill]] %s4041_s24 }
 0x46d   :  { %5862 = sst [smem:[#allocation538_spill]] %s4043_s25 }
 0x46e   :  { %5863 = sst [smem:[#allocation539_spill]] %s4045_s26 }
 0x46f   :  { %5864 = sst [smem:[#allocation540_spill]] %s4047_s27 }
 0x470   :  { %5865 = sst [smem:[#allocation541_spill]] %s4049_s28 }
 0x471   :  { %5866 = sst [smem:[#allocation542_spill]] %s4051_s29 }
 0x472   :  { %s4053_s30 = sld [smem:[#allocation9 + $0x8b]] }
 0x473   :  { %s4055_s9 = sld [smem:[#allocation9 + $0x8c]] }
 0x474   :  { %s4057_s4 = sld [smem:[#allocation9 + $0x8d]] }
 0x475   :  { %s4059_s23 = sld [smem:[#allocation9 + $0x8e]] }
 0x476   :  { %s4061_s22 = sld [smem:[#allocation9 + $0x8f]] }
 0x477   :  { %s4063_s24 = sld [smem:[#allocation9 + $0x90]] }
 0x478   :  { %5867 = sst [smem:[#allocation543_spill]] %s4053_s30  ;;  %s4075_s30 = smov 0  }
 0x479   :  { %5868 = sst [smem:[#allocation544_spill]] %s4055_s9 }
 0x47a   :  { %5869 = sst [smem:[#allocation545_spill]] %s4057_s4 }
 0x47b   :  { %s4065_s25 = sld [smem:[#allocation9 + $0x91]] }
 0x47c   :  { %s4067_s26 = sld [smem:[#allocation9 + $0x92]] }
 0x47d   :  { %5870 = sst [smem:[#allocation546_spill]] %s4063_s24 }
 0x47e   :  { %s4069_s27 = sld [smem:[#allocation9 + $0x93]] }
 0x47f   :  { %s4071_s28 = sld [smem:[#allocation10]] }
 0x480   :  { %s4073_s29 = sld [smem:[#allocation10 + $0x1]] }
 0x481   :  { %5871 = sst [smem:[#allocation547_spill]] %s4065_s25 }
 0x482   :  { %5872 = sst [smem:[#allocation548_spill]] %s4067_s26 }
 0x484   :  { %5873 = sst [smem:[#allocation549_spill]] %s4069_s27 }
 0x485   :  { %5874 = sst [smem:[#allocation550_spill]] %s4071_s28 }
 0x486   :  { %5875 = sst [smem:[#allocation551_spill]] %s4073_s29 }
 0x487 LB: > { %s5876_s4 = sld [smem:[#allocation545_spill]]  ;;  %s4081_s27 = sshll.u32 %s2918_s30, 3  ;;  %v698_v24 = vstv %s3013_s18  ;;  %v704_v29 = vstv %s3015_s19  ;;  %v706_v33 = vstv %s3017_s20  ;;  %v709_v36 = vstv %s3019_s21  ;;  %s2918_s30 = sphi %s4075_s30, %s651_s30  }
 0x488   : > { %s5877_s7 = sld [smem:[#allocation16_spill]] }
 0x489   : > { %s5878_s10 = sld [smem:[#allocation17_spill]] }
 0x48a   : > { %s5879_s12 = sld [smem:[#allocation19_spill]] }
 0x48b   : > { %s5880_s13 = sld [smem:[#allocation20_spill]] }
 0x48c   : > { %s5881_s5 = sld [smem:[#allocation22_spill]] }
 0x48d   : > { %s5882_s14 = sld [smem:[#allocation23_spill]] }
 0x48e   : > { %s5883_s11 = sld [smem:[#allocation18_spill]]  ;;  %v660_v2 = vstv %s5877_s7 }
 0x48f   : > { %5884 = sst [smem:[#allocation552_spill]] %s2918_s30  ;;  %v662_v3 = vstv %s5878_s10 }
 0x490   : > { %s5885_s16 = sld [smem:[#allocation25_spill]]  ;;  %v671_v4 = vstv %s5879_s12 }
 0x491   : > { %s5886_s0 = sld [smem:[#allocation553_spill]]  ;;  %v673_v5 = vstv %s5880_s13 }
 0x492   : > { %s5887_s17 = sld [smem:[#allocation26_spill]]  ;;  %v682_v8 = vstv %s5881_s5 }
 0x493   : > { %s5888_s3 = sld [smem:[#allocation21_spill]]  ;;  %v684_v9 = vstv %s5882_s14 }
 0x494   : > { %s5889_s1 = sld [smem:[#allocation554_spill]]  ;;  %v665_v11 = vstv %s5883_s11 }
 0x495   : > { %s5890_s15 = sld [smem:[#allocation24_spill]] }
 0x496   : > { %v693_v12 = vstv %s5885_s16  ;;  %s5891_s6 = sld [smem:[#allocation72_spill]] }
 0x497   : > { %s4087_s26 = scalar_lea.vmem %s5886_s0, %s4081_s27  ;;  %s5892_s8 = sld [smem:[#allocation73_spill]] }
 0x498   : > { %v4090_v0 = vld [vmem:[%s4087_s26] sm:$0xff]  ;;  %v4093_v1 = vld [vmem:[%s4087_s26 + $0x10] sm:$0xff]  ;;  %v695_v13 = vstv %s5887_s17  ;;  %s5893_s2 = sld [smem:[#allocation74_spill]] }
 0x499   : > { %v661_v6 = vmul.f32 %v660_v2, %v4090_v0  ;;  %v663_v7 = vmul.f32 %v4093_v1, %v662_v3  ;;  %v672_v14 = vmul.f32 %v671_v4, %v4090_v0  ;;  %v674_v15 = vmul.f32 %v4093_v1, %v673_v5  ;;  %s5895_s25 = sld [smem:[#allocation76_spill]] }
 0x49a   : > { %s658_s24 = scalar_lea.vmem %s5889_s1, %s4081_s27  ;;  %v676_v16 = vstv %s5888_s3  ;;  %v683_v17 = vmul.f32 %v682_v8, %v4090_v0  ;;  %v685_v18 = vmul.f32 %v4093_v1, %v684_v9  ;;  %v694_v22 = vmul.f32 %v693_v12, %v4090_v0  ;;  %s5896_s28 = sld [smem:[#allocation27_spill]] }
 0x49b   : > { %v4107_v10 = vld [vmem:[%s658_s24] sm:$0xff]  ;;  %v687_v19 = vstv %s5890_s15  ;;  %v664_v20 = vadd.f32 %v663_v7, %v661_v6  ;;  %v696_v23 = vmul.f32 %v4093_v1, %v695_v13  ;;  %v675_v25 = vadd.f32 %v674_v15, %v672_v14  ;;  %s5894_s24 = sld [smem:[#allocation75_spill]] }
 0x49c   : > { %v666_v21 = vmul.f32 %v665_v11, %v4107_v10  ;;  %v677_v26 = vmul.f32 %v676_v16, %v4107_v10  ;;  %v686_v27 = vadd.f32 %v685_v18, %v683_v17  ;;  %v688_v28 = vmul.f32 %v687_v19, %v4107_v10  ;;  %s5897_s29 = sld [smem:[#allocation28_spill]] }
 0x49d   : > { %v697_v31 = vadd.f32 %v696_v23, %v694_v22  ;;  %v699_v32 = vmul.f32 %v698_v24, %v4107_v10  ;;  %v668_v34 = vstv %s5891_s6  ;;  %s5898_s30 = sld [smem:[#allocation30_spill]]  ;;  %v679_v37 = vstv %s5892_s8 }
 0x49e   : > { %v667_v30 = vadd.f32 %v666_v21, %v664_v20  ;;  %v678_v35 = vadd.f32 %v677_v26, %v675_v25  ;;  %s5899_s0 = sld [smem:[#allocation31_spill]]  ;;  %v689_v38 = vadd.f32 %v688_v28, %v686_v27  ;;  %v705_v39 = vmul.f32 %v704_v29, %v4090_v0 }
 0x49f   : > { %s5900_s1 = sld [smem:[#allocation33_spill]]  ;;  %v707_v40 = vmul.f32 %v4093_v1, %v706_v33  ;;  %v690_v42 = vstv %s5893_s2  ;;  %v700_v43 = vadd.f32 %v699_v32, %v697_v31  ;;  %v710_v45 = vmul.f32 %v709_v36, %v4107_v10 }
 0x4a0   : > { %s5901_s3 = sld [smem:[#allocation34_spill]]  ;;  %v669_v41 = vadd.f32 %v668_v34, %v667_v30  ;;  %v712_v46 = vstv %s5895_s25  ;;  %v715_v47 = vstv %s5896_s28  ;;  %v680_v48 = vadd.f32 %v679_v37, %v678_v35 }
 0x4a1   : > { %s5902_s5 = sld [smem:[#allocation29_spill]]  ;;  %v701_v44 = vstv %s5894_s24  ;;  %v691_v52 = vadd.f32 %v690_v42, %v689_v38  ;;  %v708_v53 = vadd.f32 %v707_v40, %v705_v39  ;;  %v716_v58 = vmul.f32 %v715_v47, %v4090_v0 }
 0x4a2   : > { %s5903_s6 = sld [smem:[#allocation32_spill]]  ;;  %v717_v49 = vstv %s5897_s29  ;;  %v4142_v56 = vmax.f32 %v669_v41, 0.0  ;;  %v4144_v57 = vadd.f32 %v701_v44, %v700_v43  ;;  %v4156_v6 = vmax.f32 %v680_v48, 0.0 }
 0x4a3   : > { %v726_v50 = vstv %s5898_s30  ;;  %s5904_s7 = sld [smem:[#allocation36_spill]]  ;;  %v718_v60 = vmul.f32 %v4093_v1, %v717_v49  ;;  %v4158_v7 = vmax.f32 %v691_v52, 0.0  ;;  %v711_v27 = vadd.f32 %v710_v45, %v708_v53 }
 0x4a4   : > { %v728_v51 = vstv %s5899_s0  ;;  %s5905_s8 = sld [smem:[#allocation37_spill]]  ;;  %v727_v61 = vmul.f32 %v726_v50, %v4090_v0 }
 0x4a5   : > { %v737_v54 = vstv %s5900_s1  ;;  %s5906_s10 = sld [smem:[#allocation35_spill]]  ;;  %v729_v62 = vmul.f32 %v4093_v1, %v728_v51  ;;  %v719_v15 = vadd.f32 %v718_v60, %v716_v58  ;;  %v713_v43 = vadd.f32 %v712_v46, %v711_v27 }
 0x4a6   : > { %v739_v55 = vstv %s5901_s3  ;;  %s5907_s2 = sld [smem:[#allocation39_spill]]  ;;  %v738_v2 = vmul.f32 %v737_v54, %v4090_v0 }
 0x4a7   : > { %s5908_s24 = sld [smem:[#allocation40_spill]]  ;;  %v720_v59 = vstv %s5902_s5  ;;  %v740_v3 = vmul.f32 %v4093_v1, %v739_v55  ;;  %v730_v19 = vadd.f32 %v729_v62, %v727_v61 }
 0x4a8   : > { %s5909_s25 = sld [smem:[#allocation42_spill]]  ;;  %v731_v63 = vstv %s5903_s6  ;;  %v721_v8 = vmul.f32 %v720_v59, %v4107_v10 }
 0x4a9   : > { %s5910_s28 = sld [smem:[#allocation43_spill]]  ;;  %v748_v4 = vstv %s5904_s7  ;;  %v732_v16 = vmul.f32 %v731_v63, %v4107_v10  ;;  %v741_v20 = vadd.f32 %v740_v3, %v738_v2  ;;  %v4197_v3 = vmax.f32 %v4144_v57, 0.0 }
 0x4aa   : > { %v750_v5 = vstv %s5905_s8  ;;  %s5911_s0 = sld [smem:[#allocation38_spill]]  ;;  %v749_v17 = vmul.f32 %v748_v4, %v4090_v0  ;;  %v722_v35 = vadd.f32 %v721_v8, %v719_v15  ;;  %v4199_v4 = vmax.f32 %v713_v43, 0.0 }
 0x4ab   : > { %v742_v9 = vstv %s5906_s10  ;;  %s5912_s1 = sld [smem:[#allocation77_spill]]  ;;  %v751_v18 = vmul.f32 %v4093_v1, %v750_v5  ;;  %v733_v36 = vadd.f32 %v732_v16, %v730_v19 }
 0x4ac   : > { %v759_v11 = vstv %s5907_s2  ;;  %s5913_s3 = sld [smem:[#allocation41_spill]]  ;;  %v743_v21 = vmul.f32 %v742_v9, %v4107_v10 }
 0x4ad   : > { %v761_v12 = vstv %s5908_s24  ;;  %s5914_s5 = sld [smem:[#allocation44_spill]]  ;;  %v760_v23 = vmul.f32 %v759_v11, %v4090_v0  ;;  %v752_v31 = vadd.f32 %v751_v18, %v749_v17 }
 0x4ae   : > { %v770_v13 = vstv %s5909_s25  ;;  %s5915_s8 = sld [smem:[#allocation45_spill]]  ;;  %v762_v24 = vmul.f32 %v4093_v1, %v761_v12  ;;  %v744_v38 = vadd.f32 %v743_v21, %v741_v20 }
 0x4af   : > { %v772_v14 = vstv %s5910_s28  ;;  %s5916_s7 = sld [smem:[#allocation46_spill]]  ;;  %v771_v25 = vmul.f32 %v770_v13, %v4090_v0 }
 0x4b0   : > { %s5917_s10 = sld [smem:[#allocation78_spill]]  ;;  %v753_v22 = vstv %s5911_s0  ;;  %v773_v26 = vmul.f32 %v4093_v1, %v772_v14  ;;  %v763_v39 = vadd.f32 %v762_v24, %v760_v23 }
 0x4b1   : > { %v723_v28 = vstv %s5912_s1  ;;  %s5918_s2 = sld [smem:[#allocation79_spill]]  ;;  %v754_v32 = vmul.f32 %v753_v22, %v4107_v10 }
 0x4b2   : > { %v764_v29 = vstv %s5913_s3  ;;  %s5919_s6 = sld [smem:[#allocation47_spill]]  ;;  %v774_v41 = vadd.f32 %v773_v26, %v771_v25  ;;  %v724_v52 = vadd.f32 %v723_v28, %v722_v35 }
 0x4b3   : > { %v775_v30 = vstv %s5914_s5  ;;  %s5920_s29 = sld [smem:[#allocation48_spill]]  ;;  %v765_v40 = vmul.f32 %v764_v29, %v4107_v10  ;;  %v755_v48 = vadd.f32 %v754_v32, %v752_v31 }
 0x4b4   : > { %v781_v33 = vstv %s5915_s8  ;;  %s5921_s30 = sld [smem:[#allocation49_spill]]  ;;  %v776_v42 = vmul.f32 %v775_v30, %v4107_v10  ;;  %v4202_v9 = vmax.f32 %v724_v52, 0.0 }
 0x4b5   : > { %v783_v34 = vstv %s5916_s7  ;;  %s5922_s24 = sld [smem:[#allocation80_spill]]  ;;  %v782_v45 = vmul.f32 %v781_v33, %v4090_v0  ;;  %v766_v59 = vadd.f32 %v765_v40, %v763_v39 }
 0x4b6   : > { %v734_v37 = vstv %s5917_s10  ;;  %s5923_s25 = sld [smem:[#allocation81_spill]]  ;;  %v784_v47 = vmul.f32 %v4093_v1, %v783_v34  ;;  %v777_v60 = vadd.f32 %v776_v42, %v774_v41 }
 0x4b7   : > { %s5924_s28 = sld [smem:[#allocation82_spill]]  ;;  %v745_v44 = vstv %s5918_s2  ;;  %v735_v53 = vadd.f32 %v734_v37, %v733_v36 }
 0x4b8   : > { %v786_v49 = vstv %s5919_s6  ;;  %s5925_s0 = sld [smem:[#allocation50_spill]]  ;;  %v746_v58 = vadd.f32 %v745_v44, %v744_v38  ;;  %v785_v61 = vadd.f32 %v784_v47, %v782_v45 }
 0x4b9   : > { %v792_v50 = vstv %s5920_s29  ;;  %s5926_s1 = sld [smem:[#allocation51_spill]]  ;;  %v787_v62 = vmul.f32 %v786_v49, %v4107_v10  ;;  %v4204_v11 = vmax.f32 %v735_v53, 0.0 }
 0x4ba   : > { %v794_v51 = vstv %s5921_s30  ;;  %s5927_s3 = sld [smem:[#allocation52_spill]]  ;;  %v793_v63 = vmul.f32 %v792_v50, %v4090_v0  ;;  %v4210_v57 = vmax.f32 %v746_v58, 0.0 }
 0x4bb   : > { %v756_v54 = vstv %s5922_s24  ;;  %s5928_s5 = sld [smem:[#allocation54_spill]]  ;;  %v795_v2 = vmul.f32 %v4093_v1, %v794_v51  ;;  %v788_v18 = vadd.f32 %v787_v62, %v785_v61 }
 0x4bc   : > { %v767_v55 = vstv %s5923_s25  ;;  %s5929_s8 = sld [smem:[#allocation55_spill]]  ;;  %v757_v5 = vadd.f32 %v756_v54, %v755_v48 }
 0x4bd   : > { %v778_v46 = vstv %s5924_s28  ;;  %s5930_s7 = sld [smem:[#allocation83_spill]]  ;;  %v768_v14 = vadd.f32 %v767_v55, %v766_v59  ;;  %v796_v19 = vadd.f32 %v795_v2, %v793_v63 }
 0x4be   : > { %v797_v8 = vstv %s5925_s0  ;;  %s5931_s10 = sld [smem:[#allocation53_spill]]  ;;  %v779_v15 = vadd.f32 %v778_v46, %v777_v60  ;;  %v4213_v21 = vmax.f32 %v757_v5, 0.0 }
 0x4bf   : > { %v803_v12 = vstv %s5926_s1  ;;  %s5932_s2 = sld [smem:[#allocation56_spill]]  ;;  %v798_v20 = vmul.f32 %v797_v8, %v4107_v10  ;;  %v4222_v29 = vmax.f32 %v768_v14, 0.0 }
 0x4c0   : > { %v805_v13 = vstv %s5927_s3  ;;  %s5933_s6 = sld [smem:[#allocation84_spill]]  ;;  %v804_v23 = vmul.f32 %v803_v12, %v4090_v0  ;;  %v4224_v30 = vmax.f32 %v779_v15, 0.0 }
 0x4c1   : > { %v814_v16 = vstv %s5928_s5  ;;  %s5934_s29 = sld [smem:[#allocation57_spill]]  ;;  %v806_v24 = vmul.f32 %v4093_v1, %v805_v13  ;;  %v799_v34 = vadd.f32 %v798_v20, %v796_v19 }
 0x4c2   : > { %v816_v17 = vstv %s5929_s8  ;;  %s5935_s30 = sld [smem:[#allocation85_spill]]  ;;  %v815_v26 = vmul.f32 %v814_v16, %v4090_v0 }
 0x4c3   : > { %s5936_s24 = sld [smem:[#allocation58_spill]]  ;;  %v789_v22 = vstv %s5930_s7  ;;  %v817_v27 = vmul.f32 %v4093_v1, %v816_v17  ;;  %v807_v37 = vadd.f32 %v806_v24, %v804_v23 }
 0x4c4   : > { %s5937_s25 = sld [smem:[#allocation86_spill]]  ;;  %v808_v25 = vstv %s5931_s10  ;;  %v790_v33 = vadd.f32 %v789_v22, %v788_v18 }
 0x4c5   : > { %s5938_s28 = sld [smem:[#allocation59_spill]]  ;;  %v819_v28 = vstv %s5932_s2  ;;  %v809_v38 = vmul.f32 %v808_v25, %v4107_v10  ;;  %v818_v41 = vadd.f32 %v817_v27, %v815_v26 }
 0x4c6   : > { %s5939_s0 = sld [smem:[#allocation92_spill]]  ;;  %v800_v31 = vstv %s5933_s6  ;;  %v820_v39 = vmul.f32 %v819_v28, %v4107_v10  ;;  %v4255_v16 = vmax.f32 %v790_v33, 0.0 }
 0x4c7   : > { %s5940_s1 = sld [smem:[#allocation60_spill]]  ;;  %v825_v32 = vstv %s5934_s29  ;;  %v810_v54 = vadd.f32 %v809_v38, %v807_v37  ;;  %v801_v17 = vadd.f32 %v800_v31, %v799_v34 }
 0x4c8   : > { %s5941_s3 = sld [smem:[#allocation93_spill]]  ;;  %v811_v35 = vstv %s5935_s30  ;;  %v826_v42 = vmul.f32 %v825_v32, %v4090_v0  ;;  %v821_v60 = vadd.f32 %v820_v39, %v818_v41 }
 0x4c9   : > { %s5942_s5 = sld [smem:[#allocation61_spill]]  ;;  %v827_v36 = vstv %s5936_s24  ;;  %v812_v18 = vadd.f32 %v811_v35, %v810_v54  ;;  %v4265_v35 = vmax.f32 %v801_v17, 0.0 }
 0x4ca   : > { %s5943_s8 = sld [smem:[#allocation94_spill]]  ;;  %v822_v40 = vstv %s5937_s25  ;;  %v828_v45 = vmul.f32 %v4093_v1, %v827_v36 }
 0x4cb   : > { %s5944_s7 = sld [smem:[#allocation95_spill]]  ;;  %v830_v43 = vstv %s5938_s28  ;;  %v823_v20 = vadd.f32 %v822_v40, %v821_v60  ;;  %v4267_v36 = vmax.f32 %v812_v18, 0.0 }
 0x4cc   : > { %s5945_s10 = sld [smem:[#allocation96_spill]]  ;;  %v880_v44 = vstv %s5939_s0  ;;  %v831_v55 = vmul.f32 %v830_v43, %v4107_v10  ;;  %v829_v63 = vadd.f32 %v828_v45, %v826_v42 }
 0x4cd   : > { %v836_v47 = vstv %s5940_s1  ;;  %v881_v48 = vmul.f32 %v880_v44, %v4142_v56  ;;  %s5946_s2 = sld [smem:[#allocation62_spill]]  ;;  %v4271_v39 = vmax.f32 %v823_v20, 0.0 }
 0x4ce   : > { %v882_v49 = vstv %s5941_s3  ;;  %s5947_s6 = sld [smem:[#allocation97_spill]]  ;;  %v837_v46 = vmul.f32 %v836_v47, %v4090_v0  ;;  %v832_v25 = vadd.f32 %v831_v55, %v829_v63 }
 0x4cf   : > { %v838_v50 = vstv %s5942_s5  ;;  %s5948_s29 = sld [smem:[#allocation63_spill]]  ;;  %v883_v51 = vmul.f32 %v882_v49, %v4156_v6 }
 0x4d0   : > { %s5949_s30 = sld [smem:[#allocation64_spill]]  ;;  %v885_v52 = vstv %s5943_s8  ;;  %v839_v2 = vmul.f32 %v4093_v1, %v838_v50 }
 0x4d1   : > { %v888_v53 = vstv %s5944_s7  ;;  %v886_v58 = vmul.f32 %v885_v52, %v4158_v7  ;;  %s5950_s24 = sld [smem:[#allocation98_spill]]  ;;  %v884_v61 = vadd.f32 %v883_v51, %v881_v48 }
 0x4d2   : > { %v891_v59 = vstv %s5945_s10  ;;  %v889_v62 = vmul.f32 %v888_v53, %v4197_v3  ;;  %s5951_s25 = sld [smem:[#allocation87_spill]]  ;;  %v840_v26 = vadd.f32 %v839_v2, %v837_v46 }
 0x4d3   : > { %v841_v5 = vstv %s5946_s2  ;;  %s5952_s28 = sld [smem:[#allocation65_spill]]  ;;  %v887_v14 = vadd.f32 %v886_v58, %v884_v61  ;;  %v892_v15 = vmul.f32 %v891_v59, %v4199_v4 }
 0x4d4   : > { %v894_v8 = vstv %s5947_s6  ;;  %s5953_s0 = sld [smem:[#allocation66_spill]]  ;;  %v842_v22 = vmul.f32 %v841_v5, %v4107_v10 }
 0x4d5   : > { %v847_v12 = vstv %s5948_s29  ;;  %s5954_s1 = sld [smem:[#allocation99_spill]]  ;;  %v890_v23 = vadd.f32 %v889_v62, %v887_v14  ;;  %v895_v24 = vmul.f32 %v894_v8, %v4202_v9 }
 0x4d6   : > { %v849_v13 = vstv %s5949_s30  ;;  %s5955_s3 = sld [smem:[#allocation88_spill]]  ;;  %v848_v27 = vmul.f32 %v847_v12, %v4090_v0  ;;  %v843_v44 = vadd.f32 %v842_v22, %v840_v26 }
 0x4d7   : > { %v897_v19 = vstv %s5950_s24  ;;  %s5956_s5 = sld [smem:[#allocation89_spill]]  ;;  %v850_v28 = vmul.f32 %v4093_v1, %v849_v13  ;;  %v893_v33 = vadd.f32 %v892_v15, %v890_v23 }
 0x4d8   : > { %v833_v32 = vstv %s5951_s25  ;;  %v898_v34 = vmul.f32 %v897_v19, %v4204_v11  ;;  %s5957_s8 = sld [smem:[#allocation100_spill]] }
 0x4d9   : > { %v852_v31 = vstv %s5952_s28  ;;  %s5958_s7 = sld [smem:[#allocation112_spill]]  ;;  %v896_v42 = vadd.f32 %v895_v24, %v893_v33  ;;  %v834_v43 = vadd.f32 %v833_v32, %v832_v25  ;;  %v851_v45 = vadd.f32 %v850_v28, %v848_v27 }
 0x4da   : > { %s5959_s10 = sld [smem:[#allocation113_spill]]  ;;  %v858_v37 = vstv %s5953_s0  ;;  %v853_v47 = vmul.f32 %v852_v31, %v4107_v10 }
 0x4db   : > { %s5960_s2 = sld [smem:[#allocation114_spill]]  ;;  %v900_v38 = vstv %s5954_s1  ;;  %v859_v48 = vmul.f32 %v858_v37, %v4090_v0  ;;  %v899_v49 = vadd.f32 %v898_v34, %v896_v42  ;;  %v4287_v61 = vmax.f32 %v834_v43, 0.0 }
 0x4dc   : > { %s5961_s6 = sld [smem:[#allocation115_spill]]  ;;  %v844_v40 = vstv %s5955_s3  ;;  %v901_v50 = vmul.f32 %v900_v38, %v4210_v57  ;;  %v854_v15 = vadd.f32 %v853_v47, %v851_v45 }
 0x4dd   : > { %s5962_s29 = sld [smem:[#allocation67_spill]]  ;;  %v855_v41 = vstv %s5956_s5  ;;  %v845_v14 = vadd.f32 %v844_v40, %v843_v44 }
 0x4de   : > { %s5963_s30 = sld [smem:[#allocation68_spill]]  ;;  %v903_v51 = vstv %s5957_s8  ;;  %v902_v5 = vadd.f32 %v901_v50, %v899_v49  ;;  %v4307_v37 = vadd.f32 %v855_v41, %v854_v15 }
 0x4df   : > { %s5964_s24 = sld [smem:[#allocation90_spill]]  ;;  %v946_v52 = vstv %s5958_s7  ;;  %v904_v8 = vmul.f32 %v903_v51, %v4213_v21  ;;  %v4305_v34 = vmax.f32 %v845_v14, 0.0 }
 0x4e0   : > { %s5965_s25 = sld [smem:[#allocation116_spill]]  ;;  %v948_v53 = vstv %s5959_s10  ;;  %v947_v59 = vmul.f32 %v946_v52, %v4142_v56 }
 0x4e1   : > { %v951_v54 = vstv %s5960_s2  ;;  %s5966_s28 = sld [smem:[#allocation101_spill]]  ;;  %v949_v60 = vmul.f32 %v948_v53, %v4156_v6  ;;  %v905_v28 = vadd.f32 %v904_v8, %v902_v5 }
 0x4e2   : > { %v954_v55 = vstv %s5961_s6  ;;  %s5967_s0 = sld [smem:[#allocation117_spill]]  ;;  %v952_v46 = vmul.f32 %v951_v54, %v4158_v7 }
 0x4e3   : > { %v860_v58 = vstv %s5962_s29  ;;  %s5968_s1 = sld [smem:[#allocation69_spill]]  ;;  %v950_v12 = vadd.f32 %v949_v60, %v947_v59  ;;  %v955_v13 = vmul.f32 %v954_v55, %v4197_v3 }
 0x4e4   : > { %v863_v62 = vstv %s5963_s30  ;;  %s5969_s3 = sld [smem:[#allocation70_spill]]  ;;  %v861_v19 = vmul.f32 %v4093_v1, %v860_v58 }
 0x4e5   : > { %v866_v63 = vstv %s5964_s24  ;;  %s5970_s5 = sld [smem:[#allocation71_spill]]  ;;  %v864_v20 = vmul.f32 %v863_v62, %v4107_v10  ;;  %v953_v22 = vadd.f32 %v952_v46, %v950_v12 }
 0x4e6   : > { %v957_v2 = vstv %s5965_s25  ;;  %s5971_s8 = sld [smem:[#allocation118_spill]]  ;;  %v862_v47 = vadd.f32 %v861_v19, %v859_v48 }
 0x4e7   : > { %v906_v17 = vstv %s5966_s28  ;;  %s5972_s7 = sld [smem:[#allocation102_spill]]  ;;  %v958_v23 = vmul.f32 %v957_v2, %v4199_v4  ;;  %v956_v31 = vadd.f32 %v955_v13, %v953_v22 }
 0x4e8   : > { %v960_v18 = vstv %s5967_s0  ;;  %s5973_s10 = sld [smem:[#allocation119_spill]]  ;;  %v907_v32 = vmul.f32 %v906_v17, %v4222_v29  ;;  %v865_v15 = vadd.f32 %v864_v20, %v862_v47 }
 0x4e9   : > { %s5974_s2 = sld [smem:[#allocation103_spill]]  ;;  %v869_v24 = vstv %s5968_s1  ;;  %v961_v33 = vmul.f32 %v960_v18, %v4202_v9  ;;  %v959_v43 = vadd.f32 %v958_v23, %v956_v31 }
 0x4ea   : > { %s5975_s6 = sld [smem:[#allocation120_spill]]  ;;  %v871_v25 = vstv %s5969_s3  ;;  %v870_v49 = vmul.f32 %v869_v24, %v4090_v0  ;;  %v908_v51 = vadd.f32 %v907_v32, %v905_v28 }
 0x4eb   : > { %v874_v26 = vstv %s5970_s5  ;;  %s5976_s29 = sld [smem:[#allocation121_spill]]  ;;  %v872_v50 = vmul.f32 %v4093_v1, %v871_v25  ;;  %v962_v53 = vadd.f32 %v961_v33, %v959_v43 }
 0x4ec   : > { %v963_v27 = vstv %s5971_s8  ;;  %s5977_s30 = sld [smem:[#allocation104_spill]]  ;;  %v875_v55 = vmul.f32 %v874_v26, %v4107_v10 }
 0x4ed   : > { %v909_v38 = vstv %s5972_s7  ;;  %v964_v44 = vmul.f32 %v963_v27, %v4204_v11  ;;  %s5978_s25 = sld [smem:[#allocation122_spill]] }
 0x4ee   : > { %v966_v40 = vstv %s5973_s10  ;;  %s5979_s28 = sld [smem:[#allocation123_spill]]  ;;  %v910_v52 = vmul.f32 %v909_v38, %v4224_v30 }
 0x4ef   : > { %v912_v42 = vstv %s5974_s2  ;;  %s5980_s0 = sld [smem:[#allocation132_spill]]  ;;  %v967_v54 = vmul.f32 %v966_v40, %v4210_v57  ;;  %v965_v59 = vadd.f32 %v964_v44, %v962_v53  ;;  %v867_v40 = vadd.f32 %v866_v63, %v865_v15 }
 0x4f0   : > { %v969_v45 = vstv %s5975_s6  ;;  %s5981_s1 = sld [smem:[#allocation133_spill]]  ;;  %v913_v58 = vmul.f32 %v912_v42, %v4255_v16  ;;  %v911_v12 = vadd.f32 %v910_v52, %v908_v51  ;;  %v873_v42 = vadd.f32 %v872_v50, %v870_v49 }
 0x4f1   : > { %s5982_s3 = sld [smem:[#allocation134_spill]]  ;;  %v972_v41 = vstv %s5976_s29  ;;  %v970_v0 = vmul.f32 %v969_v45, %v4213_v21  ;;  %v968_v10 = vadd.f32 %v967_v54, %v965_v59  ;;  %v4356_v59 = vmax.f32 %v867_v40, 0.0 }
 0x4f2   : > { %s5983_s5 = sld [smem:[#allocation135_spill]]  ;;  %v915_v48 = vstv %s5977_s30  ;;  %v973_v1 = vmul.f32 %v972_v41, %v4222_v29  ;;  %v914_v32 = vadd.f32 %v913_v58, %v911_v12 }
 0x4f3   : > { %s5984_s8 = sld [smem:[#allocation105_spill]]  ;;  %v975_v60 = vstv %s5978_s25  ;;  %v971_v22 = vadd.f32 %v970_v0, %v968_v10  ;;  %v916_v26 = vmul.f32 %v915_v48, %v4265_v35  ;;  %v4354_v0 = vmax.f32 %v4307_v37, 0.0 }
 0x4f4   : > { %s5985_s7 = sld [smem:[#allocation136_spill]]  ;;  %v978_v46 = vstv %s5979_s28  ;;  %v976_v23 = vmul.f32 %v975_v60, %v4224_v30 }
 0x4f5   : > { %v1014_v62 = vstv %s5980_s0  ;;  %s5986_s10 = sld [smem:[#allocation124_spill]]  ;;  %v979_v27 = vmul.f32 %v978_v46, %v4255_v16  ;;  %v974_v31 = vadd.f32 %v973_v1, %v971_v22  ;;  %v917_v63 = vadd.f32 %v916_v26, %v914_v32 }
 0x4f6   : > { %v1016_v2 = vstv %s5981_s1  ;;  %s5987_s2 = sld [smem:[#allocation137_spill]]  ;;  %v1015_v13 = vmul.f32 %v1014_v62, %v4142_v56  ;;  %v876_v1 = vadd.f32 %v875_v55, %v873_v42 }
 0x4f7   : > { %v1019_v5 = vstv %s5982_s3  ;;  %v1017_v14 = vmul.f32 %v1016_v2, %v4156_v6  ;;  %s5988_s6 = sld [smem:[#allocation91_spill]]  ;;  %v977_v47 = vadd.f32 %v976_v23, %v974_v31 }
 0x4f8   : > { %v1022_v8 = vstv %s5983_s5  ;;  %v1020_v18 = vmul.f32 %v1019_v5, %v4158_v7  ;;  %s5989_s29 = sld [smem:[#allocation138_spill]] }
 0x4f9   : > { %v918_v17 = vstv %s5984_s8  ;;  %v1018_v24 = vadd.f32 %v1017_v14, %v1015_v13  ;;  %v1023_v25 = vmul.f32 %v1022_v8, %v4197_v3  ;;  %s5990_s30 = sld [smem:[#allocation106_spill]]  ;;  %v980_v49 = vadd.f32 %v979_v27, %v977_v47 }
 0x4fa   : > { %v1025_v19 = vstv %s5985_s7  ;;  %s5991_s25 = sld [smem:[#allocation125_spill]]  ;;  %v919_v45 = vmul.f32 %v918_v17, %v4267_v36 }
 0x4fb   : > { %v981_v28 = vstv %s5986_s10  ;;  %s5992_s28 = sld [smem:[#allocation139_spill]]  ;;  %v1021_v33 = vadd.f32 %v1020_v18, %v1018_v24  ;;  %v1026_v38 = vmul.f32 %v1025_v19, %v4199_v4 }
 0x4fc   : > { %v1028_v20 = vstv %s5987_s2  ;;  %s5993_s0 = sld [smem:[#allocation140_spill]]  ;;  %v982_v53 = vmul.f32 %v981_v28, %v4265_v35  ;;  %v920_v13 = vadd.f32 %v919_v45, %v917_v63 }
 0x4fd   : > { %v877_v43 = vstv %s5988_s6  ;;  %s5994_s1 = sld [smem:[#allocation107_spill]]  ;;  %v1024_v41 = vadd.f32 %v1023_v25, %v1021_v33  ;;  %v1029_v51 = vmul.f32 %v1028_v20, %v4202_v9 }
 0x4fe   : > { %v1031_v44 = vstv %s5989_s29  ;;  %s5995_s3 = sld [smem:[#allocation108_spill]]  ;;  %v983_v55 = vadd.f32 %v982_v53, %v980_v49  ;;  %v878_v17 = vadd.f32 %v877_v43, %v876_v1 }
 0x4ff   : > { %v921_v52 = vstv %s5990_s30  ;;  %s5996_s5 = sld [smem:[#allocation126_spill]]  ;;  %v1027_v50 = vadd.f32 %v1026_v38, %v1024_v41  ;;  %v1032_v48 = vmul.f32 %v1031_v44, %v4204_v11 }
 0x500   : > { %v984_v54 = vstv %s5991_s25  ;;  %s5997_s8 = sld [smem:[#allocation141_spill]]  ;;  %v922_v46 = vmul.f32 %v921_v52, %v4271_v39 }
 0x501   : > { %v1034_v58 = vstv %s5992_s28  ;;  %s5998_s7 = sld [smem:[#allocation109_spill]]  ;;  %v1030_v2 = vadd.f32 %v1029_v51, %v1027_v50  ;;  %v985_v12 = vmul.f32 %v984_v54, %v4267_v36 }
 0x502   : > { %v1037_v60 = vstv %s5993_s0  ;;  %s5999_s10 = sld [smem:[#allocation142_spill]]  ;;  %v1035_v5 = vmul.f32 %v1034_v58, %v4210_v57  ;;  %v923_v31 = vadd.f32 %v922_v46, %v920_v13 }
 0x503   : > { %v924_v62 = vstv %s5994_s1  ;;  %s6000_s2 = sld [smem:[#allocation127_spill]]  ;;  %v1033_v14 = vadd.f32 %v1032_v48, %v1030_v2  ;;  %v1038_v15 = vmul.f32 %v1037_v60, %v4213_v21  ;;  %v986_v33 = vadd.f32 %v985_v12, %v983_v55 }
 0x504   : > { %v927_v8 = vstv %s5995_s3  ;;  %s6001_s6 = sld [smem:[#allocation143_spill]]  ;;  %v925_v18 = vmul.f32 %v924_v62, %v4287_v61  ;;  %v4389_v60 = vmax.f32 %v878_v17, 0.0 }
 0x505   : > { %v987_v10 = vstv %s5996_s5  ;;  %s6002_s29 = sld [smem:[#allocation152_spill]]  ;;  %v928_v23 = vmul.f32 %v927_v8, %v4305_v34  ;;  %v1036_v25 = vadd.f32 %v1035_v5, %v1033_v14 }
 0x506   : > { %v1040_v37 = vstv %s5997_s8  ;;  %s6003_s30 = sld [smem:[#allocation153_spill]]  ;;  %v988_v27 = vmul.f32 %v987_v10, %v4271_v39  ;;  %v926_v49 = vadd.f32 %v925_v18, %v923_v31 }
 0x507   : > { %v930_v19 = vstv %s5998_s7  ;;  %s6004_s25 = sld [smem:[#allocation154_spill]]  ;;  %v1041_v26 = vmul.f32 %v1040_v37, %v4222_v29  ;;  %v1039_v38 = vadd.f32 %v1038_v15, %v1036_v25 }
 0x508   : > { %v1043_v22 = vstv %s5999_s10  ;;  %s6005_s28 = sld [smem:[#allocation155_spill]]  ;;  %v989_v50 = vadd.f32 %v988_v27, %v986_v33  ;;  %v931_v5 = vmul.f32 %v930_v19, %v4354_v0  ;;  %v929_v15 = vadd.f32 %v928_v23, %v926_v49 }
 0x509   : > { %v990_v24 = vstv %s6000_s2  ;;  %s6006_s0 = sld [smem:[#allocation144_spill]]  ;;  %v1044_v40 = vmul.f32 %v1043_v22, %v4224_v30  ;;  %v1042_v41 = vadd.f32 %v1041_v26, %v1039_v38 }
 0x50a   : > { %v1046_v28 = vstv %s6001_s6  ;;  %s6007_s1 = sld [smem:[#allocation156_spill]]  ;;  %v991_v47 = vmul.f32 %v990_v24, %v4287_v61 }
 0x50b   : > { %v1082_v20 = vstv %s6002_s29  ;;  %s6008_s3 = sld [smem:[#allocation157_spill]]  ;;  %v1047_v51 = vmul.f32 %v1046_v28, %v4255_v16  ;;  %v1045_v48 = vadd.f32 %v1044_v40, %v1042_v41  ;;  %v932_v40 = vadd.f32 %v931_v5, %v929_v15 }
 0x50c   : > { %v1084_v32 = vstv %s6003_s30  ;;  %v1083_v42 = vmul.f32 %v1082_v20, %v4142_v56  ;;  %s6009_s5 = sld [smem:[#allocation128_spill]]  ;;  %v992_v17 = vadd.f32 %v991_v47, %v989_v50 }
 0x50d   : > { %v1085_v43 = vmul.f32 %v1084_v32, %v4156_v6  ;;  %v1087_v44 = vstv %s6004_s25  ;;  %s6010_s8 = sld [smem:[#allocation158_spill]]  ;;  %v1048_v8 = vadd.f32 %v1047_v51, %v1045_v48 }
 0x50e   : > { %v1090_v45 = vstv %s6005_s28  ;;  %v1088_v52 = vmul.f32 %v1087_v44, %v4158_v7  ;;  %s6011_s7 = sld [smem:[#allocation110_spill]] }
 0x50f   : > { %v1049_v53 = vstv %s6006_s0  ;;  %v1086_v54 = vadd.f32 %v1085_v43, %v1083_v42  ;;  %s6012_s10 = sld [smem:[#allocation145_spill]]  ;;  %v1091_v58 = vmul.f32 %v1090_v45, %v4197_v3 }
 0x510   : > { %v1093_v63 = vstv %s6007_s1  ;;  %s6013_s2 = sld [smem:[#allocation159_spill]]  ;;  %v1050_v12 = vmul.f32 %v1049_v53, %v4265_v35 }
 0x511   : > { %v1096_v1 = vstv %s6008_s3  ;;  %s6014_s6 = sld [smem:[#allocation111_spill]]  ;;  %v1089_v62 = vadd.f32 %v1088_v52, %v1086_v54  ;;  %v1094_v2 = vmul.f32 %v1093_v63, %v4199_v4 }
 0x512   : > { %v993_v46 = vstv %s6009_s5  ;;  %s6015_s29 = sld [smem:[#allocation129_spill]]  ;;  %v1097_v14 = vmul.f32 %v1096_v1, %v4202_v9  ;;  %v1051_v28 = vadd.f32 %v1050_v12, %v1048_v8 }
 0x513   : > { %v1099_v10 = vstv %s6010_s8  ;;  %s6016_s30 = sld [smem:[#allocation160_spill]]  ;;  %v1092_v55 = vadd.f32 %v1091_v58, %v1089_v62  ;;  %v994_v18 = vmul.f32 %v993_v46, %v4305_v34 }
 0x514   : > { %v933_v37 = vstv %s6011_s7  ;;  %s6017_s25 = sld [smem:[#allocation130_spill]]  ;;  %v1100_v26 = vmul.f32 %v1099_v10, %v4204_v11 }
 0x515   : > { %v1052_v13 = vstv %s6012_s10  ;;  %s6018_s28 = sld [smem:[#allocation146_spill]]  ;;  %v1095_v25 = vadd.f32 %v1094_v2, %v1092_v55  ;;  %v934_v27 = vmul.f32 %v933_v37, %v4356_v59  ;;  %v995_v42 = vadd.f32 %v994_v18, %v992_v17 }
 0x516   : > { %v1102_v22 = vstv %s6013_s2  ;;  %s6019_s0 = sld [smem:[#allocation161_spill]]  ;;  %v1053_v20 = vmul.f32 %v1052_v13, %v4267_v36 }
 0x517   : > { %v936_v24 = vstv %s6014_s6  ;;  %s6020_s1 = sld [smem:[#allocation147_spill]]  ;;  %v1098_v33 = vadd.f32 %v1097_v14, %v1095_v25  ;;  %v1103_v38 = vmul.f32 %v1102_v22, %v4210_v57  ;;  %v935_v48 = vadd.f32 %v934_v27, %v932_v40 }
 0x518   : > { %v996_v19 = vstv %s6015_s29  ;;  %s6021_s3 = sld [smem:[#allocation162_spill]]  ;;  %v937_v51 = vmul.f32 %v936_v24, %v4389_v60  ;;  %v1054_v52 = vadd.f32 %v1053_v20, %v1051_v28 }
 0x519   : > { %v1105_v32 = vstv %s6016_s30  ;;  %s6022_s5 = sld [smem:[#allocation131_spill]]  ;;  %v997_v43 = vmul.f32 %v996_v19, %v4354_v0  ;;  %v1101_v47 = vadd.f32 %v1100_v26, %v1098_v33 }
 0x51a   : > { %v999_v31 = vstv %s6017_s25  ;;  %s6023_s8 = sld [smem:[#allocation148_spill]]  ;;  %v1106_v41 = vmul.f32 %v1105_v32, %v4213_v21  ;;  %v938_v22 = vadd.f32 %v937_v51, %v935_v48 }
 0x51b   : > { %v1055_v23 = vstv %s6018_s28  ;;  %s6024_s7 = sld [smem:[#allocation163_spill]]  ;;  %v1000_v58 = vmul.f32 %v999_v31, %v4356_v59  ;;  %v1104_v49 = vadd.f32 %v1103_v38, %v1101_v47  ;;  %v998_v1 = vadd.f32 %v997_v43, %v995_v42 }
 0x51c   : > { %v1108_v44 = vstv %s6019_s0  ;;  %s6025_s10 = sld [smem:[#allocation172_spill]]  ;;  %v1056_v53 = vmul.f32 %v1055_v23, %v4271_v39 }
 0x51d   : > { %v1058_v45 = vstv %s6020_s1  ;;  %s6026_s2 = sld [smem:[#allocation173_spill]]  ;;  %v1109_v50 = vmul.f32 %v1108_v44, %v4222_v29  ;;  %v1107_v2 = vadd.f32 %v1106_v41, %v1104_v49  ;;  %v1001_v26 = vadd.f32 %v1000_v58, %v998_v1 }
 0x51e   : > { %v1111_v54 = vstv %s6021_s3  ;;  %s6027_s6 = sld [smem:[#allocation174_spill]]  ;;  %v1059_v46 = vmul.f32 %v1058_v45, %v4287_v61  ;;  %v1057_v10 = vadd.f32 %v1056_v53, %v1054_v52 }
 0x51f   : > { %v1002_v63 = vstv %s6022_s5  ;;  %s6028_s29 = sld [smem:[#allocation175_spill]]  ;;  %v1112_v5 = vmul.f32 %v1111_v54, %v4224_v30  ;;  %v1110_v14 = vadd.f32 %v1109_v50, %v1107_v2 }
 0x520   : > { %s6029_s30 = sld [smem:[#allocation492_spill]]  ;;  %v1061_v62 = vstv %s6023_s8  ;;  %v1003_v19 = vmul.f32 %v1002_v63, %v4389_v60  ;;  %v1060_v32 = vadd.f32 %v1059_v46, %v1057_v10 }
 0x521   : > { %s6030_s25 = sld [smem:[#allocation176_spill]]  ;;  %v1114_v8 = vstv %s6024_s7  ;;  %v1062_v31 = vmul.f32 %v1061_v62, %v4305_v34  ;;  %v1113_v23 = vadd.f32 %v1112_v5, %v1110_v14 }
 0x522   : > { %s6031_s28 = sld [smem:[#allocation149_spill]]  ;;  %v1150_v12 = vstv %s6025_s10  ;;  %v1115_v33 = vmul.f32 %v1114_v8, %v4255_v16  ;;  %v1004_v41 = vadd.f32 %v1003_v19, %v1001_v26 }
 0x523   : > { %v1151_v37 = vmul.f32 %v1150_v12, %v4142_v56  ;;  %v1152_v13 = vstv %s6026_s2  ;;  %s6032_s0 = sld [smem:[#allocation164_spill]]  ;;  %v1063_v54 = vadd.f32 %v1062_v31, %v1060_v32 }
 0x524   : > { %v1155_v55 = vstv %s6027_s6  ;;  %v1153_v15 = vmul.f32 %v1152_v13, %v4156_v6  ;;  %s6033_s1 = sld [smem:[#allocation512_spill]]  ;;  %v1116_v58 = vadd.f32 %v1115_v33, %v1113_v23 }
 0x525   : > { %v1156_v17 = vmul.f32 %v1155_v55, %v4158_v7  ;;  %v1158_v18 = vstv %s6028_s29  ;;  %s6034_s3 = sld [smem:[#allocation493_spill]] }
 0x526   : > { %v939_v24 = vstv %s6029_s30  ;;  %s6035_s5 = sld [smem:[#allocation177_spill]]  ;;  %v1154_v28 = vadd.f32 %v1153_v15, %v1151_v37  ;;  %v1159_v20 = vmul.f32 %v1158_v18, %v4197_v3 }
 0x527   : > { %v1161_v25 = vstv %s6030_s25  ;;  %s6036_s8 = sld [smem:[#allocation150_spill]]  ;;  %v940_v43 = vadd.f32 %v939_v24, %v938_v22 }
 0x528   : > { %v1064_v27 = vstv %s6031_s28  ;;  %s6037_s7 = sld [smem:[#allocation165_spill]]  ;;  %v1157_v40 = vadd.f32 %v1156_v17, %v1154_v28  ;;  %v1162_v42 = vmul.f32 %v1161_v25, %v4199_v4 }
 0x529   : > { %s6038_s10 = sld [smem:[#allocation532_spill]]  ;;  %v1117_v38 = vstv %s6032_s0  ;;  %v1065_v51 = vmul.f32 %v1064_v27, %v4354_v0  ;;  %v941_v62 = vmax.f32 %v940_v43, 0.0 }
 0x52a   : > { %s6039_s2 = sld [smem:[#allocation513_spill]]  ;;  %v942_v44 = vstv %s6033_s1  ;;  %v1160_v53 = vadd.f32 %v1159_v20, %v1157_v40  ;;  %v1118_v63 = vmul.f32 %v1117_v38, %v4265_v35 }
 0x52b   : > { %s6040_s6 = sld [smem:[#allocation533_spill]]  ;;  %v1005_v45 = vstv %s6034_s3  ;;  %v1066_v55 = vadd.f32 %v1065_v51, %v1063_v54  ;;  %v943_v25 = vmul.f32 %v942_v44, %v941_v62 }
 0x52c   : > { %s6041_s29 = sld [smem:[#allocation151_spill]]  ;;  %v1164_v47 = vstv %s6035_s5  ;;  %v1163_v1 = vadd.f32 %v1162_v42, %v1160_v53  ;;  %v1006_v12 = vadd.f32 %v1005_v45, %v1004_v41  ;;  %v1119_v14 = vadd.f32 %v1118_v63, %v1116_v58 }
 0x52d   : > { %s6042_s30 = sld [smem:[#allocation178_spill]]  ;;  %v1067_v52 = vstv %s6036_s8  ;;  %v1165_v46 = vmul.f32 %v1164_v47, %v4202_v9 }
 0x52e   : > { %s6043_s25 = sld [smem:[#allocation494_spill]]  ;;  %v1120_v49 = vstv %s6037_s7  ;;  %v1068_v10 = vmul.f32 %v1067_v52, %v4356_v59  ;;  %v1007_v20 = vmax.f32 %v1006_v12, 0.0 }
 0x52f   : > { %s6044_s28 = sld [smem:[#allocation166_spill]]  ;;  %v944_v50 = vstv %s6038_s10  ;;  %v1121_v13 = vmul.f32 %v1120_v49, %v4267_v36  ;;  %v1166_v24 = vadd.f32 %v1165_v46, %v1163_v1 }
 0x530   : > { %s6045_s0 = sld [smem:[#allocation167_spill]]  ;;  %v1008_v48 = vstv %s6039_s2  ;;  %v945_v26 = vmul.f32 %v944_v50, %v941_v62  ;;  %v1069_v33 = vadd.f32 %v1068_v10, %v1066_v55 }
 0x531   : > { %s6046_s1 = sld [smem:[#allocation514_spill]]  ;;  %v1011_v2 = vstv %s6040_s6  ;;  %v1122_v38 = vadd.f32 %v1121_v13, %v1119_v14  ;;  %v1009_v13 = vmul.f32 %v1008_v48, %v1007_v20 }
 0x532   : > { %v1070_v5 = vstv %s6041_s29  ;;  %s6047_s3 = sld [smem:[#allocation534_spill]] }
 0x533   : > { %v1167_v8 = vstv %s6042_s30  ;;  %s6048_s5 = sld [smem:[#allocation179_spill]]  ;;  %v1071_v18 = vmul.f32 %v1070_v5, %v4389_v60 }
 0x534   : > { %v1073_v37 = vstv %s6043_s25  ;;  %s6049_s8 = sld [smem:[#allocation168_spill]]  ;;  %v1168_v19 = vmul.f32 %v1167_v8, %v4204_v11 }
 0x535   : > { %v1123_v15 = vstv %s6044_s28  ;;  %s6050_s7 = sld [smem:[#allocation192_spill]]  ;;  %v1072_v50 = vadd.f32 %v1071_v18, %v1069_v33 }
 0x536   : > { %v1126_v17 = vstv %s6045_s0  ;;  %s6051_s10 = sld [smem:[#allocation193_spill]]  ;;  %v1124_v32 = vmul.f32 %v1123_v15, %v4271_v39  ;;  %v1169_v43 = vadd.f32 %v1168_v19, %v1166_v24 }
 0x537   : > { %v1076_v22 = vstv %s6046_s1  ;;  %s6052_s2 = sld [smem:[#allocation180_spill]]  ;;  %v1127_v31 = vmul.f32 %v1126_v17, %v4287_v61  ;;  %v1012_v17 = vmul.f32 %v1011_v2, %v1007_v20 }
 0x538   : > { %s6053_s6 = sld [smem:[#allocation194_spill]]  ;;  %v1079_v27 = vstv %s6047_s3  ;;  %v1125_v1 = vadd.f32 %v1124_v32, %v1122_v38 }
 0x539   : > { %s6054_s29 = sld [smem:[#allocation195_spill]]  ;;  %v1170_v28 = vstv %s6048_s5 }
 0x53a   : > { %s6055_s30 = sld [smem:[#allocation196_spill]]  ;;  %v1129_v23 = vstv %s6049_s8  ;;  %v1171_v44 = vmul.f32 %v1170_v28, %v4210_v57  ;;  %v1074_v28 = vadd.f32 %v1073_v37, %v1072_v50  ;;  %v1128_v32 = vadd.f32 %v1127_v31, %v1125_v1 }
 0x53b   : > { %s6056_s25 = sld [smem:[#allocation169_spill]]  ;;  %v1218_v40 = vstv %s6050_s7  ;;  %v1130_v55 = vmul.f32 %v1129_v23, %v4305_v34  ;;  %v1010_v37 = vadd.f32 %v1009_v13, %v943_v25  ;;  %v1013_v31 = vadd.f32 %v1012_v17, %v945_v26 }
 0x53c   : > { %s6057_s28 = sld [smem:[#allocation170_spill]]  ;;  %v1220_v42 = vstv %s6051_s10  ;;  %v1219_v45 = vmul.f32 %v1218_v40, %v4142_v56  ;;  %v1172_v5 = vadd.f32 %v1171_v44, %v1169_v43 }
 0x53d   : > { %s6058_s0 = sld [smem:[#allocation197_spill]]  ;;  %v1221_v47 = vmul.f32 %v1220_v42, %v4156_v6  ;;  %v1173_v41 = vstv %s6052_s2 }
 0x53e   : > { %v1223_v51 = vstv %s6053_s6  ;;  %s6059_s5 = sld [smem:[#allocation181_spill]]  ;;  %v1174_v8 = vmul.f32 %v1173_v41, %v4213_v21  ;;  %v1075_v41 = vmax.f32 %v1074_v28, 0.0 }
 0x53f   : > { %v1226_v52 = vstv %s6054_s29  ;;  %s6060_s11 = sld [smem:[#allocation198_spill]]  ;;  %v1222_v63 = vadd.f32 %v1221_v47, %v1219_v45  ;;  %v1224_v49 = vmul.f32 %v1223_v51, %v4158_v7  ;;  %v1131_v51 = vadd.f32 %v1130_v55, %v1128_v32 }
 0x540   : > { %v1229_v53 = vstv %s6055_s30  ;;  %v1227_v46 = vmul.f32 %v1226_v52, %v4197_v3  ;;  %s6061_s8 = sld [smem:[#allocation199_spill]]  ;;  %v1175_v38 = vadd.f32 %v1174_v8, %v1172_v5 }
 0x541   : > { %v1132_v54 = vstv %s6056_s25  ;;  %v1225_v12 = vadd.f32 %v1224_v49, %v1222_v63  ;;  %v1230_v10 = vmul.f32 %v1229_v53, %v4199_v4  ;;  %s6062_s7 = sld [smem:[#allocation171_spill]] }
 0x542   : > { %v1135_v58 = vstv %s6057_s28  ;;  %s6063_s10 = sld [smem:[#allocation495_spill]]  ;;  %v1133_v18 = vmul.f32 %v1132_v54, %v4354_v0 }
 0x543   : > { %v1232_v62 = vstv %s6058_s0  ;;  %s6064_s2 = sld [smem:[#allocation182_spill]]  ;;  %v1228_v24 = vadd.f32 %v1227_v46, %v1225_v12  ;;  %v1136_v33 = vmul.f32 %v1135_v58, %v4356_v59  ;;  %v1077_v12 = vmul.f32 %v1076_v22, %v1075_v41 }
 0x544   : > { %v1176_v14 = vstv %s6059_s5  ;;  %s6065_s6 = sld [smem:[#allocation200_spill]]  ;;  %v1233_v19 = vmul.f32 %v1232_v62, %v4202_v9  ;;  %v1134_v13 = vadd.f32 %v1133_v18, %v1131_v51 }
 0x545   : > { %v1235_v15 = vstv %s6060_s11  ;;  %s6066_s29 = sld [smem:[#allocation183_spill]]  ;;  %v1177_v23 = vmul.f32 %v1176_v14, %v4222_v29  ;;  %v1231_v40 = vadd.f32 %v1230_v10, %v1228_v24  ;;  %v1080_v10 = vmul.f32 %v1079_v27, %v1075_v41 }
 0x546   : > { %v1238_v48 = vstv %s6061_s8  ;;  %s6067_s30 = sld [smem:[#allocation184_spill]]  ;;  %v1236_v42 = vmul.f32 %v1235_v15, %v4204_v11  ;;  %v4527_v41 = vadd.f32 %v1077_v12, %v1010_v37 }
 0x547   : > { %v1138_v43 = vstv %s6062_s7  ;;  %s6068_s11 = sld [smem:[#allocation515_spill]]  ;;  %v1234_v45 = vadd.f32 %v1233_v19, %v1231_v40  ;;  %v1239_v47 = vmul.f32 %v1238_v48, %v4210_v57  ;;  %v1178_v54 = vadd.f32 %v1177_v23, %v1175_v38 }
 0x548   : > { %v1141_v2 = vstv %s6063_s10  ;;  %s6069_s25 = sld [smem:[#allocation535_spill]]  ;;  %v1139_v25 = vmul.f32 %v1138_v43, %v4389_v60  ;;  %v1137_v23 = vadd.f32 %v1136_v33, %v1134_v13  ;;  %v4531_v33 = vadd.f32 %v1080_v10, %v1013_v31 }
 0x549   : > { %v1179_v20 = vstv %s6064_s2  ;;  %s6070_s28 = sld [smem:[#allocation201_spill]]  ;;  %v1237_v63 = vadd.f32 %v1236_v42, %v1234_v45 }
 0x54a   : > { %v1241_v44 = vstv %s6065_s6  ;;  %s6071_s0 = sld [smem:[#allocation185_spill]]  ;;  %v1180_v58 = vmul.f32 %v1179_v20, %v4224_v30 }
 0x54b   : > { %v1182_v52 = vstv %s6066_s29  ;;  %s6072_s5 = sld [smem:[#allocation186_spill]]  ;;  %v1242_v49 = vmul.f32 %v1241_v44, %v4213_v21  ;;  %v1240_v8 = vadd.f32 %v1239_v47, %v1237_v63 }
 0x54c   : > { %v1185_v53 = vstv %s6067_s30  ;;  %s6073_s8 = sld [smem:[#allocation212_spill]]  ;;  %v1183_v46 = vmul.f32 %v1182_v52, %v4255_v16  ;;  %v1181_v14 = vadd.f32 %v1180_v58, %v1178_v54 }
 0x54d   : > { %v1144_v26 = vstv %s6068_s11  ;;  %s6074_s7 = sld [smem:[#allocation213_spill]]  ;;  %v1186_v62 = vmul.f32 %v1185_v53, %v4265_v35  ;;  %v1243_v15 = vadd.f32 %v1242_v49, %v1240_v8  ;;  %v1140_v49 = vadd.f32 %v1139_v25, %v1137_v23 }
 0x54e   : > { %v1147_v50 = vstv %s6069_s25  ;;  %s6075_s2 = sld [smem:[#allocation214_spill]]  ;;  %v1184_v20 = vadd.f32 %v1183_v46, %v1181_v14 }
 0x54f   : > { %v1244_v1 = vstv %s6070_s28  ;;  %s6076_s6 = sld [smem:[#allocation215_spill]] }
 0x550   : > { %s6077_s29 = sld [smem:[#allocation202_spill]]  ;;  %v1188_v5 = vstv %s6071_s0  ;;  %v1245_v17 = vmul.f32 %v1244_v1, %v4222_v29 }
 0x551   : > { %s6078_s30 = sld [smem:[#allocation187_spill]]  ;;  %v1191_v55 = vstv %s6072_s5  ;;  %v1189_v22 = vmul.f32 %v1188_v5, %v4267_v36  ;;  %v1187_v5 = vadd.f32 %v1186_v62, %v1184_v20 }
 0x552   : > { %s6079_s12 = sld [smem:[#allocation216_spill]]  ;;  %v1286_v24 = vstv %s6073_s8  ;;  %v1192_v40 = vmul.f32 %v1191_v55, %v4271_v39  ;;  %v1246_v51 = vadd.f32 %v1245_v17, %v1243_v15 }
 0x553   : > { %s6080_s28 = sld [smem:[#allocation188_spill]]  ;;  %v1287_v19 = vmul.f32 %v1286_v24, %v4142_v56  ;;  %v1288_v28 = vstv %s6074_s7 }
 0x554   : > { %v1291_v32 = vstv %s6075_s2  ;;  %s6081_s0 = sld [smem:[#allocation217_spill]]  ;;  %v1289_v27 = vmul.f32 %v1288_v28, %v4156_v6 }
 0x555   : > { %v1294_v48 = vstv %s6076_s6  ;;  %s6082_s1 = sld [smem:[#allocation203_spill]]  ;;  %v1292_v18 = vmul.f32 %v1291_v32, %v4158_v7 }
 0x556   : > { %v1247_v38 = vstv %s6077_s29  ;;  %s6083_s5 = sld [smem:[#allocation218_spill]]  ;;  %v1290_v45 = vadd.f32 %v1289_v27, %v1287_v19  ;;  %v1295_v47 = vmul.f32 %v1294_v48, %v4197_v3  ;;  %v1142_v19 = vadd.f32 %v1141_v2, %v1140_v49 }
 0x557   : > { %v1194_v42 = vstv %s6078_s30  ;;  %s6084_s8 = sld [smem:[#allocation189_spill]]  ;;  %v1248_v52 = vmul.f32 %v1247_v38, %v4224_v30  ;;  %v1190_v48 = vadd.f32 %v1189_v22, %v1187_v5 }
 0x558   : > { %v1297_v43 = vstv %s6079_s12  ;;  %s6085_s7 = sld [smem:[#allocation190_spill]]  ;;  %v1293_v58 = vadd.f32 %v1292_v18, %v1290_v45  ;;  %v1195_v1 = vmul.f32 %v1194_v42, %v4287_v61 }
 0x559   : > { %v1197_v44 = vstv %s6080_s28  ;;  %s6086_s2 = sld [smem:[#allocation219_spill]]  ;;  %v1298_v63 = vmul.f32 %v1297_v43, %v4199_v4  ;;  %v1249_v13 = vadd.f32 %v1248_v52, %v1246_v51 }
 0x55a   : > { %v1300_v53 = vstv %s6081_s0  ;;  %s6087_s6 = sld [smem:[#allocation191_spill]]  ;;  %v4537_v37 = vmul.f32 %v1197_v44, %v4305_v34  ;;  %v1296_v31 = vadd.f32 %v1295_v47, %v1293_v58  ;;  %v1143_v47 = vmax.f32 %v1142_v19, 0.0 }
 0x55b   : > { %v1250_v54 = vstv %s6082_s1  ;;  %s6088_s12 = sld [smem:[#allocation204_spill]]  ;;  %v1301_v12 = vmul.f32 %v1300_v53, %v4202_v9 }
 0x55c   : > { %s6089_s29 = sld [smem:[#allocation496_spill]]  ;;  %v1303_v46 = vstv %s6083_s5  ;;  %v1251_v55 = vmul.f32 %v1250_v54, %v4255_v16  ;;  %v1299_v17 = vadd.f32 %v1298_v63, %v1296_v31  ;;  %v1193_v54 = vadd.f32 %v1192_v40, %v1190_v48 }
 0x55d   : > { %s6090_s30 = sld [smem:[#allocation220_spill]]  ;;  %v1200_v8 = vstv %s6084_s8  ;;  %v1304_v24 = vmul.f32 %v1303_v46, %v4204_v11 }
 0x55e   : > { %v1203_v10 = vstv %s6085_s7  ;;  %s6091_s1 = sld [smem:[#allocation221_spill]]  ;;  %v4551_v62 = vmul.f32 %v1200_v8, %v4354_v0  ;;  %v1302_v27 = vadd.f32 %v1301_v12, %v1299_v17  ;;  %v1252_v2 = vadd.f32 %v1251_v55, %v1249_v13 }
 0x55f   : > { %v1306_v14 = vstv %s6086_s2  ;;  %s6092_s28 = sld [smem:[#allocation516_spill]]  ;;  %v4556_v38 = vmul.f32 %v1203_v10, %v4356_v59  ;;  %v1196_v17 = vadd.f32 %v1195_v1, %v1193_v54  ;;  %v1145_v1 = vmul.f32 %v1144_v26, %v1143_v47 }
 0x560   : > { %v1206_v25 = vstv %s6087_s6  ;;  %s6093_s0 = sld [smem:[#allocation205_spill]]  ;;  %v1307_v18 = vmul.f32 %v1306_v14, %v4210_v57  ;;  %v1305_v45 = vadd.f32 %v1304_v24, %v1302_v27 }
 0x561   : > { %v1253_v15 = vstv %s6088_s12  ;;  %s6094_s5 = sld [smem:[#allocation536_spill]]  ;;  %v4560_v23 = vmul.f32 %v1206_v25, %v4389_v60  ;;  %v1199_v54 = vadd.f32 %v4537_v37, %v1196_v17  ;;  %v4603_v37 = vadd.f32 %v1145_v1, %v4527_v41 }
 0x562   : > { %v1209_v28 = vstv %s6089_s29  ;;  %s6095_s8 = sld [smem:[#allocation206_spill]]  ;;  %v1254_v42 = vmul.f32 %v1253_v15, %v4265_v35  ;;  %v1308_v63 = vadd.f32 %v1307_v18, %v1305_v45 }
 0x563   : > { %v1309_v32 = vstv %s6090_s30  ;;  %s6096_s7 = sld [smem:[#allocation222_spill]] }
 0x564   : > { %s6097_s2 = sld [smem:[#allocation207_spill]]  ;;  %v1312_v43 = vstv %s6091_s1  ;;  %v1310_v22 = vmul.f32 %v1309_v32, %v4213_v21  ;;  %v1255_v46 = vadd.f32 %v1254_v42, %v1252_v2 }
 0x565   : > { %s6098_s6 = sld [smem:[#allocation232_spill]]  ;;  %v1212_v20 = vstv %s6092_s28  ;;  %v1313_v49 = vmul.f32 %v1312_v43, %v4222_v29 }
 0x566   : > { %s6099_s12 = sld [smem:[#allocation233_spill]]  ;;  %v1256_v44 = vstv %s6093_s0  ;;  %v1311_v12 = vadd.f32 %v1310_v22, %v1308_v63  ;;  %v1148_v22 = vmul.f32 %v1147_v50, %v1143_v47 }
 0x567   : > { %s6100_s30 = sld [smem:[#allocation223_spill]]  ;;  %v1215_v51 = vstv %s6094_s5  ;;  %v1257_v5 = vmul.f32 %v1256_v44, %v4267_v36 }
 0x568   : > { %s6101_s3 = sld [smem:[#allocation234_spill]]  ;;  %v1259_v52 = vstv %s6095_s8  ;;  %v1314_v24 = vadd.f32 %v1313_v49, %v1311_v12 }
 0x569   : > { %s6102_s10 = sld [smem:[#allocation235_spill]]  ;;  %v1315_v53 = vstv %s6096_s7  ;;  %v1258_v48 = vadd.f32 %v1257_v5, %v1255_v46  ;;  %v1260_v27 = vmul.f32 %v1259_v52, %v4271_v39 }
 0x56a   : > { %s6103_s13 = sld [smem:[#allocation236_spill]]  ;;  %v1262_v58 = vstv %s6097_s2  ;;  %v1316_v10 = vmul.f32 %v1315_v53, %v4224_v30 }
 0x56b   : > { %v1354_v8 = vstv %s6098_s6  ;;  %s6104_s1 = sld [smem:[#allocation237_spill]]  ;;  %v1263_v63 = vmul.f32 %v1262_v58, %v4287_v61  ;;  %v1261_v5 = vadd.f32 %v1260_v27, %v1258_v48 }
 0x56c   : > { %v1356_v31 = vstv %s6099_s12  ;;  %v1355_v13 = vmul.f32 %v1354_v8, %v4142_v56  ;;  %s6105_s0 = sld [smem:[#allocation224_spill]]  ;;  %v1317_v42 = vadd.f32 %v1316_v10, %v1314_v24 }
 0x56d   : > { %v1357_v55 = vmul.f32 %v1356_v31, %v4156_v6  ;;  %v1318_v14 = vstv %s6100_s30  ;;  %s6106_s8 = sld [smem:[#allocation238_spill]]  ;;  %v1264_v17 = vadd.f32 %v1263_v63, %v1261_v5 }
 0x56e   : > { %v1359_v40 = vstv %s6101_s3  ;;  %s6107_s7 = sld [smem:[#allocation208_spill]]  ;;  %v1319_v43 = vmul.f32 %v1318_v14, %v4255_v16  ;;  %v1202_v14 = vadd.f32 %v4551_v62, %v1199_v54 }
 0x56f   : > { %v1362_v25 = vstv %s6102_s10  ;;  %v1358_v19 = vadd.f32 %v1357_v55, %v1355_v13  ;;  %v1360_v32 = vmul.f32 %v1359_v40, %v4158_v7  ;;  %s6108_s2 = sld [smem:[#allocation225_spill]] }
 0x570   : > { %v1365_v15 = vstv %s6103_s13  ;;  %v1363_v18 = vmul.f32 %v1362_v25, %v4197_v3  ;;  %s6109_s6 = sld [smem:[#allocation239_spill]]  ;;  %v1320_v26 = vadd.f32 %v1319_v43, %v1317_v42 }
 0x571   : > { %v1368_v2 = vstv %s6104_s1  ;;  %v1361_v44 = vadd.f32 %v1360_v32, %v1358_v19  ;;  %v1366_v45 = vmul.f32 %v1365_v15, %v4199_v4  ;;  %s6110_s13 = sld [smem:[#allocation209_spill]] }
 0x572   : > { %v1321_v53 = vstv %s6105_s0  ;;  %s6111_s3 = sld [smem:[#allocation210_spill]]  ;;  %v1369_v46 = vmul.f32 %v1368_v2, %v4202_v9  ;;  %v4617_v2 = vadd.f32 %v1148_v22, %v4531_v33 }
 0x573   : > { %v1371_v52 = vstv %s6106_s8  ;;  %s6112_s10 = sld [smem:[#allocation240_spill]]  ;;  %v1364_v49 = vadd.f32 %v1363_v18, %v1361_v44  ;;  %v1322_v50 = vmul.f32 %v1321_v53, %v4265_v35  ;;  %v1205_v44 = vadd.f32 %v4556_v38, %v1202_v14 }
 0x574   : > { %v1265_v8 = vstv %s6107_s7  ;;  %s6113_s12 = sld [smem:[#allocation226_spill]]  ;;  %v1372_v10 = vmul.f32 %v1371_v52, %v4204_v11 }
 0x575   : > { %v1324_v31 = vstv %s6108_s2  ;;  %s6114_s30 = sld [smem:[#allocation241_spill]]  ;;  %v1367_v47 = vadd.f32 %v1366_v45, %v1364_v49  ;;  %v1266_v40 = vmul.f32 %v1265_v8, %v4305_v34  ;;  %v1323_v41 = vadd.f32 %v1322_v50, %v1320_v26 }
 0x576   : > { %v1374_v12 = vstv %s6109_s6  ;;  %s6115_s1 = sld [smem:[#allocation242_spill]]  ;;  %v1325_v24 = vmul.f32 %v1324_v31, %v4267_v36 }
 0x577   : > { %v1268_v58 = vstv %s6110_s13  ;;  %s6116_s0 = sld [smem:[#allocation211_spill]]  ;;  %v1370_v25 = vadd.f32 %v1369_v46, %v1367_v47  ;;  %v1375_v15 = vmul.f32 %v1374_v12, %v4210_v57  ;;  %v1267_v52 = vadd.f32 %v1266_v40, %v1264_v17 }
 0x578   : > { %v1271_v13 = vstv %s6111_s3  ;;  %s6117_s8 = sld [smem:[#allocation243_spill]]  ;;  %v1269_v62 = vmul.f32 %v1268_v58, %v4354_v0  ;;  %v1326_v63 = vadd.f32 %v1325_v24, %v1323_v41  ;;  %v1208_v58 = vadd.f32 %v4560_v23, %v1205_v44 }
 0x579   : > { %v1377_v55 = vstv %s6112_s10  ;;  %s6118_s7 = sld [smem:[#allocation227_spill]]  ;;  %v1373_v48 = vadd.f32 %v1372_v10, %v1370_v25  ;;  %v1272_v45 = vmul.f32 %v1271_v13, %v4356_v59 }
 0x57a   : > { %v1327_v19 = vstv %s6113_s12  ;;  %v1378_v27 = vmul.f32 %v1377_v55, %v4213_v21  ;;  %s6119_s2 = sld [smem:[#allocation252_spill]]  ;;  %v1270_v13 = vadd.f32 %v1269_v62, %v1267_v52 }
 0x57b   : > { %v1380_v32 = vstv %s6114_s30  ;;  %s6120_s6 = sld [smem:[#allocation253_spill]]  ;;  %v1376_v1 = vadd.f32 %v1375_v15, %v1373_v48  ;;  %v1328_v54 = vmul.f32 %v1327_v19, %v4271_v39 }
 0x57c   : > { %v1383_v18 = vstv %s6115_s1  ;;  %s6121_s13 = sld [smem:[#allocation254_spill]]  ;;  %v1381_v53 = vmul.f32 %v1380_v32, %v4222_v29  ;;  %v1273_v62 = vadd.f32 %v1272_v45, %v1270_v13  ;;  %v1210_v45 = vadd.f32 %v1209_v28, %v1208_v58 }
 0x57d   : > { %v1274_v42 = vstv %s6116_s0  ;;  %s6122_s3 = sld [smem:[#allocation255_spill]]  ;;  %v1384_v22 = vmul.f32 %v1383_v18, %v4224_v30  ;;  %v1379_v49 = vadd.f32 %v1378_v27, %v1376_v1  ;;  %v1329_v24 = vadd.f32 %v1328_v54, %v1326_v63 }
 0x57e   : > { %v1386_v43 = vstv %s6117_s8  ;;  %s6123_s10 = sld [smem:[#allocation244_spill]]  ;;  %v1275_v55 = vmul.f32 %v1274_v42, %v4389_v60 }
 0x57f   : > { %v1330_v33 = vstv %s6118_s7  ;;  %s6124_s12 = sld [smem:[#allocation256_spill]]  ;;  %v1387_v46 = vmul.f32 %v1386_v43, %v4255_v16  ;;  %v1382_v26 = vadd.f32 %v1381_v53, %v1379_v49 }
 0x580   : > { %s6125_s30 = sld [smem:[#allocation228_spill]]  ;;  %v1422_v5 = vstv %s6119_s2  ;;  %v1331_v19 = vmul.f32 %v1330_v33, %v4287_v61 }
 0x581   : > { %v1423_v38 = vmul.f32 %v1422_v5, %v4142_v56  ;;  %v1424_v8 = vstv %s6120_s6  ;;  %s6126_s1 = sld [smem:[#allocation257_spill]]  ;;  %v1385_v25 = vadd.f32 %v1384_v22, %v1382_v26 }
 0x582   : > { %v1427_v31 = vstv %s6121_s13  ;;  %s6127_s0 = sld [smem:[#allocation245_spill]]  ;;  %v1425_v47 = vmul.f32 %v1424_v8, %v4156_v6  ;;  %v1332_v33 = vadd.f32 %v1331_v19, %v1329_v24  ;;  %v1276_v8 = vadd.f32 %v1275_v55, %v1273_v62 }
 0x583   : > { %v1430_v12 = vstv %s6122_s3  ;;  %v1428_v10 = vmul.f32 %v1427_v31, %v4158_v7  ;;  %s6128_s8 = sld [smem:[#allocation497_spill]]  ;;  %v1388_v23 = vadd.f32 %v1387_v46, %v1385_v25  ;;  %v1211_v25 = vmax.f32 %v1210_v45, 0.0 }
 0x584   : > { %v1389_v50 = vstv %s6123_s10  ;;  %s6129_s7 = sld [smem:[#allocation517_spill]]  ;;  %v1426_v15 = vadd.f32 %v1425_v47, %v1423_v38  ;;  %v1431_v17 = vmul.f32 %v1430_v12, %v4197_v3 }
 0x585   : > { %v1433_v14 = vstv %s6124_s12  ;;  %s6130_s2 = sld [smem:[#allocation258_spill]]  ;;  %v1390_v32 = vmul.f32 %v1389_v50, %v4265_v35 }
 0x586   : > { %v1333_v40 = vstv %s6125_s30  ;;  %s6131_s6 = sld [smem:[#allocation229_spill]]  ;;  %v1429_v27 = vadd.f32 %v1428_v10, %v1426_v15  ;;  %v1434_v18 = vmul.f32 %v1433_v14, %v4199_v4 }
 0x587   : > { %v1436_v41 = vstv %s6126_s1  ;;  %s6132_s13 = sld [smem:[#allocation259_spill]]  ;;  %v1334_v1 = vmul.f32 %v1333_v40, %v4305_v34  ;;  %v1391_v22 = vadd.f32 %v1390_v32, %v1388_v23 }
 0x588   : > { %v1392_v48 = vstv %s6127_s0  ;;  %s6133_s3 = sld [smem:[#allocation246_spill]]  ;;  %v1432_v52 = vadd.f32 %v1431_v17, %v1429_v27  ;;  %v1437_v54 = vmul.f32 %v1436_v41, %v4202_v9 }
 0x589   : > { %v1277_v42 = vstv %s6128_s8  ;;  %s6134_s10 = sld [smem:[#allocation230_spill]]  ;;  %v1393_v63 = vmul.f32 %v1392_v48, %v4267_v36  ;;  %v1335_v14 = vadd.f32 %v1334_v1, %v1332_v33 }
 0x58a   : > { %v1280_v43 = vstv %s6129_s7  ;;  %s6135_s12 = sld [smem:[#allocation260_spill]]  ;;  %v1435_v5 = vadd.f32 %v1434_v18, %v1432_v52  ;;  %v1278_v24 = vadd.f32 %v1277_v42, %v1276_v8 }
 0x58b   : > { %v1439_v44 = vstv %s6130_s2  ;;  %s6136_s30 = sld [smem:[#allocation231_spill]]  ;;  %v1394_v40 = vadd.f32 %v1393_v63, %v1391_v22 }
 0x58c   : > { %v1336_v53 = vstv %s6131_s6  ;;  %s6137_s11 = sld [smem:[#allocation247_spill]]  ;;  %v1440_v38 = vmul.f32 %v1439_v44, %v4204_v11  ;;  %v1438_v10 = vadd.f32 %v1437_v54, %v1435_v5 }
 0x58d   : > { %v1442_v49 = vstv %s6132_s13  ;;  %s6138_s1 = sld [smem:[#allocation261_spill]]  ;;  %v1337_v31 = vmul.f32 %v1336_v53, %v4354_v0 }
 0x58e   : > { %v1395_v46 = vstv %s6133_s3  ;;  %s6139_s0 = sld [smem:[#allocation537_spill]]  ;;  %v1443_v13 = vmul.f32 %v1442_v49, %v4210_v57  ;;  %v1441_v15 = vadd.f32 %v1440_v38, %v1438_v10 }
 0x58f   : > { %v1339_v12 = vstv %s6134_s10  ;;  %s6140_s8 = sld [smem:[#allocation262_spill]]  ;;  %v1396_v28 = vmul.f32 %v1395_v46, %v4271_v39  ;;  %v1338_v62 = vadd.f32 %v1337_v31, %v1335_v14 }
 0x590   : > { %v1445_v26 = vstv %s6135_s12  ;;  %s6141_s2 = sld [smem:[#allocation248_spill]]  ;;  %v1340_v19 = vmul.f32 %v1339_v12, %v4356_v59  ;;  %v1444_v27 = vadd.f32 %v1443_v13, %v1441_v15 }
 0x591   : > { %v1342_v50 = vstv %s6136_s30  ;;  %s6142_s6 = sld [smem:[#allocation272_spill]]  ;;  %v1446_v17 = vmul.f32 %v1445_v26, %v4213_v21  ;;  %v1397_v44 = vadd.f32 %v1396_v28, %v1394_v40  ;;  %v1213_v40 = vmul.f32 %v1212_v20, %v1211_v25 }
 0x592   : > { %v1398_v47 = vstv %s6137_s11  ;;  %s6143_s13 = sld [smem:[#allocation273_spill]]  ;;  %v1343_v32 = vmul.f32 %v1342_v50, %v4389_v60  ;;  %v1341_v31 = vadd.f32 %v1340_v19, %v1338_v62  ;;  %v1216_v28 = vmul.f32 %v1215_v51, %v1211_v25 }
 0x593   : > { %v1448_v58 = vstv %s6138_s1  ;;  %s6144_s3 = sld [smem:[#allocation263_spill]]  ;;  %v1399_v23 = vmul.f32 %v1398_v47, %v4287_v61  ;;  %v1447_v53 = vadd.f32 %v1446_v17, %v1444_v27  ;;  %v1279_v17 = vmax.f32 %v1278_v24, 0.0 }
 0x594   : > { %v1283_v55 = vstv %s6139_s0  ;;  %s6145_s11 = sld [smem:[#allocation274_spill]]  ;;  %v1449_v18 = vmul.f32 %v1448_v58, %v4222_v29  ;;  %v1214_v25 = vadd.f32 %v1213_v40, %v4603_v37 }
 0x595   : > { %s6146_s10 = sld [smem:[#allocation275_spill]]  ;;  %v1451_v41 = vstv %s6140_s8  ;;  %v1400_v12 = vadd.f32 %v1399_v23, %v1397_v44 }
 0x596   : > { %s6147_s12 = sld [smem:[#allocation276_spill]]  ;;  %v1401_v48 = vstv %s6141_s2  ;;  %v1452_v52 = vmul.f32 %v1451_v41, %v4224_v30  ;;  %v1450_v5 = vadd.f32 %v1449_v18, %v1447_v53  ;;  %v1284_v53 = vmul.f32 %v1283_v55, %v1279_v17 }
 0x597   : > { %s6148_s30 = sld [smem:[#allocation249_spill]]  ;;  %v1490_v1 = vstv %s6142_s6  ;;  %v1402_v26 = vmul.f32 %v1401_v48, %v4305_v34  ;;  %v1344_v48 = vadd.f32 %v1343_v32, %v1341_v31  ;;  %v1281_v32 = vmul.f32 %v1280_v43, %v1279_v17 }
 0x598   : > { %v1492_v42 = vstv %s6143_s13  ;;  %v1491_v54 = vmul.f32 %v1490_v1, %v4142_v56  ;;  %s6149_s1 = sld [smem:[#allocation264_spill]]  ;;  %v1453_v47 = vadd.f32 %v1452_v52, %v1450_v5 }
 0x599   : > { %v1493_v33 = vmul.f32 %v1492_v42, %v4156_v6  ;;  %v1454_v22 = vstv %s6144_s3  ;;  %s6150_s0 = sld [smem:[#allocation277_spill]]  ;;  %v1403_v27 = vadd.f32 %v1402_v26, %v1400_v12  ;;  %v1217_v42 = vadd.f32 %v1216_v28, %v4617_v2 }
 0x59a   : > { %v1495_v63 = vstv %s6145_s11  ;;  %s6151_s8 = sld [smem:[#allocation498_spill]]  ;;  %v1455_v10 = vmul.f32 %v1454_v22, %v4255_v16  ;;  %v1282_v43 = vadd.f32 %v1281_v32, %v1214_v25 }
 0x59b   : > { %v1498_v49 = vstv %s6146_s10  ;;  %v1494_v38 = vadd.f32 %v1493_v33, %v1491_v54  ;;  %s6152_s2 = sld [smem:[#allocation250_spill]]  ;;  %v1496_v8 = vmul.f32 %v1495_v63, %v4158_v7  ;;  %v1285_v55 = vadd.f32 %v1284_v53, %v1217_v42 }
 0x59c   : > { %v1501_v45 = vstv %s6147_s12  ;;  %v1499_v50 = vmul.f32 %v1498_v49, %v4197_v3  ;;  %s6153_s6 = sld [smem:[#allocation265_spill]]  ;;  %v1456_v44 = vadd.f32 %v1455_v10, %v1453_v47 }
 0x59d   : > { %v1404_v46 = vstv %s6148_s30  ;;  %v1497_v13 = vadd.f32 %v1496_v8, %v1494_v38  ;;  %v1502_v14 = vmul.f32 %v1501_v45, %v4199_v4  ;;  %s6154_s13 = sld [smem:[#allocation278_spill]] }
 0x59e   : > { %v1457_v58 = vstv %s6149_s1  ;;  %s6155_s3 = sld [smem:[#allocation251_spill]]  ;;  %v1405_v18 = vmul.f32 %v1404_v46, %v4354_v0 }
 0x59f   : > { %v1504_v15 = vstv %s6150_s0  ;;  %v1500_v23 = vadd.f32 %v1499_v50, %v1497_v13  ;;  %s6156_s11 = sld [smem:[#allocation266_spill]]  ;;  %v1458_v20 = vmul.f32 %v1457_v58, %v4265_v35 }
 0x5a0   : > { %v1345_v19 = vstv %s6151_s8  ;;  %s6157_s10 = sld [smem:[#allocation518_spill]]  ;;  %v1505_v51 = vmul.f32 %v1504_v15, %v4202_v9  ;;  %v1406_v33 = vadd.f32 %v1405_v18, %v1403_v27 }
 0x5a1   : > { %v1407_v41 = vstv %s6152_s2  ;;  %v1503_v1 = vadd.f32 %v1502_v14, %v1500_v23  ;;  %s6158_s12 = sld [smem:[#allocation279_spill]]  ;;  %v1346_v54 = vadd.f32 %v1345_v19, %v1344_v48  ;;  %v1459_v49 = vadd.f32 %v1458_v20, %v1456_v44 }
 0x5a2   : > { %v1460_v62 = vstv %s6153_s6  ;;  %s6159_s30 = sld [smem:[#allocation538_spill]]  ;;  %v1408_v22 = vmul.f32 %v1407_v41, %v4356_v59 }
 0x5a3   : > { %v1507_v24 = vstv %s6154_s13  ;;  %s6160_s1 = sld [smem:[#allocation267_spill]]  ;;  %v1461_v63 = vmul.f32 %v1460_v62, %v4267_v36  ;;  %v1506_v46 = vadd.f32 %v1505_v51, %v1503_v1  ;;  %v1347_v31 = vmax.f32 %v1346_v54, 0.0 }
 0x5a4   : > { %v1410_v52 = vstv %s6155_s3  ;;  %s6161_s0 = sld [smem:[#allocation292_spill]]  ;;  %v1508_v37 = vmul.f32 %v1507_v24, %v4204_v11  ;;  %v1409_v12 = vadd.f32 %v1408_v22, %v1406_v33 }
 0x5a5   : > { %v1463_v45 = vstv %s6156_s11  ;;  %s6162_s8 = sld [smem:[#allocation293_spill]]  ;;  %v1411_v8 = vmul.f32 %v1410_v52, %v4389_v60  ;;  %v1462_v47 = vadd.f32 %v1461_v63, %v1459_v49 }
 0x5a6   : > { %v1348_v2 = vstv %s6157_s10  ;;  %s6163_s2 = sld [smem:[#allocation294_spill]]  ;;  %v1464_v26 = vmul.f32 %v1463_v45, %v4271_v39  ;;  %v1509_v10 = vadd.f32 %v1508_v37, %v1506_v46 }
 0x5a7   : > { %v1510_v5 = vstv %s6158_s12  ;;  %s6164_s6 = sld [smem:[#allocation295_spill]]  ;;  %v1349_v48 = vmul.f32 %v1348_v2, %v1347_v31  ;;  %v1412_v44 = vadd.f32 %v1411_v8, %v1409_v12 }
 0x5a8   : > { %s6165_s13 = sld [smem:[#allocation499_spill]]  ;;  %v1351_v38 = vstv %s6159_s30  ;;  %v1511_v13 = vmul.f32 %v1510_v5, %v4210_v57  ;;  %v1465_v25 = vadd.f32 %v1464_v26, %v1462_v47 }
 0x5a9   : > { %s6166_s3 = sld [smem:[#allocation280_spill]]  ;;  %v1466_v50 = vstv %s6160_s1  ;;  %v1352_v22 = vmul.f32 %v1351_v38, %v1347_v31  ;;  %v4741_v46 = vadd.f32 %v1349_v48, %v1282_v43 }
 0x5aa   : > { %s6167_s11 = sld [smem:[#allocation519_spill]]  ;;  %v1558_v14 = vstv %s6161_s0  ;;  %v1467_v20 = vmul.f32 %v1466_v50, %v4287_v61  ;;  %v1512_v24 = vadd.f32 %v1511_v13, %v1509_v10 }
 0x5ab   : > { %s6168_s5 = sld [smem:[#allocation268_spill]]  ;;  %v1559_v40 = vmul.f32 %v1558_v14, %v4142_v56  ;;  %v1560_v28 = vstv %s6162_s8  ;;  %v4749_v13 = vadd.f32 %v1352_v22, %v1285_v55 }
 0x5ac   : > { %s6169_s7 = sld [smem:[#allocation296_spill]]  ;;  %v1563_v58 = vstv %s6163_s2  ;;  %v1561_v41 = vmul.f32 %v1560_v28, %v4156_v6  ;;  %v1468_v8 = vadd.f32 %v1467_v20, %v1465_v25 }
 0x5ad   : > { %v1566_v15 = vstv %s6164_s6  ;;  %s6170_s10 = sld [smem:[#allocation297_spill]]  ;;  %v1564_v23 = vmul.f32 %v1563_v58, %v4158_v7 }
 0x5ae   : > { %v1413_v17 = vstv %s6165_s13  ;;  %s6171_s12 = sld [smem:[#allocation539_spill]]  ;;  %v1562_v1 = vadd.f32 %v1561_v41, %v1559_v40  ;;  %v1567_v51 = vmul.f32 %v1566_v15, %v4197_v3 }
 0x5af   : > { %v1513_v19 = vstv %s6166_s3  ;;  %s6172_s30 = sld [smem:[#allocation281_spill]]  ;;  %v1414_v37 = vadd.f32 %v1413_v17, %v1412_v44 }
 0x5b0   : > { %v1416_v27 = vstv %s6167_s11  ;;  %s6173_s1 = sld [smem:[#allocation269_spill]]  ;;  %v1514_v42 = vmul.f32 %v1513_v19, %v4213_v21  ;;  %v1565_v54 = vadd.f32 %v1564_v23, %v1562_v1 }
 0x5b1   : > { %v1469_v18 = vstv %s6168_s5  ;;  %s6174_s0 = sld [smem:[#allocation298_spill]]  ;;  %v1415_v28 = vmax.f32 %v1414_v37, 0.0 }
 0x5b2   : > { %v1569_v62 = vstv %s6169_s7  ;;  %s6175_s8 = sld [smem:[#allocation270_spill]]  ;;  %v1470_v63 = vmul.f32 %v1469_v18, %v4305_v34  ;;  %v1568_v2 = vadd.f32 %v1567_v51, %v1565_v54  ;;  %v1515_v26 = vadd.f32 %v1514_v42, %v1512_v24 }
 0x5b3   : > { %v1572_v32 = vstv %s6170_s10  ;;  %s6176_s2 = sld [smem:[#allocation271_spill]]  ;;  %v1570_v33 = vmul.f32 %v1569_v62, %v4199_v4  ;;  %v1417_v24 = vmul.f32 %v1416_v27, %v1415_v28 }
 0x5b4   : > { %v1419_v53 = vstv %s6171_s12  ;;  %s6177_s6 = sld [smem:[#allocation282_spill]]  ;;  %v1573_v5 = vmul.f32 %v1572_v32, %v4202_v9  ;;  %v1471_v19 = vadd.f32 %v1470_v63, %v1468_v8 }
 0x5b5   : > { %v1516_v52 = vstv %s6172_s30  ;;  %s6178_s5 = sld [smem:[#allocation500_spill]]  ;;  %v1571_v31 = vadd.f32 %v1570_v33, %v1568_v2  ;;  %v1420_v42 = vmul.f32 %v1419_v53, %v1415_v28 }
 0x5b6   : > { %v1472_v49 = vstv %s6173_s1  ;;  %s6179_s7 = sld [smem:[#allocation299_spill]]  ;;  %v1517_v50 = vmul.f32 %v1516_v52, %v4222_v29 }
 0x5b7   : > { %v1575_v45 = vstv %s6174_s0  ;;  %s6180_s13 = sld [smem:[#allocation283_spill]]  ;;  %v1473_v43 = vmul.f32 %v1472_v49, %v4354_v0  ;;  %v1574_v17 = vadd.f32 %v1573_v5, %v1571_v31 }
 0x5b8   : > { %v1475_v12 = vstv %s6175_s8  ;;  %s6181_s3 = sld [smem:[#allocation520_spill]]  ;;  %v1576_v10 = vmul.f32 %v1575_v45, %v4204_v11  ;;  %v1518_v23 = vadd.f32 %v1517_v50, %v1515_v26 }
 0x5b9   : > { %v1478_v47 = vstv %s6176_s2  ;;  %s6182_s11 = sld [smem:[#allocation540_spill]]  ;;  %v1476_v58 = vmul.f32 %v1475_v12, %v4356_v59  ;;  %v1474_v54 = vadd.f32 %v1473_v43, %v1471_v19 }
 0x5ba   : > { %v1519_v38 = vstv %s6177_s6  ;;  %s6183_s10 = sld [smem:[#allocation284_spill]]  ;;  %v1479_v41 = vmul.f32 %v1478_v47, %v4389_v60  ;;  %v1577_v62 = vadd.f32 %v1576_v10, %v1574_v17 }
 0x5bb   : > { %v1481_v14 = vstv %s6178_s5  ;;  %s6184_s12 = sld [smem:[#allocation285_spill]]  ;;  %v1520_v55 = vmul.f32 %v1519_v38, %v4224_v30  ;;  %v1477_v38 = vadd.f32 %v1476_v58, %v1474_v54 }
 0x5bc   : > { %v1578_v40 = vstv %s6179_s7  ;;  %s6185_s30 = sld [smem:[#allocation300_spill]] }
 0x5bd   : > { %v1522_v15 = vstv %s6180_s13  ;;  %s6186_s1 = sld [smem:[#allocation286_spill]]  ;;  %v1579_v44 = vmul.f32 %v1578_v40, %v4210_v57  ;;  %v1521_v33 = vadd.f32 %v1520_v55, %v1518_v23 }
 0x5be   : > { %s6187_s0 = sld [smem:[#allocation287_spill]]  ;;  %v1484_v48 = vstv %s6181_s3  ;;  %v1523_v20 = vmul.f32 %v1522_v15, %v4255_v16 }
 0x5bf   : > { %s6188_s8 = sld [smem:[#allocation312_spill]]  ;;  %v1487_v18 = vstv %s6182_s11  ;;  %v1580_v49 = vadd.f32 %v1579_v44, %v1577_v62  ;;  %v4788_v62 = vadd.f32 %v1417_v24, %v4741_v46  ;;  %v4797_v46 = vadd.f32 %v1420_v42, %v4749_v13 }
 0x5c0   : > { %s6189_s2 = sld [smem:[#allocation313_spill]]  ;;  %v1525_v1 = vstv %s6183_s10  ;;  %v1524_v31 = vadd.f32 %v1523_v20, %v1521_v33 }
 0x5c1   : > { %s6190_s6 = sld [smem:[#allocation301_spill]]  ;;  %v1528_v51 = vstv %s6184_s12  ;;  %v1526_v53 = vmul.f32 %v1525_v1, %v4265_v35 }
 0x5c2   : > { %s6191_s7 = sld [smem:[#allocation314_spill]]  ;;  %v1581_v25 = vstv %s6185_s30  ;;  %v1529_v26 = vmul.f32 %v1528_v51, %v4267_v36  ;;  %v1480_v51 = vadd.f32 %v1479_v41, %v1477_v38 }
 0x5c3   : > { %s6192_s13 = sld [smem:[#allocation315_spill]]  ;;  %v1531_v32 = vstv %s6186_s1  ;;  %v1582_v45 = vmul.f32 %v1581_v25, %v4213_v21  ;;  %v1527_v25 = vadd.f32 %v1526_v53, %v1524_v31 }
 0x5c4   : > { %s6193_s14 = sld [smem:[#allocation316_spill]]  ;;  %v1534_v52 = vstv %s6187_s0  ;;  %v1532_v19 = vmul.f32 %v1531_v32, %v4271_v39 }
 0x5c5   : > { %v1626_v22 = vstv %s6188_s8  ;;  %s6194_s15 = sld [smem:[#allocation317_spill]]  ;;  %v1583_v40 = vadd.f32 %v1582_v45, %v1580_v49  ;;  %v1535_v23 = vmul.f32 %v1534_v52, %v4287_v61 }
 0x5c6   : > { %v1628_v63 = vstv %s6189_s2  ;;  %v1627_v37 = vmul.f32 %v1626_v22, %v4142_v56  ;;  %s6195_s10 = sld [smem:[#allocation302_spill]] }
 0x5c7   : > { %v1629_v2 = vmul.f32 %v1628_v63, %v4156_v6  ;;  %v1584_v5 = vstv %s6190_s6  ;;  %s6196_s12 = sld [smem:[#allocation318_spill]] }
 0x5c8   : > { %v1631_v8 = vstv %s6191_s7  ;;  %s6197_s30 = sld [smem:[#allocation288_spill]]  ;;  %v1585_v28 = vmul.f32 %v1584_v5, %v4222_v29 }
 0x5c9   : > { %v1634_v12 = vstv %s6192_s13  ;;  %v1630_v50 = vadd.f32 %v1629_v2, %v1627_v37  ;;  %v1632_v47 = vmul.f32 %v1631_v8, %v4158_v7  ;;  %s6198_s1 = sld [smem:[#allocation303_spill]]  ;;  %v1482_v8 = vadd.f32 %v1481_v14, %v1480_v51 }
 0x5ca   : > { %v1637_v27 = vstv %s6193_s14  ;;  %v1635_v10 = vmul.f32 %v1634_v12, %v4197_v3  ;;  %s6199_s0 = sld [smem:[#allocation319_spill]]  ;;  %v1586_v52 = vadd.f32 %v1585_v28, %v1583_v40  ;;  %v1530_v12 = vadd.f32 %v1529_v26, %v1527_v25 }
 0x5cb   : > { %v1640_v43 = vstv %s6194_s15  ;;  %v1633_v15 = vadd.f32 %v1632_v47, %v1630_v50  ;;  %v1638_v17 = vmul.f32 %v1637_v27, %v4199_v4  ;;  %s6200_s14 = sld [smem:[#allocation289_spill]] }
 0x5cc   : > { %v1587_v55 = vstv %s6195_s10  ;;  %s6201_s8 = sld [smem:[#allocation290_spill]]  ;;  %v1641_v1 = vmul.f32 %v1640_v43, %v4202_v9 }
 0x5cd   : > { %v1643_v58 = vstv %s6196_s12  ;;  %s6202_s2 = sld [smem:[#allocation320_spill]]  ;;  %v1636_v20 = vadd.f32 %v1635_v10, %v1633_v15  ;;  %v1588_v33 = vmul.f32 %v1587_v55, %v4224_v30  ;;  %v1483_v15 = vmax.f32 %v1482_v8, 0.0 }
 0x5ce   : > { %v1537_v44 = vstv %s6197_s30  ;;  %s6203_s15 = sld [smem:[#allocation291_spill]]  ;;  %v1644_v63 = vmul.f32 %v1643_v58, %v4204_v11 }
 0x5cf   : > { %v1590_v54 = vstv %s6198_s1  ;;  %s6204_s6 = sld [smem:[#allocation304_spill]]  ;;  %v1639_v22 = vadd.f32 %v1638_v17, %v1636_v20  ;;  %v1538_v41 = vmul.f32 %v1537_v44, %v4305_v34  ;;  %v1589_v42 = vadd.f32 %v1588_v33, %v1586_v52 }
 0x5d0   : > { %v1646_v32 = vstv %s6199_s0  ;;  %s6205_s7 = sld [smem:[#allocation305_spill]]  ;;  %v1591_v27 = vmul.f32 %v1590_v54, %v4255_v16  ;;  %v1533_v17 = vadd.f32 %v1532_v19, %v1530_v12 }
 0x5d1   : > { %v1540_v24 = vstv %s6200_s14  ;;  %s6206_s13 = sld [smem:[#allocation321_spill]]  ;;  %v1642_v2 = vadd.f32 %v1641_v1, %v1639_v22  ;;  %v1647_v5 = vmul.f32 %v1646_v32, %v4210_v57 }
 0x5d2   : > { %v1543_v49 = vstv %s6201_s8  ;;  %s6207_s10 = sld [smem:[#allocation501_spill]]  ;;  %v1541_v38 = vmul.f32 %v1540_v24, %v4354_v0  ;;  %v1592_v44 = vadd.f32 %v1591_v27, %v1589_v42  ;;  %v1536_v24 = vadd.f32 %v1535_v23, %v1533_v17 }
 0x5d3   : > { %v1649_v45 = vstv %s6202_s2  ;;  %s6208_s12 = sld [smem:[#allocation521_spill]]  ;;  %v1645_v50 = vadd.f32 %v1644_v63, %v1642_v2  ;;  %v4813_v31 = vmul.f32 %v1543_v49, %v4356_v59  ;;  %v1485_v2 = vmul.f32 %v1484_v48, %v1483_v15 }
 0x5d4   : > { %v1546_v37 = vstv %s6203_s15  ;;  %s6209_s30 = sld [smem:[#allocation541_spill]]  ;;  %v1650_v47 = vmul.f32 %v1649_v45, %v4213_v21  ;;  %v1488_v27 = vmul.f32 %v1487_v18, %v1483_v15  ;;  %v1539_v48 = vadd.f32 %v1538_v41, %v1536_v24 }
 0x5d5   : > { %v1593_v13 = vstv %s6204_s6  ;;  %s6211_s0 = sld [smem:[#allocation332_spill]]  ;;  %v4816_v10 = vmul.f32 %v1546_v37, %v4389_v60  ;;  %v1648_v28 = vadd.f32 %v1647_v5, %v1645_v50 }
 0x5d6   : > { %v1596_v53 = vstv %s6205_s7  ;;  %s6212_s14 = sld [smem:[#allocation333_spill]]  ;;  %v1594_v55 = vmul.f32 %v1593_v13, %v4265_v35 }
 0x5d7   : > { %s6213_s8 = sld [smem:[#allocation334_spill]]  ;;  %v1652_v14 = vstv %s6206_s13  ;;  %v1597_v58 = vmul.f32 %v1596_v53, %v4267_v36  ;;  %v1651_v20 = vadd.f32 %v1650_v47, %v1648_v28 }
 0x5d8   : > { %s6214_s2 = sld [smem:[#allocation335_spill]]  ;;  %v1549_v26 = vstv %s6207_s10  ;;  %v1653_v1 = vmul.f32 %v1652_v14, %v4222_v29  ;;  %v1595_v5 = vadd.f32 %v1594_v55, %v1592_v44 }
 0x5d9   : > { %s6215_s15 = sld [smem:[#allocation306_spill]]  ;;  %v1552_v43 = vstv %s6208_s12 }
 0x5da   : > { %s6216_s6 = sld [smem:[#allocation322_spill]]  ;;  %v1555_v40 = vstv %s6209_s30  ;;  %v1654_v13 = vadd.f32 %v1653_v1, %v1651_v20  ;;  %v1598_v18 = vadd.f32 %v1597_v58, %v1595_v5  ;;  %v4853_v1 = vadd.f32 %v1485_v2, %v4788_v62 }
 0x5db   : > { %s6217_s7 = sld [smem:[#allocation307_spill]]  ;;  %v1694_v51 = vstv %s6211_s0 }
 0x5dc   : > { %s6218_s5 = sld [smem:[#allocation308_spill]]  ;;  %v1695_v25 = vmul.f32 %v1694_v51, %v4142_v56  ;;  %v1696_v54 = vstv %s6212_s14 }
 0x5dd   : > { %s6219_s16 = sld [smem:[#allocation336_spill]]  ;;  %v1699_v32 = vstv %s6213_s8  ;;  %v1697_v22 = vmul.f32 %v1696_v54, %v4156_v6  ;;  %v4858_v54 = vadd.f32 %v1488_v27, %v4797_v46 }
 0x5de   : > { %v1702_v52 = vstv %s6214_s2  ;;  %s6220_s13 = sld [smem:[#allocation337_spill]]  ;;  %v1700_v63 = vmul.f32 %v1699_v32, %v4158_v7 }
 0x5df   : > { %v1599_v19 = vstv %s6215_s15  ;;  %s6221_s30 = sld [smem:[#allocation323_spill]]  ;;  %v1698_v8 = vadd.f32 %v1697_v22, %v1695_v25  ;;  %v1703_v12 = vmul.f32 %v1702_v52, %v4197_v3 }
 0x5e0   : > { %v1655_v33 = vstv %s6216_s6  ;;  %s6222_s0 = sld [smem:[#allocation338_spill]]  ;;  %v1600_v23 = vmul.f32 %v1599_v19, %v4271_v39  ;;  %v1542_v19 = vadd.f32 %v1541_v38, %v1539_v48 }
 0x5e1   : > { %v1602_v49 = vstv %s6217_s7  ;;  %s6223_s17 = sld [smem:[#allocation309_spill]]  ;;  %v1656_v42 = vmul.f32 %v1655_v33, %v4224_v30  ;;  %v1701_v47 = vadd.f32 %v1700_v63, %v1698_v8 }
 0x5e2   : > { %v1605_v45 = vstv %s6218_s5  ;;  %s6224_s14 = sld [smem:[#allocation339_spill]]  ;;  %v1603_v28 = vmul.f32 %v1602_v49, %v4287_v61  ;;  %v1601_v63 = vadd.f32 %v1600_v23, %v1598_v18 }
 0x5e3   : > { %v1705_v37 = vstv %s6219_s16  ;;  %s6225_s5 = sld [smem:[#allocation324_spill]]  ;;  %v1606_v17 = vmul.f32 %v1605_v45, %v4305_v34  ;;  %v1704_v44 = vadd.f32 %v1703_v12, %v1701_v47  ;;  %v1657_v51 = vadd.f32 %v1656_v42, %v1654_v13 }
 0x5e4   : > { %v1708_v53 = vstv %s6220_s13  ;;  %v1706_v14 = vmul.f32 %v1705_v37, %v4199_v4  ;;  %s6226_s16 = sld [smem:[#allocation310_spill]]  ;;  %v1545_v13 = vadd.f32 %v4813_v31, %v1542_v19 }
 0x5e5   : > { %v1658_v50 = vstv %s6221_s30  ;;  %s6227_s8 = sld [smem:[#allocation340_spill]]  ;;  %v1709_v20 = vmul.f32 %v1708_v53, %v4202_v9 }
 0x5e6   : > { %v1711_v55 = vstv %s6222_s0  ;;  %s6228_s2 = sld [smem:[#allocation311_spill]]  ;;  %v1659_v41 = vmul.f32 %v1658_v50, %v4255_v16  ;;  %v1707_v58 = vadd.f32 %v1706_v14, %v1704_v44  ;;  %v1604_v50 = vadd.f32 %v1603_v28, %v1601_v63 }
 0x5e7   : > { %v1608_v15 = vstv %s6223_s17  ;;  %s6229_s15 = sld [smem:[#allocation502_spill]]  ;;  %v1712_v52 = vmul.f32 %v1711_v55, %v4204_v11 }
 0x5e8   : > { %v1714_v25 = vstv %s6224_s14  ;;  %s6230_s6 = sld [smem:[#allocation341_spill]]  ;;  %v1609_v33 = vmul.f32 %v1608_v15, %v4354_v0  ;;  %v1710_v49 = vadd.f32 %v1709_v20, %v1707_v58  ;;  %v1660_v37 = vadd.f32 %v1659_v41, %v1657_v51 }
 0x5e9   : > { %v1661_v32 = vstv %s6225_s5  ;;  %s6231_s7 = sld [smem:[#allocation325_spill]]  ;;  %v1715_v45 = vmul.f32 %v1714_v25, %v4210_v57 }
 0x5ea   : > { %v1611_v22 = vstv %s6226_s16  ;;  %s6232_s17 = sld [smem:[#allocation326_spill]]  ;;  %v1662_v2 = vmul.f32 %v1661_v32, %v4265_v35  ;;  %v1713_v12 = vadd.f32 %v1712_v52, %v1710_v49  ;;  %v1607_v52 = vadd.f32 %v1606_v17, %v1604_v50 }
 0x5eb   : > { %v1717_v62 = vstv %s6227_s8  ;;  %s6233_s13 = sld [smem:[#allocation342_spill]]  ;;  %v1612_v38 = vmul.f32 %v1611_v22, %v4356_v59  ;;  %v1548_v17 = vadd.f32 %v4816_v10, %v1545_v13 }
 0x5ec   : > { %v1614_v24 = vstv %s6228_s2  ;;  %s6234_s30 = sld [smem:[#allocation327_spill]]  ;;  %v1718_v27 = vmul.f32 %v1717_v62, %v4213_v21  ;;  %v1716_v14 = vadd.f32 %v1715_v45, %v1713_v12  ;;  %v1663_v55 = vadd.f32 %v1662_v2, %v1660_v37 }
 0x5ed   : > { %v1617_v46 = vstv %s6229_s15  ;;  %s6235_s0 = sld [smem:[#allocation352_spill]]  ;;  %v4875_v42 = vmul.f32 %v1614_v24, %v4389_v60 }
 0x5ee   : > { %v1720_v5 = vstv %s6230_s6  ;;  %s6236_s14 = sld [smem:[#allocation353_spill]]  ;;  %v1719_v31 = vadd.f32 %v1718_v27, %v1716_v14 }
 0x5ef   : > { %v1664_v8 = vstv %s6231_s7  ;;  %s6237_s5 = sld [smem:[#allocation343_spill]]  ;;  %v1721_v48 = vmul.f32 %v1720_v5, %v4222_v29 }
 0x5f0   : > { %s6238_s16 = sld [smem:[#allocation354_spill]]  ;;  %v1667_v53 = vstv %s6232_s17  ;;  %v1665_v18 = vmul.f32 %v1664_v8, %v4267_v36 }
 0x5f1   : > { %s6239_s8 = sld [smem:[#allocation355_spill]]  ;;  %v1723_v23 = vstv %s6233_s13  ;;  %v1722_v19 = vadd.f32 %v1721_v48, %v1719_v31  ;;  %v1668_v24 = vmul.f32 %v1667_v53, %v4271_v39 }
 0x5f2   : > { %s6240_s2 = sld [smem:[#allocation356_spill]]  ;;  %v1670_v47 = vstv %s6234_s30  ;;  %v1724_v20 = vmul.f32 %v1723_v23, %v4224_v30  ;;  %v1666_v63 = vadd.f32 %v1665_v18, %v1663_v55  ;;  %v1610_v23 = vadd.f32 %v1609_v33, %v1607_v52 }
 0x5f3   : > { %v1762_v15 = vstv %s6235_s0  ;;  %s6241_s6 = sld [smem:[#allocation357_spill]]  ;;  %v1671_v50 = vmul.f32 %v1670_v47, %v4287_v61  ;;  %v4910_v33 = vadd.f32 %v1549_v26, %v1548_v17 }
 0x5f4   : > { %v1764_v44 = vstv %s6236_s14  ;;  %v1763_v51 = vmul.f32 %v1762_v15, %v4142_v56  ;;  %s6242_s7 = sld [smem:[#allocation522_spill]]  ;;  %v1725_v37 = vadd.f32 %v1724_v20, %v1722_v19  ;;  %v1669_v55 = vadd.f32 %v1668_v24, %v1666_v63 }
 0x5f5   : > { %v1765_v41 = vmul.f32 %v1764_v44, %v4156_v6  ;;  %v1726_v25 = vstv %s6237_s5  ;;  %s6243_s17 = sld [smem:[#allocation344_spill]] }
 0x5f6   : > { %v1767_v32 = vstv %s6238_s16  ;;  %s6244_s13 = sld [smem:[#allocation358_spill]]  ;;  %v1727_v2 = vmul.f32 %v1726_v25, %v4255_v16  ;;  %v1613_v25 = vadd.f32 %v1612_v38, %v1610_v23  ;;  %v1672_v52 = vadd.f32 %v1671_v50, %v1669_v55 }
 0x5f7   : > { %v1770_v28 = vstv %s6239_s8  ;;  %v1766_v22 = vadd.f32 %v1765_v41, %v1763_v51  ;;  %v1768_v62 = vmul.f32 %v1767_v32, %v4158_v7  ;;  %s6245_s30 = sld [smem:[#allocation328_spill]] }
 0x5f8   : > { %v1773_v58 = vstv %s6240_s2  ;;  %v1771_v49 = vmul.f32 %v1770_v28, %v4197_v3  ;;  %s6246_s0 = sld [smem:[#allocation345_spill]]  ;;  %v1728_v10 = vadd.f32 %v1727_v2, %v1725_v37 }
 0x5f9   : > { %v1776_v45 = vstv %s6241_s6  ;;  %s6247_s14 = sld [smem:[#allocation359_spill]]  ;;  %v1769_v5 = vadd.f32 %v1768_v62, %v1766_v22  ;;  %v1774_v8 = vmul.f32 %v1773_v58, %v4199_v4 }
 0x5fa   : > { %v1620_v12 = vstv %s6242_s7  ;;  %s6248_s5 = sld [smem:[#allocation329_spill]]  ;;  %v1777_v48 = vmul.f32 %v1776_v45, %v4202_v9  ;;  %v1551_v45 = vmax.f32 %v4910_v33, 0.0 }
 0x5fb   : > { %v1729_v27 = vstv %s6243_s17  ;;  %s6249_s16 = sld [smem:[#allocation330_spill]]  ;;  %v1772_v14 = vadd.f32 %v1771_v49, %v1769_v5  ;;  %v1616_v5 = vadd.f32 %v4875_v42, %v1613_v25 }
 0x5fc   : > { %v1779_v53 = vstv %s6244_s13  ;;  %s6250_s8 = sld [smem:[#allocation360_spill]]  ;;  %v1730_v13 = vmul.f32 %v1729_v27, %v4265_v35 }
 0x5fd   : > { %v1673_v18 = vstv %s6245_s30  ;;  %s6251_s2 = sld [smem:[#allocation346_spill]]  ;;  %v1775_v31 = vadd.f32 %v1774_v8, %v1772_v14  ;;  %v1780_v20 = vmul.f32 %v1779_v53, %v4204_v11 }
 0x5fe   : > { %v1732_v15 = vstv %s6246_s0  ;;  %s6252_s6 = sld [smem:[#allocation361_spill]]  ;;  %v1674_v32 = vmul.f32 %v1673_v18, %v4305_v34  ;;  %v1731_v63 = vadd.f32 %v1730_v13, %v1728_v10 }
 0x5ff   : > { %v1782_v44 = vstv %s6247_s14  ;;  %s6253_s17 = sld [smem:[#allocation362_spill]]  ;;  %v1778_v28 = vadd.f32 %v1777_v48, %v1775_v31  ;;  %v1733_v19 = vmul.f32 %v1732_v15, %v4267_v36 }
 0x600   : > { %v1676_v47 = vstv %s6248_s5  ;;  %s6254_s13 = sld [smem:[#allocation331_spill]]  ;;  %v1783_v58 = vmul.f32 %v1782_v44, %v4210_v57  ;;  %v1675_v53 = vadd.f32 %v1674_v32, %v1672_v52 }
 0x601   : > { %v1679_v51 = vstv %s6249_s16  ;;  %s6255_s3 = sld [smem:[#allocation363_spill]]  ;;  %v1781_v26 = vadd.f32 %v1780_v20, %v1778_v28  ;;  %v1677_v38 = vmul.f32 %v1676_v47, %v4354_v0  ;;  %v1734_v48 = vadd.f32 %v1733_v19, %v1731_v63 }
 0x602   : > { %v1785_v41 = vstv %s6250_s8  ;;  %s6256_s30 = sld [smem:[#allocation347_spill]]  ;;  %v1680_v8 = vmul.f32 %v1679_v51, %v4356_v59 }
 0x603   : > { %v1735_v22 = vstv %s6251_s2  ;;  %v1786_v24 = vmul.f32 %v1785_v41, %v4213_v21  ;;  %s6257_s0 = sld [smem:[#allocation372_spill]]  ;;  %v1784_v17 = vadd.f32 %v1783_v58, %v1781_v26  ;;  %v1678_v51 = vadd.f32 %v1677_v38, %v1675_v53 }
 0x604   : > { %v1788_v62 = vstv %s6252_s6  ;;  %s6258_s14 = sld [smem:[#allocation373_spill]]  ;;  %v1736_v23 = vmul.f32 %v1735_v22, %v4271_v39  ;;  %v1553_v22 = vmul.f32 %v1552_v43, %v1551_v45 }
 0x605   : > { %v1791_v49 = vstv %s6253_s17  ;;  %s6259_s5 = sld [smem:[#allocation374_spill]]  ;;  %v1789_v27 = vmul.f32 %v1788_v62, %v4222_v29  ;;  %v1787_v55 = vadd.f32 %v1786_v24, %v1784_v17  ;;  %v4954_v17 = vadd.f32 %v1617_v46, %v1616_v5 }
 0x606   : > { %v1682_v37 = vstv %s6254_s13  ;;  %s6260_s16 = sld [smem:[#allocation375_spill]]  ;;  %v1792_v14 = vmul.f32 %v1791_v49, %v4224_v30  ;;  %v1737_v28 = vadd.f32 %v1736_v23, %v1734_v48  ;;  %v1556_v48 = vmul.f32 %v1555_v40, %v1551_v45 }
 0x607   : > { %v1794_v2 = vstv %s6255_s3  ;;  %s6261_s8 = sld [smem:[#allocation364_spill]]  ;;  %v1790_v31 = vadd.f32 %v1789_v27, %v1787_v55  ;;  %v1683_v62 = vmul.f32 %v1682_v37, %v4389_v60  ;;  %v1681_v37 = vadd.f32 %v1680_v8, %v1678_v51 }
 0x608   : > { %v1738_v50 = vstv %s6256_s30  ;;  %s6262_s2 = sld [smem:[#allocation348_spill]]  ;;  %v1795_v18 = vmul.f32 %v1794_v2, %v4255_v16  ;;  %v1554_v5 = vadd.f32 %v1553_v22, %v4853_v1 }
 0x609   : > { %s6263_s6 = sld [smem:[#allocation376_spill]]  ;;  %v1830_v15 = vstv %s6257_s0  ;;  %v1739_v41 = vmul.f32 %v1738_v50, %v4287_v61  ;;  %v1793_v58 = vadd.f32 %v1792_v14, %v1790_v31 }
 0x60a   : > { %v1831_v42 = vmul.f32 %v1830_v15, %v4142_v56  ;;  %v1832_v44 = vstv %s6258_s14  ;;  %s6264_s3 = sld [smem:[#allocation377_spill]] }
 0x60b   : > { %v1835_v10 = vstv %s6259_s5  ;;  %s6265_s17 = sld [smem:[#allocation365_spill]]  ;;  %v1833_v33 = vmul.f32 %v1832_v44, %v4156_v6  ;;  %v1796_v24 = vadd.f32 %v1795_v18, %v1793_v58  ;;  %v1740_v23 = vadd.f32 %v1739_v41, %v1737_v28 }
 0x60c   : > { %v1838_v13 = vstv %s6260_s16  ;;  %v1836_v47 = vmul.f32 %v1835_v10, %v4158_v7  ;;  %s6266_s13 = sld [smem:[#allocation349_spill]]  ;;  %v1619_v44 = vmax.f32 %v4954_v17, 0.0 }
 0x60d   : > { %v1797_v20 = vstv %s6261_s8  ;;  %s6267_s30 = sld [smem:[#allocation378_spill]]  ;;  %v1834_v52 = vadd.f32 %v1833_v33, %v1831_v42  ;;  %v1839_v19 = vmul.f32 %v1838_v13, %v4197_v3  ;;  %v1684_v13 = vadd.f32 %v1683_v62, %v1681_v37 }
 0x60e   : > { %v1741_v25 = vstv %s6262_s2  ;;  %s6268_s0 = sld [smem:[#allocation542_spill]]  ;;  %v1798_v63 = vmul.f32 %v1797_v20, %v4265_v35 }
 0x60f   : > { %v1841_v32 = vstv %s6263_s6  ;;  %s6269_s14 = sld [smem:[#allocation366_spill]]  ;;  %v1837_v38 = vadd.f32 %v1836_v47, %v1834_v52  ;;  %v1742_v27 = vmul.f32 %v1741_v25, %v4305_v34  ;;  %v1557_v25 = vadd.f32 %v1556_v48, %v4858_v54 }
 0x610   : > { %v1844_v26 = vstv %s6264_s3  ;;  %v1842_v2 = vmul.f32 %v1841_v32, %v4199_v4  ;;  %s6270_s5 = sld [smem:[#allocation503_spill]]  ;;  %v1799_v18 = vadd.f32 %v1798_v63, %v1796_v24  ;;  %v1621_v52 = vmul.f32 %v1620_v12, %v1619_v44 }
 0x611   : > { %v1800_v49 = vstv %s6265_s17  ;;  %s6271_s16 = sld [smem:[#allocation379_spill]]  ;;  %v1840_v50 = vadd.f32 %v1839_v19, %v1837_v38  ;;  %v1845_v14 = vmul.f32 %v1844_v26, %v4202_v9  ;;  %v1743_v31 = vadd.f32 %v1742_v27, %v1740_v23 }
 0x612   : > { %v1744_v43 = vstv %s6266_s13  ;;  %s6272_s8 = sld [smem:[#allocation350_spill]]  ;;  %v1801_v46 = vmul.f32 %v1800_v49, %v4267_v36 }
 0x613   : > { %v1847_v53 = vstv %s6267_s30  ;;  %s6273_s2 = sld [smem:[#allocation351_spill]]  ;;  %v1843_v42 = vadd.f32 %v1842_v2, %v1840_v50  ;;  %v1745_v40 = vmul.f32 %v1744_v43, %v4354_v0 }
 0x614   : > { %v1623_v55 = vstv %s6268_s0  ;;  %s6274_s6 = sld [smem:[#allocation367_spill]]  ;;  %v1848_v8 = vmul.f32 %v1847_v53, %v4204_v11  ;;  %v1802_v1 = vadd.f32 %v1801_v46, %v1799_v18 }
 0x615   : > { %v1803_v15 = vstv %s6269_s14  ;;  %s6275_s3 = sld [smem:[#allocation523_spill]]  ;;  %v1846_v33 = vadd.f32 %v1845_v14, %v1843_v42  ;;  %v1746_v26 = vadd.f32 %v1745_v40, %v1743_v31 }
 0x616   : > { %v1685_v10 = vstv %s6270_s5  ;;  %s6276_s17 = sld [smem:[#allocation543_spill]]  ;;  %v1804_v51 = vmul.f32 %v1803_v15, %v4271_v39 }
 0x617   : > { %v1850_v45 = vstv %s6271_s16  ;;  %s6277_s13 = sld [smem:[#allocation380_spill]]  ;;  %v1849_v28 = vadd.f32 %v1848_v8, %v1846_v33  ;;  %v1686_v63 = vadd.f32 %v1685_v10, %v1684_v13  ;;  %v1622_v33 = vadd.f32 %v1621_v52, %v1554_v5 }
 0x618   : > { %v1747_v20 = vstv %s6272_s8  ;;  %s6278_s30 = sld [smem:[#allocation368_spill]]  ;;  %v1851_v58 = vmul.f32 %v1850_v45, %v4210_v57  ;;  %v1805_v49 = vadd.f32 %v1804_v51, %v1802_v1 }
 0x619   : > { %v1750_v47 = vstv %s6273_s2  ;;  %s6279_s0 = sld [smem:[#allocation392_spill]]  ;;  %v1748_v22 = vmul.f32 %v1747_v20, %v4356_v59  ;;  %v1687_v48 = vmax.f32 %v1686_v63, 0.0 }
 0x61a   : > { %v1806_v41 = vstv %s6274_s6  ;;  %s6280_s14 = sld [smem:[#allocation393_spill]]  ;;  %v1751_v24 = vmul.f32 %v1750_v47, %v4389_v60  ;;  %v1852_v12 = vadd.f32 %v1851_v58, %v1849_v28  ;;  %v1624_v47 = vmul.f32 %v1623_v55, %v1619_v44 }
 0x61b   : > { %v1688_v32 = vstv %s6275_s3  ;;  %s6281_s5 = sld [smem:[#allocation381_spill]]  ;;  %v1807_v54 = vmul.f32 %v1806_v41, %v4287_v61  ;;  %v1749_v18 = vadd.f32 %v1748_v22, %v1746_v26 }
 0x61c   : > { %v1691_v19 = vstv %s6276_s17  ;;  %s6282_s16 = sld [smem:[#allocation394_spill]]  ;;  %v1689_v41 = vmul.f32 %v1688_v32, %v1687_v48  ;;  %v1625_v52 = vadd.f32 %v1624_v47, %v1557_v25 }
 0x61d   : > { %s6283_s8 = sld [smem:[#allocation395_spill]]  ;;  %v1853_v62 = vstv %s6277_s13  ;;  %v1808_v42 = vadd.f32 %v1807_v54, %v1805_v49  ;;  %v1752_v28 = vadd.f32 %v1751_v24, %v1749_v18  ;;  %v1692_v32 = vmul.f32 %v1691_v19, %v1687_v48 }
 0x61e   : > { %s6284_s2 = sld [smem:[#allocation396_spill]]  ;;  %v1809_v38 = vstv %s6278_s30  ;;  %v1854_v27 = vmul.f32 %v1853_v62, %v4213_v21 }
 0x61f   : > { %v1898_v2 = vstv %s6279_s0  ;;  %s6285_s6 = sld [smem:[#allocation369_spill]]  ;;  %v1810_v8 = vmul.f32 %v1809_v38, %v4305_v34  ;;  %v1693_v48 = vadd.f32 %v1692_v32, %v1625_v52 }
 0x620   : > { %v1900_v17 = vstv %s6280_s14  ;;  %v1899_v43 = vmul.f32 %v1898_v2, %v4142_v56  ;;  %s6286_s3 = sld [smem:[#allocation382_spill]]  ;;  %v1855_v45 = vadd.f32 %v1854_v27, %v1852_v12  ;;  %v1690_v2 = vadd.f32 %v1689_v41, %v1622_v33 }
 0x621   : > { %v1901_v53 = vmul.f32 %v1900_v17, %v4156_v6  ;;  %v1856_v37 = vstv %s6281_s5  ;;  %s6287_s17 = sld [smem:[#allocation397_spill]]  ;;  %v1811_v62 = vadd.f32 %v1810_v8, %v1808_v42 }
 0x622   : > { %v1903_v23 = vstv %s6282_s16  ;;  %s6288_s13 = sld [smem:[#allocation504_spill]]  ;;  %v1857_v13 = vmul.f32 %v1856_v37, %v4222_v29 }
 0x623   : > { %v1906_v50 = vstv %s6283_s8  ;;  %v1902_v46 = vadd.f32 %v1901_v53, %v1899_v43  ;;  %v1904_v15 = vmul.f32 %v1903_v23, %v4158_v7  ;;  %s6289_s30 = sld [smem:[#allocation370_spill]] }
 0x624   : > { %v1909_v14 = vstv %s6284_s2  ;;  %v1907_v40 = vmul.f32 %v1906_v50, %v4197_v3  ;;  %s6290_s0 = sld [smem:[#allocation383_spill]]  ;;  %v1858_v49 = vadd.f32 %v1857_v13, %v1855_v45 }
 0x625   : > { %v1812_v10 = vstv %s6285_s6  ;;  %v1905_v31 = vadd.f32 %v1904_v15, %v1902_v46  ;;  %v1910_v20 = vmul.f32 %v1909_v14, %v4199_v4  ;;  %s6291_s14 = sld [smem:[#allocation524_spill]] }
 0x626   : > { %v1859_v1 = vstv %s6286_s3  ;;  %s6292_s5 = sld [smem:[#allocation398_spill]]  ;;  %v1813_v63 = vmul.f32 %v1812_v10, %v4354_v0  ;;  %v1827_v10 = vstv %s5876_s4 }
 0x627   : > { %v1912_v51 = vstv %s6287_s17  ;;  %s6293_s9 = sld [smem:[#allocation544_spill]]  ;;  %v1908_v22 = vadd.f32 %v1907_v40, %v1905_v31  ;;  %v1860_v5 = vmul.f32 %v1859_v1, %v4224_v30 }
 0x628   : > { %v1753_v58 = vstv %s6288_s13  ;;  %s6294_s16 = sld [smem:[#allocation371_spill]]  ;;  %v1913_v44 = vmul.f32 %v1912_v51, %v4202_v9  ;;  %v1814_v43 = vadd.f32 %v1813_v63, %v1811_v62 }
 0x629   : > { %v1815_v26 = vstv %s6289_s30  ;;  %s6295_s8 = sld [smem:[#allocation384_spill]]  ;;  %v1911_v55 = vadd.f32 %v1910_v20, %v1908_v22  ;;  %v1754_v17 = vadd.f32 %v1753_v58, %v1752_v28  ;;  %v1861_v25 = vadd.f32 %v1860_v5, %v1858_v49 }
 0x62a   : > { %v1862_v54 = vstv %s6290_s0  ;;  %s6296_s2 = sld [smem:[#allocation385_spill]]  ;;  %v1816_v53 = vmul.f32 %v1815_v26, %v4356_v59 }
 0x62b   : > { %v1756_v24 = vstv %s6291_s14  ;;  %s6297_s6 = sld [smem:[#allocation505_spill]]  ;;  %v1863_v37 = vmul.f32 %v1862_v54, %v4255_v16  ;;  %v1914_v50 = vadd.f32 %v1913_v44, %v1911_v55  ;;  %v1755_v42 = vmax.f32 %v1754_v17, 0.0 }
 0x62c   : > { %v1915_v38 = vstv %s6292_s5  ;;  %s6298_s3 = sld [smem:[#allocation399_spill]]  ;;  %v1817_v45 = vadd.f32 %v1816_v53, %v1814_v43 }
 0x62d   : > { %s6299_s17 = sld [smem:[#allocation525_spill]]  ;;  %v1759_v12 = vstv %s6293_s9  ;;  %v1916_v14 = vmul.f32 %v1915_v38, %v4204_v11  ;;  %v1864_v33 = vadd.f32 %v1863_v37, %v1861_v25 }
 0x62e   : > { %v1818_v27 = vstv %s6294_s16  ;;  %s6300_s13 = sld [smem:[#allocation386_spill]]  ;;  %v1760_v43 = vmul.f32 %v1759_v12, %v1755_v42 }
 0x62f   : > { %v1865_v23 = vstv %s6295_s8  ;;  %s6301_s30 = sld [smem:[#allocation400_spill]]  ;;  %v1819_v18 = vmul.f32 %v1818_v27, %v4389_v60  ;;  %v1917_v47 = vadd.f32 %v1916_v14, %v1914_v50  ;;  %v1757_v27 = vmul.f32 %v1756_v24, %v1755_v42 }
 0x630   : > { %v1868_v19 = vstv %s6296_s2  ;;  %s6302_s0 = sld [smem:[#allocation412_spill]]  ;;  %v1866_v40 = vmul.f32 %v1865_v23, %v4265_v35 }
 0x631   : > { %s6303_s14 = sld [smem:[#allocation413_spill]]  ;;  %v1821_v46 = vstv %s6297_s6  ;;  %v1869_v13 = vmul.f32 %v1868_v19, %v4267_v36  ;;  %v1820_v49 = vadd.f32 %v1819_v18, %v1817_v45 }
 0x632   : > { %s6304_s5 = sld [smem:[#allocation414_spill]]  ;;  %v1918_v15 = vstv %s6298_s3  ;;  %v1867_v52 = vadd.f32 %v1866_v40, %v1864_v33 }
 0x633   : > { %s6305_s16 = sld [smem:[#allocation415_spill]]  ;;  %v1824_v8 = vstv %s6299_s17  ;;  %v1919_v1 = vmul.f32 %v1918_v15, %v4210_v57  ;;  %v1822_v14 = vadd.f32 %v1821_v46, %v1820_v49 }
 0x634   : > { %s6306_s1 = sld [smem:[#allocation387_spill]]  ;;  %v1871_v31 = vstv %s6300_s13  ;;  %v1870_v24 = vadd.f32 %v1869_v13, %v1867_v52 }
 0x635   : > { %s6307_s7 = sld [smem:[#allocation388_spill]]  ;;  %v1921_v20 = vstv %s6301_s30  ;;  %v1920_v32 = vadd.f32 %v1919_v1, %v1917_v47  ;;  %v1872_v53 = vmul.f32 %v1871_v31, %v4271_v39  ;;  %v1758_v31 = vadd.f32 %v1757_v27, %v1690_v2 }
 0x636   : > { %s6308_s8 = sld [smem:[#allocation401_spill]]  ;;  %v1966_v51 = vstv %s6302_s0  ;;  %v1922_v5 = vmul.f32 %v1921_v20, %v4213_v21  ;;  %v5050_v20 = vadd.f32 %v1760_v43, %v1693_v48 }
 0x637   : > { %s6309_s2 = sld [smem:[#allocation416_spill]]  ;;  %v1967_v41 = vmul.f32 %v1966_v51, %v4142_v56  ;;  %v1968_v28 = vstv %s6303_s14 }
 0x638   : > { %v1971_v58 = vstv %s6304_s5  ;;  %s6310_s6 = sld [smem:[#allocation417_spill]]  ;;  %v1969_v26 = vmul.f32 %v1968_v28, %v4156_v6  ;;  %v1923_v12 = vadd.f32 %v1922_v5, %v1920_v32 }
 0x639   : > { %v1974_v22 = vstv %s6305_s16  ;;  %s6311_s3 = sld [smem:[#allocation389_spill]]  ;;  %v1972_v54 = vmul.f32 %v1971_v58, %v4158_v7  ;;  %v1823_v58 = vmax.f32 %v1822_v14, 0.0 }
 0x63a   : > { %v1874_v62 = vstv %s6306_s1  ;;  %s6312_s13 = sld [smem:[#allocation402_spill]]  ;;  %v1970_v38 = vadd.f32 %v1969_v26, %v1967_v41  ;;  %v1975_v17 = vmul.f32 %v1974_v22, %v4197_v3  ;;  %v1873_v22 = vadd.f32 %v1872_v53, %v1870_v24 }
 0x63b   : > { %v1877_v63 = vstv %s6307_s7  ;;  %s6313_s30 = sld [smem:[#allocation418_spill]]  ;;  %v1875_v23 = vmul.f32 %v1874_v62, %v4287_v61  ;;  %v1825_v53 = vmul.f32 %v1824_v8, %v1823_v58 }
 0x63c   : > { %v1924_v55 = vstv %s6308_s8  ;;  %s6314_s1 = sld [smem:[#allocation390_spill]]  ;;  %v1973_v19 = vadd.f32 %v1972_v54, %v1970_v38  ;;  %v1878_v33 = vmul.f32 %v1877_v63, %v4305_v34 }
 0x63d   : > { %v1977_v44 = vstv %s6309_s2  ;;  %s6315_s7 = sld [smem:[#allocation391_spill]]  ;;  %v1925_v18 = vmul.f32 %v1924_v55, %v4222_v29  ;;  %v1895_v55 = vstv %s4059_s23 }
 0x63e   : > { %v1980_v37 = vstv %s6310_s6  ;;  %v1978_v50 = vmul.f32 %v1977_v44, %v4199_v4  ;;  %s6316_s0 = sld [smem:[#allocation419_spill]]  ;;  %v1976_v42 = vadd.f32 %v1975_v17, %v1973_v19 }
 0x63f   : > { %v1880_v25 = vstv %s6311_s3  ;;  %s6317_s14 = sld [smem:[#allocation506_spill]]  ;;  %v1981_v45 = vmul.f32 %v1980_v37, %v4202_v9  ;;  %v1926_v62 = vadd.f32 %v1925_v18, %v1923_v12  ;;  %v1828_v37 = vmul.f32 %v1827_v10, %v1823_v58 }
 0x640   : > { %v1927_v15 = vstv %s6312_s13  ;;  %s6318_s5 = sld [smem:[#allocation403_spill]]  ;;  %v1979_v46 = vadd.f32 %v1978_v50, %v1976_v42  ;;  %v1881_v13 = vmul.f32 %v1880_v25, %v4354_v0  ;;  %v1876_v25 = vadd.f32 %v1875_v23, %v1873_v22 }
 0x641   : > { %v1983_v40 = vstv %s6313_s30  ;;  %s6319_s16 = sld [smem:[#allocation526_spill]]  ;;  %v1928_v2 = vmul.f32 %v1927_v15, %v4224_v30 }
 0x642   : > { %v1883_v47 = vstv %s6314_s1  ;;  %v1984_v51 = vmul.f32 %v1983_v40, %v4204_v11  ;;  %s6320_s8 = sld [smem:[#allocation420_spill]]  ;;  %v1982_v63 = vadd.f32 %v1981_v45, %v1979_v46 }
 0x643   : > { %v1886_v1 = vstv %s6315_s7  ;;  %s6321_s2 = sld [smem:[#allocation404_spill]]  ;;  %v1884_v26 = vmul.f32 %v1883_v47, %v4356_v59  ;;  %v1929_v19 = vadd.f32 %v1928_v2, %v1926_v62  ;;  %v1879_v47 = vadd.f32 %v1878_v33, %v1876_v25 }
 0x644   : > { %v1986_v41 = vstv %s6316_s0  ;;  %s6322_s6 = sld [smem:[#allocation405_spill]]  ;;  %v5063_v54 = vmul.f32 %v1886_v1, %v4389_v60  ;;  %v1985_v52 = vadd.f32 %v1984_v51, %v1982_v63  ;;  %v5096_v33 = vadd.f32 %v1825_v53, %v1758_v31 }
 0x645   : > { %v1889_v28 = vstv %s6317_s14  ;;  %s6323_s3 = sld [smem:[#allocation406_spill]]  ;;  %v1987_v5 = vmul.f32 %v1986_v41, %v4210_v57 }
 0x646   : > { %v1930_v48 = vstv %s6318_s5  ;;  %s6324_s13 = sld [smem:[#allocation407_spill]] }
 0x647   : > { %v1892_v49 = vstv %s6319_s16  ;;  %s6325_s30 = sld [smem:[#allocation432_spill]]  ;;  %v1931_v44 = vmul.f32 %v1930_v48, %v4255_v16  ;;  %v1988_v50 = vadd.f32 %v1987_v5, %v1985_v52 }
 0x648   : > { %s6326_s1 = sld [smem:[#allocation433_spill]]  ;;  %v1989_v32 = vstv %s6320_s8 }
 0x649   : > { %s6327_s7 = sld [smem:[#allocation421_spill]]  ;;  %v1933_v38 = vstv %s6321_s2  ;;  %v1990_v14 = vmul.f32 %v1989_v32, %v4213_v21  ;;  %v1932_v1 = vadd.f32 %v1931_v44, %v1929_v19  ;;  %v5103_v19 = vadd.f32 %v1828_v37, %v5050_v20 }
 0x64a   : > { %v1936_v17 = vstv %s6322_s6  ;;  %s6328_s0 = sld [smem:[#allocation434_spill]]  ;;  %v1934_v40 = vmul.f32 %v1933_v38, %v4265_v35  ;;  %v1882_v38 = vadd.f32 %v1881_v13, %v1879_v47 }
 0x64b   : > { %v1939_v27 = vstv %s6323_s3  ;;  %s6329_s5 = sld [smem:[#allocation435_spill]]  ;;  %v1937_v8 = vmul.f32 %v1936_v17, %v4267_v36  ;;  %v1991_v41 = vadd.f32 %v1990_v14, %v1988_v50 }
 0x64c   : > { %v1942_v43 = vstv %s6324_s13  ;;  %s6330_s9 = sld [smem:[#allocation436_spill]]  ;;  %v1940_v22 = vmul.f32 %v1939_v27, %v4271_v39  ;;  %v1935_v17 = vadd.f32 %v1934_v40, %v1932_v1  ;;  %v1885_v20 = vadd.f32 %v1884_v26, %v1882_v38 }
 0x64d   : > { %v2034_v18 = vstv %s6325_s30  ;;  %s6331_s8 = sld [smem:[#allocation437_spill]]  ;;  %v1943_v44 = vmul.f32 %v1942_v43, %v4287_v61 }
 0x64e   : > { %v2036_v15 = vstv %s6326_s1  ;;  %s6332_s2 = sld [smem:[#allocation422_spill]]  ;;  %v2035_v12 = vmul.f32 %v2034_v18, %v4142_v56  ;;  %v1938_v37 = vadd.f32 %v1937_v8, %v1935_v17 }
 0x64f   : > { %v1992_v24 = vstv %s6327_s7  ;;  %v2037_v42 = vmul.f32 %v2036_v15, %v4156_v6  ;;  %s6333_s6 = sld [smem:[#allocation408_spill]] }
 0x650   : > { %v2039_v45 = vstv %s6328_s0  ;;  %s6334_s3 = sld [smem:[#allocation438_spill]]  ;;  %v1993_v2 = vmul.f32 %v1992_v24, %v4222_v29 }
 0x651   : > { %v2042_v10 = vstv %s6329_s5  ;;  %v2038_v46 = vadd.f32 %v2037_v42, %v2035_v12  ;;  %v2040_v51 = vmul.f32 %v2039_v45, %v4158_v7  ;;  %s6335_s13 = sld [smem:[#allocation439_spill]] }
 0x652   : > { %v2045_v23 = vstv %s6330_s9  ;;  %v2043_v48 = vmul.f32 %v2042_v10, %v4197_v3  ;;  %s6336_s30 = sld [smem:[#allocation409_spill]]  ;;  %v1994_v50 = vadd.f32 %v1993_v2, %v1991_v41 }
 0x653   : > { %v2048_v58 = vstv %s6331_s8  ;;  %s6337_s1 = sld [smem:[#allocation423_spill]]  ;;  %v2041_v63 = vadd.f32 %v2040_v51, %v2038_v46  ;;  %v2046_v5 = vmul.f32 %v2045_v23, %v4199_v4 }
 0x654   : > { %v1995_v62 = vstv %s6332_s2  ;;  %s6338_s9 = sld [smem:[#allocation410_spill]]  ;;  %v2049_v27 = vmul.f32 %v2048_v58, %v4202_v9 }
 0x655   : > { %v1945_v52 = vstv %s6333_s6  ;;  %s6339_s7 = sld [smem:[#allocation411_spill]]  ;;  %v2044_v25 = vadd.f32 %v2043_v48, %v2041_v63  ;;  %v1996_v14 = vmul.f32 %v1995_v62, %v4224_v30  ;;  %v1888_v62 = vadd.f32 %v5063_v54, %v1885_v20 }
 0x656   : > { %v2051_v32 = vstv %s6334_s3  ;;  %s6340_s0 = sld [smem:[#allocation440_spill]]  ;;  %v1946_v13 = vmul.f32 %v1945_v52, %v4305_v34  ;;  %v1941_v63 = vadd.f32 %v1940_v22, %v1938_v37 }
 0x657   : > { %v2054_v31 = vstv %s6335_s13  ;;  %s6341_s5 = sld [smem:[#allocation441_spill]]  ;;  %v2047_v18 = vadd.f32 %v2046_v5, %v2044_v25  ;;  %v2052_v15 = vmul.f32 %v2051_v32, %v4204_v11  ;;  %v1997_v23 = vadd.f32 %v1996_v14, %v1994_v50 }
 0x658   : > { %v1948_v53 = vstv %s6336_s30  ;;  %s6342_s8 = sld [smem:[#allocation424_spill]]  ;;  %v2055_v45 = vmul.f32 %v2054_v31, %v4210_v57 }
 0x659   : > { %v1998_v43 = vstv %s6337_s1  ;;  %s6343_s2 = sld [smem:[#allocation425_spill]]  ;;  %v2050_v42 = vadd.f32 %v2049_v27, %v2047_v18  ;;  %v1949_v10 = vmul.f32 %v1948_v53, %v4354_v0  ;;  %v1944_v18 = vadd.f32 %v1943_v44, %v1941_v63 }
 0x65a   : > { %v1951_v40 = vstv %s6338_s9  ;;  %s6344_s6 = sld [smem:[#allocation507_spill]]  ;;  %v1999_v47 = vmul.f32 %v1998_v43, %v4255_v16 }
 0x65b   : > { %v1954_v24 = vstv %s6339_s7  ;;  %s6345_s3 = sld [smem:[#allocation442_spill]]  ;;  %v2053_v41 = vadd.f32 %v2052_v15, %v2050_v42  ;;  %v5122_v26 = vmul.f32 %v1951_v40, %v4356_v59 }
 0x65c   : > { %v2057_v12 = vstv %s6340_s0  ;;  %s6346_s13 = sld [smem:[#allocation426_spill]]  ;;  %v5125_v8 = vmul.f32 %v1954_v24, %v4389_v60  ;;  %v2000_v32 = vadd.f32 %v1999_v47, %v1997_v23 }
 0x65d   : > { %v2060_v1 = vstv %s6341_s5  ;;  %s6347_s30 = sld [smem:[#allocation443_spill]]  ;;  %v2058_v2 = vmul.f32 %v2057_v12, %v4213_v21  ;;  %v2056_v5 = vadd.f32 %v2055_v45, %v2053_v41 }
 0x65e   : > { %v2001_v46 = vstv %s6342_s8  ;;  %s6348_s1 = sld [smem:[#allocation452_spill]]  ;;  %v2061_v52 = vmul.f32 %v2060_v1, %v4222_v29 }
 0x65f   : > { %v2004_v51 = vstv %s6343_s2  ;;  %s6349_s9 = sld [smem:[#allocation453_spill]]  ;;  %v2002_v38 = vmul.f32 %v2001_v46, %v4265_v35  ;;  %v2059_v27 = vadd.f32 %v2058_v2, %v2056_v5  ;;  %v5150_v46 = vadd.f32 %v1889_v28, %v1888_v62 }
 0x660   : > { %v1957_v48 = vstv %s6344_s6  ;;  %s6350_s7 = sld [smem:[#allocation454_spill]]  ;;  %v2005_v17 = vmul.f32 %v2004_v51, %v4267_v36  ;;  %v1947_v2 = vadd.f32 %v1946_v13, %v1944_v18 }
 0x661   : > { %v2063_v58 = vstv %s6345_s3  ;;  %s6351_s0 = sld [smem:[#allocation455_spill]]  ;;  %v2062_v15 = vadd.f32 %v2061_v52, %v2059_v27  ;;  %v2003_v12 = vadd.f32 %v2002_v38, %v2000_v32 }
 0x662   : > { %s6352_s5 = sld [smem:[#allocation427_spill]]  ;;  %v2007_v25 = vstv %s6346_s13  ;;  %v2064_v50 = vmul.f32 %v2063_v58, %v4224_v30 }
 0x663   : > { %s6353_s8 = sld [smem:[#allocation456_spill]]  ;;  %v2066_v14 = vstv %s6347_s30  ;;  %v2008_v58 = vmul.f32 %v2007_v25, %v4271_v39  ;;  %v2006_v62 = vadd.f32 %v2005_v17, %v2003_v12 }
 0x664   : > { %s6354_s2 = sld [smem:[#allocation444_spill]]  ;;  %v2102_v31 = vstv %s6348_s1  ;;  %v2067_v37 = vmul.f32 %v2066_v14, %v4255_v16  ;;  %v2065_v45 = vadd.f32 %v2064_v50, %v2062_v15 }
 0x665   : > { %v2103_v54 = vmul.f32 %v2102_v31, %v4142_v56  ;;  %v2104_v22 = vstv %s6349_s9  ;;  %s6355_s3 = sld [smem:[#allocation527_spill]]  ;;  %v2009_v12 = vadd.f32 %v2008_v58, %v2006_v62 }
 0x666   : > { %v2107_v53 = vstv %s6350_s7  ;;  %s6356_s4 = sld [smem:[#allocation428_spill]]  ;;  %v2105_v40 = vmul.f32 %v2104_v22, %v4156_v6  ;;  %v2068_v32 = vadd.f32 %v2067_v37, %v2065_v45  ;;  %v1950_v22 = vadd.f32 %v1949_v10, %v1947_v2 }
 0x667   : > { %v2110_v43 = vstv %s6351_s0  ;;  %s6357_s10 = sld [smem:[#allocation457_spill]]  ;;  %v2108_v24 = vmul.f32 %v2107_v53, %v4158_v7 }
 0x668   : > { %v2010_v20 = vstv %s6352_s5  ;;  %s6358_s13 = sld [smem:[#allocation458_spill]]  ;;  %v2106_v47 = vadd.f32 %v2105_v40, %v2103_v54  ;;  %v2111_v1 = vmul.f32 %v2110_v43, %v4197_v3 }
 0x669   : > { %v2113_v42 = vstv %s6353_s8  ;;  %s6359_s30 = sld [smem:[#allocation445_spill]]  ;;  %v2011_v52 = vmul.f32 %v2010_v20, %v4287_v61 }
 0x66a   : > { %v2069_v23 = vstv %s6354_s2  ;;  %s6360_s1 = sld [smem:[#allocation429_spill]]  ;;  %v2109_v63 = vadd.f32 %v2108_v24, %v2106_v47  ;;  %v2114_v5 = vmul.f32 %v2113_v42, %v4199_v4 }
 0x66b   : > { %v1960_v44 = vstv %s6355_s3  ;;  %s6361_s9 = sld [smem:[#allocation430_spill]]  ;;  %v2070_v38 = vmul.f32 %v2069_v23, %v4265_v35 }
 0x66c   : > { %v2013_v51 = vstv %s6356_s4  ;;  %s6362_s7 = sld [smem:[#allocation459_spill]]  ;;  %v2112_v50 = vadd.f32 %v2111_v1, %v2109_v63  ;;  %v1953_v1 = vadd.f32 %v5122_v26, %v1950_v22 }
 0x66d   : > { %v2116_v41 = vstv %s6357_s10  ;;  %s6363_s0 = sld [smem:[#allocation431_spill]]  ;;  %v2014_v25 = vmul.f32 %v2013_v51, %v4305_v34  ;;  %v2071_v15 = vadd.f32 %v2070_v38, %v2068_v32  ;;  %v2012_v38 = vadd.f32 %v2011_v52, %v2009_v12 }
 0x66e   : > { %s6364_s5 = sld [smem:[#allocation446_spill]]  ;;  %v2119_v28 = vstv %s6358_s13  ;;  %v2117_v13 = vmul.f32 %v2116_v41, %v4202_v9  ;;  %v2115_v43 = vadd.f32 %v2114_v5, %v2112_v50 }
 0x66f   : > { %s6365_s8 = sld [smem:[#allocation460_spill]]  ;;  %v2072_v27 = vstv %s6359_s30  ;;  %v2120_v18 = vmul.f32 %v2119_v28, %v4204_v11 }
 0x670   : > { %s6366_s4 = sld [smem:[#allocation447_spill]]  ;;  %v2016_v14 = vstv %s6360_s1  ;;  %v2073_v17 = vmul.f32 %v2072_v27, %v4267_v36  ;;  %v2118_v37 = vadd.f32 %v2117_v13, %v2115_v43 }
 0x671   : > { %v2019_v31 = vstv %s6361_s9  ;;  %s6367_s10 = sld [smem:[#allocation461_spill]]  ;;  %v2017_v45 = vmul.f32 %v2016_v14, %v4354_v0 }
 0x672   : > { %v2122_v54 = vstv %s6362_s7  ;;  %s6368_s2 = sld [smem:[#allocation462_spill]]  ;;  %v5175_v10 = vmul.f32 %v2019_v31, %v4356_v59  ;;  %v2121_v51 = vadd.f32 %v2120_v18, %v2118_v37  ;;  %v2074_v58 = vadd.f32 %v2073_v17, %v2071_v15 }
 0x673   : > { %v2022_v53 = vstv %s6363_s0  ;;  %s6369_s13 = sld [smem:[#allocation448_spill]]  ;;  %v2123_v42 = vmul.f32 %v2122_v54, %v4210_v57 }
 0x674   : > { %v2075_v40 = vstv %s6364_s5  ;;  %s6370_s30 = sld [smem:[#allocation449_spill]]  ;;  %v5178_v23 = vmul.f32 %v2022_v53, %v4389_v60 }
 0x675   : > { %v2125_v24 = vstv %s6365_s8  ;;  %s6371_s1 = sld [smem:[#allocation463_spill]]  ;;  %v2076_v63 = vmul.f32 %v2075_v40, %v4271_v39  ;;  %v2124_v62 = vadd.f32 %v2123_v42, %v2121_v51 }
 0x676   : > { %v2078_v20 = vstv %s6366_s4  ;;  %s6372_s9 = sld [smem:[#allocation472_spill]]  ;;  %v2126_v41 = vmul.f32 %v2125_v24, %v4213_v21 }
 0x677   : > { %v2128_v47 = vstv %s6367_s10  ;;  %s6373_s7 = sld [smem:[#allocation473_spill]]  ;;  %v2079_v5 = vmul.f32 %v2078_v20, %v4287_v61  ;;  %v2077_v43 = vadd.f32 %v2076_v63, %v2074_v58 }
 0x678   : > { %s6374_s0 = sld [smem:[#allocation464_spill]]  ;;  %v2131_v2 = vstv %s6368_s2  ;;  %v2129_v27 = vmul.f32 %v2128_v47, %v4222_v29  ;;  %v2127_v31 = vadd.f32 %v2126_v41, %v2124_v62 }
 0x679   : > { %s6375_s5 = sld [smem:[#allocation474_spill]]  ;;  %v2081_v32 = vstv %s6369_s13  ;;  %v2132_v26 = vmul.f32 %v2131_v2, %v4224_v30  ;;  %v2015_v2 = vadd.f32 %v2014_v25, %v2012_v38  ;;  %v2080_v58 = vadd.f32 %v2079_v5, %v2077_v43 }
 0x67a   : > { %s6376_s8 = sld [smem:[#allocation475_spill]]  ;;  %v2084_v28 = vstv %s6370_s30  ;;  %v2130_v17 = vadd.f32 %v2129_v27, %v2127_v31  ;;  %v2082_v20 = vmul.f32 %v2081_v32, %v4305_v34 }
 0x67b   : > { %s6377_s4 = sld [smem:[#allocation476_spill]]  ;;  %v2134_v50 = vstv %s6371_s1  ;;  %v2018_v31 = vadd.f32 %v2017_v45, %v2015_v2 }
 0x67c   : > { %s6378_s10 = sld [smem:[#allocation465_spill]]  ;;  %v2170_v13 = vstv %s6372_s9  ;;  %v2135_v40 = vmul.f32 %v2134_v50, %v4255_v16  ;;  %v2133_v42 = vadd.f32 %v2132_v26, %v2130_v17  ;;  %v2085_v50 = vmul.f32 %v2084_v28, %v4354_v0 }
 0x67d   : > { %v2172_v14 = vstv %s6373_s7  ;;  %s6379_s2 = sld [smem:[#allocation477_spill]]  ;;  %v2171_v22 = vmul.f32 %v2170_v13, %v4142_v56 }
 0x67e   : > { %v2137_v54 = vstv %s6374_s0  ;;  %v2173_v53 = vmul.f32 %v2172_v14, %v4156_v6  ;;  %s6380_s13 = sld [smem:[#allocation466_spill]]  ;;  %v2136_v32 = vadd.f32 %v2135_v40, %v2133_v42 }
 0x67f   : > { %v2175_v18 = vstv %s6375_s5  ;;  %s6381_s30 = sld [smem:[#allocation478_spill]]  ;;  %v2138_v47 = vmul.f32 %v2137_v54, %v4265_v35  ;;  %v2083_v54 = vadd.f32 %v2082_v20, %v2080_v58  ;;  %v2021_v20 = vadd.f32 %v5175_v10, %v2018_v31 }
 0x680   : > { %v2178_v52 = vstv %s6376_s8  ;;  %v2174_v24 = vadd.f32 %v2173_v53, %v2171_v22  ;;  %v2176_v12 = vmul.f32 %v2175_v18, %v4158_v7  ;;  %s6382_s1 = sld [smem:[#allocation450_spill]] }
 0x681   : > { %v2181_v15 = vstv %s6377_s4  ;;  %v2179_v56 = vmul.f32 %v2178_v52, %v4197_v3  ;;  %s6383_s9 = sld [smem:[#allocation467_spill]]  ;;  %v1956_v52 = vadd.f32 %v5125_v8, %v1953_v1 }
 0x682   : > { %v2140_v37 = vstv %s6378_s10  ;;  %s6384_s7 = sld [smem:[#allocation479_spill]]  ;;  %v2177_v51 = vadd.f32 %v2176_v12, %v2174_v24  ;;  %v2182_v41 = vmul.f32 %v2181_v15, %v4199_v4  ;;  %v2139_v4 = vadd.f32 %v2138_v47, %v2136_v32 }
 0x683   : > { %v2184_v6 = vstv %s6379_s2  ;;  %s6385_s0 = sld [smem:[#allocation468_spill]]  ;;  %v2141_v62 = vmul.f32 %v2140_v37, %v4267_v36  ;;  %v2086_v37 = vadd.f32 %v2085_v50, %v2083_v54  ;;  %v1891_v47 = vmax.f32 %v5150_v46, 0.0 }
 0x684   : > { %v2143_v63 = vstv %s6380_s13  ;;  %s6386_s5 = sld [smem:[#allocation480_spill]]  ;;  %v2180_v27 = vadd.f32 %v2179_v56, %v2177_v51  ;;  %v2185_v3 = vmul.f32 %v2184_v6, %v4202_v9  ;;  %v1958_v10 = vadd.f32 %v1957_v48, %v1956_v52 }
 0x685   : > { %v2187_v7 = vstv %s6381_s30  ;;  %s6387_s8 = sld [smem:[#allocation451_spill]]  ;;  %v2144_v25 = vmul.f32 %v2143_v63, %v4271_v39  ;;  %v2142_v9 = vadd.f32 %v2141_v62, %v2139_v4  ;;  %v1893_v48 = vmul.f32 %v1892_v49, %v1891_v47 }
 0x686   : > { %v2087_v26 = vstv %s6382_s1  ;;  %s6388_s4 = sld [smem:[#allocation469_spill]]  ;;  %v2183_v5 = vadd.f32 %v2182_v41, %v2180_v27  ;;  %v2188_v38 = vmul.f32 %v2187_v7, %v4204_v11  ;;  %v2024_v7 = vadd.f32 %v5178_v23, %v2021_v20 }
 0x687   : > { %v2146_v13 = vstv %s6383_s9  ;;  %s6389_s10 = sld [smem:[#allocation481_spill]]  ;;  %v2145_v11 = vadd.f32 %v2144_v25, %v2142_v9  ;;  %v1959_v23 = vmax.f32 %v1958_v10, 0.0 }
 0x688   : > { %v2190_v14 = vstv %s6384_s7  ;;  %s6390_s2 = sld [smem:[#allocation482_spill]]  ;;  %v2147_v28 = vmul.f32 %v2146_v13, %v4287_v61  ;;  %v2186_v43 = vadd.f32 %v2185_v3, %v2183_v5 }
 0x689   : > { %v2149_v22 = vstv %s6385_s0  ;;  %v2191_v18 = vmul.f32 %v2190_v14, %v4210_v57  ;;  %s6391_s13 = sld [smem:[#allocation508_spill]]  ;;  %v2088_v57 = vmul.f32 %v2087_v26, %v4356_v59  ;;  %v1896_v26 = vmul.f32 %v1895_v55, %v1891_v47 }
 0x68a   : > { %v2193_v53 = vstv %s6386_s5  ;;  %s6392_s30 = sld [smem:[#allocation470_spill]]  ;;  %v2150_v45 = vmul.f32 %v2149_v22, %v4305_v34  ;;  %v2189_v24 = vadd.f32 %v2188_v38, %v2186_v43  ;;  %v2148_v8 = vadd.f32 %v2147_v28, %v2145_v11 }
 0x68b   : > { %v2090_v15 = vstv %s6387_s8  ;;  %s6393_s1 = sld [smem:[#allocation483_spill]]  ;;  %v2194_v12 = vmul.f32 %v2193_v53, %v4213_v21  ;;  %v2089_v32 = vadd.f32 %v2088_v57, %v2086_v37  ;;  %v1963_v14 = vstv %s4061_s22 }
 0x68c   : > { %v2152_v17 = vstv %s6388_s4  ;;  %s6394_s9 = sld [smem:[#allocation484_spill]]  ;;  %v2192_v6 = vadd.f32 %v2191_v18, %v2189_v24  ;;  %v2151_v2 = vadd.f32 %v2150_v45, %v2148_v8  ;;  %v1894_v53 = vadd.f32 %v1893_v48, %v5096_v33 }
 0x68d   : > { %v2196_v40 = vstv %s6389_s10  ;;  %v2153_v1 = vmul.f32 %v2152_v17, %v4354_v0  ;;  %s6395_s7 = sld [smem:[#allocation471_spill]]  ;;  %v1897_v9 = vadd.f32 %v1896_v26, %v5103_v19  ;;  %v1961_v28 = vmul.f32 %v1960_v44, %v1959_v23 }
 0x68e   : > { %v2199_v56 = vstv %s6390_s2  ;;  %v2197_v42 = vmul.f32 %v2196_v40, %v4222_v29  ;;  %s6396_s0 = sld [smem:[#allocation485_spill]]  ;;  %v2195_v58 = vadd.f32 %v2194_v12, %v2192_v6  ;;  %v2091_v29 = vmul.f32 %v2090_v15, %v4389_v60 }
 0x68f   : > { %v2025_v51 = vstv %s6391_s13  ;;  %v2200_v63 = vmul.f32 %v2199_v56, %v4224_v30  ;;  %s6397_s5 = sld [smem:[#allocation509_spill]]  ;;  %v2154_v62 = vadd.f32 %v2153_v1, %v2151_v2  ;;  %v1964_v43 = vmul.f32 %v1963_v14, %v1959_v23 }
 0x690   : > { %v2155_v41 = vstv %s6392_s30  ;;  %s6398_s8 = sld [smem:[#allocation486_spill]]  ;;  %v2198_v3 = vadd.f32 %v2197_v42, %v2195_v58  ;;  %v2026_v5 = vadd.f32 %v2025_v51, %v2024_v7  ;;  %v2092_v38 = vadd.f32 %v2091_v29, %v2089_v32 }
 0x691   : > { %v2202_v21 = vstv %s6393_s1  ;;  %v2156_v27 = vmul.f32 %v2155_v41, %v4356_v59  ;;  %s6399_s4 = sld [smem:[#allocation487_spill]]  ;;  %v1962_v44 = vadd.f32 %v1961_v28, %v1894_v53  ;;  %v1965_v20 = vadd.f32 %v1964_v43, %v1897_v9  ;;  %v2831_v9 = vld [vmem:[%s4087_s26 + $0x10] sm:$0xff] }
 0x692   : > { %v2205_v46 = vstv %s6394_s9  ;;  %v2203_v50 = vmul.f32 %v2202_v21, %v4255_v16  ;;  %v2201_v4 = vadd.f32 %v2200_v63, %v2198_v3  ;;  %s6400_s10 = sld [smem:[#allocation528_spill]]  ;;  %v2027_v15 = vmax.f32 %v2026_v5, 0.0 }
 0x693   : > { %v2158_v13 = vstv %s6395_s7  ;;  %v2206_v25 = vmul.f32 %v2205_v46, %v4265_v35  ;;  %s6401_s2 = sld [smem:[#allocation488_spill]]  ;;  %v2157_v16 = vadd.f32 %v2156_v27, %v2154_v62 }
 0x694   : > { %v2208_v30 = vstv %s6396_s0  ;;  %s6402_s13 = sld [smem:[#allocation546_spill]]  ;;  %v2159_v49 = vmul.f32 %v2158_v13, %v4389_v60  ;;  %v2204_v55 = vadd.f32 %v2203_v50, %v2201_v4 }
 0x695   : > { %v2093_v31 = vstv %s6397_s5  ;;  %v2209_v22 = vmul.f32 %v2208_v30, %v4267_v36  ;;  %s6403_s30 = sld [smem:[#allocation510_spill]] }
 0x696   : > { %v2211_v54 = vstv %s6398_s8  ;;  %s6404_s1 = sld [smem:[#allocation489_spill]]  ;;  %v2207_v18 = vadd.f32 %v2206_v25, %v2204_v55  ;;  %v2094_v40 = vadd.f32 %v2093_v31, %v2092_v38  ;;  %v2160_v45 = vadd.f32 %v2159_v49, %v2157_v16 }
 0x697   : > { %v2214_v35 = vstv %s6399_s4  ;;  %v2212_v52 = vmul.f32 %v2211_v54, %v4271_v39  ;;  %s6405_s9 = sld [smem:[#allocation490_spill]] }
 0x698   : > { %v2028_v17 = vstv %s6400_s10  ;;  %s6406_s7 = sld [smem:[#allocation529_spill]]  ;;  %v2210_v24 = vadd.f32 %v2209_v22, %v2207_v18  ;;  %v2215_v33 = vmul.f32 %v2214_v35, %v4287_v61  ;;  %v2095_v8 = vmax.f32 %v2094_v40, 0.0  ;;  %v2830_v22 = vld [vmem:[%s4087_s26] sm:$0xff] }
 0x699   : > { %v2217_v11 = vstv %s6401_s2  ;;  %s6407_s0 = sld [smem:[#allocation547_spill]]  ;;  %v2029_v57 = vmul.f32 %v2028_v17, %v2027_v15 }
 0x69a   : > { %v2031_v36 = vstv %s6402_s13  ;;  %s6408_s5 = sld [smem:[#allocation491_spill]]  ;;  %v2213_v37 = vadd.f32 %v2212_v52, %v2210_v24  ;;  %v2218_v39 = vmul.f32 %v2217_v11, %v4305_v34 }
 0x69b   : > { %v2161_v19 = vstv %s6403_s30  ;;  %v2032_v56 = vmul.f32 %v2031_v36, %v2027_v15  ;;  %s6409_s8 = sld [smem:[#allocation530_spill]]  ;;  %v2030_v2 = vadd.f32 %v2029_v57, %v1962_v44 }
 0x69c   : > { %v2220_v12 = vstv %s6404_s1  ;;  %s6410_s4 = sld [smem:[#allocation548_spill]]  ;;  %v2162_v42 = vadd.f32 %v2161_v19, %v2160_v45  ;;  %v2216_v47 = vadd.f32 %v2215_v33, %v2213_v37 }
 0x69d   : > { %v2223_v1 = vstv %s6405_s9  ;;  %v2221_v51 = vmul.f32 %v2220_v12, %v4354_v0  ;;  %s6411_s10 = sld [smem:[#allocation511_spill]]  ;;  %v2033_v58 = vadd.f32 %v2032_v56, %v1965_v20 }
 0x69e   : > { %v2096_v6 = vstv %s6406_s7  ;;  %v2219_v21 = vadd.f32 %v2218_v39, %v2216_v47  ;;  %v2224_v10 = vmul.f32 %v2223_v1, %v4356_v59  ;;  %s6412_s2 = sld [smem:[#allocation531_spill]]  ;;  %v2163_v7 = vmax.f32 %v2162_v42, 0.0 }
 0x69f   : > { %v2099_v61 = vstv %s6407_s0  ;;  %v2097_v34 = vmul.f32 %v2096_v6, %v2095_v8  ;;  %s6413_s13 = sld [smem:[#allocation549_spill]] }
 0x6a0   : > { %v2226_v41 = vstv %s6408_s5  ;;  %v2100_v63 = vmul.f32 %v2099_v61, %v2095_v8  ;;  %v2222_v32 = vadd.f32 %v2221_v51, %v2219_v21  ;;  %s6414_s30 = sld [smem:[#allocation550_spill]] }
 0x6a1   : > { %v2227_v29 = vmul.f32 %v2226_v41, %v4389_v60  ;;  %v2164_v46 = vstv %s6409_s8  ;;  %s6415_s1 = sld [smem:[#allocation551_spill]]  ;;  %v2098_v27 = vadd.f32 %v2097_v34, %v2030_v2 }
 0x6a2   : > { %v2167_v62 = vstv %s6410_s4  ;;  %v2225_v0 = vadd.f32 %v2224_v10, %v2222_v32  ;;  %v2101_v50 = vadd.f32 %v2100_v63, %v2033_v58  ;;  %v2165_v48 = vmul.f32 %v2164_v46, %v2163_v7  ;;  %s6416_s0 = sld [smem:[#allocation555_spill]] }
 0x6a3   : > { %v2229_v3 = vstv %s6411_s10  ;;  %v2168_v59 = vmul.f32 %v2167_v62, %v2163_v7  ;;  %s6417_s8 = sld [smem:[#allocation552_spill]] }
 0x6a4   : > { %v2228_v26 = vadd.f32 %v2227_v29, %v2225_v0  ;;  %v2232_v30 = vstv %s6412_s2  ;;  %v2166_v14 = vadd.f32 %v2165_v48, %v2098_v27 }
 0x6a5   : > { %v2235_v23 = vstv %s6413_s13  ;;  %v2169_v4 = vadd.f32 %v2168_v59, %v2101_v50 }
 0x6a6   : > { %v2230_v13 = vadd.f32 %v2229_v3, %v2228_v26  ;;  %v2238_v38 = vstv %s6414_s30 }
 0x6a7   : > { %v2243_v31 = vstv %s6415_s1 }
 0x6a8   : > { %v2231_v60 = vmax.f32 %v2230_v13, 0.0  ;;  %s2241_s5 = scalar_lea.vmem %s6416_s0, %s4081_s27 }
 0x6a9   : > { %s651_s30 = sadd.s32 1, %s6417_s8  }
 0x6aa   : > { %v2233_v25 = vmul.f32 %v2232_v30, %v2231_v60  ;;  %v2236_v5 = vmul.f32 %v2235_v23, %v2231_v60  ;;  %p648_p2 = scmp.ge.s32.totalorder %s651_s30, 2  }
 0x6ac   : > { %v2234_v54 = vadd.f32 %v2233_v25, %v2166_v14  ;;  %v2237_v16 = vadd.f32 %v2236_v5, %v2169_v4 }
 0x6ae   : > { %v2239_v49 = vadd.f32 %v2238_v38, %v2234_v54  ;;  %v2244_v55 = vadd.f32 %v2243_v31, %v2237_v16  ;;  %650 = sbr.rel (!%p648_p2) target bundleno = 1159 (0x487), region = 88 }
 0x6b0   : > { %v2240_v53 = vadd.f32 %v2830_v22, %v2239_v49  ;;  %v2245_v35 = vadd.f32 %v2831_v9, %v2244_v55 }
 0x6b2   : > { %2242 = vst [vmem:[%s2241_s5] sm:$0xff] %v2240_v53  ;;  %2813 = vst [vmem:[%s2241_s5 + $0x10] sm:$0xff] %v2245_v35 }
 0x6b3   :  { %2252 = vsyncpa [#allocation3], 1 }
 0x6b4   :  { %2253 = vsyncpa [#allocation5], 1 }
 0x6b5   :  { %2254 = vsyncpa [#allocation8], 1 }
 0x6b6   :  { %2255 = vsyncpa [#allocation11], 1 }

</bundles_post_ra>
